<compile_context>
chip_gen: v5e
topology: v5e:2x2
jax: 0.10.0
libtpu: 0.0.40
codegen_flags: <defaults>
</compile_context>

<pallas_src>
import numpy as np
import jax
import jax.numpy as jnp
from jax.experimental import pallas as pl
from jax.experimental.pallas import tpu as pltpu

LANE = 128
_CP = pltpu.CompilerParams(dimension_semantics=("parallel",))


def _round_up(x, m):
    return (x + m - 1) // m * m


def _m_tile(mp):
    # Largest tile in {512, 256, 128} dividing mp that leaves >=2 grid steps
    # (so v7x megacore can shard the spatial axis); otherwise one full block.
    for tm in (512, 256, 128):
        if mp % tm == 0 and mp // tm >= 2:
            return tm
    return mp


# ----------------------------- Pallas kernels ------------------------------

def _make_conv_kernel(relu, has_gdn, has_res):
    """out = [res +] [GDN(] relu?(W @ cols + b) [)]   (lane-dense (Cout, Mtile))."""
    def kernel(*refs):
        w_ref, a_ref, b_ref = refs[0], refs[1], refs[2]
        i = 3
        if has_gdn:
            g_ref, bt_ref = refs[i], refs[i + 1]
            i += 2
        if has_res:
            r_ref = refs[i]
            i += 1
        o_ref = refs[i]
        a = a_ref[...]
        if a.dtype != jnp.bfloat16:
            a = a.astype(jnp.bfloat16)          # bf16 MXU operands, f32 accumulate
        y = jnp.dot(w_ref[...], a, preferred_element_type=jnp.float32) + b_ref[...]
        if relu:
            y = jnp.maximum(y, 0.0)
        if has_gdn:
            n = jnp.dot(g_ref[...], y * y,
                        preferred_element_type=jnp.float32) + bt_ref[...]
            y = y * jax.lax.rsqrt(n)            # rsqrt -> EUP slot
        if has_res:
            y = y + r_ref[...]
        o_ref[...] = y.astype(o_ref.dtype)
    return kernel


def _make_gate_kernel(has_mul):
    """Fused Trunk tail: out = (t * sigmoid(Wr @ r + br) + x) [* middle_map]."""
    def kernel(*refs):
        w_ref, r_ref, b_ref, t_ref, x_ref = refs[:5]
        i = 5
        if has_mul:
            m_ref = refs[i]
            i += 1
        o_ref = refs[i]
        r = r_ref[...].astype(jnp.bfloat16)
        z = jnp.dot(w_ref[...], r, preferred_element_type=jnp.float32) + b_ref[...]
        s = 1.0 / (1.0 + jnp.exp(-z))           # exp -> EUP slot
        y = t_ref[...] * s + x_ref[...]
        if has_mul:
            y = y * m_ref[...]
        o_ref[...] = y.astype(o_ref.dtype)
    return kernel


def _attn_kernel(th_ref, ph_ref, g_ref, o_ref):
    th = th_ref[0]                                  # (L, C2)
    ph = ph_ref[0]                                  # (C2, L)
    g = g_ref[0]                                    # (L, C2)
    f = jnp.dot(th, ph, preferred_element_type=jnp.float32)
    f = f - jnp.max(f, axis=-1, keepdims=True)
    e = jnp.exp(f)
    p = e / jnp.sum(e, axis=-1, keepdims=True)
    o_ref[0] = jnp.dot(p, g, preferred_element_type=jnp.float32).astype(o_ref.dtype)


# ----------------------------- Pallas wrappers ------------------------------

def conv_call(a, prep, *, relu=False, res=None, gdn=None):
    """Flipped-orientation conv matmul with fused epilogues.

    a    : (K, Mp)  im2col cols (bf16) or activation (f32, 1x1 conv)
    prep : {"w": (Cout, K) bf16, "b": (Cout, 1) f32}
    res  : optional (Cout, Mp) f32 residual
    gdn  : optional {"gamma": (Cout, Cout) f32, "beta": (Cout, 1) f32}
    """
    wmat, bias = prep["w"], prep["b"]
    cout, kdim = wmat.shape
    mp = a.shape[1]
    tm = _m_tile(mp)

    def full(r, c):
        return pl.BlockSpec((r, c), lambda i: (0, 0))

    def col(r):
        return pl.BlockSpec((r, tm), lambda i: (0, i))

    inputs = [wmat, a, bias]
    in_specs = [full(cout, kdim), col(kdim), full(cout, 1)]
    if gdn is not None:
        inputs += [gdn["gamma"], gdn["beta"]]
        in_specs += [full(cout, cout), full(cout, 1)]
    if res is not None:
        inputs.append(res)
        in_specs.append(col(cout))

    return pl.pallas_call(
        _make_conv_kernel(relu, gdn is not None, res is not None),
        out_shape=jax.ShapeDtypeStruct((cout, mp), jnp.float32),
        grid=(mp // tm,),
        in_specs=in_specs,
        out_specs=col(cout),
        compiler_params=_CP,
    )(*inputs)


def gate_call(r_act, prep, t_act, x_act, mm=None):
    """Fused: (t * sigmoid(conv1x1(r)) + x) [* middle_map]."""
    wmat, bias = prep["w"], prep["b"]
    cout, cin = wmat.shape
    mp = r_act.shape[1]
    tm = _m_tile(mp)

    def full(r, c):
        return pl.BlockSpec((r, c), lambda i: (0, 0))

    def col(r):
        return pl.BlockSpec((r, tm), lambda i: (0, i))

    inputs = [wmat, r_act, bias, t_act, x_act]
    in_specs = [full(cout, cin), col(cin), full(cout, 1), col(cout), col(cout)]
    if mm is not None:
        inputs.append(mm)
        in_specs.append(col(1))

    return pl.pallas_call(
        _make_gate_kernel(mm is not None),
        out_shape=jax.ShapeDtypeStruct((cout, mp), jnp.float32),
        grid=(mp // tm,),
        in_specs=in_specs,
        out_specs=col(cout),
        compiler_params=_CP,
    )(*inputs)


def attention_call(th, ph, g):
    b, l, c2 = th.shape
    spec_lc = pl.BlockSpec((1, l, c2), lambda i: (i, 0, 0))
    spec_cl = pl.BlockSpec((1, c2, l), lambda i: (i, 0, 0))
    return pl.pallas_call(
        _attn_kernel,
        out_shape=jax.ShapeDtypeStruct((b, l, c2), jnp.float32),
        grid=(b,),
        in_specs=[spec_lc, spec_cl, spec_lc],
        out_specs=spec_lc,
        compiler_params=_CP,
    )(th, ph, g)


# ----------------------------- layout helpers -------------------------------

def to_act(x_nchw):
    """NCHW -> persistent (C, Mp) channel-major layout (spatial on lanes)."""
    b, c, h, w = x_nchw.shape
    m = b * h * w
    mp = _round_up(m, LANE)
    d = jnp.transpose(x_nchw, (1, 0, 2, 3)).reshape(c, m)
    if mp != m:
        d = jnp.pad(d, ((0, 0), (0, mp - m)))
    return d, (b, h, w)


def from_act(d, shape):
    b, h, w = shape
    c = d.shape[0]
    m = b * h * w
    return jnp.transpose(d[:, :m].reshape(c, b, h, w), (1, 0, 2, 3))


def _im2col(act, shape, k, stride, pad):
    """(C, Mp) activation -> (k*k*C, Mp_out) bf16 cols in W @ cols orientation."""
    b, h, w = shape
    c = act.shape[0]
    m = b * h * w
    x = act[:, :m].reshape(c, b, h, w)
    xp = jnp.pad(x, ((0, 0), (0, 0), (pad, pad), (pad, pad)))
    ho = (h + 2 * pad - k) // stride + 1
    wo = (w + 2 * pad - k) // stride + 1
    taps = []
    for di in range(k):
        for dj in range(k):
            taps.append(xp[:, :, di:di + stride * ho:stride,
                           dj:dj + stride * wo:stride])
    cols = jnp.stack(taps, axis=0).reshape(k * k * c, b * ho * wo)
    cols = cols.astype(jnp.bfloat16)
    mo = b * ho * wo
    mop = _round_up(mo, LANE)
    if mop != mo:
        cols = jnp.pad(cols, ((0, 0), (0, mop - mo)))
    return cols, (b, ho, wo)


# ----------------------------- NN building blocks ---------------------------

def conv(act, shape, prep, k, stride, pad, *, relu=False, res=None, gdn=None):
    if k == 1 and stride == 1 and pad == 0:
        a, out_shape = act, shape
    else:
        a, out_shape = _im2col(act, shape, k, stride, pad)
    return conv_call(a, prep, relu=relu, res=res, gdn=gdn), out_shape


def resblock_fwd(p, act, shape):
    h1, _ = conv(act, shape, p["conv1"], 3, 1, 1, relu=True)
    out, _ = conv(h1, shape, p["conv2"], 3, 1, 1, res=act)
    return out


def resgdn_fwd(p, act, shape):
    h1, _ = conv(act, shape, p["conv1"], 3, 1, 1, gdn=p["gdn1"])
    out, _ = conv(h1, shape, p["conv2"], 3, 1, 1, gdn=p["gdn2"], res=act)
    return out


def nonlocal_fwd(p, act, shape):
    b, h, w = shape
    l = h * w
    m = b * l
    mp = act.shape[1]
    c2 = p["wz"]["w"].shape[1]
    tpg = conv_call(act, p["tpg"])                    # fused theta/phi/g 1x1 conv
    tpg3 = tpg[:, :m].reshape(3, c2, b, l)
    th = jnp.transpose(tpg3[0], (1, 2, 0))            # (B, L, C2)
    ph = jnp.transpose(tpg3[1], (1, 0, 2))            # (B, C2, L)
    g = jnp.transpose(tpg3[2], (1, 2, 0))             # (B, L, C2)
    y = attention_call(th, ph, g)                     # (B, L, C2)
    y2 = jnp.transpose(y, (2, 0, 1)).reshape(c2, m)   # (C2, M)
    if mp != m:
        y2 = jnp.pad(y2, ((0, 0), (0, mp - m)))
    return conv_call(y2, p["wz"], res=act)            # W conv + residual


def trunk_fwd(p, act, shape, flag, with_resgdn, mm=None):
    t = act
    for rp in p["trunk_res"]:
        t = resblock_fwd(rp, t, shape)
    if with_resgdn:
        t = resgdn_fwd(p["resgdn"], t, shape)
    r = act
    if flag:
        r = nonlocal_fwd(p["nonlocal"], r, shape)
    for rp in p["rab_res"]:
        r = resblock_fwd(rp, r, shape)
    return gate_call(r, p["rab_conv"], t, act, mm=mm)


# ----------------------------- parameter init -------------------------------

def conv_params(key, cin, cout, k):
    kw_, kb_ = jax.random.split(key)
    bound = 1.0 / np.sqrt(cin * k * k)
    w = jax.random.uniform(kw_, (cout, cin, k, k), jnp.float32, -bound, bound)
    b = jax.random.uniform(kb_, (cout,), jnp.float32, -bound, bound)
    return {"w": w, "b": b}


def gdn_params(c):
    return {"gamma": 0.1 * jnp.eye(c, dtype=jnp.float32),
            "beta": jnp.ones((c,), jnp.float32)}


def resblock_params(key, c):
    k1, k2 = jax.random.split(key)
    return {"conv1": conv_params(k1, c, c, 3), "conv2": conv_params(k2, c, c, 3)}


def resgdn_params(key, c):
    k1, k2 = jax.random.split(key)
    return {"conv1": conv_params(k1, c, c, 3), "conv2": conv_params(k2, c, c, 3),
            "gdn1": gdn_params(c), "gdn2": gdn_params(c)}


def nonlocal_params(key, c, c2):
    kg, kt, kp, kw_ = jax.random.split(key, 4)
    return {"g": conv_params(kg, c, c2, 1), "theta": conv_params(kt, c, c2, 1),
            "phi": conv_params(kp, c, c2, 1), "W": conv_params(kw_, c2, c, 1)}


def trunk_params(key, n, m1b, m2b, flag, with_resgdn):
    keys = jax.random.split(key, m1b + m2b + 3)
    p = {"trunk_res": [resblock_params(keys[i], n) for i in range(m1b)],
         "rab_res": [resblock_params(keys[m1b + i], n) for i in range(m2b)],
         "rab_conv": conv_params(keys[m1b + m2b], n, n, 1)}
    if with_resgdn:
        p["resgdn"] = resgdn_params(keys[m1b + m2b + 1], n)
    if flag:
        p["nonlocal"] = nonlocal_params(keys[m1b + m2b + 2], n, n // 2)
    return p


def init_enc_params(key, num_features, m1, m, n2, n1):
    ks = jax.random.split(key, 16)
    return {
        "conv1": conv_params(ks[0], num_features, m1, 5),
        "trunk1": trunk_params(ks[1], m1, 2, 2, False, True),
        "down1": conv_params(ks[2], m1, 2 * m1, 5),
        "trunk2": trunk_params(ks[3], 2 * m1, 3, 4, False, True),
        "down2": conv_params(ks[4], 2 * m1, m, 5),
        "trunk3": trunk_params(ks[5], m, 3, 4, False, True),
        "down3": conv_params(ks[6], m, m, 5),
        "trunk4": trunk_params(ks[7], m, 3, 4, False, True),
        "down4": conv_params(ks[8], m, n1, 5),
        "trunk5": trunk_params(ks[9], n1, 3, 4, True, True),
        "trunk6": trunk_params(ks[10], n1, 2, 2, True, False),
        "down6": conv_params(ks[11], n1, m, 5),
        "trunk7": trunk_params(ks[12], m, 2, 2, True, False),
        "down7": conv_params(ks[13], m, m, 5),
        "conv2": conv_params(ks[14], m, n2, 3),
        "trunk8": trunk_params(ks[15], n2, 2, 2, True, False),
    }


# ---- one-time parameter preparation (hoisted weight preprocessing) ----------

def _prep_conv(cp):
    w = cp["w"]
    cout, cin, kh, kw = w.shape
    wmat = jnp.transpose(w, (0, 2, 3, 1)).reshape(cout, kh * kw * cin)
    return {"w": wmat.astype(jnp.bfloat16),
            "b": cp["b"].reshape(cout, 1).astype(jnp.float32)}


def _prep_gdn(gp):
    c = gp["beta"].shape[0]
    return {"gamma": gp["gamma"].astype(jnp.float32),
            "beta": gp["beta"].reshape(c, 1).astype(jnp.float32)}


def _prep_resblock(p):
    return {"conv1": _prep_conv(p["conv1"]), "conv2": _prep_conv(p["conv2"])}


def _prep_resgdn(p):
    return {"conv1": _prep_conv(p["conv1"]), "conv2": _prep_conv(p["conv2"]),
            "gdn1": _prep_gdn(p["gdn1"]), "gdn2": _prep_gdn(p["gdn2"])}


def _prep_nonlocal(p):
    def flat(cp):
        w = cp["w"]
        return w.reshape(w.shape[0], w.shape[1])
    wtpg = jnp.concatenate([flat(p["theta"]), flat(p["phi"]), flat(p["g"])], axis=0)
    btpg = jnp.concatenate([p["theta"]["b"], p["phi"]["b"], p["g"]["b"]])
    return {"tpg": {"w": wtpg.astype(jnp.bfloat16),
                    "b": btpg.reshape(-1, 1).astype(jnp.float32)},
            "wz": _prep_conv(p["W"])}


def _prep_trunk(p):
    q = {"trunk_res": [_prep_resblock(rp) for rp in p["trunk_res"]],
         "rab_res": [_prep_resblock(rp) for rp in p["rab_res"]],
         "rab_conv": _prep_conv(p["rab_conv"])}
    if "resgdn" in p:
        q["resgdn"] = _prep_resgdn(p["resgdn"])
    if "nonlocal" in p:
        q["nonlocal"] = _prep_nonlocal(p["nonlocal"])
    return q


def prepare_enc_params(p):
    return {name: (_prep_trunk(v) if name.startswith("trunk") else _prep_conv(v))
            for name, v in p.items()}


# ----------------------------- Enc forward ----------------------------------

def enc_forward(params, x, middle_map):
    act, sp = to_act(x)
    a1, sp1 = conv(act, sp, params["conv1"], 5, 1, 2)
    a2, sp2 = conv(trunk_fwd(params["trunk1"], a1, sp1, False, True),
                   sp1, params["down1"], 5, 2, 2)
    a3, sp3 = conv(trunk_fwd(params["trunk2"], a2, sp2, False, True),
                   sp2, params["down2"], 5, 2, 2)
    a4, sp4 = conv(trunk_fwd(params["trunk3"], a3, sp3, False, True),
                   sp3, params["down3"], 5, 2, 2)
    a5, sp5 = conv(trunk_fwd(params["trunk4"], a4, sp4, False, True),
                   sp4, params["down4"], 5, 2, 2)

    # trunk5 with the middle_map multiply fused into its gate epilogue
    b5, h5, w5 = sp5
    m5 = b5 * h5 * w5
    mp5 = a5.shape[1]
    mm = middle_map.reshape(1, m5).astype(jnp.float32)
    if mp5 != m5:
        mm = jnp.pad(mm, ((0, 0), (0, mp5 - m5)))
    x5_act = trunk_fwd(params["trunk5"], a5, sp5, True, True, mm=mm)
    x5 = from_act(x5_act, sp5)

    x5d = jax.lax.stop_gradient(x5_act)            # torch .detach(): forward identical
    a6, sp6 = conv(trunk_fwd(params["trunk6"], x5d, sp5, True, False),
                   sp5, params["down6"], 5, 2, 2)
    a7, sp7 = conv(trunk_fwd(params["trunk7"], a6, sp6, True, False),
                   sp6, params["down7"], 5, 2, 2)
    a8, sp8 = conv(a7, sp7, params["conv2"], 3, 1, 1)
    x8_act = trunk_fwd(params["trunk8"], a8, sp8, True, False)
    x8 = from_act(x8_act, sp8)
    return x5, x8


# ----------------------------------- main ------------------------------------

if __name__ == "__main__":
    num_features, M1, M, N2, N1 = 3, 8, 16, 16, 16
    B, H, W = 2, 32, 32

    def _down(s):
        return (s + 2 * 2 - 5) // 2 + 1

    h5 = _down(_down(_down(_down(H))))
    w5 = _down(_down(_down(_down(W))))
    h8 = _down(_down(h5))
    w8 = _down(_down(w5))

    key = jax.random.PRNGKey(0)
    kp, kx, km = jax.random.split(key, 3)
    raw_params = init_enc_params(kp, num_features, M1, M, N2, N1)
    params = prepare_enc_params(raw_params)       # one-time weight preprocessing
    x = jax.random.normal(kx, (B, num_features, H, W), jnp.float32)
    middle_map = jax.random.uniform(km, (B, h5, w5), jnp.float32)

    fwd = jax.jit(enc_forward)
    x5, x8 = fwd(params, x, middle_map)
    jax.block_until_ready((x5, x8))

    assert x5.shape == (B, N1, h5, w5), x5.shape
    assert x8.shape == (B, N2, h8, w8), x8.shape
    assert bool(jnp.all(jnp.isfinite(x5))) and bool(jnp.all(jnp.isfinite(x8)))
    print("KERNEL_OK")
</pallas_src>

<mosaic_0001>
module attributes {stable_mosaic.version = 11 : i64} {
  func.func @kernel(%arg0: i32, %arg1: memref<8x75xbf16, #tpu.memory_space<vmem>>, %arg2: memref<75x512xbf16, #tpu.memory_space<vmem>>, %arg3: memref<8x1xf32, #tpu.memory_space<vmem>>, %arg4: memref<8x512xf32, #tpu.memory_space<vmem>>) attributes {dimension_semantics = [#tpu.dimension_semantics<parallel>], iteration_bounds = array<i64: 4>, scalar_prefetch = 0 : i64, scratch_operands = 0 : i64, tpu.core_type = #tpu.core_type<tc>, window_params = [{pipeline_mode = #tpu.pipeline_mode<synchronous>, transform_indices = @transform_0, window_bounds = array<i64: 8, 75>}, {transform_indices = @transform_1, window_bounds = array<i64: 75, 512>}, {pipeline_mode = #tpu.pipeline_mode<synchronous>, transform_indices = @transform_2, window_bounds = array<i64: 8, 1>}, {transform_indices = @transform_3, window_bounds = array<i64: 8, 512>}]} {
    %c0 = arith.constant 0 : index
    %c0_0 = arith.constant 0 : index
    %0 = vector.load %arg2[%c0, %c0_0] : memref<75x512xbf16, #tpu.memory_space<vmem>>, vector<75x512xbf16>
    %c0_1 = arith.constant 0 : index
    %c0_2 = arith.constant 0 : index
    %1 = vector.load %arg1[%c0_1, %c0_2] : memref<8x75xbf16, #tpu.memory_space<vmem>>, vector<8x75xbf16>
    %cst = arith.constant dense<0.000000e+00> : vector<8x512xf32>
    %2 = tpu.matmul %1, %0, %cst {dimension_numbers = #tpu.dot_dimension_numbers<[1], [0], [0], [1], [0, 0, 1, 1], [], []>} : vector<8x75xbf16>, vector<75x512xbf16>, vector<8x512xf32> -> vector<8x512xf32>
    %c0_3 = arith.constant 0 : index
    %c0_4 = arith.constant 0 : index
    %3 = vector.load %arg3[%c0_3, %c0_4] : memref<8x1xf32, #tpu.memory_space<vmem>>, vector<8x1xf32>
    %4 = vector.broadcast %3 : vector<8x1xf32> to vector<8x512xf32>
    %5 = arith.addf %2, %4 : vector<8x512xf32>
    %c0_5 = arith.constant 0 : index
    %c0_6 = arith.constant 0 : index
    %6 = vector.load %arg4[%c0_5, %c0_6] : memref<8x512xf32, #tpu.memory_space<vmem>>, vector<8x512xf32>
    tpu.vector_store %arg4[%c0_5, %c0_6], %5 {strides = array<i32>} : memref<8x512xf32, #tpu.memory_space<vmem>>, vector<8x512xf32>,
    return
  }
  func.func @transform_0(%arg0: i32) -> (i32, i32) {
    %c0_i32 = arith.constant 0 : i32
    %c0_i32_0 = arith.constant 0 : i32
    %c0_i32_1 = arith.constant 0 : i32
    return %c0_i32, %c0_i32_0 : i32, i32
  }
  func.func @transform_1(%arg0: i32) -> (i32, i32) {
    %c0_i32 = arith.constant 0 : i32
    %c0_i32_0 = arith.constant 0 : i32
    return %c0_i32, %arg0 : i32, i32
  }
  func.func @transform_2(%arg0: i32) -> (i32, i32) {
    %c0_i32 = arith.constant 0 : i32
    %c0_i32_0 = arith.constant 0 : i32
    %c0_i32_1 = arith.constant 0 : i32
    return %c0_i32, %c0_i32_0 : i32, i32
  }
  func.func @transform_3(%arg0: i32) -> (i32, i32) {
    %c0_i32 = arith.constant 0 : i32
    %c0_i32_0 = arith.constant 0 : i32
    return %c0_i32, %arg0 : i32, i32
  }
}

module attributes {stable_mosaic.version = 11 : i64} {
  func.func @kernel(%arg0: i32, %arg1: memref<8x72xbf16, #tpu.memory_space<vmem>>, %arg2: memref<72x512xbf16, #tpu.memory_space<vmem>>, %arg3: memref<8x1xf32, #tpu.memory_space<vmem>>, %arg4: memref<8x512xf32, #tpu.memory_space<vmem>>) attributes {dimension_semantics = [#tpu.dimension_semantics<parallel>], iteration_bounds = array<i64: 4>, scalar_prefetch = 0 : i64, scratch_operands = 0 : i64, tpu.core_type = #tpu.core_type<tc>, window_params = [{pipeline_mode = #tpu.pipeline_mode<synchronous>, transform_indices = @transform_0, window_bounds = array<i64: 8, 72>}, {transform_indices = @transform_1, window_bounds = array<i64: 72, 512>}, {pipeline_mode = #tpu.pipeline_mode<synchronous>, transform_indices = @transform_2, window_bounds = array<i64: 8, 1>}, {transform_indices = @transform_3, window_bounds = array<i64: 8, 512>}]} {
    %c0 = arith.constant 0 : index
    %c0_0 = arith.constant 0 : index
    %0 = vector.load %arg2[%c0, %c0_0] : memref<72x512xbf16, #tpu.memory_space<vmem>>, vector<72x512xbf16>
    %c0_1 = arith.constant 0 : index
    %c0_2 = arith.constant 0 : index
    %1 = vector.load %arg1[%c0_1, %c0_2] : memref<8x72xbf16, #tpu.memory_space<vmem>>, vector<8x72xbf16>
    %cst = arith.constant dense<0.000000e+00> : vector<8x512xf32>
    %2 = tpu.matmul %1, %0, %cst {dimension_numbers = #tpu.dot_dimension_numbers<[1], [0], [0], [1], [0, 0, 1, 1], [], []>} : vector<8x72xbf16>, vector<72x512xbf16>, vector<8x512xf32> -> vector<8x512xf32>
    %c0_3 = arith.constant 0 : index
    %c0_4 = arith.constant 0 : index
    %3 = vector.load %arg3[%c0_3, %c0_4] : memref<8x1xf32, #tpu.memory_space<vmem>>, vector<8x1xf32>
    %4 = vector.broadcast %3 : vector<8x1xf32> to vector<8x512xf32>
    %5 = arith.addf %2, %4 : vector<8x512xf32>
    %cst_5 = arith.constant 0.000000e+00 : f32
    %6 = vector.broadcast %cst_5 : f32 to vector<8x512xf32>
    %7 = arith.maximumf %5, %6 : vector<8x512xf32>
    %c0_6 = arith.constant 0 : index
    %c0_7 = arith.constant 0 : index
    %8 = vector.load %arg4[%c0_6, %c0_7] : memref<8x512xf32, #tpu.memory_space<vmem>>, vector<8x512xf32>
    tpu.vector_store %arg4[%c0_6, %c0_7], %7 {strides = array<i32>} : memref<8x512xf32, #tpu.memory_space<vmem>>, vector<8x512xf32>,
    return
  }
  func.func @transform_0(%arg0: i32) -> (i32, i32) {
    %c0_i32 = arith.constant 0 : i32
    %c0_i32_0 = arith.constant 0 : i32
    %c0_i32_1 = arith.constant 0 : i32
    return %c0_i32, %c0_i32_0 : i32, i32
  }
  func.func @transform_1(%arg0: i32) -> (i32, i32) {
    %c0_i32 = arith.constant 0 : i32
    %c0_i32_0 = arith.constant 0 : i32
    return %c0_i32, %arg0 : i32, i32
  }
  func.func @transform_2(%arg0: i32) -> (i32, i32) {
    %c0_i32 = arith.constant 0 : i32
    %c0_i32_0 = arith.constant 0 : i32
    %c0_i32_1 = arith.constant 0 : i32
    return %c0_i32, %c0_i32_0 : i32, i32
  }
  func.func @transform_3(%arg0: i32) -> (i32, i32) {
    %c0_i32 = arith.constant 0 : i32
    %c0_i32_0 = arith.constant 0 : i32
    return %c0_i32, %arg0 : i32, i32
  }
}

module attributes {stable_mosaic.version = 11 : i64} {
  func.func @kernel(%arg0: i32, %arg1: memref<8x72xbf16, #tpu.memory_space<vmem>>, %arg2: memref<72x512xbf16, #tpu.memory_space<vmem>>, %arg3: memref<8x1xf32, #tpu.memory_space<vmem>>, %arg4: memref<8x512xf32, #tpu.memory_space<vmem>>, %arg5: memref<8x512xf32, #tpu.memory_space<vmem>>) attributes {dimension_semantics = [#tpu.dimension_semantics<parallel>], iteration_bounds = array<i64: 4>, scalar_prefetch = 0 : i64, scratch_operands = 0 : i64, tpu.core_type = #tpu.core_type<tc>, window_params = [{pipeline_mode = #tpu.pipeline_mode<synchronous>, transform_indices = @transform_0, window_bounds = array<i64: 8, 72>}, {transform_indices = @transform_1, window_bounds = array<i64: 72, 512>}, {pipeline_mode = #tpu.pipeline_mode<synchronous>, transform_indices = @transform_2, window_bounds = array<i64: 8, 1>}, {transform_indices = @transform_3, window_bounds = array<i64: 8, 512>}, {transform_indices = @transform_4, window_bounds = array<i64: 8, 512>}]} {
    %c0 = arith.constant 0 : index
    %c0_0 = arith.constant 0 : index
    %0 = vector.load %arg2[%c0, %c0_0] : memref<72x512xbf16, #tpu.memory_space<vmem>>, vector<72x512xbf16>
    %c0_1 = arith.constant 0 : index
    %c0_2 = arith.constant 0 : index
    %1 = vector.load %arg1[%c0_1, %c0_2] : memref<8x72xbf16, #tpu.memory_space<vmem>>, vector<8x72xbf16>
    %cst = arith.constant dense<0.000000e+00> : vector<8x512xf32>
    %2 = tpu.matmul %1, %0, %cst {dimension_numbers = #tpu.dot_dimension_numbers<[1], [0], [0], [1], [0, 0, 1, 1], [], []>} : vector<8x72xbf16>, vector<72x512xbf16>, vector<8x512xf32> -> vector<8x512xf32>
    %c0_3 = arith.constant 0 : index
    %c0_4 = arith.constant 0 : index
    %3 = vector.load %arg3[%c0_3, %c0_4] : memref<8x1xf32, #tpu.memory_space<vmem>>, vector<8x1xf32>
    %4 = vector.broadcast %3 : vector<8x1xf32> to vector<8x512xf32>
    %5 = arith.addf %2, %4 : vector<8x512xf32>
    %c0_5 = arith.constant 0 : index
    %c0_6 = arith.constant 0 : index
    %6 = vector.load %arg4[%c0_5, %c0_6] : memref<8x512xf32, #tpu.memory_space<vmem>>, vector<8x512xf32>
    %7 = arith.addf %5, %6 : vector<8x512xf32>
    %c0_7 = arith.constant 0 : index
    %c0_8 = arith.constant 0 : index
    %8 = vector.load %arg5[%c0_7, %c0_8] : memref<8x512xf32, #tpu.memory_space<vmem>>, vector<8x512xf32>
    tpu.vector_store %arg5[%c0_7, %c0_8], %7 {strides = array<i32>} : memref<8x512xf32, #tpu.memory_space<vmem>>, vector<8x512xf32>,
    return
  }
  func.func @transform_0(%arg0: i32) -> (i32, i32) {
    %c0_i32 = arith.constant 0 : i32
    %c0_i32_0 = arith.constant 0 : i32
    %c0_i32_1 = arith.constant 0 : i32
    return %c0_i32, %c0_i32_0 : i32, i32
  }
  func.func @transform_1(%arg0: i32) -> (i32, i32) {
    %c0_i32 = arith.constant 0 : i32
    %c0_i32_0 = arith.constant 0 : i32
    return %c0_i32, %arg0 : i32, i32
  }
  func.func @transform_2(%arg0: i32) -> (i32, i32) {
    %c0_i32 = arith.constant 0 : i32
    %c0_i32_0 = arith.constant 0 : i32
    %c0_i32_1 = arith.constant 0 : i32
    return %c0_i32, %c0_i32_0 : i32, i32
  }
  func.func @transform_3(%arg0: i32) -> (i32, i32) {
    %c0_i32 = arith.constant 0 : i32
    %c0_i32_0 = arith.constant 0 : i32
    return %c0_i32, %arg0 : i32, i32
  }
  func.func @transform_4(%arg0: i32) -> (i32, i32) {
    %c0_i32 = arith.constant 0 : i32
    %c0_i32_0 = arith.constant 0 : i32
    return %c0_i32, %arg0 : i32, i32
  }
}

module attributes {stable_mosaic.version = 11 : i64} {
  func.func @kernel(%arg0: i32, %arg1: memref<8x72xbf16, #tpu.memory_space<vmem>>, %arg2: memref<72x512xbf16, #tpu.memory_space<vmem>>, %arg3: memref<8x1xf32, #tpu.memory_space<vmem>>, %arg4: memref<8x8xf32, #tpu.memory_space<vmem>>, %arg5: memref<8x1xf32, #tpu.memory_space<vmem>>, %arg6: memref<8x512xf32, #tpu.memory_space<vmem>>) attributes {dimension_semantics = [#tpu.dimension_semantics<parallel>], iteration_bounds = array<i64: 4>, scalar_prefetch = 0 : i64, scratch_operands = 0 : i64, tpu.core_type = #tpu.core_type<tc>, window_params = [{pipeline_mode = #tpu.pipeline_mode<synchronous>, transform_indices = @transform_0, window_bounds = array<i64: 8, 72>}, {transform_indices = @transform_1, window_bounds = array<i64: 72, 512>}, {pipeline_mode = #tpu.pipeline_mode<synchronous>, transform_indices = @transform_2, window_bounds = array<i64: 8, 1>}, {pipeline_mode = #tpu.pipeline_mode<synchronous>, transform_indices = @transform_3, window_bounds = array<i64: 8, 8>}, {pipeline_mode = #tpu.pipeline_mode<synchronous>, transform_indices = @transform_4, window_bounds = array<i64: 8, 1>}, {transform_indices = @transform_5, window_bounds = array<i64: 8, 512>}]} {
    %c0 = arith.constant 0 : index
    %c0_0 = arith.constant 0 : index
    %0 = vector.load %arg2[%c0, %c0_0] : memref<72x512xbf16, #tpu.memory_space<vmem>>, vector<72x512xbf16>
    %c0_1 = arith.constant 0 : index
    %c0_2 = arith.constant 0 : index
    %1 = vector.load %arg1[%c0_1, %c0_2] : memref<8x72xbf16, #tpu.memory_space<vmem>>, vector<8x72xbf16>
    %cst = arith.constant dense<0.000000e+00> : vector<8x512xf32>
    %2 = tpu.matmul %1, %0, %cst {dimension_numbers = #tpu.dot_dimension_numbers<[1], [0], [0], [1], [0, 0, 1, 1], [], []>} : vector<8x72xbf16>, vector<72x512xbf16>, vector<8x512xf32> -> vector<8x512xf32>
    %c0_3 = arith.constant 0 : index
    %c0_4 = arith.constant 0 : index
    %3 = vector.load %arg3[%c0_3, %c0_4] : memref<8x1xf32, #tpu.memory_space<vmem>>, vector<8x1xf32>
    %4 = vector.broadcast %3 : vector<8x1xf32> to vector<8x512xf32>
    %5 = arith.addf %2, %4 : vector<8x512xf32>
    %c0_5 = arith.constant 0 : index
    %c0_6 = arith.constant 0 : index
    %6 = vector.load %arg4[%c0_5, %c0_6] : memref<8x8xf32, #tpu.memory_space<vmem>>, vector<8x8xf32>
    %7 = arith.mulf %5, %5 : vector<8x512xf32>
    %cst_7 = arith.constant dense<0.000000e+00> : vector<8x512xf32>
    %8 = tpu.matmul %6, %7, %cst_7 {dimension_numbers = #tpu.dot_dimension_numbers<[1], [0], [0], [1], [0, 0, 1, 1], [], []>} : vector<8x8xf32>, vector<8x512xf32>, vector<8x512xf32> -> vector<8x512xf32>
    %c0_8 = arith.constant 0 : index
    %c0_9 = arith.constant 0 : index
    %9 = vector.load %arg5[%c0_8, %c0_9] : memref<8x1xf32, #tpu.memory_space<vmem>>, vector<8x1xf32>
    %10 = vector.broadcast %9 : vector<8x1xf32> to vector<8x512xf32>
    %11 = arith.addf %8, %10 : vector<8x512xf32>
    %12 = math.rsqrt %11 : vector<8x512xf32>
    %13 = arith.mulf %5, %12 : vector<8x512xf32>
    %c0_10 = arith.constant 0 : index
    %c0_11 = arith.constant 0 : index
    %14 = vector.load %arg6[%c0_10, %c0_11] : memref<8x512xf32, #tpu.memory_space<vmem>>, vector<8x512xf32>
    tpu.vector_store %arg6[%c0_10, %c0_11], %13 {strides = array<i32>} : memref<8x512xf32, #tpu.memory_space<vmem>>, vector<8x512xf32>,
    return
  }
  func.func @transform_0(%arg0: i32) -> (i32, i32) {
    %c0_i32 = arith.constant 0 : i32
    %c0_i32_0 = arith.constant 0 : i32
    %c0_i32_1 = arith.constant 0 : i32
    return %c0_i32, %c0_i32_0 : i32, i32
  }
  func.func @transform_1(%arg0: i32) -> (i32, i32) {
    %c0_i32 = arith.constant 0 : i32
    %c0_i32_0 = arith.constant 0 : i32
    return %c0_i32, %arg0 : i32, i32
  }
  func.func @transform_2(%arg0: i32) -> (i32, i32) {
    %c0_i32 = arith.constant 0 : i32
    %c0_i32_0 = arith.constant 0 : i32
    %c0_i32_1 = arith.constant 0 : i32
    return %c0_i32, %c0_i32_0 : i32, i32
  }
  func.func @transform_3(%arg0: i32) -> (i32, i32) {
    %c0_i32 = arith.constant 0 : i32
    %c0_i32_0 = arith.constant 0 : i32
    %c0_i32_1 = arith.constant 0 : i32
    return %c0_i32, %c0_i32_0 : i32, i32
  }
  func.func @transform_4(%arg0: i32) -> (i32, i32) {
    %c0_i32 = arith.constant 0 : i32
    %c0_i32_0 = arith.constant 0 : i32
    %c0_i32_1 = arith.constant 0 : i32
    return %c0_i32, %c0_i32_0 : i32, i32
  }
  func.func @transform_5(%arg0: i32) -> (i32, i32) {
    %c0_i32 = arith.constant 0 : i32
    %c0_i32_0 = arith.constant 0 : i32
    return %c0_i32, %arg0 : i32, i32
  }
}

module attributes {stable_mosaic.version = 11 : i64} {
  func.func @kernel(%arg0: i32, %arg1: memref<8x72xbf16, #tpu.memory_space<vmem>>, %arg2: memref<72x512xbf16, #tpu.memory_space<vmem>>, %arg3: memref<8x1xf32, #tpu.memory_space<vmem>>, %arg4: memref<8x8xf32, #tpu.memory_space<vmem>>, %arg5: memref<8x1xf32, #tpu.memory_space<vmem>>, %arg6: memref<8x512xf32, #tpu.memory_space<vmem>>, %arg7: memref<8x512xf32, #tpu.memory_space<vmem>>) attributes {dimension_semantics = [#tpu.dimension_semantics<parallel>], iteration_bounds = array<i64: 4>, scalar_prefetch = 0 : i64, scratch_operands = 0 : i64, tpu.core_type = #tpu.core_type<tc>, window_params = [{pipeline_mode = #tpu.pipeline_mode<synchronous>, transform_indices = @transform_0, window_bounds = array<i64: 8, 72>}, {transform_indices = @transform_1, window_bounds = array<i64: 72, 512>}, {pipeline_mode = #tpu.pipeline_mode<synchronous>, transform_indices = @transform_2, window_bounds = array<i64: 8, 1>}, {pipeline_mode = #tpu.pipeline_mode<synchronous>, transform_indices = @transform_3, window_bounds = array<i64: 8, 8>}, {pipeline_mode = #tpu.pipeline_mode<synchronous>, transform_indices = @transform_4, window_bounds = array<i64: 8, 1>}, {transform_indices = @transform_5, window_bounds = array<i64: 8, 512>}, {transform_indices = @transform_6, window_bounds = array<i64: 8, 512>}]} {
    %c0 = arith.constant 0 : index
    %c0_0 = arith.constant 0 : index
    %0 = vector.load %arg2[%c0, %c0_0] : memref<72x512xbf16, #tpu.memory_space<vmem>>, vector<72x512xbf16>
    %c0_1 = arith.constant 0 : index
    %c0_2 = arith.constant 0 : index
    %1 = vector.load %arg1[%c0_1, %c0_2] : memref<8x72xbf16, #tpu.memory_space<vmem>>, vector<8x72xbf16>
    %cst = arith.constant dense<0.000000e+00> : vector<8x512xf32>
    %2 = tpu.matmul %1, %0, %cst {dimension_numbers = #tpu.dot_dimension_numbers<[1], [0], [0], [1], [0, 0, 1, 1], [], []>} : vector<8x72xbf16>, vector<72x512xbf16>, vector<8x512xf32> -> vector<8x512xf32>
    %c0_3 = arith.constant 0 : index
    %c0_4 = arith.constant 0 : index
    %3 = vector.load %arg3[%c0_3, %c0_4] : memref<8x1xf32, #tpu.memory_space<vmem>>, vector<8x1xf32>
    %4 = vector.broadcast %3 : vector<8x1xf32> to vector<8x512xf32>
    %5 = arith.addf %2, %4 : vector<8x512xf32>
    %c0_5 = arith.constant 0 : index
    %c0_6 = arith.constant 0 : index
    %6 = vector.load %arg4[%c0_5, %c0_6] : memref<8x8xf32, #tpu.memory_space<vmem>>, vector<8x8xf32>
    %7 = arith.mulf %5, %5 : vector<8x512xf32>
    %cst_7 = arith.constant dense<0.000000e+00> : vector<8x512xf32>
    %8 = tpu.matmul %6, %7, %cst_7 {dimension_numbers = #tpu.dot_dimension_numbers<[1], [0], [0], [1], [0, 0, 1, 1], [], []>} : vector<8x8xf32>, vector<8x512xf32>, vector<8x512xf32> -> vector<8x512xf32>
    %c0_8 = arith.constant 0 : index
    %c0_9 = arith.constant 0 : index
    %9 = vector.load %arg5[%c0_8, %c0_9] : memref<8x1xf32, #tpu.memory_space<vmem>>, vector<8x1xf32>
    %10 = vector.broadcast %9 : vector<8x1xf32> to vector<8x512xf32>
    %11 = arith.addf %8, %10 : vector<8x512xf32>
    %12 = math.rsqrt %11 : vector<8x512xf32>
    %13 = arith.mulf %5, %12 : vector<8x512xf32>
    %c0_10 = arith.constant 0 : index
    %c0_11 = arith.constant 0 : index
    %14 = vector.load %arg6[%c0_10, %c0_11] : memref<8x512xf32, #tpu.memory_space<vmem>>, vector<8x512xf32>
    %15 = arith.addf %13, %14 : vector<8x512xf32>
    %c0_12 = arith.constant 0 : index
    %c0_13 = arith.constant 0 : index
    %16 = vector.load %arg7[%c0_12, %c0_13] : memref<8x512xf32, #tpu.memory_space<vmem>>, vector<8x512xf32>
    tpu.vector_store %arg7[%c0_12, %c0_13], %15 {strides = array<i32>} : memref<8x512xf32, #tpu.memory_space<vmem>>, vector<8x512xf32>,
    return
  }
  func.func @transform_0(%arg0: i32) -> (i32, i32) {
    %c0_i32 = arith.constant 0 : i32
    %c0_i32_0 = arith.constant 0 : i32
    %c0_i32_1 = arith.constant 0 : i32
    return %c0_i32, %c0_i32_0 : i32, i32
  }
  func.func @transform_1(%arg0: i32) -> (i32, i32) {
    %c0_i32 = arith.constant 0 : i32
    %c0_i32_0 = arith.constant 0 : i32
    return %c0_i32, %arg0 : i32, i32
  }
  func.func @transform_2(%arg0: i32) -> (i32, i32) {
    %c0_i32 = arith.constant 0 : i32
    %c0_i32_0 = arith.constant 0 : i32
    %c0_i32_1 = arith.constant 0 : i32
    return %c0_i32, %c0_i32_0 : i32, i32
  }
  func.func @transform_3(%arg0: i32) -> (i32, i32) {
    %c0_i32 = arith.constant 0 : i32
    %c0_i32_0 = arith.constant 0 : i32
    %c0_i32_1 = arith.constant 0 : i32
    return %c0_i32, %c0_i32_0 : i32, i32
  }
  func.func @transform_4(%arg0: i32) -> (i32, i32) {
    %c0_i32 = arith.constant 0 : i32
    %c0_i32_0 = arith.constant 0 : i32
    %c0_i32_1 = arith.constant 0 : i32
    return %c0_i32, %c0_i32_0 : i32, i32
  }
  func.func @transform_5(%arg0: i32) -> (i32, i32) {
    %c0_i32 = arith.constant 0 : i32
    %c0_i32_0 = arith.constant 0 : i32
    return %c0_i32, %arg0 : i32, i32
  }
  func.func @transform_6(%arg0: i32) -> (i32, i32) {
    %c0_i32 = arith.constant 0 : i32
    %c0_i32_0 = arith.constant 0 : i32
    return %c0_i32, %arg0 : i32, i32
  }
}

module attributes {stable_mosaic.version = 11 : i64} {
  func.func @kernel(%arg0: i32, %arg1: memref<8x8xbf16, #tpu.memory_space<vmem>>, %arg2: memref<8x512xf32, #tpu.memory_space<vmem>>, %arg3: memref<8x1xf32, #tpu.memory_space<vmem>>, %arg4: memref<8x512xf32, #tpu.memory_space<vmem>>, %arg5: memref<8x512xf32, #tpu.memory_space<vmem>>, %arg6: memref<8x512xf32, #tpu.memory_space<vmem>>) attributes {dimension_semantics = [#tpu.dimension_semantics<parallel>], iteration_bounds = array<i64: 4>, scalar_prefetch = 0 : i64, scratch_operands = 0 : i64, tpu.core_type = #tpu.core_type<tc>, window_params = [{pipeline_mode = #tpu.pipeline_mode<synchronous>, transform_indices = @transform_0, window_bounds = array<i64: 8, 8>}, {transform_indices = @transform_1, window_bounds = array<i64: 8, 512>}, {pipeline_mode = #tpu.pipeline_mode<synchronous>, transform_indices = @transform_2, window_bounds = array<i64: 8, 1>}, {transform_indices = @transform_3, window_bounds = array<i64: 8, 512>}, {transform_indices = @transform_4, window_bounds = array<i64: 8, 512>}, {transform_indices = @transform_5, window_bounds = array<i64: 8, 512>}]} {
    %c0 = arith.constant 0 : index
    %c0_0 = arith.constant 0 : index
    %0 = vector.load %arg2[%c0, %c0_0] : memref<8x512xf32, #tpu.memory_space<vmem>>, vector<8x512xf32>
    %1 = arith.truncf %0 : vector<8x512xf32> to vector<8x512xbf16>
    %c0_1 = arith.constant 0 : index
    %c0_2 = arith.constant 0 : index
    %2 = vector.load %arg1[%c0_1, %c0_2] : memref<8x8xbf16, #tpu.memory_space<vmem>>, vector<8x8xbf16>
    %cst = arith.constant dense<0.000000e+00> : vector<8x512xf32>
    %3 = tpu.matmul %2, %1, %cst {dimension_numbers = #tpu.dot_dimension_numbers<[1], [0], [0], [1], [0, 0, 1, 1], [], []>} : vector<8x8xbf16>, vector<8x512xbf16>, vector<8x512xf32> -> vector<8x512xf32>
    %c0_3 = arith.constant 0 : index
    %c0_4 = arith.constant 0 : index
    %4 = vector.load %arg3[%c0_3, %c0_4] : memref<8x1xf32, #tpu.memory_space<vmem>>, vector<8x1xf32>
    %5 = vector.broadcast %4 : vector<8x1xf32> to vector<8x512xf32>
    %6 = arith.addf %3, %5 : vector<8x512xf32>
    %cst_5 = arith.constant 0.000000e+00 : f32
    %7 = vector.broadcast %cst_5 : f32 to vector<8x512xf32>
    %8 = arith.subf %7, %6 : vector<8x512xf32>
    %9 = math.exp %8 : vector<8x512xf32>
    %cst_6 = arith.constant 1.000000e+00 : f32
    %10 = vector.broadcast %cst_6 : f32 to vector<8x512xf32>
    %11 = arith.addf %10, %9 : vector<8x512xf32>
    %cst_7 = arith.constant 1.000000e+00 : f32
    %12 = vector.broadcast %cst_7 : f32 to vector<8x512xf32>
    %13 = arith.divf %12, %11 : vector<8x512xf32>
    %c0_8 = arith.constant 0 : index
    %c0_9 = arith.constant 0 : index
    %14 = vector.load %arg4[%c0_8, %c0_9] : memref<8x512xf32, #tpu.memory_space<vmem>>, vector<8x512xf32>
    %15 = arith.mulf %14, %13 : vector<8x512xf32>
    %c0_10 = arith.constant 0 : index
    %c0_11 = arith.constant 0 : index
    %16 = vector.load %arg5[%c0_10, %c0_11] : memref<8x512xf32, #tpu.memory_space<vmem>>, vector<8x512xf32>
    %17 = arith.addf %15, %16 : vector<8x512xf32>
    %c0_12 = arith.constant 0 : index
    %c0_13 = arith.constant 0 : index
    %18 = vector.load %arg6[%c0_12, %c0_13] : memref<8x512xf32, #tpu.memory_space<vmem>>, vector<8x512xf32>
    tpu.vector_store %arg6[%c0_12, %c0_13], %17 {strides = array<i32>} : memref<8x512xf32, #tpu.memory_space<vmem>>, vector<8x512xf32>,
    return
  }
  func.func @transform_0(%arg0: i32) -> (i32, i32) {
    %c0_i32 = arith.constant 0 : i32
    %c0_i32_0 = arith.constant 0 : i32
    %c0_i32_1 = arith.constant 0 : i32
    return %c0_i32, %c0_i32_0 : i32, i32
  }
  func.func @transform_1(%arg0: i32) -> (i32, i32) {
    %c0_i32 = arith.constant 0 : i32
    %c0_i32_0 = arith.constant 0 : i32
    return %c0_i32, %arg0 : i32, i32
  }
  func.func @transform_2(%arg0: i32) -> (i32, i32) {
    %c0_i32 = arith.constant 0 : i32
    %c0_i32_0 = arith.constant 0 : i32
    %c0_i32_1 = arith.constant 0 : i32
    return %c0_i32, %c0_i32_0 : i32, i32
  }
  func.func @transform_3(%arg0: i32) -> (i32, i32) {
    %c0_i32 = arith.constant 0 : i32
    %c0_i32_0 = arith.constant 0 : i32
    return %c0_i32, %arg0 : i32, i32
  }
  func.func @transform_4(%arg0: i32) -> (i32, i32) {
    %c0_i32 = arith.constant 0 : i32
    %c0_i32_0 = arith.constant 0 : i32
    return %c0_i32, %arg0 : i32, i32
  }
  func.func @transform_5(%arg0: i32) -> (i32, i32) {
    %c0_i32 = arith.constant 0 : i32
    %c0_i32_0 = arith.constant 0 : i32
    return %c0_i32, %arg0 : i32, i32
  }
}

module attributes {stable_mosaic.version = 11 : i64} {
  func.func @kernel(%arg0: i32, %arg1: memref<16x200xbf16, #tpu.memory_space<vmem>>, %arg2: memref<200x256xbf16, #tpu.memory_space<vmem>>, %arg3: memref<16x1xf32, #tpu.memory_space<vmem>>, %arg4: memref<16x256xf32, #tpu.memory_space<vmem>>) attributes {dimension_semantics = [#tpu.dimension_semantics<parallel>], iteration_bounds = array<i64: 2>, scalar_prefetch = 0 : i64, scratch_operands = 0 : i64, tpu.core_type = #tpu.core_type<tc>, window_params = [{pipeline_mode = #tpu.pipeline_mode<synchronous>, transform_indices = @transform_0, window_bounds = array<i64: 16, 200>}, {transform_indices = @transform_1, window_bounds = array<i64: 200, 256>}, {pipeline_mode = #tpu.pipeline_mode<synchronous>, transform_indices = @transform_2, window_bounds = array<i64: 16, 1>}, {transform_indices = @transform_3, window_bounds = array<i64: 16, 256>}]} {
    %c0 = arith.constant 0 : index
    %c0_0 = arith.constant 0 : index
    %0 = vector.load %arg2[%c0, %c0_0] : memref<200x256xbf16, #tpu.memory_space<vmem>>, vector<200x256xbf16>
    %c0_1 = arith.constant 0 : index
    %c0_2 = arith.constant 0 : index
    %1 = vector.load %arg1[%c0_1, %c0_2] : memref<16x200xbf16, #tpu.memory_space<vmem>>, vector<16x200xbf16>
    %cst = arith.constant dense<0.000000e+00> : vector<16x256xf32>
    %2 = tpu.matmul %1, %0, %cst {dimension_numbers = #tpu.dot_dimension_numbers<[1], [0], [0], [1], [0, 0, 1, 1], [], []>} : vector<16x200xbf16>, vector<200x256xbf16>, vector<16x256xf32> -> vector<16x256xf32>
    %c0_3 = arith.constant 0 : index
    %c0_4 = arith.constant 0 : index
    %3 = vector.load %arg3[%c0_3, %c0_4] : memref<16x1xf32, #tpu.memory_space<vmem>>, vector<16x1xf32>
    %4 = vector.broadcast %3 : vector<16x1xf32> to vector<16x256xf32>
    %5 = arith.addf %2, %4 : vector<16x256xf32>
    %c0_5 = arith.constant 0 : index
    %c0_6 = arith.constant 0 : index
    %6 = vector.load %arg4[%c0_5, %c0_6] : memref<16x256xf32, #tpu.memory_space<vmem>>, vector<16x256xf32>
    tpu.vector_store %arg4[%c0_5, %c0_6], %5 {strides = array<i32>} : memref<16x256xf32, #tpu.memory_space<vmem>>, vector<16x256xf32>,
    return
  }
  func.func @transform_0(%arg0: i32) -> (i32, i32) {
    %c0_i32 = arith.constant 0 : i32
    %c0_i32_0 = arith.constant 0 : i32
    %c0_i32_1 = arith.constant 0 : i32
    return %c0_i32, %c0_i32_0 : i32, i32
  }
  func.func @transform_1(%arg0: i32) -> (i32, i32) {
    %c0_i32 = arith.constant 0 : i32
    %c0_i32_0 = arith.constant 0 : i32
    return %c0_i32, %arg0 : i32, i32
  }
  func.func @transform_2(%arg0: i32) -> (i32, i32) {
    %c0_i32 = arith.constant 0 : i32
    %c0_i32_0 = arith.constant 0 : i32
    %c0_i32_1 = arith.constant 0 : i32
    return %c0_i32, %c0_i32_0 : i32, i32
  }
  func.func @transform_3(%arg0: i32) -> (i32, i32) {
    %c0_i32 = arith.constant 0 : i32
    %c0_i32_0 = arith.constant 0 : i32
    return %c0_i32, %arg0 : i32, i32
  }
}

module attributes {stable_mosaic.version = 11 : i64} {
  func.func @kernel(%arg0: i32, %arg1: memref<16x144xbf16, #tpu.memory_space<vmem>>, %arg2: memref<144x256xbf16, #tpu.memory_space<vmem>>, %arg3: memref<16x1xf32, #tpu.memory_space<vmem>>, %arg4: memref<16x256xf32, #tpu.memory_space<vmem>>, %arg5: memref<16x256xf32, #tpu.memory_space<vmem>>) attributes {dimension_semantics = [#tpu.dimension_semantics<parallel>], iteration_bounds = array<i64: 2>, scalar_prefetch = 0 : i64, scratch_operands = 0 : i64, tpu.core_type = #tpu.core_type<tc>, window_params = [{pipeline_mode = #tpu.pipeline_mode<synchronous>, transform_indices = @transform_0, window_bounds = array<i64: 16, 144>}, {transform_indices = @transform_1, window_bounds = array<i64: 144, 256>}, {pipeline_mode = #tpu.pipeline_mode<synchronous>, transform_indices = @transform_2, window_bounds = array<i64: 16, 1>}, {transform_indices = @transform_3, window_bounds = array<i64: 16, 256>}, {transform_indices = @transform_4, window_bounds = array<i64: 16, 256>}]} {
    %c0 = arith.constant 0 : index
    %c0_0 = arith.constant 0 : index
    %0 = vector.load %arg2[%c0, %c0_0] : memref<144x256xbf16, #tpu.memory_space<vmem>>, vector<144x256xbf16>
    %c0_1 = arith.constant 0 : index
    %c0_2 = arith.constant 0 : index
    %1 = vector.load %arg1[%c0_1, %c0_2] : memref<16x144xbf16, #tpu.memory_space<vmem>>, vector<16x144xbf16>
    %cst = arith.constant dense<0.000000e+00> : vector<16x256xf32>
    %2 = tpu.matmul %1, %0, %cst {dimension_numbers = #tpu.dot_dimension_numbers<[1], [0], [0], [1], [0, 0, 1, 1], [], []>} : vector<16x144xbf16>, vector<144x256xbf16>, vector<16x256xf32> -> vector<16x256xf32>
    %c0_3 = arith.constant 0 : index
    %c0_4 = arith.constant 0 : index
    %3 = vector.load %arg3[%c0_3, %c0_4] : memref<16x1xf32, #tpu.memory_space<vmem>>, vector<16x1xf32>
    %4 = vector.broadcast %3 : vector<16x1xf32> to vector<16x256xf32>
    %5 = arith.addf %2, %4 : vector<16x256xf32>
    %c0_5 = arith.constant 0 : index
    %c0_6 = arith.constant 0 : index
    %6 = vector.load %arg4[%c0_5, %c0_6] : memref<16x256xf32, #tpu.memory_space<vmem>>, vector<16x256xf32>
    %7 = arith.addf %5, %6 : vector<16x256xf32>
    %c0_7 = arith.constant 0 : index
    %c0_8 = arith.constant 0 : index
    %8 = vector.load %arg5[%c0_7, %c0_8] : memref<16x256xf32, #tpu.memory_space<vmem>>, vector<16x256xf32>
    tpu.vector_store %arg5[%c0_7, %c0_8], %7 {strides = array<i32>} : memref<16x256xf32, #tpu.memory_space<vmem>>, vector<16x256xf32>,
    return
  }
  func.func @transform_0(%arg0: i32) -> (i32, i32) {
    %c0_i32 = arith.constant 0 : i32
    %c0_i32_0 = arith.constant 0 : i32
    %c0_i32_1 = arith.constant 0 : i32
    return %c0_i32, %c0_i32_0 : i32, i32
  }
  func.func @transform_1(%arg0: i32) -> (i32, i32) {
    %c0_i32 = arith.constant 0 : i32
    %c0_i32_0 = arith.constant 0 : i32
    return %c0_i32, %arg0 : i32, i32
  }
  func.func @transform_2(%arg0: i32) -> (i32, i32) {
    %c0_i32 = arith.constant 0 : i32
    %c0_i32_0 = arith.constant 0 : i32
    %c0_i32_1 = arith.constant 0 : i32
    return %c0_i32, %c0_i32_0 : i32, i32
  }
  func.func @transform_3(%arg0: i32) -> (i32, i32) {
    %c0_i32 = arith.constant 0 : i32
    %c0_i32_0 = arith.constant 0 : i32
    return %c0_i32, %arg0 : i32, i32
  }
  func.func @transform_4(%arg0: i32) -> (i32, i32) {
    %c0_i32 = arith.constant 0 : i32
    %c0_i32_0 = arith.constant 0 : i32
    return %c0_i32, %arg0 : i32, i32
  }
}

module attributes {stable_mosaic.version = 11 : i64} {
  func.func @kernel(%arg0: i32, %arg1: memref<16x144xbf16, #tpu.memory_space<vmem>>, %arg2: memref<144x256xbf16, #tpu.memory_space<vmem>>, %arg3: memref<16x1xf32, #tpu.memory_space<vmem>>, %arg4: memref<16x256xf32, #tpu.memory_space<vmem>>) attributes {dimension_semantics = [#tpu.dimension_semantics<parallel>], iteration_bounds = array<i64: 2>, scalar_prefetch = 0 : i64, scratch_operands = 0 : i64, tpu.core_type = #tpu.core_type<tc>, window_params = [{pipeline_mode = #tpu.pipeline_mode<synchronous>, transform_indices = @transform_0, window_bounds = array<i64: 16, 144>}, {transform_indices = @transform_1, window_bounds = array<i64: 144, 256>}, {pipeline_mode = #tpu.pipeline_mode<synchronous>, transform_indices = @transform_2, window_bounds = array<i64: 16, 1>}, {transform_indices = @transform_3, window_bounds = array<i64: 16, 256>}]} {
    %c0 = arith.constant 0 : index
    %c0_0 = arith.constant 0 : index
    %0 = vector.load %arg2[%c0, %c0_0] : memref<144x256xbf16, #tpu.memory_space<vmem>>, vector<144x256xbf16>
    %c0_1 = arith.constant 0 : index
    %c0_2 = arith.constant 0 : index
    %1 = vector.load %arg1[%c0_1, %c0_2] : memref<16x144xbf16, #tpu.memory_space<vmem>>, vector<16x144xbf16>
    %cst = arith.constant dense<0.000000e+00> : vector<16x256xf32>
    %2 = tpu.matmul %1, %0, %cst {dimension_numbers = #tpu.dot_dimension_numbers<[1], [0], [0], [1], [0, 0, 1, 1], [], []>} : vector<16x144xbf16>, vector<144x256xbf16>, vector<16x256xf32> -> vector<16x256xf32>
    %c0_3 = arith.constant 0 : index
    %c0_4 = arith.constant 0 : index
    %3 = vector.load %arg3[%c0_3, %c0_4] : memref<16x1xf32, #tpu.memory_space<vmem>>, vector<16x1xf32>
    %4 = vector.broadcast %3 : vector<16x1xf32> to vector<16x256xf32>
    %5 = arith.addf %2, %4 : vector<16x256xf32>
    %cst_5 = arith.constant 0.000000e+00 : f32
    %6 = vector.broadcast %cst_5 : f32 to vector<16x256xf32>
    %7 = arith.maximumf %5, %6 : vector<16x256xf32>
    %c0_6 = arith.constant 0 : index
    %c0_7 = arith.constant 0 : index
    %8 = vector.load %arg4[%c0_6, %c0_7] : memref<16x256xf32, #tpu.memory_space<vmem>>, vector<16x256xf32>
    tpu.vector_store %arg4[%c0_6, %c0_7], %7 {strides = array<i32>} : memref<16x256xf32, #tpu.memory_space<vmem>>, vector<16x256xf32>,
    return
  }
  func.func @transform_0(%arg0: i32) -> (i32, i32) {
    %c0_i32 = arith.constant 0 : i32
    %c0_i32_0 = arith.constant 0 : i32
    %c0_i32_1 = arith.constant 0 : i32
    return %c0_i32, %c0_i32_0 : i32, i32
  }
  func.func @transform_1(%arg0: i32) -> (i32, i32) {
    %c0_i32 = arith.constant 0 : i32
    %c0_i32_0 = arith.constant 0 : i32
    return %c0_i32, %arg0 : i32, i32
  }
  func.func @transform_2(%arg0: i32) -> (i32, i32) {
    %c0_i32 = arith.constant 0 : i32
    %c0_i32_0 = arith.constant 0 : i32
    %c0_i32_1 = arith.constant 0 : i32
    return %c0_i32, %c0_i32_0 : i32, i32
  }
  func.func @transform_3(%arg0: i32) -> (i32, i32) {
    %c0_i32 = arith.constant 0 : i32
    %c0_i32_0 = arith.constant 0 : i32
    return %c0_i32, %arg0 : i32, i32
  }
}

module attributes {stable_mosaic.version = 11 : i64} {
  func.func @kernel(%arg0: i32, %arg1: memref<16x144xbf16, #tpu.memory_space<vmem>>, %arg2: memref<144x256xbf16, #tpu.memory_space<vmem>>, %arg3: memref<16x1xf32, #tpu.memory_space<vmem>>, %arg4: memref<16x16xf32, #tpu.memory_space<vmem>>, %arg5: memref<16x1xf32, #tpu.memory_space<vmem>>, %arg6: memref<16x256xf32, #tpu.memory_space<vmem>>) attributes {dimension_semantics = [#tpu.dimension_semantics<parallel>], iteration_bounds = array<i64: 2>, scalar_prefetch = 0 : i64, scratch_operands = 0 : i64, tpu.core_type = #tpu.core_type<tc>, window_params = [{pipeline_mode = #tpu.pipeline_mode<synchronous>, transform_indices = @transform_0, window_bounds = array<i64: 16, 144>}, {transform_indices = @transform_1, window_bounds = array<i64: 144, 256>}, {pipeline_mode = #tpu.pipeline_mode<synchronous>, transform_indices = @transform_2, window_bounds = array<i64: 16, 1>}, {pipeline_mode = #tpu.pipeline_mode<synchronous>, transform_indices = @transform_3, window_bounds = array<i64: 16, 16>}, {pipeline_mode = #tpu.pipeline_mode<synchronous>, transform_indices = @transform_4, window_bounds = array<i64: 16, 1>}, {transform_indices = @transform_5, window_bounds = array<i64: 16, 256>}]} {
    %c0 = arith.constant 0 : index
    %c0_0 = arith.constant 0 : index
    %0 = vector.load %arg2[%c0, %c0_0] : memref<144x256xbf16, #tpu.memory_space<vmem>>, vector<144x256xbf16>
    %c0_1 = arith.constant 0 : index
    %c0_2 = arith.constant 0 : index
    %1 = vector.load %arg1[%c0_1, %c0_2] : memref<16x144xbf16, #tpu.memory_space<vmem>>, vector<16x144xbf16>
    %cst = arith.constant dense<0.000000e+00> : vector<16x256xf32>
    %2 = tpu.matmul %1, %0, %cst {dimension_numbers = #tpu.dot_dimension_numbers<[1], [0], [0], [1], [0, 0, 1, 1], [], []>} : vector<16x144xbf16>, vector<144x256xbf16>, vector<16x256xf32> -> vector<16x256xf32>
    %c0_3 = arith.constant 0 : index
    %c0_4 = arith.constant 0 : index
    %3 = vector.load %arg3[%c0_3, %c0_4] : memref<16x1xf32, #tpu.memory_space<vmem>>, vector<16x1xf32>
    %4 = vector.broadcast %3 : vector<16x1xf32> to vector<16x256xf32>
    %5 = arith.addf %2, %4 : vector<16x256xf32>
    %c0_5 = arith.constant 0 : index
    %c0_6 = arith.constant 0 : index
    %6 = vector.load %arg4[%c0_5, %c0_6] : memref<16x16xf32, #tpu.memory_space<vmem>>, vector<16x16xf32>
    %7 = arith.mulf %5, %5 : vector<16x256xf32>
    %cst_7 = arith.constant dense<0.000000e+00> : vector<16x256xf32>
    %8 = tpu.matmul %6, %7, %cst_7 {dimension_numbers = #tpu.dot_dimension_numbers<[1], [0], [0], [1], [0, 0, 1, 1], [], []>} : vector<16x16xf32>, vector<16x256xf32>, vector<16x256xf32> -> vector<16x256xf32>
    %c0_8 = arith.constant 0 : index
    %c0_9 = arith.constant 0 : index
    %9 = vector.load %arg5[%c0_8, %c0_9] : memref<16x1xf32, #tpu.memory_space<vmem>>, vector<16x1xf32>
    %10 = vector.broadcast %9 : vector<16x1xf32> to vector<16x256xf32>
    %11 = arith.addf %8, %10 : vector<16x256xf32>
    %12 = math.rsqrt %11 : vector<16x256xf32>
    %13 = arith.mulf %5, %12 : vector<16x256xf32>
    %c0_10 = arith.constant 0 : index
    %c0_11 = arith.constant 0 : index
    %14 = vector.load %arg6[%c0_10, %c0_11] : memref<16x256xf32, #tpu.memory_space<vmem>>, vector<16x256xf32>
    tpu.vector_store %arg6[%c0_10, %c0_11], %13 {strides = array<i32>} : memref<16x256xf32, #tpu.memory_space<vmem>>, vector<16x256xf32>,
    return
  }
  func.func @transform_0(%arg0: i32) -> (i32, i32) {
    %c0_i32 = arith.constant 0 : i32
    %c0_i32_0 = arith.constant 0 : i32
    %c0_i32_1 = arith.constant 0 : i32
    return %c0_i32, %c0_i32_0 : i32, i32
  }
  func.func @transform_1(%arg0: i32) -> (i32, i32) {
    %c0_i32 = arith.constant 0 : i32
    %c0_i32_0 = arith.constant 0 : i32
    return %c0_i32, %arg0 : i32, i32
  }
  func.func @transform_2(%arg0: i32) -> (i32, i32) {
    %c0_i32 = arith.constant 0 : i32
    %c0_i32_0 = arith.constant 0 : i32
    %c0_i32_1 = arith.constant 0 : i32
    return %c0_i32, %c0_i32_0 : i32, i32
  }
  func.func @transform_3(%arg0: i32) -> (i32, i32) {
    %c0_i32 = arith.constant 0 : i32
    %c0_i32_0 = arith.constant 0 : i32
    %c0_i32_1 = arith.constant 0 : i32
    return %c0_i32, %c0_i32_0 : i32, i32
  }
  func.func @transform_4(%arg0: i32) -> (i32, i32) {
    %c0_i32 = arith.constant 0 : i32
    %c0_i32_0 = arith.constant 0 : i32
    %c0_i32_1 = arith.constant 0 : i32
    return %c0_i32, %c0_i32_0 : i32, i32
  }
  func.func @transform_5(%arg0: i32) -> (i32, i32) {
    %c0_i32 = arith.constant 0 : i32
    %c0_i32_0 = arith.constant 0 : i32
    return %c0_i32, %arg0 : i32, i32
  }
}

module attributes {stable_mosaic.version = 11 : i64} {
  func.func @kernel(%arg0: i32, %arg1: memref<16x144xbf16, #tpu.memory_space<vmem>>, %arg2: memref<144x256xbf16, #tpu.memory_space<vmem>>, %arg3: memref<16x1xf32, #tpu.memory_space<vmem>>, %arg4: memref<16x16xf32, #tpu.memory_space<vmem>>, %arg5: memref<16x1xf32, #tpu.memory_space<vmem>>, %arg6: memref<16x256xf32, #tpu.memory_space<vmem>>, %arg7: memref<16x256xf32, #tpu.memory_space<vmem>>) attributes {dimension_semantics = [#tpu.dimension_semantics<parallel>], iteration_bounds = array<i64: 2>, scalar_prefetch = 0 : i64, scratch_operands = 0 : i64, tpu.core_type = #tpu.core_type<tc>, window_params = [{pipeline_mode = #tpu.pipeline_mode<synchronous>, transform_indices = @transform_0, window_bounds = array<i64: 16, 144>}, {transform_indices = @transform_1, window_bounds = array<i64: 144, 256>}, {pipeline_mode = #tpu.pipeline_mode<synchronous>, transform_indices = @transform_2, window_bounds = array<i64: 16, 1>}, {pipeline_mode = #tpu.pipeline_mode<synchronous>, transform_indices = @transform_3, window_bounds = array<i64: 16, 16>}, {pipeline_mode = #tpu.pipeline_mode<synchronous>, transform_indices = @transform_4, window_bounds = array<i64: 16, 1>}, {transform_indices = @transform_5, window_bounds = array<i64: 16, 256>}, {transform_indices = @transform_6, window_bounds = array<i64: 16, 256>}]} {
    %c0 = arith.constant 0 : index
    %c0_0 = arith.constant 0 : index
    %0 = vector.load %arg2[%c0, %c0_0] : memref<144x256xbf16, #tpu.memory_space<vmem>>, vector<144x256xbf16>
    %c0_1 = arith.constant 0 : index
    %c0_2 = arith.constant 0 : index
    %1 = vector.load %arg1[%c0_1, %c0_2] : memref<16x144xbf16, #tpu.memory_space<vmem>>, vector<16x144xbf16>
    %cst = arith.constant dense<0.000000e+00> : vector<16x256xf32>
    %2 = tpu.matmul %1, %0, %cst {dimension_numbers = #tpu.dot_dimension_numbers<[1], [0], [0], [1], [0, 0, 1, 1], [], []>} : vector<16x144xbf16>, vector<144x256xbf16>, vector<16x256xf32> -> vector<16x256xf32>
    %c0_3 = arith.constant 0 : index
    %c0_4 = arith.constant 0 : index
    %3 = vector.load %arg3[%c0_3, %c0_4] : memref<16x1xf32, #tpu.memory_space<vmem>>, vector<16x1xf32>
    %4 = vector.broadcast %3 : vector<16x1xf32> to vector<16x256xf32>
    %5 = arith.addf %2, %4 : vector<16x256xf32>
    %c0_5 = arith.constant 0 : index
    %c0_6 = arith.constant 0 : index
    %6 = vector.load %arg4[%c0_5, %c0_6] : memref<16x16xf32, #tpu.memory_space<vmem>>, vector<16x16xf32>
    %7 = arith.mulf %5, %5 : vector<16x256xf32>
    %cst_7 = arith.constant dense<0.000000e+00> : vector<16x256xf32>
    %8 = tpu.matmul %6, %7, %cst_7 {dimension_numbers = #tpu.dot_dimension_numbers<[1], [0], [0], [1], [0, 0, 1, 1], [], []>} : vector<16x16xf32>, vector<16x256xf32>, vector<16x256xf32> -> vector<16x256xf32>
    %c0_8 = arith.constant 0 : index
    %c0_9 = arith.constant 0 : index
    %9 = vector.load %arg5[%c0_8, %c0_9] : memref<16x1xf32, #tpu.memory_space<vmem>>, vector<16x1xf32>
    %10 = vector.broadcast %9 : vector<16x1xf32> to vector<16x256xf32>
    %11 = arith.addf %8, %10 : vector<16x256xf32>
    %12 = math.rsqrt %11 : vector<16x256xf32>
    %13 = arith.mulf %5, %12 : vector<16x256xf32>
    %c0_10 = arith.constant 0 : index
    %c0_11 = arith.constant 0 : index
    %14 = vector.load %arg6[%c0_10, %c0_11] : memref<16x256xf32, #tpu.memory_space<vmem>>, vector<16x256xf32>
    %15 = arith.addf %13, %14 : vector<16x256xf32>
    %c0_12 = arith.constant 0 : index
    %c0_13 = arith.constant 0 : index
    %16 = vector.load %arg7[%c0_12, %c0_13] : memref<16x256xf32, #tpu.memory_space<vmem>>, vector<16x256xf32>
    tpu.vector_store %arg7[%c0_12, %c0_13], %15 {strides = array<i32>} : memref<16x256xf32, #tpu.memory_space<vmem>>, vector<16x256xf32>,
    return
  }
  func.func @transform_0(%arg0: i32) -> (i32, i32) {
    %c0_i32 = arith.constant 0 : i32
    %c0_i32_0 = arith.constant 0 : i32
    %c0_i32_1 = arith.constant 0 : i32
    return %c0_i32, %c0_i32_0 : i32, i32
  }
  func.func @transform_1(%arg0: i32) -> (i32, i32) {
    %c0_i32 = arith.constant 0 : i32
    %c0_i32_0 = arith.constant 0 : i32
    return %c0_i32, %arg0 : i32, i32
  }
  func.func @transform_2(%arg0: i32) -> (i32, i32) {
    %c0_i32 = arith.constant 0 : i32
    %c0_i32_0 = arith.constant 0 : i32
    %c0_i32_1 = arith.constant 0 : i32
    return %c0_i32, %c0_i32_0 : i32, i32
  }
  func.func @transform_3(%arg0: i32) -> (i32, i32) {
    %c0_i32 = arith.constant 0 : i32
    %c0_i32_0 = arith.constant 0 : i32
    %c0_i32_1 = arith.constant 0 : i32
    return %c0_i32, %c0_i32_0 : i32, i32
  }
  func.func @transform_4(%arg0: i32) -> (i32, i32) {
    %c0_i32 = arith.constant 0 : i32
    %c0_i32_0 = arith.constant 0 : i32
    %c0_i32_1 = arith.constant 0 : i32
    return %c0_i32, %c0_i32_0 : i32, i32
  }
  func.func @transform_5(%arg0: i32) -> (i32, i32) {
    %c0_i32 = arith.constant 0 : i32
    %c0_i32_0 = arith.constant 0 : i32
    return %c0_i32, %arg0 : i32, i32
  }
  func.func @transform_6(%arg0: i32) -> (i32, i32) {
    %c0_i32 = arith.constant 0 : i32
    %c0_i32_0 = arith.constant 0 : i32
    return %c0_i32, %arg0 : i32, i32
  }
}

module attributes {stable_mosaic.version = 11 : i64} {
  func.func @kernel(%arg0: i32, %arg1: memref<16x16xbf16, #tpu.memory_space<vmem>>, %arg2: memref<16x256xf32, #tpu.memory_space<vmem>>, %arg3: memref<16x1xf32, #tpu.memory_space<vmem>>, %arg4: memref<16x256xf32, #tpu.memory_space<vmem>>, %arg5: memref<16x256xf32, #tpu.memory_space<vmem>>, %arg6: memref<16x256xf32, #tpu.memory_space<vmem>>) attributes {dimension_semantics = [#tpu.dimension_semantics<parallel>], iteration_bounds = array<i64: 2>, scalar_prefetch = 0 : i64, scratch_operands = 0 : i64, tpu.core_type = #tpu.core_type<tc>, window_params = [{pipeline_mode = #tpu.pipeline_mode<synchronous>, transform_indices = @transform_0, window_bounds = array<i64: 16, 16>}, {transform_indices = @transform_1, window_bounds = array<i64: 16, 256>}, {pipeline_mode = #tpu.pipeline_mode<synchronous>, transform_indices = @transform_2, window_bounds = array<i64: 16, 1>}, {transform_indices = @transform_3, window_bounds = array<i64: 16, 256>}, {transform_indices = @transform_4, window_bounds = array<i64: 16, 256>}, {transform_indices = @transform_5, window_bounds = array<i64: 16, 256>}]} {
    %c0 = arith.constant 0 : index
    %c0_0 = arith.constant 0 : index
    %0 = vector.load %arg2[%c0, %c0_0] : memref<16x256xf32, #tpu.memory_space<vmem>>, vector<16x256xf32>
    %1 = arith.truncf %0 : vector<16x256xf32> to vector<16x256xbf16>
    %c0_1 = arith.constant 0 : index
    %c0_2 = arith.constant 0 : index
    %2 = vector.load %arg1[%c0_1, %c0_2] : memref<16x16xbf16, #tpu.memory_space<vmem>>, vector<16x16xbf16>
    %cst = arith.constant dense<0.000000e+00> : vector<16x256xf32>
    %3 = tpu.matmul %2, %1, %cst {dimension_numbers = #tpu.dot_dimension_numbers<[1], [0], [0], [1], [0, 0, 1, 1], [], []>} : vector<16x16xbf16>, vector<16x256xbf16>, vector<16x256xf32> -> vector<16x256xf32>
    %c0_3 = arith.constant 0 : index
    %c0_4 = arith.constant 0 : index
    %4 = vector.load %arg3[%c0_3, %c0_4] : memref<16x1xf32, #tpu.memory_space<vmem>>, vector<16x1xf32>
    %5 = vector.broadcast %4 : vector<16x1xf32> to vector<16x256xf32>
    %6 = arith.addf %3, %5 : vector<16x256xf32>
    %cst_5 = arith.constant 0.000000e+00 : f32
    %7 = vector.broadcast %cst_5 : f32 to vector<16x256xf32>
    %8 = arith.subf %7, %6 : vector<16x256xf32>
    %9 = math.exp %8 : vector<16x256xf32>
    %cst_6 = arith.constant 1.000000e+00 : f32
    %10 = vector.broadcast %cst_6 : f32 to vector<16x256xf32>
    %11 = arith.addf %10, %9 : vector<16x256xf32>
    %cst_7 = arith.constant 1.000000e+00 : f32
    %12 = vector.broadcast %cst_7 : f32 to vector<16x256xf32>
    %13 = arith.divf %12, %11 : vector<16x256xf32>
    %c0_8 = arith.constant 0 : index
    %c0_9 = arith.constant 0 : index
    %14 = vector.load %arg4[%c0_8, %c0_9] : memref<16x256xf32, #tpu.memory_space<vmem>>, vector<16x256xf32>
    %15 = arith.mulf %14, %13 : vector<16x256xf32>
    %c0_10 = arith.constant 0 : index
    %c0_11 = arith.constant 0 : index
    %16 = vector.load %arg5[%c0_10, %c0_11] : memref<16x256xf32, #tpu.memory_space<vmem>>, vector<16x256xf32>
    %17 = arith.addf %15, %16 : vector<16x256xf32>
    %c0_12 = arith.constant 0 : index
    %c0_13 = arith.constant 0 : index
    %18 = vector.load %arg6[%c0_12, %c0_13] : memref<16x256xf32, #tpu.memory_space<vmem>>, vector<16x256xf32>
    tpu.vector_store %arg6[%c0_12, %c0_13], %17 {strides = array<i32>} : memref<16x256xf32, #tpu.memory_space<vmem>>, vector<16x256xf32>,
    return
  }
  func.func @transform_0(%arg0: i32) -> (i32, i32) {
    %c0_i32 = arith.constant 0 : i32
    %c0_i32_0 = arith.constant 0 : i32
    %c0_i32_1 = arith.constant 0 : i32
    return %c0_i32, %c0_i32_0 : i32, i32
  }
  func.func @transform_1(%arg0: i32) -> (i32, i32) {
    %c0_i32 = arith.constant 0 : i32
    %c0_i32_0 = arith.constant 0 : i32
    return %c0_i32, %arg0 : i32, i32
  }
  func.func @transform_2(%arg0: i32) -> (i32, i32) {
    %c0_i32 = arith.constant 0 : i32
    %c0_i32_0 = arith.constant 0 : i32
    %c0_i32_1 = arith.constant 0 : i32
    return %c0_i32, %c0_i32_0 : i32, i32
  }
  func.func @transform_3(%arg0: i32) -> (i32, i32) {
    %c0_i32 = arith.constant 0 : i32
    %c0_i32_0 = arith.constant 0 : i32
    return %c0_i32, %arg0 : i32, i32
  }
  func.func @transform_4(%arg0: i32) -> (i32, i32) {
    %c0_i32 = arith.constant 0 : i32
    %c0_i32_0 = arith.constant 0 : i32
    return %c0_i32, %arg0 : i32, i32
  }
  func.func @transform_5(%arg0: i32) -> (i32, i32) {
    %c0_i32 = arith.constant 0 : i32
    %c0_i32_0 = arith.constant 0 : i32
    return %c0_i32, %arg0 : i32, i32
  }
}

module attributes {stable_mosaic.version = 11 : i64} {
  func.func @kernel(%arg0: i32, %arg1: memref<16x400xbf16, #tpu.memory_space<vmem>>, %arg2: memref<400x128xbf16, #tpu.memory_space<vmem>>, %arg3: memref<16x1xf32, #tpu.memory_space<vmem>>, %arg4: memref<16x128xf32, #tpu.memory_space<vmem>>) attributes {dimension_semantics = [#tpu.dimension_semantics<parallel>], iteration_bounds = array<i64: 1>, scalar_prefetch = 0 : i64, scratch_operands = 0 : i64, tpu.core_type = #tpu.core_type<tc>, window_params = [{pipeline_mode = #tpu.pipeline_mode<synchronous>, transform_indices = @transform_0, window_bounds = array<i64: 16, 400>}, {transform_indices = @transform_1, window_bounds = array<i64: 400, 128>}, {pipeline_mode = #tpu.pipeline_mode<synchronous>, transform_indices = @transform_2, window_bounds = array<i64: 16, 1>}, {transform_indices = @transform_3, window_bounds = array<i64: 16, 128>}]} {
    %c0 = arith.constant 0 : index
    %c0_0 = arith.constant 0 : index
    %0 = vector.load %arg2[%c0, %c0_0] : memref<400x128xbf16, #tpu.memory_space<vmem>>, vector<400x128xbf16>
    %c0_1 = arith.constant 0 : index
    %c0_2 = arith.constant 0 : index
    %1 = vector.load %arg1[%c0_1, %c0_2] : memref<16x400xbf16, #tpu.memory_space<vmem>>, vector<16x400xbf16>
    %cst = arith.constant dense<0.000000e+00> : vector<16x128xf32>
    %2 = tpu.matmul %1, %0, %cst {dimension_numbers = #tpu.dot_dimension_numbers<[1], [0], [0], [1], [0, 0, 1, 1], [], []>} : vector<16x400xbf16>, vector<400x128xbf16>, vector<16x128xf32> -> vector<16x128xf32>
    %c0_3 = arith.constant 0 : index
    %c0_4 = arith.constant 0 : index
    %3 = vector.load %arg3[%c0_3, %c0_4] : memref<16x1xf32, #tpu.memory_space<vmem>>, vector<16x1xf32>
    %4 = vector.broadcast %3 : vector<16x1xf32> to vector<16x128xf32>
    %5 = arith.addf %2, %4 : vector<16x128xf32>
    %c0_5 = arith.constant 0 : index
    %c0_6 = arith.constant 0 : index
    %6 = vector.load %arg4[%c0_5, %c0_6] : memref<16x128xf32, #tpu.memory_space<vmem>>, vector<16x128xf32>
    tpu.vector_store %arg4[%c0_5, %c0_6], %5 {strides = array<i32>} : memref<16x128xf32, #tpu.memory_space<vmem>>, vector<16x128xf32>,
    return
  }
  func.func @transform_0(%arg0: i32) -> (i32, i32) {
    %c0_i32 = arith.constant 0 : i32
    %c0_i32_0 = arith.constant 0 : i32
    %c0_i32_1 = arith.constant 0 : i32
    return %c0_i32, %c0_i32_0 : i32, i32
  }
  func.func @transform_1(%arg0: i32) -> (i32, i32) {
    %c0_i32 = arith.constant 0 : i32
    %c0_i32_0 = arith.constant 0 : i32
    return %c0_i32, %arg0 : i32, i32
  }
  func.func @transform_2(%arg0: i32) -> (i32, i32) {
    %c0_i32 = arith.constant 0 : i32
    %c0_i32_0 = arith.constant 0 : i32
    %c0_i32_1 = arith.constant 0 : i32
    return %c0_i32, %c0_i32_0 : i32, i32
  }
  func.func @transform_3(%arg0: i32) -> (i32, i32) {
    %c0_i32 = arith.constant 0 : i32
    %c0_i32_0 = arith.constant 0 : i32
    return %c0_i32, %arg0 : i32, i32
  }
}

module attributes {stable_mosaic.version = 11 : i64} {
  func.func @kernel(%arg0: i32, %arg1: memref<16x144xbf16, #tpu.memory_space<vmem>>, %arg2: memref<144x128xbf16, #tpu.memory_space<vmem>>, %arg3: memref<16x1xf32, #tpu.memory_space<vmem>>, %arg4: memref<16x128xf32, #tpu.memory_space<vmem>>) attributes {dimension_semantics = [#tpu.dimension_semantics<parallel>], iteration_bounds = array<i64: 1>, scalar_prefetch = 0 : i64, scratch_operands = 0 : i64, tpu.core_type = #tpu.core_type<tc>, window_params = [{pipeline_mode = #tpu.pipeline_mode<synchronous>, transform_indices = @transform_0, window_bounds = array<i64: 16, 144>}, {transform_indices = @transform_1, window_bounds = array<i64: 144, 128>}, {pipeline_mode = #tpu.pipeline_mode<synchronous>, transform_indices = @transform_2, window_bounds = array<i64: 16, 1>}, {transform_indices = @transform_3, window_bounds = array<i64: 16, 128>}]} {
    %c0 = arith.constant 0 : index
    %c0_0 = arith.constant 0 : index
    %0 = vector.load %arg2[%c0, %c0_0] : memref<144x128xbf16, #tpu.memory_space<vmem>>, vector<144x128xbf16>
    %c0_1 = arith.constant 0 : index
    %c0_2 = arith.constant 0 : index
    %1 = vector.load %arg1[%c0_1, %c0_2] : memref<16x144xbf16, #tpu.memory_space<vmem>>, vector<16x144xbf16>
    %cst = arith.constant dense<0.000000e+00> : vector<16x128xf32>
    %2 = tpu.matmul %1, %0, %cst {dimension_numbers = #tpu.dot_dimension_numbers<[1], [0], [0], [1], [0, 0, 1, 1], [], []>} : vector<16x144xbf16>, vector<144x128xbf16>, vector<16x128xf32> -> vector<16x128xf32>
    %c0_3 = arith.constant 0 : index
    %c0_4 = arith.constant 0 : index
    %3 = vector.load %arg3[%c0_3, %c0_4] : memref<16x1xf32, #tpu.memory_space<vmem>>, vector<16x1xf32>
    %4 = vector.broadcast %3 : vector<16x1xf32> to vector<16x128xf32>
    %5 = arith.addf %2, %4 : vector<16x128xf32>
    %cst_5 = arith.constant 0.000000e+00 : f32
    %6 = vector.broadcast %cst_5 : f32 to vector<16x128xf32>
    %7 = arith.maximumf %5, %6 : vector<16x128xf32>
    %c0_6 = arith.constant 0 : index
    %c0_7 = arith.constant 0 : index
    %8 = vector.load %arg4[%c0_6, %c0_7] : memref<16x128xf32, #tpu.memory_space<vmem>>, vector<16x128xf32>
    tpu.vector_store %arg4[%c0_6, %c0_7], %7 {strides = array<i32>} : memref<16x128xf32, #tpu.memory_space<vmem>>, vector<16x128xf32>,
    return
  }
  func.func @transform_0(%arg0: i32) -> (i32, i32) {
    %c0_i32 = arith.constant 0 : i32
    %c0_i32_0 = arith.constant 0 : i32
    %c0_i32_1 = arith.constant 0 : i32
    return %c0_i32, %c0_i32_0 : i32, i32
  }
  func.func @transform_1(%arg0: i32) -> (i32, i32) {
    %c0_i32 = arith.constant 0 : i32
    %c0_i32_0 = arith.constant 0 : i32
    return %c0_i32, %arg0 : i32, i32
  }
  func.func @transform_2(%arg0: i32) -> (i32, i32) {
    %c0_i32 = arith.constant 0 : i32
    %c0_i32_0 = arith.constant 0 : i32
    %c0_i32_1 = arith.constant 0 : i32
    return %c0_i32, %c0_i32_0 : i32, i32
  }
  func.func @transform_3(%arg0: i32) -> (i32, i32) {
    %c0_i32 = arith.constant 0 : i32
    %c0_i32_0 = arith.constant 0 : i32
    return %c0_i32, %arg0 : i32, i32
  }
}

module attributes {stable_mosaic.version = 11 : i64} {
  func.func @kernel(%arg0: i32, %arg1: memref<16x144xbf16, #tpu.memory_space<vmem>>, %arg2: memref<144x128xbf16, #tpu.memory_space<vmem>>, %arg3: memref<16x1xf32, #tpu.memory_space<vmem>>, %arg4: memref<16x128xf32, #tpu.memory_space<vmem>>, %arg5: memref<16x128xf32, #tpu.memory_space<vmem>>) attributes {dimension_semantics = [#tpu.dimension_semantics<parallel>], iteration_bounds = array<i64: 1>, scalar_prefetch = 0 : i64, scratch_operands = 0 : i64, tpu.core_type = #tpu.core_type<tc>, window_params = [{pipeline_mode = #tpu.pipeline_mode<synchronous>, transform_indices = @transform_0, window_bounds = array<i64: 16, 144>}, {transform_indices = @transform_1, window_bounds = array<i64: 144, 128>}, {pipeline_mode = #tpu.pipeline_mode<synchronous>, transform_indices = @transform_2, window_bounds = array<i64: 16, 1>}, {transform_indices = @transform_3, window_bounds = array<i64: 16, 128>}, {transform_indices = @transform_4, window_bounds = array<i64: 16, 128>}]} {
    %c0 = arith.constant 0 : index
    %c0_0 = arith.constant 0 : index
    %0 = vector.load %arg2[%c0, %c0_0] : memref<144x128xbf16, #tpu.memory_space<vmem>>, vector<144x128xbf16>
    %c0_1 = arith.constant 0 : index
    %c0_2 = arith.constant 0 : index
    %1 = vector.load %arg1[%c0_1, %c0_2] : memref<16x144xbf16, #tpu.memory_space<vmem>>, vector<16x144xbf16>
    %cst = arith.constant dense<0.000000e+00> : vector<16x128xf32>
    %2 = tpu.matmul %1, %0, %cst {dimension_numbers = #tpu.dot_dimension_numbers<[1], [0], [0], [1], [0, 0, 1, 1], [], []>} : vector<16x144xbf16>, vector<144x128xbf16>, vector<16x128xf32> -> vector<16x128xf32>
    %c0_3 = arith.constant 0 : index
    %c0_4 = arith.constant 0 : index
    %3 = vector.load %arg3[%c0_3, %c0_4] : memref<16x1xf32, #tpu.memory_space<vmem>>, vector<16x1xf32>
    %4 = vector.broadcast %3 : vector<16x1xf32> to vector<16x128xf32>
    %5 = arith.addf %2, %4 : vector<16x128xf32>
    %c0_5 = arith.constant 0 : index
    %c0_6 = arith.constant 0 : index
    %6 = vector.load %arg4[%c0_5, %c0_6] : memref<16x128xf32, #tpu.memory_space<vmem>>, vector<16x128xf32>
    %7 = arith.addf %5, %6 : vector<16x128xf32>
    %c0_7 = arith.constant 0 : index
    %c0_8 = arith.constant 0 : index
    %8 = vector.load %arg5[%c0_7, %c0_8] : memref<16x128xf32, #tpu.memory_space<vmem>>, vector<16x128xf32>
    tpu.vector_store %arg5[%c0_7, %c0_8], %7 {strides = array<i32>} : memref<16x128xf32, #tpu.memory_space<vmem>>, vector<16x128xf32>,
    return
  }
  func.func @transform_0(%arg0: i32) -> (i32, i32) {
    %c0_i32 = arith.constant 0 : i32
    %c0_i32_0 = arith.constant 0 : i32
    %c0_i32_1 = arith.constant 0 : i32
    return %c0_i32, %c0_i32_0 : i32, i32
  }
  func.func @transform_1(%arg0: i32) -> (i32, i32) {
    %c0_i32 = arith.constant 0 : i32
    %c0_i32_0 = arith.constant 0 : i32
    return %c0_i32, %arg0 : i32, i32
  }
  func.func @transform_2(%arg0: i32) -> (i32, i32) {
    %c0_i32 = arith.constant 0 : i32
    %c0_i32_0 = arith.constant 0 : i32
    %c0_i32_1 = arith.constant 0 : i32
    return %c0_i32, %c0_i32_0 : i32, i32
  }
  func.func @transform_3(%arg0: i32) -> (i32, i32) {
    %c0_i32 = arith.constant 0 : i32
    %c0_i32_0 = arith.constant 0 : i32
    return %c0_i32, %arg0 : i32, i32
  }
  func.func @transform_4(%arg0: i32) -> (i32, i32) {
    %c0_i32 = arith.constant 0 : i32
    %c0_i32_0 = arith.constant 0 : i32
    return %c0_i32, %arg0 : i32, i32
  }
}

module attributes {stable_mosaic.version = 11 : i64} {
  func.func @kernel(%arg0: i32, %arg1: memref<16x144xbf16, #tpu.memory_space<vmem>>, %arg2: memref<144x128xbf16, #tpu.memory_space<vmem>>, %arg3: memref<16x1xf32, #tpu.memory_space<vmem>>, %arg4: memref<16x16xf32, #tpu.memory_space<vmem>>, %arg5: memref<16x1xf32, #tpu.memory_space<vmem>>, %arg6: memref<16x128xf32, #tpu.memory_space<vmem>>) attributes {dimension_semantics = [#tpu.dimension_semantics<parallel>], iteration_bounds = array<i64: 1>, scalar_prefetch = 0 : i64, scratch_operands = 0 : i64, tpu.core_type = #tpu.core_type<tc>, window_params = [{pipeline_mode = #tpu.pipeline_mode<synchronous>, transform_indices = @transform_0, window_bounds = array<i64: 16, 144>}, {transform_indices = @transform_1, window_bounds = array<i64: 144, 128>}, {pipeline_mode = #tpu.pipeline_mode<synchronous>, transform_indices = @transform_2, window_bounds = array<i64: 16, 1>}, {pipeline_mode = #tpu.pipeline_mode<synchronous>, transform_indices = @transform_3, window_bounds = array<i64: 16, 16>}, {pipeline_mode = #tpu.pipeline_mode<synchronous>, transform_indices = @transform_4, window_bounds = array<i64: 16, 1>}, {transform_indices = @transform_5, window_bounds = array<i64: 16, 128>}]} {
    %c0 = arith.constant 0 : index
    %c0_0 = arith.constant 0 : index
    %0 = vector.load %arg2[%c0, %c0_0] : memref<144x128xbf16, #tpu.memory_space<vmem>>, vector<144x128xbf16>
    %c0_1 = arith.constant 0 : index
    %c0_2 = arith.constant 0 : index
    %1 = vector.load %arg1[%c0_1, %c0_2] : memref<16x144xbf16, #tpu.memory_space<vmem>>, vector<16x144xbf16>
    %cst = arith.constant dense<0.000000e+00> : vector<16x128xf32>
    %2 = tpu.matmul %1, %0, %cst {dimension_numbers = #tpu.dot_dimension_numbers<[1], [0], [0], [1], [0, 0, 1, 1], [], []>} : vector<16x144xbf16>, vector<144x128xbf16>, vector<16x128xf32> -> vector<16x128xf32>
    %c0_3 = arith.constant 0 : index
    %c0_4 = arith.constant 0 : index
    %3 = vector.load %arg3[%c0_3, %c0_4] : memref<16x1xf32, #tpu.memory_space<vmem>>, vector<16x1xf32>
    %4 = vector.broadcast %3 : vector<16x1xf32> to vector<16x128xf32>
    %5 = arith.addf %2, %4 : vector<16x128xf32>
    %c0_5 = arith.constant 0 : index
    %c0_6 = arith.constant 0 : index
    %6 = vector.load %arg4[%c0_5, %c0_6] : memref<16x16xf32, #tpu.memory_space<vmem>>, vector<16x16xf32>
    %7 = arith.mulf %5, %5 : vector<16x128xf32>
    %cst_7 = arith.constant dense<0.000000e+00> : vector<16x128xf32>
    %8 = tpu.matmul %6, %7, %cst_7 {dimension_numbers = #tpu.dot_dimension_numbers<[1], [0], [0], [1], [0, 0, 1, 1], [], []>} : vector<16x16xf32>, vector<16x128xf32>, vector<16x128xf32> -> vector<16x128xf32>
    %c0_8 = arith.constant 0 : index
    %c0_9 = arith.constant 0 : index
    %9 = vector.load %arg5[%c0_8, %c0_9] : memref<16x1xf32, #tpu.memory_space<vmem>>, vector<16x1xf32>
    %10 = vector.broadcast %9 : vector<16x1xf32> to vector<16x128xf32>
    %11 = arith.addf %8, %10 : vector<16x128xf32>
    %12 = math.rsqrt %11 : vector<16x128xf32>
    %13 = arith.mulf %5, %12 : vector<16x128xf32>
    %c0_10 = arith.constant 0 : index
    %c0_11 = arith.constant 0 : index
    %14 = vector.load %arg6[%c0_10, %c0_11] : memref<16x128xf32, #tpu.memory_space<vmem>>, vector<16x128xf32>
    tpu.vector_store %arg6[%c0_10, %c0_11], %13 {strides = array<i32>} : memref<16x128xf32, #tpu.memory_space<vmem>>, vector<16x128xf32>,
    return
  }
  func.func @transform_0(%arg0: i32) -> (i32, i32) {
    %c0_i32 = arith.constant 0 : i32
    %c0_i32_0 = arith.constant 0 : i32
    %c0_i32_1 = arith.constant 0 : i32
    return %c0_i32, %c0_i32_0 : i32, i32
  }
  func.func @transform_1(%arg0: i32) -> (i32, i32) {
    %c0_i32 = arith.constant 0 : i32
    %c0_i32_0 = arith.constant 0 : i32
    return %c0_i32, %arg0 : i32, i32
  }
  func.func @transform_2(%arg0: i32) -> (i32, i32) {
    %c0_i32 = arith.constant 0 : i32
    %c0_i32_0 = arith.constant 0 : i32
    %c0_i32_1 = arith.constant 0 : i32
    return %c0_i32, %c0_i32_0 : i32, i32
  }
  func.func @transform_3(%arg0: i32) -> (i32, i32) {
    %c0_i32 = arith.constant 0 : i32
    %c0_i32_0 = arith.constant 0 : i32
    %c0_i32_1 = arith.constant 0 : i32
    return %c0_i32, %c0_i32_0 : i32, i32
  }
  func.func @transform_4(%arg0: i32) -> (i32, i32) {
    %c0_i32 = arith.constant 0 : i32
    %c0_i32_0 = arith.constant 0 : i32
    %c0_i32_1 = arith.constant 0 : i32
    return %c0_i32, %c0_i32_0 : i32, i32
  }
  func.func @transform_5(%arg0: i32) -> (i32, i32) {
    %c0_i32 = arith.constant 0 : i32
    %c0_i32_0 = arith.constant 0 : i32
    return %c0_i32, %arg0 : i32, i32
  }
}

module attributes {stable_mosaic.version = 11 : i64} {
  func.func @kernel(%arg0: i32, %arg1: memref<16x144xbf16, #tpu.memory_space<vmem>>, %arg2: memref<144x128xbf16, #tpu.memory_space<vmem>>, %arg3: memref<16x1xf32, #tpu.memory_space<vmem>>, %arg4: memref<16x16xf32, #tpu.memory_space<vmem>>, %arg5: memref<16x1xf32, #tpu.memory_space<vmem>>, %arg6: memref<16x128xf32, #tpu.memory_space<vmem>>, %arg7: memref<16x128xf32, #tpu.memory_space<vmem>>) attributes {dimension_semantics = [#tpu.dimension_semantics<parallel>], iteration_bounds = array<i64: 1>, scalar_prefetch = 0 : i64, scratch_operands = 0 : i64, tpu.core_type = #tpu.core_type<tc>, window_params = [{pipeline_mode = #tpu.pipeline_mode<synchronous>, transform_indices = @transform_0, window_bounds = array<i64: 16, 144>}, {transform_indices = @transform_1, window_bounds = array<i64: 144, 128>}, {pipeline_mode = #tpu.pipeline_mode<synchronous>, transform_indices = @transform_2, window_bounds = array<i64: 16, 1>}, {pipeline_mode = #tpu.pipeline_mode<synchronous>, transform_indices = @transform_3, window_bounds = array<i64: 16, 16>}, {pipeline_mode = #tpu.pipeline_mode<synchronous>, transform_indices = @transform_4, window_bounds = array<i64: 16, 1>}, {transform_indices = @transform_5, window_bounds = array<i64: 16, 128>}, {transform_indices = @transform_6, window_bounds = array<i64: 16, 128>}]} {
    %c0 = arith.constant 0 : index
    %c0_0 = arith.constant 0 : index
    %0 = vector.load %arg2[%c0, %c0_0] : memref<144x128xbf16, #tpu.memory_space<vmem>>, vector<144x128xbf16>
    %c0_1 = arith.constant 0 : index
    %c0_2 = arith.constant 0 : index
    %1 = vector.load %arg1[%c0_1, %c0_2] : memref<16x144xbf16, #tpu.memory_space<vmem>>, vector<16x144xbf16>
    %cst = arith.constant dense<0.000000e+00> : vector<16x128xf32>
    %2 = tpu.matmul %1, %0, %cst {dimension_numbers = #tpu.dot_dimension_numbers<[1], [0], [0], [1], [0, 0, 1, 1], [], []>} : vector<16x144xbf16>, vector<144x128xbf16>, vector<16x128xf32> -> vector<16x128xf32>
    %c0_3 = arith.constant 0 : index
    %c0_4 = arith.constant 0 : index
    %3 = vector.load %arg3[%c0_3, %c0_4] : memref<16x1xf32, #tpu.memory_space<vmem>>, vector<16x1xf32>
    %4 = vector.broadcast %3 : vector<16x1xf32> to vector<16x128xf32>
    %5 = arith.addf %2, %4 : vector<16x128xf32>
    %c0_5 = arith.constant 0 : index
    %c0_6 = arith.constant 0 : index
    %6 = vector.load %arg4[%c0_5, %c0_6] : memref<16x16xf32, #tpu.memory_space<vmem>>, vector<16x16xf32>
    %7 = arith.mulf %5, %5 : vector<16x128xf32>
    %cst_7 = arith.constant dense<0.000000e+00> : vector<16x128xf32>
    %8 = tpu.matmul %6, %7, %cst_7 {dimension_numbers = #tpu.dot_dimension_numbers<[1], [0], [0], [1], [0, 0, 1, 1], [], []>} : vector<16x16xf32>, vector<16x128xf32>, vector<16x128xf32> -> vector<16x128xf32>
    %c0_8 = arith.constant 0 : index
    %c0_9 = arith.constant 0 : index
    %9 = vector.load %arg5[%c0_8, %c0_9] : memref<16x1xf32, #tpu.memory_space<vmem>>, vector<16x1xf32>
    %10 = vector.broadcast %9 : vector<16x1xf32> to vector<16x128xf32>
    %11 = arith.addf %8, %10 : vector<16x128xf32>
    %12 = math.rsqrt %11 : vector<16x128xf32>
    %13 = arith.mulf %5, %12 : vector<16x128xf32>
    %c0_10 = arith.constant 0 : index
    %c0_11 = arith.constant 0 : index
    %14 = vector.load %arg6[%c0_10, %c0_11] : memref<16x128xf32, #tpu.memory_space<vmem>>, vector<16x128xf32>
    %15 = arith.addf %13, %14 : vector<16x128xf32>
    %c0_12 = arith.constant 0 : index
    %c0_13 = arith.constant 0 : index
    %16 = vector.load %arg7[%c0_12, %c0_13] : memref<16x128xf32, #tpu.memory_space<vmem>>, vector<16x128xf32>
    tpu.vector_store %arg7[%c0_12, %c0_13], %15 {strides = array<i32>} : memref<16x128xf32, #tpu.memory_space<vmem>>, vector<16x128xf32>,
    return
  }
  func.func @transform_0(%arg0: i32) -> (i32, i32) {
    %c0_i32 = arith.constant 0 : i32
    %c0_i32_0 = arith.constant 0 : i32
    %c0_i32_1 = arith.constant 0 : i32
    return %c0_i32, %c0_i32_0 : i32, i32
  }
  func.func @transform_1(%arg0: i32) -> (i32, i32) {
    %c0_i32 = arith.constant 0 : i32
    %c0_i32_0 = arith.constant 0 : i32
    return %c0_i32, %arg0 : i32, i32
  }
  func.func @transform_2(%arg0: i32) -> (i32, i32) {
    %c0_i32 = arith.constant 0 : i32
    %c0_i32_0 = arith.constant 0 : i32
    %c0_i32_1 = arith.constant 0 : i32
    return %c0_i32, %c0_i32_0 : i32, i32
  }
  func.func @transform_3(%arg0: i32) -> (i32, i32) {
    %c0_i32 = arith.constant 0 : i32
    %c0_i32_0 = arith.constant 0 : i32
    %c0_i32_1 = arith.constant 0 : i32
    return %c0_i32, %c0_i32_0 : i32, i32
  }
  func.func @transform_4(%arg0: i32) -> (i32, i32) {
    %c0_i32 = arith.constant 0 : i32
    %c0_i32_0 = arith.constant 0 : i32
    %c0_i32_1 = arith.constant 0 : i32
    return %c0_i32, %c0_i32_0 : i32, i32
  }
  func.func @transform_5(%arg0: i32) -> (i32, i32) {
    %c0_i32 = arith.constant 0 : i32
    %c0_i32_0 = arith.constant 0 : i32
    return %c0_i32, %arg0 : i32, i32
  }
  func.func @transform_6(%arg0: i32) -> (i32, i32) {
    %c0_i32 = arith.constant 0 : i32
    %c0_i32_0 = arith.constant 0 : i32
    return %c0_i32, %arg0 : i32, i32
  }
}

module attributes {stable_mosaic.version = 11 : i64} {
  func.func @kernel(%arg0: i32, %arg1: memref<16x16xbf16, #tpu.memory_space<vmem>>, %arg2: memref<16x128xf32, #tpu.memory_space<vmem>>, %arg3: memref<16x1xf32, #tpu.memory_space<vmem>>, %arg4: memref<16x128xf32, #tpu.memory_space<vmem>>, %arg5: memref<16x128xf32, #tpu.memory_space<vmem>>, %arg6: memref<16x128xf32, #tpu.memory_space<vmem>>) attributes {dimension_semantics = [#tpu.dimension_semantics<parallel>], iteration_bounds = array<i64: 1>, scalar_prefetch = 0 : i64, scratch_operands = 0 : i64, tpu.core_type = #tpu.core_type<tc>, window_params = [{pipeline_mode = #tpu.pipeline_mode<synchronous>, transform_indices = @transform_0, window_bounds = array<i64: 16, 16>}, {transform_indices = @transform_1, window_bounds = array<i64: 16, 128>}, {pipeline_mode = #tpu.pipeline_mode<synchronous>, transform_indices = @transform_2, window_bounds = array<i64: 16, 1>}, {transform_indices = @transform_3, window_bounds = array<i64: 16, 128>}, {transform_indices = @transform_4, window_bounds = array<i64: 16, 128>}, {transform_indices = @transform_5, window_bounds = array<i64: 16, 128>}]} {
    %c0 = arith.constant 0 : index
    %c0_0 = arith.constant 0 : index
    %0 = vector.load %arg2[%c0, %c0_0] : memref<16x128xf32, #tpu.memory_space<vmem>>, vector<16x128xf32>
    %1 = arith.truncf %0 : vector<16x128xf32> to vector<16x128xbf16>
    %c0_1 = arith.constant 0 : index
    %c0_2 = arith.constant 0 : index
    %2 = vector.load %arg1[%c0_1, %c0_2] : memref<16x16xbf16, #tpu.memory_space<vmem>>, vector<16x16xbf16>
    %cst = arith.constant dense<0.000000e+00> : vector<16x128xf32>
    %3 = tpu.matmul %2, %1, %cst {dimension_numbers = #tpu.dot_dimension_numbers<[1], [0], [0], [1], [0, 0, 1, 1], [], []>} : vector<16x16xbf16>, vector<16x128xbf16>, vector<16x128xf32> -> vector<16x128xf32>
    %c0_3 = arith.constant 0 : index
    %c0_4 = arith.constant 0 : index
    %4 = vector.load %arg3[%c0_3, %c0_4] : memref<16x1xf32, #tpu.memory_space<vmem>>, vector<16x1xf32>
    %5 = vector.broadcast %4 : vector<16x1xf32> to vector<16x128xf32>
    %6 = arith.addf %3, %5 : vector<16x128xf32>
    %cst_5 = arith.constant 0.000000e+00 : f32
    %7 = vector.broadcast %cst_5 : f32 to vector<16x128xf32>
    %8 = arith.subf %7, %6 : vector<16x128xf32>
    %9 = math.exp %8 : vector<16x128xf32>
    %cst_6 = arith.constant 1.000000e+00 : f32
    %10 = vector.broadcast %cst_6 : f32 to vector<16x128xf32>
    %11 = arith.addf %10, %9 : vector<16x128xf32>
    %cst_7 = arith.constant 1.000000e+00 : f32
    %12 = vector.broadcast %cst_7 : f32 to vector<16x128xf32>
    %13 = arith.divf %12, %11 : vector<16x128xf32>
    %c0_8 = arith.constant 0 : index
    %c0_9 = arith.constant 0 : index
    %14 = vector.load %arg4[%c0_8, %c0_9] : memref<16x128xf32, #tpu.memory_space<vmem>>, vector<16x128xf32>
    %15 = arith.mulf %14, %13 : vector<16x128xf32>
    %c0_10 = arith.constant 0 : index
    %c0_11 = arith.constant 0 : index
    %16 = vector.load %arg5[%c0_10, %c0_11] : memref<16x128xf32, #tpu.memory_space<vmem>>, vector<16x128xf32>
    %17 = arith.addf %15, %16 : vector<16x128xf32>
    %c0_12 = arith.constant 0 : index
    %c0_13 = arith.constant 0 : index
    %18 = vector.load %arg6[%c0_12, %c0_13] : memref<16x128xf32, #tpu.memory_space<vmem>>, vector<16x128xf32>
    tpu.vector_store %arg6[%c0_12, %c0_13], %17 {strides = array<i32>} : memref<16x128xf32, #tpu.memory_space<vmem>>, vector<16x128xf32>,
    return
  }
  func.func @transform_0(%arg0: i32) -> (i32, i32) {
    %c0_i32 = arith.constant 0 : i32
    %c0_i32_0 = arith.constant 0 : i32
    %c0_i32_1 = arith.constant 0 : i32
    return %c0_i32, %c0_i32_0 : i32, i32
  }
  func.func @transform_1(%arg0: i32) -> (i32, i32) {
    %c0_i32 = arith.constant 0 : i32
    %c0_i32_0 = arith.constant 0 : i32
    return %c0_i32, %arg0 : i32, i32
  }
  func.func @transform_2(%arg0: i32) -> (i32, i32) {
    %c0_i32 = arith.constant 0 : i32
    %c0_i32_0 = arith.constant 0 : i32
    %c0_i32_1 = arith.constant 0 : i32
    return %c0_i32, %c0_i32_0 : i32, i32
  }
  func.func @transform_3(%arg0: i32) -> (i32, i32) {
    %c0_i32 = arith.constant 0 : i32
    %c0_i32_0 = arith.constant 0 : i32
    return %c0_i32, %arg0 : i32, i32
  }
  func.func @transform_4(%arg0: i32) -> (i32, i32) {
    %c0_i32 = arith.constant 0 : i32
    %c0_i32_0 = arith.constant 0 : i32
    return %c0_i32, %arg0 : i32, i32
  }
  func.func @transform_5(%arg0: i32) -> (i32, i32) {
    %c0_i32 = arith.constant 0 : i32
    %c0_i32_0 = arith.constant 0 : i32
    return %c0_i32, %arg0 : i32, i32
  }
}

module attributes {stable_mosaic.version = 11 : i64} {
  func.func @kernel(%arg0: i32, %arg1: memref<24x16xbf16, #tpu.memory_space<vmem>>, %arg2: memref<16x128xf32, #tpu.memory_space<vmem>>, %arg3: memref<24x1xf32, #tpu.memory_space<vmem>>, %arg4: memref<24x128xf32, #tpu.memory_space<vmem>>) attributes {dimension_semantics = [#tpu.dimension_semantics<parallel>], iteration_bounds = array<i64: 1>, scalar_prefetch = 0 : i64, scratch_operands = 0 : i64, tpu.core_type = #tpu.core_type<tc>, window_params = [{pipeline_mode = #tpu.pipeline_mode<synchronous>, transform_indices = @transform_0, window_bounds = array<i64: 24, 16>}, {transform_indices = @transform_1, window_bounds = array<i64: 16, 128>}, {pipeline_mode = #tpu.pipeline_mode<synchronous>, transform_indices = @transform_2, window_bounds = array<i64: 24, 1>}, {transform_indices = @transform_3, window_bounds = array<i64: 24, 128>}]} {
    %c0 = arith.constant 0 : index
    %c0_0 = arith.constant 0 : index
    %0 = vector.load %arg2[%c0, %c0_0] : memref<16x128xf32, #tpu.memory_space<vmem>>, vector<16x128xf32>
    %1 = arith.truncf %0 : vector<16x128xf32> to vector<16x128xbf16>
    %c0_1 = arith.constant 0 : index
    %c0_2 = arith.constant 0 : index
    %2 = vector.load %arg1[%c0_1, %c0_2] : memref<24x16xbf16, #tpu.memory_space<vmem>>, vector<24x16xbf16>
    %cst = arith.constant dense<0.000000e+00> : vector<24x128xf32>
    %3 = tpu.matmul %2, %1, %cst {dimension_numbers = #tpu.dot_dimension_numbers<[1], [0], [0], [1], [0, 0, 1, 1], [], []>} : vector<24x16xbf16>, vector<16x128xbf16>, vector<24x128xf32> -> vector<24x128xf32>
    %c0_3 = arith.constant 0 : index
    %c0_4 = arith.constant 0 : index
    %4 = vector.load %arg3[%c0_3, %c0_4] : memref<24x1xf32, #tpu.memory_space<vmem>>, vector<24x1xf32>
    %5 = vector.broadcast %4 : vector<24x1xf32> to vector<24x128xf32>
    %6 = arith.addf %3, %5 : vector<24x128xf32>
    %c0_5 = arith.constant 0 : index
    %c0_6 = arith.constant 0 : index
    %7 = vector.load %arg4[%c0_5, %c0_6] : memref<24x128xf32, #tpu.memory_space<vmem>>, vector<24x128xf32>
    tpu.vector_store %arg4[%c0_5, %c0_6], %6 {strides = array<i32>} : memref<24x128xf32, #tpu.memory_space<vmem>>, vector<24x128xf32>,
    return
  }
  func.func @transform_0(%arg0: i32) -> (i32, i32) {
    %c0_i32 = arith.constant 0 : i32
    %c0_i32_0 = arith.constant 0 : i32
    %c0_i32_1 = arith.constant 0 : i32
    return %c0_i32, %c0_i32_0 : i32, i32
  }
  func.func @transform_1(%arg0: i32) -> (i32, i32) {
    %c0_i32 = arith.constant 0 : i32
    %c0_i32_0 = arith.constant 0 : i32
    return %c0_i32, %arg0 : i32, i32
  }
  func.func @transform_2(%arg0: i32) -> (i32, i32) {
    %c0_i32 = arith.constant 0 : i32
    %c0_i32_0 = arith.constant 0 : i32
    %c0_i32_1 = arith.constant 0 : i32
    return %c0_i32, %c0_i32_0 : i32, i32
  }
  func.func @transform_3(%arg0: i32) -> (i32, i32) {
    %c0_i32 = arith.constant 0 : i32
    %c0_i32_0 = arith.constant 0 : i32
    return %c0_i32, %arg0 : i32, i32
  }
}

module attributes {stable_mosaic.version = 11 : i64} {
  func.func @kernel(%arg0: i32, %arg1: memref<16x8xbf16, #tpu.memory_space<vmem>>, %arg2: memref<8x128xf32, #tpu.memory_space<vmem>>, %arg3: memref<16x1xf32, #tpu.memory_space<vmem>>, %arg4: memref<16x128xf32, #tpu.memory_space<vmem>>, %arg5: memref<16x128xf32, #tpu.memory_space<vmem>>) attributes {dimension_semantics = [#tpu.dimension_semantics<parallel>], iteration_bounds = array<i64: 1>, scalar_prefetch = 0 : i64, scratch_operands = 0 : i64, tpu.core_type = #tpu.core_type<tc>, window_params = [{pipeline_mode = #tpu.pipeline_mode<synchronous>, transform_indices = @transform_0, window_bounds = array<i64: 16, 8>}, {transform_indices = @transform_1, window_bounds = array<i64: 8, 128>}, {pipeline_mode = #tpu.pipeline_mode<synchronous>, transform_indices = @transform_2, window_bounds = array<i64: 16, 1>}, {transform_indices = @transform_3, window_bounds = array<i64: 16, 128>}, {transform_indices = @transform_4, window_bounds = array<i64: 16, 128>}]} {
    %c0 = arith.constant 0 : index
    %c0_0 = arith.constant 0 : index
    %0 = vector.load %arg2[%c0, %c0_0] : memref<8x128xf32, #tpu.memory_space<vmem>>, vector<8x128xf32>
    %1 = arith.truncf %0 : vector<8x128xf32> to vector<8x128xbf16>
    %c0_1 = arith.constant 0 : index
    %c0_2 = arith.constant 0 : index
    %2 = vector.load %arg1[%c0_1, %c0_2] : memref<16x8xbf16, #tpu.memory_space<vmem>>, vector<16x8xbf16>
    %cst = arith.constant dense<0.000000e+00> : vector<16x128xf32>
    %3 = tpu.matmul %2, %1, %cst {dimension_numbers = #tpu.dot_dimension_numbers<[1], [0], [0], [1], [0, 0, 1, 1], [], []>} : vector<16x8xbf16>, vector<8x128xbf16>, vector<16x128xf32> -> vector<16x128xf32>
    %c0_3 = arith.constant 0 : index
    %c0_4 = arith.constant 0 : index
    %4 = vector.load %arg3[%c0_3, %c0_4] : memref<16x1xf32, #tpu.memory_space<vmem>>, vector<16x1xf32>
    %5 = vector.broadcast %4 : vector<16x1xf32> to vector<16x128xf32>
    %6 = arith.addf %3, %5 : vector<16x128xf32>
    %c0_5 = arith.constant 0 : index
    %c0_6 = arith.constant 0 : index
    %7 = vector.load %arg4[%c0_5, %c0_6] : memref<16x128xf32, #tpu.memory_space<vmem>>, vector<16x128xf32>
    %8 = arith.addf %6, %7 : vector<16x128xf32>
    %c0_7 = arith.constant 0 : index
    %c0_8 = arith.constant 0 : index
    %9 = vector.load %arg5[%c0_7, %c0_8] : memref<16x128xf32, #tpu.memory_space<vmem>>, vector<16x128xf32>
    tpu.vector_store %arg5[%c0_7, %c0_8], %8 {strides = array<i32>} : memref<16x128xf32, #tpu.memory_space<vmem>>, vector<16x128xf32>,
    return
  }
  func.func @transform_0(%arg0: i32) -> (i32, i32) {
    %c0_i32 = arith.constant 0 : i32
    %c0_i32_0 = arith.constant 0 : i32
    %c0_i32_1 = arith.constant 0 : i32
    return %c0_i32, %c0_i32_0 : i32, i32
  }
  func.func @transform_1(%arg0: i32) -> (i32, i32) {
    %c0_i32 = arith.constant 0 : i32
    %c0_i32_0 = arith.constant 0 : i32
    return %c0_i32, %arg0 : i32, i32
  }
  func.func @transform_2(%arg0: i32) -> (i32, i32) {
    %c0_i32 = arith.constant 0 : i32
    %c0_i32_0 = arith.constant 0 : i32
    %c0_i32_1 = arith.constant 0 : i32
    return %c0_i32, %c0_i32_0 : i32, i32
  }
  func.func @transform_3(%arg0: i32) -> (i32, i32) {
    %c0_i32 = arith.constant 0 : i32
    %c0_i32_0 = arith.constant 0 : i32
    return %c0_i32, %arg0 : i32, i32
  }
  func.func @transform_4(%arg0: i32) -> (i32, i32) {
    %c0_i32 = arith.constant 0 : i32
    %c0_i32_0 = arith.constant 0 : i32
    return %c0_i32, %arg0 : i32, i32
  }
}

module attributes {stable_mosaic.version = 11 : i64} {
  func.func @_attn_kernel(%arg0: i32, %arg1: memref<1x4x8xf32, #tpu.memory_space<vmem>>, %arg2: memref<1x8x4xf32, #tpu.memory_space<vmem>>, %arg3: memref<1x4x8xf32, #tpu.memory_space<vmem>>, %arg4: memref<1x4x8xf32, #tpu.memory_space<vmem>>) attributes {dimension_semantics = [#tpu.dimension_semantics<parallel>], iteration_bounds = array<i64: 2>, scalar_prefetch = 0 : i64, scratch_operands = 0 : i64, tpu.core_type = #tpu.core_type<tc>, window_params = [{transform_indices = @transform_0, window_bounds = array<i64: 1, 4, 8>}, {transform_indices = @transform_1, window_bounds = array<i64: 1, 8, 4>}, {transform_indices = @transform_2, window_bounds = array<i64: 1, 4, 8>}, {transform_indices = @transform_3, window_bounds = array<i64: 1, 4, 8>}]} {
    %c0 = arith.constant 0 : index
    %c0_0 = arith.constant 0 : index
    %c0_1 = arith.constant 0 : index
    %0 = vector.load %arg1[%c0, %c0_0, %c0_1] : memref<1x4x8xf32, #tpu.memory_space<vmem>>, vector<1x4x8xf32>
    %1 = vector.shape_cast %0 : vector<1x4x8xf32> to vector<4x8xf32>
    %c0_2 = arith.constant 0 : index
    %c0_3 = arith.constant 0 : index
    %c0_4 = arith.constant 0 : index
    %2 = vector.load %arg2[%c0_2, %c0_3, %c0_4] : memref<1x8x4xf32, #tpu.memory_space<vmem>>, vector<1x8x4xf32>
    %3 = vector.shape_cast %2 : vector<1x8x4xf32> to vector<8x4xf32>
    %c0_5 = arith.constant 0 : index
    %c0_6 = arith.constant 0 : index
    %c0_7 = arith.constant 0 : index
    %4 = vector.load %arg3[%c0_5, %c0_6, %c0_7] : memref<1x4x8xf32, #tpu.memory_space<vmem>>, vector<1x4x8xf32>
    %5 = vector.shape_cast %4 : vector<1x4x8xf32> to vector<4x8xf32>
    %cst = arith.constant dense<0.000000e+00> : vector<4x4xf32>
    %6 = tpu.matmul %1, %3, %cst {dimension_numbers = #tpu.dot_dimension_numbers<[1], [0], [0], [1], [0, 0, 1, 1], [], []>} : vector<4x8xf32>, vector<8x4xf32>, vector<4x4xf32> -> vector<4x4xf32>
    %cst_8 = arith.constant dense<0xFF800000> : vector<4xf32>
    %7 = vector.multi_reduction <maximumf>, %6, %cst_8 [1] : vector<4x4xf32> to vector<4xf32>
    %8 = vector.shape_cast %7 : vector<4xf32> to vector<4x1xf32>
    %9 = vector.broadcast %8 : vector<4x1xf32> to vector<4x4xf32>
    %10 = arith.subf %6, %9 : vector<4x4xf32>
    %11 = math.exp %10 : vector<4x4xf32>
    %cst_9 = arith.constant dense<0.000000e+00> : vector<4xf32>
    %12 = vector.multi_reduction <add>, %11, %cst_9 [1] : vector<4x4xf32> to vector<4xf32>
    %13 = vector.shape_cast %12 : vector<4xf32> to vector<4x1xf32>
    %14 = vector.broadcast %13 : vector<4x1xf32> to vector<4x4xf32>
    %15 = arith.divf %11, %14 : vector<4x4xf32>
    %cst_10 = arith.constant dense<0.000000e+00> : vector<4x8xf32>
    %16 = tpu.matmul %15, %5, %cst_10 {dimension_numbers = #tpu.dot_dimension_numbers<[1], [0], [0], [1], [0, 0, 1, 1], [], []>} : vector<4x4xf32>, vector<4x8xf32>, vector<4x8xf32> -> vector<4x8xf32>
    %c0_11 = arith.constant 0 : index
    %c0_12 = arith.constant 0 : index
    %c0_13 = arith.constant 0 : index
    %17 = vector.load %arg4[%c0_11, %c0_12, %c0_13] : memref<1x4x8xf32, #tpu.memory_space<vmem>>, vector<1x4x8xf32>
    %18 = vector.shape_cast %17 : vector<1x4x8xf32> to vector<4x8xf32>
    %19 = vector.shape_cast %16 : vector<4x8xf32> to vector<1x4x8xf32>
    tpu.vector_store %arg4[%c0_11, %c0_12, %c0_13], %19 {strides = array<i32>} : memref<1x4x8xf32, #tpu.memory_space<vmem>>, vector<1x4x8xf32>,
    return
  }
  func.func @transform_0(%arg0: i32) -> (i32, i32, i32) {
    %c0_i32 = arith.constant 0 : i32
    %c0_i32_0 = arith.constant 0 : i32
    %c0_i32_1 = arith.constant 0 : i32
    return %arg0, %c0_i32, %c0_i32_0 : i32, i32, i32
  }
  func.func @transform_1(%arg0: i32) -> (i32, i32, i32) {
    %c0_i32 = arith.constant 0 : i32
    %c0_i32_0 = arith.constant 0 : i32
    %c0_i32_1 = arith.constant 0 : i32
    return %arg0, %c0_i32, %c0_i32_0 : i32, i32, i32
  }
  func.func @transform_2(%arg0: i32) -> (i32, i32, i32) {
    %c0_i32 = arith.constant 0 : i32
    %c0_i32_0 = arith.constant 0 : i32
    %c0_i32_1 = arith.constant 0 : i32
    return %arg0, %c0_i32, %c0_i32_0 : i32, i32, i32
  }
  func.func @transform_3(%arg0: i32) -> (i32, i32, i32) {
    %c0_i32 = arith.constant 0 : i32
    %c0_i32_0 = arith.constant 0 : i32
    %c0_i32_1 = arith.constant 0 : i32
    return %arg0, %c0_i32, %c0_i32_0 : i32, i32, i32
  }
}

module attributes {stable_mosaic.version = 11 : i64} {
  func.func @kernel(%arg0: i32, %arg1: memref<16x16xbf16, #tpu.memory_space<vmem>>, %arg2: memref<16x128xf32, #tpu.memory_space<vmem>>, %arg3: memref<16x1xf32, #tpu.memory_space<vmem>>, %arg4: memref<16x128xf32, #tpu.memory_space<vmem>>, %arg5: memref<16x128xf32, #tpu.memory_space<vmem>>, %arg6: memref<1x128xf32, #tpu.memory_space<vmem>>, %arg7: memref<16x128xf32, #tpu.memory_space<vmem>>) attributes {dimension_semantics = [#tpu.dimension_semantics<parallel>], iteration_bounds = array<i64: 1>, scalar_prefetch = 0 : i64, scratch_operands = 0 : i64, tpu.core_type = #tpu.core_type<tc>, window_params = [{pipeline_mode = #tpu.pipeline_mode<synchronous>, transform_indices = @transform_0, window_bounds = array<i64: 16, 16>}, {transform_indices = @transform_1, window_bounds = array<i64: 16, 128>}, {pipeline_mode = #tpu.pipeline_mode<synchronous>, transform_indices = @transform_2, window_bounds = array<i64: 16, 1>}, {transform_indices = @transform_3, window_bounds = array<i64: 16, 128>}, {transform_indices = @transform_4, window_bounds = array<i64: 16, 128>}, {transform_indices = @transform_5, window_bounds = array<i64: 1, 128>}, {transform_indices = @transform_6, window_bounds = array<i64: 16, 128>}]} {
    %c0 = arith.constant 0 : index
    %c0_0 = arith.constant 0 : index
    %0 = vector.load %arg2[%c0, %c0_0] : memref<16x128xf32, #tpu.memory_space<vmem>>, vector<16x128xf32>
    %1 = arith.truncf %0 : vector<16x128xf32> to vector<16x128xbf16>
    %c0_1 = arith.constant 0 : index
    %c0_2 = arith.constant 0 : index
    %2 = vector.load %arg1[%c0_1, %c0_2] : memref<16x16xbf16, #tpu.memory_space<vmem>>, vector<16x16xbf16>
    %cst = arith.constant dense<0.000000e+00> : vector<16x128xf32>
    %3 = tpu.matmul %2, %1, %cst {dimension_numbers = #tpu.dot_dimension_numbers<[1], [0], [0], [1], [0, 0, 1, 1], [], []>} : vector<16x16xbf16>, vector<16x128xbf16>, vector<16x128xf32> -> vector<16x128xf32>
    %c0_3 = arith.constant 0 : index
    %c0_4 = arith.constant 0 : index
    %4 = vector.load %arg3[%c0_3, %c0_4] : memref<16x1xf32, #tpu.memory_space<vmem>>, vector<16x1xf32>
    %5 = vector.broadcast %4 : vector<16x1xf32> to vector<16x128xf32>
    %6 = arith.addf %3, %5 : vector<16x128xf32>
    %cst_5 = arith.constant 0.000000e+00 : f32
    %7 = vector.broadcast %cst_5 : f32 to vector<16x128xf32>
    %8 = arith.subf %7, %6 : vector<16x128xf32>
    %9 = math.exp %8 : vector<16x128xf32>
    %cst_6 = arith.constant 1.000000e+00 : f32
    %10 = vector.broadcast %cst_6 : f32 to vector<16x128xf32>
    %11 = arith.addf %10, %9 : vector<16x128xf32>
    %cst_7 = arith.constant 1.000000e+00 : f32
    %12 = vector.broadcast %cst_7 : f32 to vector<16x128xf32>
    %13 = arith.divf %12, %11 : vector<16x128xf32>
    %c0_8 = arith.constant 0 : index
    %c0_9 = arith.constant 0 : index
    %14 = vector.load %arg4[%c0_8, %c0_9] : memref<16x128xf32, #tpu.memory_space<vmem>>, vector<16x128xf32>
    %15 = arith.mulf %14, %13 : vector<16x128xf32>
    %c0_10 = arith.constant 0 : index
    %c0_11 = arith.constant 0 : index
    %16 = vector.load %arg5[%c0_10, %c0_11] : memref<16x128xf32, #tpu.memory_space<vmem>>, vector<16x128xf32>
    %17 = arith.addf %15, %16 : vector<16x128xf32>
    %c0_12 = arith.constant 0 : index
    %c0_13 = arith.constant 0 : index
    %18 = vector.load %arg6[%c0_12, %c0_13] : memref<1x128xf32, #tpu.memory_space<vmem>>, vector<1x128xf32>
    %19 = vector.broadcast %18 : vector<1x128xf32> to vector<16x128xf32>
    %20 = arith.mulf %17, %19 : vector<16x128xf32>
    %c0_14 = arith.constant 0 : index
    %c0_15 = arith.constant 0 : index
    %21 = vector.load %arg7[%c0_14, %c0_15] : memref<16x128xf32, #tpu.memory_space<vmem>>, vector<16x128xf32>
    tpu.vector_store %arg7[%c0_14, %c0_15], %20 {strides = array<i32>} : memref<16x128xf32, #tpu.memory_space<vmem>>, vector<16x128xf32>,
    return
  }
  func.func @transform_0(%arg0: i32) -> (i32, i32) {
    %c0_i32 = arith.constant 0 : i32
    %c0_i32_0 = arith.constant 0 : i32
    %c0_i32_1 = arith.constant 0 : i32
    return %c0_i32, %c0_i32_0 : i32, i32
  }
  func.func @transform_1(%arg0: i32) -> (i32, i32) {
    %c0_i32 = arith.constant 0 : i32
    %c0_i32_0 = arith.constant 0 : i32
    return %c0_i32, %arg0 : i32, i32
  }
  func.func @transform_2(%arg0: i32) -> (i32, i32) {
    %c0_i32 = arith.constant 0 : i32
    %c0_i32_0 = arith.constant 0 : i32
    %c0_i32_1 = arith.constant 0 : i32
    return %c0_i32, %c0_i32_0 : i32, i32
  }
  func.func @transform_3(%arg0: i32) -> (i32, i32) {
    %c0_i32 = arith.constant 0 : i32
    %c0_i32_0 = arith.constant 0 : i32
    return %c0_i32, %arg0 : i32, i32
  }
  func.func @transform_4(%arg0: i32) -> (i32, i32) {
    %c0_i32 = arith.constant 0 : i32
    %c0_i32_0 = arith.constant 0 : i32
    return %c0_i32, %arg0 : i32, i32
  }
  func.func @transform_5(%arg0: i32) -> (i32, i32) {
    %c0_i32 = arith.constant 0 : i32
    %c0_i32_0 = arith.constant 0 : i32
    return %c0_i32, %arg0 : i32, i32
  }
  func.func @transform_6(%arg0: i32) -> (i32, i32) {
    %c0_i32 = arith.constant 0 : i32
    %c0_i32_0 = arith.constant 0 : i32
    return %c0_i32, %arg0 : i32, i32
  }
}

module attributes {stable_mosaic.version = 11 : i64} {
  func.func @kernel(%arg0: i32, %arg1: memref<16x144xbf16, #tpu.memory_space<vmem>>, %arg2: memref<144x128xbf16, #tpu.memory_space<vmem>>, %arg3: memref<16x1xf32, #tpu.memory_space<vmem>>, %arg4: memref<16x128xf32, #tpu.memory_space<vmem>>) attributes {dimension_semantics = [#tpu.dimension_semantics<parallel>], iteration_bounds = array<i64: 1>, scalar_prefetch = 0 : i64, scratch_operands = 0 : i64, tpu.core_type = #tpu.core_type<tc>, window_params = [{pipeline_mode = #tpu.pipeline_mode<synchronous>, transform_indices = @transform_0, window_bounds = array<i64: 16, 144>}, {transform_indices = @transform_1, window_bounds = array<i64: 144, 128>}, {pipeline_mode = #tpu.pipeline_mode<synchronous>, transform_indices = @transform_2, window_bounds = array<i64: 16, 1>}, {transform_indices = @transform_3, window_bounds = array<i64: 16, 128>}]} {
    %c0 = arith.constant 0 : index
    %c0_0 = arith.constant 0 : index
    %0 = vector.load %arg2[%c0, %c0_0] : memref<144x128xbf16, #tpu.memory_space<vmem>>, vector<144x128xbf16>
    %c0_1 = arith.constant 0 : index
    %c0_2 = arith.constant 0 : index
    %1 = vector.load %arg1[%c0_1, %c0_2] : memref<16x144xbf16, #tpu.memory_space<vmem>>, vector<16x144xbf16>
    %cst = arith.constant dense<0.000000e+00> : vector<16x128xf32>
    %2 = tpu.matmul %1, %0, %cst {dimension_numbers = #tpu.dot_dimension_numbers<[1], [0], [0], [1], [0, 0, 1, 1], [], []>} : vector<16x144xbf16>, vector<144x128xbf16>, vector<16x128xf32> -> vector<16x128xf32>
    %c0_3 = arith.constant 0 : index
    %c0_4 = arith.constant 0 : index
    %3 = vector.load %arg3[%c0_3, %c0_4] : memref<16x1xf32, #tpu.memory_space<vmem>>, vector<16x1xf32>
    %4 = vector.broadcast %3 : vector<16x1xf32> to vector<16x128xf32>
    %5 = arith.addf %2, %4 : vector<16x128xf32>
    %c0_5 = arith.constant 0 : index
    %c0_6 = arith.constant 0 : index
    %6 = vector.load %arg4[%c0_5, %c0_6] : memref<16x128xf32, #tpu.memory_space<vmem>>, vector<16x128xf32>
    tpu.vector_store %arg4[%c0_5, %c0_6], %5 {strides = array<i32>} : memref<16x128xf32, #tpu.memory_space<vmem>>, vector<16x128xf32>,
    return
  }
  func.func @transform_0(%arg0: i32) -> (i32, i32) {
    %c0_i32 = arith.constant 0 : i32
    %c0_i32_0 = arith.constant 0 : i32
    %c0_i32_1 = arith.constant 0 : i32
    return %c0_i32, %c0_i32_0 : i32, i32
  }
  func.func @transform_1(%arg0: i32) -> (i32, i32) {
    %c0_i32 = arith.constant 0 : i32
    %c0_i32_0 = arith.constant 0 : i32
    return %c0_i32, %arg0 : i32, i32
  }
  func.func @transform_2(%arg0: i32) -> (i32, i32) {
    %c0_i32 = arith.constant 0 : i32
    %c0_i32_0 = arith.constant 0 : i32
    %c0_i32_1 = arith.constant 0 : i32
    return %c0_i32, %c0_i32_0 : i32, i32
  }
  func.func @transform_3(%arg0: i32) -> (i32, i32) {
    %c0_i32 = arith.constant 0 : i32
    %c0_i32_0 = arith.constant 0 : i32
    return %c0_i32, %arg0 : i32, i32
  }
}

module attributes {stable_mosaic.version = 11 : i64} {
  func.func @_attn_kernel(%arg0: i32, %arg1: memref<1x1x8xf32, #tpu.memory_space<vmem>>, %arg2: memref<1x8x1xf32, #tpu.memory_space<vmem>>, %arg3: memref<1x1x8xf32, #tpu.memory_space<vmem>>, %arg4: memref<1x1x8xf32, #tpu.memory_space<vmem>>) attributes {dimension_semantics = [#tpu.dimension_semantics<parallel>], iteration_bounds = array<i64: 2>, scalar_prefetch = 0 : i64, scratch_operands = 0 : i64, tpu.core_type = #tpu.core_type<tc>, window_params = [{transform_indices = @transform_0, window_bounds = array<i64: 1, 1, 8>}, {transform_indices = @transform_1, window_bounds = array<i64: 1, 8, 1>}, {transform_indices = @transform_2, window_bounds = array<i64: 1, 1, 8>}, {transform_indices = @transform_3, window_bounds = array<i64: 1, 1, 8>}]} {
    %c0 = arith.constant 0 : index
    %c0_0 = arith.constant 0 : index
    %c0_1 = arith.constant 0 : index
    %0 = vector.load %arg1[%c0, %c0_0, %c0_1] : memref<1x1x8xf32, #tpu.memory_space<vmem>>, vector<1x1x8xf32>
    %1 = vector.shape_cast %0 : vector<1x1x8xf32> to vector<1x8xf32>
    %c0_2 = arith.constant 0 : index
    %c0_3 = arith.constant 0 : index
    %c0_4 = arith.constant 0 : index
    %2 = vector.load %arg2[%c0_2, %c0_3, %c0_4] : memref<1x8x1xf32, #tpu.memory_space<vmem>>, vector<1x8x1xf32>
    %3 = vector.shape_cast %2 : vector<1x8x1xf32> to vector<8x1xf32>
    %c0_5 = arith.constant 0 : index
    %c0_6 = arith.constant 0 : index
    %c0_7 = arith.constant 0 : index
    %4 = vector.load %arg3[%c0_5, %c0_6, %c0_7] : memref<1x1x8xf32, #tpu.memory_space<vmem>>, vector<1x1x8xf32>
    %5 = vector.shape_cast %4 : vector<1x1x8xf32> to vector<1x8xf32>
    %cst = arith.constant dense<0.000000e+00> : vector<1x1xf32>
    %6 = tpu.matmul %1, %3, %cst {dimension_numbers = #tpu.dot_dimension_numbers<[1], [0], [0], [1], [0, 0, 1, 1], [], []>} : vector<1x8xf32>, vector<8x1xf32>, vector<1x1xf32> -> vector<1x1xf32>
    %cst_8 = arith.constant dense<0xFF800000> : vector<1xf32>
    %7 = vector.multi_reduction <maximumf>, %6, %cst_8 [1] : vector<1x1xf32> to vector<1xf32>
    %8 = vector.shape_cast %7 : vector<1xf32> to vector<1x1xf32>
    %9 = arith.subf %6, %8 : vector<1x1xf32>
    %10 = math.exp %9 : vector<1x1xf32>
    %cst_9 = arith.constant dense<0.000000e+00> : vector<1xf32>
    %11 = vector.multi_reduction <add>, %10, %cst_9 [1] : vector<1x1xf32> to vector<1xf32>
    %12 = vector.shape_cast %11 : vector<1xf32> to vector<1x1xf32>
    %13 = arith.divf %10, %12 : vector<1x1xf32>
    %cst_10 = arith.constant dense<0.000000e+00> : vector<1x8xf32>
    %14 = tpu.matmul %13, %5, %cst_10 {dimension_numbers = #tpu.dot_dimension_numbers<[1], [0], [0], [1], [0, 0, 1, 1], [], []>} : vector<1x1xf32>, vector<1x8xf32>, vector<1x8xf32> -> vector<1x8xf32>
    %c0_11 = arith.constant 0 : index
    %c0_12 = arith.constant 0 : index
    %c0_13 = arith.constant 0 : index
    %15 = vector.load %arg4[%c0_11, %c0_12, %c0_13] : memref<1x1x8xf32, #tpu.memory_space<vmem>>, vector<1x1x8xf32>
    %16 = vector.shape_cast %15 : vector<1x1x8xf32> to vector<1x8xf32>
    %17 = vector.shape_cast %14 : vector<1x8xf32> to vector<1x1x8xf32>
    tpu.vector_store %arg4[%c0_11, %c0_12, %c0_13], %17 {strides = array<i32>} : memref<1x1x8xf32, #tpu.memory_space<vmem>>, vector<1x1x8xf32>,
    return
  }
  func.func @transform_0(%arg0: i32) -> (i32, i32, i32) {
    %c0_i32 = arith.constant 0 : i32
    %c0_i32_0 = arith.constant 0 : i32
    %c0_i32_1 = arith.constant 0 : i32
    return %arg0, %c0_i32, %c0_i32_0 : i32, i32, i32
  }
  func.func @transform_1(%arg0: i32) -> (i32, i32, i32) {
    %c0_i32 = arith.constant 0 : i32
    %c0_i32_0 = arith.constant 0 : i32
    %c0_i32_1 = arith.constant 0 : i32
    return %arg0, %c0_i32, %c0_i32_0 : i32, i32, i32
  }
  func.func @transform_2(%arg0: i32) -> (i32, i32, i32) {
    %c0_i32 = arith.constant 0 : i32
    %c0_i32_0 = arith.constant 0 : i32
    %c0_i32_1 = arith.constant 0 : i32
    return %arg0, %c0_i32, %c0_i32_0 : i32, i32, i32
  }
  func.func @transform_3(%arg0: i32) -> (i32, i32, i32) {
    %c0_i32 = arith.constant 0 : i32
    %c0_i32_0 = arith.constant 0 : i32
    %c0_i32_1 = arith.constant 0 : i32
    return %arg0, %c0_i32, %c0_i32_0 : i32, i32, i32
  }
}

module attributes {stable_mosaic.version = 11 : i64} {
  func.func @kernel(%arg0: i32, %arg1: memref<16x16xbf16, #tpu.memory_space<vmem>>, %arg2: memref<16x128xf32, #tpu.memory_space<vmem>>, %arg3: memref<16x1xf32, #tpu.memory_space<vmem>>, %arg4: memref<16x128xf32, #tpu.memory_space<vmem>>, %arg5: memref<16x128xf32, #tpu.memory_space<vmem>>, %arg6: memref<16x128xf32, #tpu.memory_space<vmem>>) attributes {dimension_semantics = [#tpu.dimension_semantics<parallel>], iteration_bounds = array<i64: 1>, scalar_prefetch = 0 : i64, scratch_operands = 0 : i64, tpu.core_type = #tpu.core_type<tc>, window_params = [{pipeline_mode = #tpu.pipeline_mode<synchronous>, transform_indices = @transform_0, window_bounds = array<i64: 16, 16>}, {transform_indices = @transform_1, window_bounds = array<i64: 16, 128>}, {pipeline_mode = #tpu.pipeline_mode<synchronous>, transform_indices = @transform_2, window_bounds = array<i64: 16, 1>}, {transform_indices = @transform_3, window_bounds = array<i64: 16, 128>}, {transform_indices = @transform_4, window_bounds = array<i64: 16, 128>}, {transform_indices = @transform_5, window_bounds = array<i64: 16, 128>}]} {
    %c0 = arith.constant 0 : index
    %c0_0 = arith.constant 0 : index
    %0 = vector.load %arg2[%c0, %c0_0] : memref<16x128xf32, #tpu.memory_space<vmem>>, vector<16x128xf32>
    %1 = arith.truncf %0 : vector<16x128xf32> to vector<16x128xbf16>
    %c0_1 = arith.constant 0 : index
    %c0_2 = arith.constant 0 : index
    %2 = vector.load %arg1[%c0_1, %c0_2] : memref<16x16xbf16, #tpu.memory_space<vmem>>, vector<16x16xbf16>
    %cst = arith.constant dense<0.000000e+00> : vector<16x128xf32>
    %3 = tpu.matmul %2, %1, %cst {dimension_numbers = #tpu.dot_dimension_numbers<[1], [0], [0], [1], [0, 0, 1, 1], [], []>} : vector<16x16xbf16>, vector<16x128xbf16>, vector<16x128xf32> -> vector<16x128xf32>
    %c0_3 = arith.constant 0 : index
    %c0_4 = arith.constant 0 : index
    %4 = vector.load %arg3[%c0_3, %c0_4] : memref<16x1xf32, #tpu.memory_space<vmem>>, vector<16x1xf32>
    %5 = vector.broadcast %4 : vector<16x1xf32> to vector<16x128xf32>
    %6 = arith.addf %3, %5 : vector<16x128xf32>
    %cst_5 = arith.constant 0.000000e+00 : f32
    %7 = vector.broadcast %cst_5 : f32 to vector<16x128xf32>
    %8 = arith.subf %7, %6 : vector<16x128xf32>
    %9 = math.exp %8 : vector<16x128xf32>
    %cst_6 = arith.constant 1.000000e+00 : f32
    %10 = vector.broadcast %cst_6 : f32 to vector<16x128xf32>
    %11 = arith.addf %10, %9 : vector<16x128xf32>
    %cst_7 = arith.constant 1.000000e+00 : f32
    %12 = vector.broadcast %cst_7 : f32 to vector<16x128xf32>
    %13 = arith.divf %12, %11 : vector<16x128xf32>
    %c0_8 = arith.constant 0 : index
    %c0_9 = arith.constant 0 : index
    %14 = vector.load %arg4[%c0_8, %c0_9] : memref<16x128xf32, #tpu.memory_space<vmem>>, vector<16x128xf32>
    %15 = arith.mulf %14, %13 : vector<16x128xf32>
    %c0_10 = arith.constant 0 : index
    %c0_11 = arith.constant 0 : index
    %16 = vector.load %arg5[%c0_10, %c0_11] : memref<16x128xf32, #tpu.memory_space<vmem>>, vector<16x128xf32>
    %17 = arith.addf %15, %16 : vector<16x128xf32>
    %c0_12 = arith.constant 0 : index
    %c0_13 = arith.constant 0 : index
    %18 = vector.load %arg6[%c0_12, %c0_13] : memref<16x128xf32, #tpu.memory_space<vmem>>, vector<16x128xf32>
    tpu.vector_store %arg6[%c0_12, %c0_13], %17 {strides = array<i32>} : memref<16x128xf32, #tpu.memory_space<vmem>>, vector<16x128xf32>,
    return
  }
  func.func @transform_0(%arg0: i32) -> (i32, i32) {
    %c0_i32 = arith.constant 0 : i32
    %c0_i32_0 = arith.constant 0 : i32
    %c0_i32_1 = arith.constant 0 : i32
    return %c0_i32, %c0_i32_0 : i32, i32
  }
  func.func @transform_1(%arg0: i32) -> (i32, i32) {
    %c0_i32 = arith.constant 0 : i32
    %c0_i32_0 = arith.constant 0 : i32
    return %c0_i32, %arg0 : i32, i32
  }
  func.func @transform_2(%arg0: i32) -> (i32, i32) {
    %c0_i32 = arith.constant 0 : i32
    %c0_i32_0 = arith.constant 0 : i32
    %c0_i32_1 = arith.constant 0 : i32
    return %c0_i32, %c0_i32_0 : i32, i32
  }
  func.func @transform_3(%arg0: i32) -> (i32, i32) {
    %c0_i32 = arith.constant 0 : i32
    %c0_i32_0 = arith.constant 0 : i32
    return %c0_i32, %arg0 : i32, i32
  }
  func.func @transform_4(%arg0: i32) -> (i32, i32) {
    %c0_i32 = arith.constant 0 : i32
    %c0_i32_0 = arith.constant 0 : i32
    return %c0_i32, %arg0 : i32, i32
  }
  func.func @transform_5(%arg0: i32) -> (i32, i32) {
    %c0_i32 = arith.constant 0 : i32
    %c0_i32_0 = arith.constant 0 : i32
    return %c0_i32, %arg0 : i32, i32
  }
}

</mosaic_0001>

<bundles_post_ra>
// kernel: enc_forward.126
= control target key start
LH: loop header
LB: loop body
LE: loop exit
PB: predicated region body
PF: predicated region fallthrough
CT: control target
= control target key end

     0   :  { %s684_s12 = smov 0   ;;  %s686_s13 = smov 0   ;;  %s828_s0 = inlined_call_operand.vmem [shape: bf16[8,75], index: 0, kind: input, shape index: {}]   ;;  %s829_s1 = inlined_call_operand.vmem [shape: bf16[75,2048], index: 1, kind: input, shape index: {}]   ;;  %s830_s2 = inlined_call_operand.vmem [shape: f32[8,1], index: 2, kind: input, shape index: {}]   ;;  %s831_s3 = inlined_call_operand.vmem [shape: f32[8,2048], index: 3, kind: output, shape index: {}]  }
   0x1   :  { %s688_s14 = smov 0  }
   0x2 LB: > { %s493_s15 = sadd.s32 4294967295, %s660_s14   ;;  %s701_s16 = sadd.s32 1, %s660_s14   ;;  %s660_s14 = sphi %s688_s14, %s834_s14   ;;  %s656_s13 = sphi %s686_s13, %s833_s13   ;;  %s652_s12 = sphi %s684_s12, %s832_s12  }
   0x3   : > { %s38_s17 = ssub.s32 %s660_s14, %s701_s16  ;;  %s41_s18 = sadd.s32 1, %s656_s13 }
   0x4   : > { %p39_p0 = scmp.eq.s32.totalorder %s38_s17, 0  ;;  %p48_p1 = scmp.ne.s32.totalorder %s656_s13, %s652_s12 }
   0x5   : > { %p49_p2 = scmp.eq.s32.totalorder %s660_s14, 0  ;;  %p496_p4 = scmp.ge.s32.totalorder %s660_s14, 4 }
   0x6   : > { %s710_s19 = scalar_select %p39_p0, %s656_s13, %s41_s18  }
   0x7   : > { %p50_p3 = por %p49_p2, %p48_p1  ;;  %127 = sbr.rel (%p496_p4) target bundleno = 36 (0x24), region = 24 }
   0xc   : > { %130 = sbr.rel (!%p50_p3) target bundleno = 36 (0x24), region = 28  ;;  %s132_s20 = sand.u32 (%p50_p3), 1, %s656_s13  }
   0xd   : > { %s588_s21 = sshll.u32 (%p50_p3), %s660_s14, 4  ;;  %s609_s22 = smul.u32 (%p50_p3), 160, %s132_s20 }
   0xe   : > { %s718_s25 = scalar_lea.vmem (%p50_p3), %s829_s1, %s588_s21 }
   0xf   : > { %v150_v0 = vld [vmem:[%s718_s25] sm:$0xff] (%p50_p3)  ;;  %v152_v1 = vld [vmem:[%s718_s25 + $0x8] sm:$0xff] (%p50_p3)  ;;  %s723_s26 = scalar_lea.vmem (%p50_p3), [#allocation2], %s609_s22 }
  0x10   : > { %v154_v2 = vld [vmem:[%s718_s25 + $0x40] sm:$0xff] (%p50_p3)  ;;  %151 = vst [vmem:[%s723_s26] sm:$0xff] (%p50_p3), %v150_v0  ;;  %v156_v3 = vld [vmem:[%s718_s25 + $0x48] sm:$0xff] (%p50_p3) }
  0x11   : > { %153 = vst [vmem:[%s723_s26 + $0x8] sm:$0xff] %v152_v1  ;;  %v158_v4 = vld [vmem:[%s718_s25 + $0x80] sm:$0xff]  ;;  %v160_v5 = vld [vmem:[%s718_s25 + $0x88] sm:$0xff] }
  0x12   : > { %155 = vst [vmem:[%s723_s26 + $0x10] sm:$0xff] %v154_v2  ;;  %v162_v6 = vld [vmem:[%s718_s25 + $0xc0] sm:$0xff]  ;;  %v164_v7 = vld [vmem:[%s718_s25 + $0xc8] sm:$0xff] }
  0x13   : > { %157 = vst [vmem:[%s723_s26 + $0x18] sm:$0xff] %v156_v3  ;;  %v166_v8 = vld [vmem:[%s718_s25 + $0x100] sm:$0xff]  ;;  %v168_v9 = vld [vmem:[%s718_s25 + $0x108] sm:$0xff] }
  0x14   : > { %159 = vst [vmem:[%s723_s26 + $0x20] sm:$0xff] %v158_v4  ;;  %v170_v10 = vld [vmem:[%s718_s25 + $0x140] sm:$0xff]  ;;  %v172_v11 = vld [vmem:[%s718_s25 + $0x148] sm:$0xff] }
  0x15   : > { %161 = vst [vmem:[%s723_s26 + $0x28] sm:$0xff] %v160_v5  ;;  %v174_v12 = vld [vmem:[%s718_s25 + $0x180] sm:$0xff]  ;;  %v176_v13 = vld [vmem:[%s718_s25 + $0x188] sm:$0xff] }
  0x16   : > { %163 = vst [vmem:[%s723_s26 + $0x30] sm:$0xff] %v162_v6  ;;  %v178_v14 = vld [vmem:[%s718_s25 + $0x1c0] sm:$0xff]  ;;  %v180_v15 = vld [vmem:[%s718_s25 + $0x1c8] sm:$0xff] }
  0x17   : > { %165 = vst [vmem:[%s723_s26 + $0x38] sm:$0xff] %v164_v7  ;;  %v182_v16 = vld [vmem:[%s718_s25 + $0x200] sm:$0xff]  ;;  %v184_v17 = vld [vmem:[%s718_s25 + $0x208] sm:$0xff] }
  0x18   : > { %167 = vst [vmem:[%s723_s26 + $0x40] sm:$0xff] %v166_v8  ;;  %v186_v18 = vld [vmem:[%s718_s25 + $0x240] sm:$0xff]  ;;  %v188_v19 = vld [vmem:[%s718_s25 + $0x248] sm:$0xff] }
  0x19   : > { %169 = vst [vmem:[%s723_s26 + $0x48] sm:$0xff] %v168_v9 }
  0x1a   : > { %171 = vst [vmem:[%s723_s26 + $0x50] sm:$0xff] %v170_v10 }
  0x1b   : > { %173 = vst [vmem:[%s723_s26 + $0x58] sm:$0xff] %v172_v11 }
  0x1c   : > { %175 = vst [vmem:[%s723_s26 + $0x60] sm:$0xff] %v174_v12 }
  0x1d   : > { %177 = vst [vmem:[%s723_s26 + $0x68] sm:$0xff] %v176_v13 }
  0x1e   : > { %179 = vst [vmem:[%s723_s26 + $0x70] sm:$0xff] %v178_v14 }
  0x1f   : > { %181 = vst [vmem:[%s723_s26 + $0x78] sm:$0xff] %v180_v15 }
  0x20   : > { %183 = vst [vmem:[%s723_s26 + $0x80] sm:$0xff] %v182_v16 }
  0x21   : > { %185 = vst [vmem:[%s723_s26 + $0x88] sm:$0xff] %v184_v17 }
  0x22   : > { %187 = vst [vmem:[%s723_s26 + $0x90] sm:$0xff] %v186_v18 }
  0x23   : > { %189 = vst [vmem:[%s723_s26 + $0x98] sm:$0xff] %v188_v19 }
  0x24 PF: > { %p499_p5 = scmp.ge.s32.totalorder %s660_s14, 1  ;;  %p194_p6 = scmp.lt.s32.totalorder %s660_s14, 5 }
  0x26   : > { %p195_p7 = pnand %p499_p5, %p194_p6 }
  0x27   : > { %s201_s27 = sand.u32 (!%p195_p7), 1, %s652_s12   ;;  %s500_s7 = sshll.u32 (!%p195_p7), %s493_s15, 2 }
  0x28   : > { %198 = sbr.rel (%p195_p7) target bundleno = 213 (0xd5), region = 51  ;;  %p226_p8 = scmp.lt.s32.totalorder (!%p195_p7), %s500_s7, 15 }
  0x29   : > { %s610_s28 = smul.u32 (!%p195_p7), 160, %s201_s27 }
  0x2b   : > { %s768_s4 = scalar_lea.vmem (!%p195_p7), [#allocation2], %s610_s28 }
  0x2d   : > { %vm359_vm0 = vcmask 1044480   ;;  %vm360_vm1 = vcmask 1045504   ;;  %v662_v20 = vmov 65535   ;;  %v253_v22 = vld [vmem:[%s830_s2] sm:$0xff]  ;;  %v663_v23 = vmov 0   ;;  %s836_s7 = smov (!%p226_p8, %s500_s7), 15 }
  0x2e   : > { %v361_v21 = vsel %vm359_vm0, 4294967295, %v662_v20  ;;  %637 = vset.pattern.permute.xlu0 %v663_v23  ;;  %v568_v25 = vld [vmem:[%s768_s4 + $0x80] sm:$0xf]  ;;  %v607_v26 = vld [vmem:[%s768_s4 + $0x8c] sm:$0x30]  ;;  %vm355_vm2 = vcmask 613376  }
  0x2f   : > { %v362_v24 = vsel %vm360_vm1, %v361_v21, 0  ;;  %256 = vperm.xlu0 %637, %v253_v22   ;;  %v605_v27 = vld [vmem:[%s768_s4 + $0x84] sm:$0xf]  ;;  %v569_v28 = vor.u32 %v607_v26, %v568_v25  ;;  %v570_v29 = vld [vmem:[%s768_s4 + $0x90] sm:$0x30]  ;;  %s501_s8 = sshll.u32 %s836_s7, 3 }
  0x30   : > { %v576_v30 = vld [vmem:[%s768_s4 + $0x88] sm:$0xf]  ;;  %v608_v31 = vld [vmem:[%s768_s4 + $0x94] sm:$0x30]  ;;  %v573_v32 = vor.u32 %v605_v27, %v570_v29  ;;  %v606_v34 = vld [vmem:[%s768_s4 + $0x8c] sm:$0xf]  ;;  %s229_s11 = scalar_lea.vmem %s831_s3, %s501_s8 }
  0x31   : > { %v577_v33 = vor.u32 %v608_v31, %v576_v30  ;;  %v578_v35 = vld [vmem:[%s768_s4 + $0x98] sm:$0x30]  ;;  %v552_v36 = vld [vmem:[%s768_s4 + $0x60] sm:$0xf]  ;;  %v364_v37 = vand.u32 %v569_v28, %v362_v24  ;;  %v603_v39 = vld [vmem:[%s768_s4 + $0x6c] sm:$0xf0] }
  0x32   : > { %v581_v38 = vor.u32 %v606_v34, %v578_v35  ;;  %v601_v40 = vld [vmem:[%s768_s4 + $0x64] sm:$0xf]  ;;  %v554_v41 = vld [vmem:[%s768_s4 + $0x70] sm:$0xf0]  ;;  %v367_v42 = vand.u32 %v573_v32, %v362_v24  ;;  %v560_v44 = vld [vmem:[%s768_s4 + $0x68] sm:$0xf]  ;;  %v553_v48 = vor.u32 %v603_v39, %v552_v36 }
  0x33   : > { %v370_v43 = vand.u32 %v577_v33, %v362_v24  ;;  %v604_v45 = vld [vmem:[%s768_s4 + $0x74] sm:$0xf0]  ;;  %v602_v46 = vld [vmem:[%s768_s4 + $0x6c] sm:$0xf]  ;;  %378 = vmatpush.bf16.msra.mxu0 %v364_v37  ;;  %v562_v49 = vld [vmem:[%s768_s4 + $0x78] sm:$0xf0]  ;;  %v557_v50 = vor.u32 %v601_v40, %v554_v41 }
  0x34   : > { %v373_v47 = vand.u32 %v581_v38, %v362_v24  ;;  %391 = vmatpush.bf16.msra.mxu1 %v367_v42  ;;  %v561_v51 = vor.u32 %v604_v45, %v560_v44  ;;  %v536_v52 = vld [vmem:[%s768_s4 + $0x40] sm:$0xf]  ;;  %v599_v53 = vld [vmem:[%s768_s4 + $0x4c] sm:$0xf0]  ;;  %v597_v54 = vld [vmem:[%s768_s4 + $0x44] sm:$0xf]  ;;  %v565_v55 = vor.u32 %v602_v46, %v562_v49 }
  0x35   : > { %404 = vmatpush.bf16.msra.mxu2 %v370_v43  ;;  %v538_v56 = vld [vmem:[%s768_s4 + $0x50] sm:$0xf0]  ;;  %v544_v57 = vld [vmem:[%s768_s4 + $0x48] sm:$0xf]  ;;  %v600_v58 = vld [vmem:[%s768_s4 + $0x54] sm:$0xf0]  ;;  %v537_v61 = vor.u32 %v599_v53, %v536_v52 }
  0x36   : > { %417 = vmatpush.bf16.msra.mxu3 %v373_v47  ;;  %v598_v59 = vld [vmem:[%s768_s4 + $0x4c] sm:$0xf]  ;;  %v546_v60 = vld [vmem:[%s768_s4 + $0x58] sm:$0xf0]  ;;  %v541_v62 = vor.u32 %v597_v54, %v538_v56  ;;  %v545_v63 = vor.u32 %v600_v58, %v544_v57  ;;  %v520_v0 = vld [vmem:[%s768_s4 + $0x20] sm:$0xf] }
  0x37   : > { %379 = vmatpush.bf16.msra.mxu0 %v553_v48  ;;  %v595_v1 = vld [vmem:[%s768_s4 + $0x2c] sm:$0xf0]  ;;  %v593_v2 = vld [vmem:[%s768_s4 + $0x24] sm:$0xf]  ;;  %v549_v3 = vor.u32 %v598_v59, %v546_v60  ;;  %v522_v4 = vld [vmem:[%s768_s4 + $0x30] sm:$0xf0] }
  0x38   : > { %392 = vmatpush.bf16.msra.mxu1 %v557_v50  ;;  %v528_v5 = vld [vmem:[%s768_s4 + $0x28] sm:$0xf]  ;;  %v596_v6 = vld [vmem:[%s768_s4 + $0x34] sm:$0xf0]  ;;  %v594_v7 = vld [vmem:[%s768_s4 + $0x2c] sm:$0xf]  ;;  %v521_v9 = vor.u32 %v595_v1, %v520_v0  ;;  %v525_v10 = vor.u32 %v593_v2, %v522_v4 }
  0x39   : > { %405 = vmatpush.bf16.msra.mxu2 %v561_v51  ;;  %v530_v8 = vld [vmem:[%s768_s4 + $0x38] sm:$0xf0]  ;;  %v529_v11 = vor.u32 %v596_v6, %v528_v5  ;;  %v504_v12 = vld [vmem:[%s768_s4] sm:$0xf]  ;;  %v591_v13 = vld [vmem:[%s768_s4 + $0xc] sm:$0xf0] }
  0x3a   : > { %418 = vmatpush.bf16.msra.mxu3 %v565_v55  ;;  %v589_v14 = vld [vmem:[%s768_s4 + $0x4] sm:$0xf]  ;;  %v533_v15 = vor.u32 %v594_v7, %v530_v8  ;;  %v506_v16 = vld [vmem:[%s768_s4 + $0x10] sm:$0xf0]  ;;  %v512_v17 = vld [vmem:[%s768_s4 + $0x8] sm:$0xf]  ;;  %v505_v21 = vor.u32 %v591_v13, %v504_v12 }
  0x3b   : > { %380 = vmatpush.bf16.msra.mxu0 %v537_v61  ;;  %v592_v18 = vld [vmem:[%s768_s4 + $0x14] sm:$0xf0]  ;;  %v590_v19 = vld [vmem:[%s768_s4 + $0xc] sm:$0xf]  ;;  %v514_v20 = vld [vmem:[%s768_s4 + $0x18] sm:$0xf0]  ;;  %v509_v22 = vor.u32 %v589_v14, %v506_v16 }
  0x3c   : > { %393 = vmatpush.bf16.msra.mxu1 %v541_v62  ;;  %v513_v23 = vor.u32 %v592_v18, %v512_v17  ;;  %v517_v24 = vor.u32 %v590_v19, %v514_v20  ;;  %v252_v25 = vld [vmem:[%s828_s0] sm:$0xf] }
  0x3d   : > { %406 = vmatpush.bf16.msra.mxu2 %v545_v63 }
  0x3e   : > { %419 = vmatpush.bf16.msra.mxu3 %v549_v3 }
  0x3f   : > { %381 = vmatpush.bf16.msra.mxu0 %v521_v9 }
  0x40   : > { %394 = vmatpush.bf16.msra.mxu1 %v525_v10 }
  0x41   : > { %407 = vmatpush.bf16.msra.mxu2 %v529_v11 }
  0x42   : > { %420 = vmatpush.bf16.msra.mxu3 %v533_v15 }
  0x43   : > { %382 = vmatpush.bf16.msra.mxu0 %v505_v21 }
  0x44   : > { %395 = vmatpush.bf16.msra.mxu1 %v509_v22 }
  0x45   : > { %408 = vmatpush.bf16.msra.mxu2 %v513_v23 }
  0x46   : > { %421 = vmatpush.bf16.msra.mxu3 %v517_v24  ;;  %582 = vmatmul.msk.bf16.vlgmr.msra.gmra.mxu0 %vm355_vm2, %v252_v25 }
  0x47   : > { %583 = vmatmul.msk.bf16.vlgmr.msra.gmra.mxu1 %vm355_vm2, %v252_v25 }
  0x48   : > { %584 = vmatmul.msk.bf16.vlgmr.msra.gmra.mxu2 %vm355_vm2, %v252_v25 }
  0x49   : > { %585 = vmatmul.msk.bf16.vlgmr.msra.gmra.mxu3 %vm355_vm2, %v252_v25 }
  0xa1   : > { %v257_v26 = vpop.permute.xlu0 %256 }
  0xc3   : > { %v384_v27 = vpop.f32.mrf.mxu0 }
  0xc4   : > { %v397_v28 = vpop.f32.mrf.mxu1  ;;  %v385_v29 = vadd.f32 %v384_v27, %v257_v26 }
  0xc5   : > { %v398_v30 = vadd.f32 %v397_v28, %v257_v26 }
  0xc6   : > { %427 = vst [vmem:[%s229_s11] sm:$0xff] %v385_v29 }
  0xc7   : > { %428 = vst [vmem:[%s229_s11 + $0x8] sm:$0xff] %v398_v30 }
  0xcb   : > { %v410_v31 = vpop.f32.mrf.mxu2  ;;  %v386_v34 = vpop.f32.mrf.mxu0 }
  0xcc   : > { %v411_v32 = vadd.f32 %v410_v31, %v257_v26  ;;  %v423_v33 = vpop.f32.mrf.mxu3  ;;  %v399_v36 = vpop.f32.mrf.mxu1 }
  0xcd   : > { %v424_v35 = vadd.f32 %v423_v33, %v257_v26 }
  0xce   : > { %429 = vst [vmem:[%s229_s11 + $0x10] sm:$0xff] %v411_v32 }
  0xcf   : > { %430 = vst [vmem:[%s229_s11 + $0x18] sm:$0xff] %v424_v35 }
  0xd3   : > { %v412_v37 = vpop.f32.mrf.mxu2 }
  0xd4   : > { %v425_v38 = vpop.f32.mrf.mxu3 }
  0xd5 PF: > { %p10_p9 = scmp.ge.s32.totalorder %s701_s16, 6   ;;  %s832_s12 = smov %s656_s13 }
  0xd6   : > { %s833_s13 = smov %s710_s19  ;;  %s834_s14 = smov %s701_s16 }
  0xd7   :  { %12 = sbr.rel (!%p10_p9) target bundleno = 2 (0x2), region = 90 }

// kernel: enc_forward.127
= control target key start
LH: loop header
LB: loop body
LE: loop exit
PB: predicated region body
PF: predicated region fallthrough
CT: control target
= control target key end

     0   :  { %s651_s12 = smov 0   ;;  %s653_s13 = smov 0   ;;  %s789_s0 = inlined_call_operand.vmem [shape: bf16[8,72], index: 0, kind: input, shape index: {}]   ;;  %s790_s1 = inlined_call_operand.vmem [shape: bf16[72,2048], index: 1, kind: input, shape index: {}]   ;;  %s791_s2 = inlined_call_operand.vmem [shape: f32[8,1], index: 2, kind: input, shape index: {}]   ;;  %s792_s3 = inlined_call_operand.vmem [shape: f32[8,2048], index: 3, kind: output, shape index: {}]  }
   0x1   :  { %s655_s14 = smov 0  }
   0x2 LB: > { %s482_s15 = sadd.s32 4294967295, %s628_s14   ;;  %s668_s16 = sadd.s32 1, %s628_s14   ;;  %s628_s14 = sphi %s655_s14, %s795_s14   ;;  %s624_s13 = sphi %s653_s13, %s794_s13   ;;  %s620_s12 = sphi %s651_s12, %s793_s12  }
   0x3   : > { %s38_s17 = ssub.s32 %s628_s14, %s668_s16  ;;  %s41_s18 = sadd.s32 1, %s624_s13 }
   0x4   : > { %p39_p0 = scmp.eq.s32.totalorder %s38_s17, 0  ;;  %p48_p1 = scmp.ne.s32.totalorder %s624_s13, %s620_s12 }
   0x5   : > { %p49_p2 = scmp.eq.s32.totalorder %s628_s14, 0  ;;  %p485_p4 = scmp.ge.s32.totalorder %s628_s14, 4 }
   0x6   : > { %s677_s19 = scalar_select %p39_p0, %s624_s13, %s41_s18  }
   0x7   : > { %p50_p3 = por %p49_p2, %p48_p1  ;;  %127 = sbr.rel (%p485_p4) target bundleno = 34 (0x22), region = 24 }
   0xc   : > { %130 = sbr.rel (!%p50_p3) target bundleno = 34 (0x22), region = 28  ;;  %s132_s20 = sand.u32 (%p50_p3), 1, %s624_s13  }
   0xd   : > { %s561_s21 = sshll.u32 (%p50_p3), %s628_s14, 4  ;;  %s578_s22 = smul.u32 (%p50_p3), 144, %s132_s20 }
   0xe   : > { %s685_s25 = scalar_lea.vmem (%p50_p3), %s790_s1, %s561_s21 }
   0xf   : > { %v150_v0 = vld [vmem:[%s685_s25] sm:$0xff] (%p50_p3)  ;;  %v152_v1 = vld [vmem:[%s685_s25 + $0x8] sm:$0xff] (%p50_p3)  ;;  %s690_s26 = scalar_lea.vmem (%p50_p3), [#allocation2], %s578_s22 }
  0x10   : > { %v154_v2 = vld [vmem:[%s685_s25 + $0x40] sm:$0xff] (%p50_p3)  ;;  %151 = vst [vmem:[%s690_s26] sm:$0xff] (%p50_p3), %v150_v0  ;;  %v156_v3 = vld [vmem:[%s685_s25 + $0x48] sm:$0xff] (%p50_p3) }
  0x11   : > { %153 = vst [vmem:[%s690_s26 + $0x8] sm:$0xff] %v152_v1  ;;  %v158_v4 = vld [vmem:[%s685_s25 + $0x80] sm:$0xff]  ;;  %v160_v5 = vld [vmem:[%s685_s25 + $0x88] sm:$0xff] }
  0x12   : > { %155 = vst [vmem:[%s690_s26 + $0x10] sm:$0xff] %v154_v2  ;;  %v162_v6 = vld [vmem:[%s685_s25 + $0xc0] sm:$0xff]  ;;  %v164_v7 = vld [vmem:[%s685_s25 + $0xc8] sm:$0xff] }
  0x13   : > { %157 = vst [vmem:[%s690_s26 + $0x18] sm:$0xff] %v156_v3  ;;  %v166_v8 = vld [vmem:[%s685_s25 + $0x100] sm:$0xff]  ;;  %v168_v9 = vld [vmem:[%s685_s25 + $0x108] sm:$0xff] }
  0x14   : > { %159 = vst [vmem:[%s690_s26 + $0x20] sm:$0xff] %v158_v4  ;;  %v170_v10 = vld [vmem:[%s685_s25 + $0x140] sm:$0xff]  ;;  %v172_v11 = vld [vmem:[%s685_s25 + $0x148] sm:$0xff] }
  0x15   : > { %161 = vst [vmem:[%s690_s26 + $0x28] sm:$0xff] %v160_v5  ;;  %v174_v12 = vld [vmem:[%s685_s25 + $0x180] sm:$0xff]  ;;  %v176_v13 = vld [vmem:[%s685_s25 + $0x188] sm:$0xff] }
  0x16   : > { %163 = vst [vmem:[%s690_s26 + $0x30] sm:$0xff] %v162_v6  ;;  %v178_v14 = vld [vmem:[%s685_s25 + $0x1c0] sm:$0xff]  ;;  %v180_v15 = vld [vmem:[%s685_s25 + $0x1c8] sm:$0xff] }
  0x17   : > { %165 = vst [vmem:[%s690_s26 + $0x38] sm:$0xff] %v164_v7  ;;  %v182_v16 = vld [vmem:[%s685_s25 + $0x200] sm:$0xff]  ;;  %v184_v17 = vld [vmem:[%s685_s25 + $0x208] sm:$0xff] }
  0x18   : > { %167 = vst [vmem:[%s690_s26 + $0x40] sm:$0xff] %v166_v8 }
  0x19   : > { %169 = vst [vmem:[%s690_s26 + $0x48] sm:$0xff] %v168_v9 }
  0x1a   : > { %171 = vst [vmem:[%s690_s26 + $0x50] sm:$0xff] %v170_v10 }
  0x1b   : > { %173 = vst [vmem:[%s690_s26 + $0x58] sm:$0xff] %v172_v11 }
  0x1c   : > { %175 = vst [vmem:[%s690_s26 + $0x60] sm:$0xff] %v174_v12 }
  0x1d   : > { %177 = vst [vmem:[%s690_s26 + $0x68] sm:$0xff] %v176_v13 }
  0x1e   : > { %179 = vst [vmem:[%s690_s26 + $0x70] sm:$0xff] %v178_v14 }
  0x1f   : > { %181 = vst [vmem:[%s690_s26 + $0x78] sm:$0xff] %v180_v15 }
  0x20   : > { %183 = vst [vmem:[%s690_s26 + $0x80] sm:$0xff] %v182_v16 }
  0x21   : > { %185 = vst [vmem:[%s690_s26 + $0x88] sm:$0xff] %v184_v17 }
  0x22 PF: > { %p488_p5 = scmp.ge.s32.totalorder %s628_s14, 1  ;;  %p190_p6 = scmp.lt.s32.totalorder %s628_s14, 5 }
  0x24   : > { %p191_p7 = pnand %p488_p5, %p190_p6 }
  0x25   : > { %s197_s27 = sand.u32 (!%p191_p7), 1, %s620_s12   ;;  %s489_s7 = sshll.u32 (!%p191_p7), %s482_s15, 2 }
  0x26   : > { %194 = sbr.rel (%p191_p7) target bundleno = 208 (0xd0), region = 51  ;;  %p222_p8 = scmp.lt.s32.totalorder (!%p191_p7), %s489_s7, 15 }
  0x27   : > { %s579_s28 = smul.u32 (!%p191_p7), 144, %s197_s27 }
  0x29   : > { %s731_s4 = scalar_lea.vmem (!%p191_p7), [#allocation2], %s579_s28 }
  0x2b   : > { %v630_v18 = vmov 0   ;;  %v247_v19 = vld [vmem:[%s791_s2] sm:$0xff]  ;;  %v245_v21 = vld [vmem:[%s731_s4 + $0x88] sm:$0xff]  ;;  %vm347_vm0 = vcmask 1043456   ;;  %v577_v35 = vld [vmem:[%s731_s4 + $0x74] sm:$0xf0] }
  0x2c   : > { %605 = vset.pattern.permute.xlu0 %v630_v18  ;;  %v244_v20 = vld [vmem:[%s731_s4 + $0x80] sm:$0xff]  ;;  %v305_v24 = vunpack.c.l.b16 %v245_v21  ;;  %v306_v25 = vunpack.c.h.b16 %v245_v21  ;;  %v576_v27 = vld [vmem:[%s731_s4 + $0x6c] sm:$0xf0]  ;;  %v543_v33 = vld [vmem:[%s731_s4 + $0x70] sm:$0xf0]  ;;  %vm343_vm1 = vcmask 588800  }
  0x2d   : > { %250 = vperm.xlu0 %605, %v247_v19   ;;  %v303_v22 = vunpack.c.l.b16 %v244_v20  ;;  %v304_v23 = vunpack.c.h.b16 %v244_v20  ;;  %v541_v26 = vld [vmem:[%s731_s4 + $0x60] sm:$0xf]  ;;  %v574_v32 = vld [vmem:[%s731_s4 + $0x64] sm:$0xf]  ;;  %v549_v34 = vld [vmem:[%s731_s4 + $0x68] sm:$0xf] }
  0x2e   : > { %v325_v30 = vpack.c.b16 %v305_v24, %v305_v24  ;;  %v326_v31 = vpack.c.b16 %v306_v25, %v306_v25  ;;  %v575_v36 = vld [vmem:[%s731_s4 + $0x6c] sm:$0xf]  ;;  %v551_v37 = vld [vmem:[%s731_s4 + $0x78] sm:$0xf0]  ;;  %v542_v42 = vor.u32 %v576_v27, %v541_v26  ;;  %v546_v43 = vor.u32 %v574_v32, %v543_v33  ;;  %v525_v44 = vld [vmem:[%s731_s4 + $0x40] sm:$0xf] }
  0x2f   : > { %v323_v28 = vpack.c.b16 %v303_v22, %v303_v22  ;;  %v324_v29 = vpack.c.b16 %v304_v23, %v304_v23  ;;  %v572_v45 = vld [vmem:[%s731_s4 + $0x4c] sm:$0xf0]  ;;  %v550_v46 = vor.u32 %v577_v35, %v549_v34  ;;  %v554_v47 = vor.u32 %v575_v36, %v551_v37  ;;  %v570_v48 = vld [vmem:[%s731_s4 + $0x44] sm:$0xf]  ;;  %v527_v49 = vld [vmem:[%s731_s4 + $0x50] sm:$0xf0] }
  0x30   : > { %v355_v40 = vsel %vm347_vm0, %v325_v30, 0  ;;  %v358_v41 = vsel %vm347_vm0, %v326_v31, 0  ;;  %v533_v50 = vld [vmem:[%s731_s4 + $0x48] sm:$0xf]  ;;  %v573_v51 = vld [vmem:[%s731_s4 + $0x54] sm:$0xf0]  ;;  %v526_v54 = vor.u32 %v572_v45, %v525_v44  ;;  %v530_v55 = vor.u32 %v570_v48, %v527_v49 }
  0x31   : > { %v349_v38 = vsel %vm347_vm0, %v323_v28, 0  ;;  %v352_v39 = vsel %vm347_vm0, %v324_v29, 0  ;;  %389 = vmatpush.bf16.msra.mxu2 %v355_v40  ;;  %402 = vmatpush.bf16.msra.mxu3 %v358_v41  ;;  %v571_v52 = vld [vmem:[%s731_s4 + $0x4c] sm:$0xf]  ;;  %v535_v53 = vld [vmem:[%s731_s4 + $0x58] sm:$0xf0]  ;;  %v534_v58 = vor.u32 %v573_v51, %v533_v50 }
  0x32   : > { %363 = vmatpush.bf16.msra.mxu0 %v349_v38  ;;  %376 = vmatpush.bf16.msra.mxu1 %v352_v39  ;;  %v509_v56 = vld [vmem:[%s731_s4 + $0x20] sm:$0xf]  ;;  %v568_v57 = vld [vmem:[%s731_s4 + $0x2c] sm:$0xf0]  ;;  %v538_v59 = vor.u32 %v571_v52, %v535_v53  ;;  %v566_v60 = vld [vmem:[%s731_s4 + $0x24] sm:$0xf] }
  0x33   : > { %v511_v61 = vld [vmem:[%s731_s4 + $0x30] sm:$0xf0]  ;;  %v517_v62 = vld [vmem:[%s731_s4 + $0x28] sm:$0xf]  ;;  %v569_v63 = vld [vmem:[%s731_s4 + $0x34] sm:$0xf0]  ;;  %v510_v2 = vor.u32 %v568_v57, %v509_v56 }
  0x34   : > { %v567_v0 = vld [vmem:[%s731_s4 + $0x2c] sm:$0xf]  ;;  %v519_v1 = vld [vmem:[%s731_s4 + $0x38] sm:$0xf0]  ;;  %v514_v3 = vor.u32 %v566_v60, %v511_v61  ;;  %v493_v4 = vld [vmem:[%s731_s4] sm:$0xf]  ;;  %v518_v6 = vor.u32 %v569_v63, %v517_v62 }
  0x35   : > { %390 = vmatpush.bf16.msra.mxu2 %v550_v46  ;;  %403 = vmatpush.bf16.msra.mxu3 %v554_v47  ;;  %v564_v5 = vld [vmem:[%s731_s4 + $0xc] sm:$0xf0]  ;;  %v522_v7 = vor.u32 %v567_v0, %v519_v1  ;;  %v562_v8 = vld [vmem:[%s731_s4 + $0x4] sm:$0xf]  ;;  %v495_v9 = vld [vmem:[%s731_s4 + $0x10] sm:$0xf0] }
  0x36   : > { %364 = vmatpush.bf16.msra.mxu0 %v542_v42  ;;  %377 = vmatpush.bf16.msra.mxu1 %v546_v43  ;;  %v501_v10 = vld [vmem:[%s731_s4 + $0x8] sm:$0xf]  ;;  %v565_v11 = vld [vmem:[%s731_s4 + $0x14] sm:$0xf0]  ;;  %v563_v12 = vld [vmem:[%s731_s4 + $0xc] sm:$0xf]  ;;  %v494_v14 = vor.u32 %v564_v5, %v493_v4  ;;  %v498_v15 = vor.u32 %v562_v8, %v495_v9 }
  0x37   : > { %v503_v13 = vld [vmem:[%s731_s4 + $0x18] sm:$0xf0]  ;;  %v502_v16 = vor.u32 %v565_v11, %v501_v10  ;;  %v246_v18 = vld [vmem:[%s789_s0] sm:$0xf]  ;;  %s797_s7 = smov (!%p222_p8, %s489_s7), 15 }
  0x38   : > { %v506_v17 = vor.u32 %v563_v12, %v503_v13  ;;  %s490_s8 = sshll.u32 %s797_s7, 3 }
  0x39   : > { %391 = vmatpush.bf16.msra.mxu2 %v534_v58  ;;  %404 = vmatpush.bf16.msra.mxu3 %v538_v59  ;;  %s225_s11 = scalar_lea.vmem %s792_s3, %s490_s8 }
  0x3a   : > { %365 = vmatpush.bf16.msra.mxu0 %v526_v54  ;;  %378 = vmatpush.bf16.msra.mxu1 %v530_v55 }
  0x3d   : > { %392 = vmatpush.bf16.msra.mxu2 %v518_v6  ;;  %405 = vmatpush.bf16.msra.mxu3 %v522_v7 }
  0x3e   : > { %366 = vmatpush.bf16.msra.mxu0 %v510_v2  ;;  %379 = vmatpush.bf16.msra.mxu1 %v514_v3 }
  0x41   : > { %393 = vmatpush.bf16.msra.mxu2 %v502_v16  ;;  %406 = vmatpush.bf16.msra.mxu3 %v506_v17 }
  0x42   : > { %367 = vmatpush.bf16.msra.mxu0 %v494_v14  ;;  %380 = vmatpush.bf16.msra.mxu1 %v498_v15 }
  0x44   : > { %557 = vmatmul.msk.bf16.vlgmr.msra.gmra.mxu2 %vm343_vm1, %v246_v18  ;;  %558 = vmatmul.msk.bf16.vlgmr.msra.gmra.mxu3 %vm343_vm1, %v246_v18 }
  0x45   : > { %555 = vmatmul.msk.bf16.vlgmr.msra.gmra.mxu0 %vm343_vm1, %v246_v18  ;;  %556 = vmatmul.msk.bf16.vlgmr.msra.gmra.mxu1 %vm343_vm1, %v246_v18 }
  0x9f   : > { %v251_v19 = vpop.permute.xlu0 %250 }
  0xc2   : > { %v369_v20 = vpop.f32.mrf.mxu0  ;;  %v382_v21 = vpop.f32.mrf.mxu1 }
  0xc3   : > { %v370_v22 = vadd.f32 %v369_v20, %v251_v19  ;;  %v383_v23 = vadd.f32 %v382_v21, %v251_v19 }
  0xc5   : > { %v412_v24 = vmax.f32 %v370_v22, 0.0  ;;  %v413_v25 = vmax.f32 %v383_v23, 0.0 }
  0xc7   : > { %416 = vst [vmem:[%s225_s11] sm:$0xff] %v412_v24  ;;  %v395_v26 = vpop.f32.mrf.mxu2  ;;  %v408_v27 = vpop.f32.mrf.mxu3 }
  0xc8   : > { %417 = vst [vmem:[%s225_s11 + $0x8] sm:$0xff] %v413_v25  ;;  %v396_v28 = vadd.f32 %v395_v26, %v251_v19  ;;  %v409_v29 = vadd.f32 %v408_v27, %v251_v19 }
  0xca   : > { %v371_v30 = vpop.f32.mrf.mxu0  ;;  %v384_v31 = vpop.f32.mrf.mxu1  ;;  %v414_v32 = vmax.f32 %v396_v28, 0.0  ;;  %v415_v33 = vmax.f32 %v409_v29, 0.0 }
  0xcc   : > { %418 = vst [vmem:[%s225_s11 + $0x10] sm:$0xff] %v414_v32 }
  0xcd   : > { %419 = vst [vmem:[%s225_s11 + $0x18] sm:$0xff] %v415_v33 }
  0xcf   : > { %v397_v34 = vpop.f32.mrf.mxu2  ;;  %v410_v35 = vpop.f32.mrf.mxu3 }
  0xd0 PF: > { %p10_p9 = scmp.ge.s32.totalorder %s668_s16, 6   ;;  %s793_s12 = smov %s624_s13 }
  0xd1   : > { %s794_s13 = smov %s677_s19  ;;  %s795_s14 = smov %s668_s16 }
  0xd2   :  { %12 = sbr.rel (!%p10_p9) target bundleno = 2 (0x2), region = 90 }

// kernel: enc_forward.128
= control target key start
LH: loop header
LB: loop body
LE: loop exit
PB: predicated region body
PF: predicated region fallthrough
CT: control target
= control target key end

     0   :  { %s723_s15 = smov 0   ;;  %s725_s16 = smov 0   ;;  %s864_s0 = inlined_call_operand.vmem [shape: bf16[8,72], index: 0, kind: input, shape index: {}]   ;;  %s865_s1 = inlined_call_operand.vmem [shape: bf16[72,2048], index: 1, kind: input, shape index: {}]   ;;  %s866_s2 = inlined_call_operand.vmem [shape: f32[8,1], index: 2, kind: input, shape index: {}]   ;;  %s867_s3 = inlined_call_operand.vmem [shape: f32[8,2048], index: 3, kind: input, shape index: {}]   ;;  %s868_s4 = inlined_call_operand.vmem [shape: f32[8,2048], index: 4, kind: output, shape index: {}]  }
   0x1   :  { %s727_s17 = smov 0  }
   0x2 LB: > { %s547_s18 = sadd.s32 4294967295, %s695_s17   ;;  %s740_s19 = sadd.s32 1, %s695_s17   ;;  %s695_s17 = sphi %s727_s17, %s871_s17   ;;  %s691_s16 = sphi %s725_s16, %s870_s16   ;;  %s687_s15 = sphi %s723_s15, %s869_s15  }
   0x3   : > { %s39_s20 = ssub.s32 %s695_s17, %s740_s19  ;;  %s42_s21 = sadd.s32 1, %s691_s16 }
   0x4   : > { %p40_p0 = scmp.eq.s32.totalorder %s39_s20, 0  ;;  %p49_p1 = scmp.ne.s32.totalorder %s691_s16, %s687_s15 }
   0x5   : > { %p50_p2 = scmp.eq.s32.totalorder %s695_s17, 0  ;;  %p550_p4 = scmp.ge.s32.totalorder %s695_s17, 4 }
   0x6   : > { %s749_s22 = scalar_select %p40_p0, %s691_s16, %s42_s21  }
   0x7   : > { %p51_p3 = por %p50_p2, %p49_p1  ;;  %154 = sbr.rel (%p550_p4) target bundleno = 34 (0x22), region = 24 }
   0xc   : > { %157 = sbr.rel (!%p51_p3) target bundleno = 34 (0x22), region = 28  ;;  %s159_s23 = sand.u32 (%p51_p3), 1, %s691_s16  }
   0xd   : > { %s628_s24 = sshll.u32 (%p51_p3), %s695_s17, 4  ;;  %s645_s25 = smul.u32 (%p51_p3), 144, %s159_s23 }
   0xe   : > { %s757_s28 = scalar_lea.vmem (%p51_p3), %s865_s1, %s628_s24 }
   0xf   : > { %v177_v0 = vld [vmem:[%s757_s28] sm:$0xff] (%p51_p3)  ;;  %v179_v1 = vld [vmem:[%s757_s28 + $0x8] sm:$0xff] (%p51_p3)  ;;  %s762_s29 = scalar_lea.vmem (%p51_p3), [#allocation2], %s645_s25 }
  0x10   : > { %v181_v2 = vld [vmem:[%s757_s28 + $0x40] sm:$0xff] (%p51_p3)  ;;  %178 = vst [vmem:[%s762_s29] sm:$0xff] (%p51_p3), %v177_v0  ;;  %v183_v3 = vld [vmem:[%s757_s28 + $0x48] sm:$0xff] (%p51_p3) }
  0x11   : > { %180 = vst [vmem:[%s762_s29 + $0x8] sm:$0xff] %v179_v1  ;;  %v185_v4 = vld [vmem:[%s757_s28 + $0x80] sm:$0xff]  ;;  %v187_v5 = vld [vmem:[%s757_s28 + $0x88] sm:$0xff] }
  0x12   : > { %182 = vst [vmem:[%s762_s29 + $0x10] sm:$0xff] %v181_v2  ;;  %v189_v6 = vld [vmem:[%s757_s28 + $0xc0] sm:$0xff]  ;;  %v191_v7 = vld [vmem:[%s757_s28 + $0xc8] sm:$0xff] }
  0x13   : > { %184 = vst [vmem:[%s762_s29 + $0x18] sm:$0xff] %v183_v3  ;;  %v193_v8 = vld [vmem:[%s757_s28 + $0x100] sm:$0xff]  ;;  %v195_v9 = vld [vmem:[%s757_s28 + $0x108] sm:$0xff] }
  0x14   : > { %186 = vst [vmem:[%s762_s29 + $0x20] sm:$0xff] %v185_v4  ;;  %v197_v10 = vld [vmem:[%s757_s28 + $0x140] sm:$0xff]  ;;  %v199_v11 = vld [vmem:[%s757_s28 + $0x148] sm:$0xff] }
  0x15   : > { %188 = vst [vmem:[%s762_s29 + $0x28] sm:$0xff] %v187_v5  ;;  %v201_v12 = vld [vmem:[%s757_s28 + $0x180] sm:$0xff]  ;;  %v203_v13 = vld [vmem:[%s757_s28 + $0x188] sm:$0xff] }
  0x16   : > { %190 = vst [vmem:[%s762_s29 + $0x30] sm:$0xff] %v189_v6  ;;  %v205_v14 = vld [vmem:[%s757_s28 + $0x1c0] sm:$0xff]  ;;  %v207_v15 = vld [vmem:[%s757_s28 + $0x1c8] sm:$0xff] }
  0x17   : > { %192 = vst [vmem:[%s762_s29 + $0x38] sm:$0xff] %v191_v7  ;;  %v209_v16 = vld [vmem:[%s757_s28 + $0x200] sm:$0xff]  ;;  %v211_v17 = vld [vmem:[%s757_s28 + $0x208] sm:$0xff] }
  0x18   : > { %194 = vst [vmem:[%s762_s29 + $0x40] sm:$0xff] %v193_v8 }
  0x19   : > { %196 = vst [vmem:[%s762_s29 + $0x48] sm:$0xff] %v195_v9 }
  0x1a   : > { %198 = vst [vmem:[%s762_s29 + $0x50] sm:$0xff] %v197_v10 }
  0x1b   : > { %200 = vst [vmem:[%s762_s29 + $0x58] sm:$0xff] %v199_v11 }
  0x1c   : > { %202 = vst [vmem:[%s762_s29 + $0x60] sm:$0xff] %v201_v12 }
  0x1d   : > { %204 = vst [vmem:[%s762_s29 + $0x68] sm:$0xff] %v203_v13 }
  0x1e   : > { %206 = vst [vmem:[%s762_s29 + $0x70] sm:$0xff] %v205_v14 }
  0x1f   : > { %208 = vst [vmem:[%s762_s29 + $0x78] sm:$0xff] %v207_v15 }
  0x20   : > { %210 = vst [vmem:[%s762_s29 + $0x80] sm:$0xff] %v209_v16 }
  0x21   : > { %212 = vst [vmem:[%s762_s29 + $0x88] sm:$0xff] %v211_v17 }
  0x22 PF: > { %p553_p5 = scmp.ge.s32.totalorder %s695_s17, 1  ;;  %p226_p6 = scmp.lt.s32.totalorder %s695_s17, 5 }
  0x24   : > { %p227_p7 = pnand %p553_p5, %p226_p6 }
  0x25   : > { %s233_s30 = sand.u32 (!%p227_p7), 1, %s687_s15   ;;  %s554_s11 = sshll.u32 (!%p227_p7), %s547_s18, 2 }
  0x26   : > { %230 = sbr.rel (%p227_p7) target bundleno = 208 (0xd0), region = 55  ;;  %p265_p8 = scmp.lt.s32.totalorder (!%p227_p7), %s554_s11, 15 }
  0x27   : > { %s646_s5 = smul.u32 (!%p227_p7), 144, %s233_s30 }
  0x29   : > { %s803_s8 = scalar_lea.vmem (!%p227_p7), [#allocation2], %s646_s5 }
  0x2b   : > { %v697_v18 = vmov 0   ;;  %v296_v19 = vld [vmem:[%s866_s2] sm:$0xff]  ;;  %v294_v21 = vld [vmem:[%s803_s8 + $0x88] sm:$0xff]  ;;  %vm396_vm0 = vcmask 1043456   ;;  %v644_v35 = vld [vmem:[%s803_s8 + $0x74] sm:$0xf0] }
  0x2c   : > { %672 = vset.pattern.permute.xlu0 %v697_v18  ;;  %v293_v20 = vld [vmem:[%s803_s8 + $0x80] sm:$0xff]  ;;  %v354_v24 = vunpack.c.l.b16 %v294_v21  ;;  %v355_v25 = vunpack.c.h.b16 %v294_v21  ;;  %v643_v27 = vld [vmem:[%s803_s8 + $0x6c] sm:$0xf0]  ;;  %v610_v33 = vld [vmem:[%s803_s8 + $0x70] sm:$0xf0]  ;;  %vm392_vm1 = vcmask 588800  }
  0x2d   : > { %299 = vperm.xlu0 %672, %v296_v19   ;;  %v352_v22 = vunpack.c.l.b16 %v293_v20  ;;  %v353_v23 = vunpack.c.h.b16 %v293_v20  ;;  %v608_v26 = vld [vmem:[%s803_s8 + $0x60] sm:$0xf]  ;;  %v641_v32 = vld [vmem:[%s803_s8 + $0x64] sm:$0xf]  ;;  %v616_v34 = vld [vmem:[%s803_s8 + $0x68] sm:$0xf] }
  0x2e   : > { %v374_v30 = vpack.c.b16 %v354_v24, %v354_v24  ;;  %v375_v31 = vpack.c.b16 %v355_v25, %v355_v25  ;;  %v642_v36 = vld [vmem:[%s803_s8 + $0x6c] sm:$0xf]  ;;  %v618_v37 = vld [vmem:[%s803_s8 + $0x78] sm:$0xf0]  ;;  %v609_v42 = vor.u32 %v643_v27, %v608_v26  ;;  %v613_v43 = vor.u32 %v641_v32, %v610_v33  ;;  %v592_v44 = vld [vmem:[%s803_s8 + $0x40] sm:$0xf] }
  0x2f   : > { %v372_v28 = vpack.c.b16 %v352_v22, %v352_v22  ;;  %v373_v29 = vpack.c.b16 %v353_v23, %v353_v23  ;;  %v639_v45 = vld [vmem:[%s803_s8 + $0x4c] sm:$0xf0]  ;;  %v617_v46 = vor.u32 %v644_v35, %v616_v34  ;;  %v621_v47 = vor.u32 %v642_v36, %v618_v37  ;;  %v637_v48 = vld [vmem:[%s803_s8 + $0x44] sm:$0xf]  ;;  %v594_v49 = vld [vmem:[%s803_s8 + $0x50] sm:$0xf0] }
  0x30   : > { %v404_v40 = vsel %vm396_vm0, %v374_v30, 0  ;;  %v407_v41 = vsel %vm396_vm0, %v375_v31, 0  ;;  %v600_v50 = vld [vmem:[%s803_s8 + $0x48] sm:$0xf]  ;;  %v640_v51 = vld [vmem:[%s803_s8 + $0x54] sm:$0xf0]  ;;  %v593_v54 = vor.u32 %v639_v45, %v592_v44  ;;  %v597_v55 = vor.u32 %v637_v48, %v594_v49 }
  0x31   : > { %v398_v38 = vsel %vm396_vm0, %v372_v28, 0  ;;  %v401_v39 = vsel %vm396_vm0, %v373_v29, 0  ;;  %438 = vmatpush.bf16.msra.mxu2 %v404_v40  ;;  %451 = vmatpush.bf16.msra.mxu3 %v407_v41  ;;  %v638_v52 = vld [vmem:[%s803_s8 + $0x4c] sm:$0xf]  ;;  %v602_v53 = vld [vmem:[%s803_s8 + $0x58] sm:$0xf0]  ;;  %v601_v58 = vor.u32 %v640_v51, %v600_v50 }
  0x32   : > { %412 = vmatpush.bf16.msra.mxu0 %v398_v38  ;;  %425 = vmatpush.bf16.msra.mxu1 %v401_v39  ;;  %v576_v56 = vld [vmem:[%s803_s8 + $0x20] sm:$0xf]  ;;  %v635_v57 = vld [vmem:[%s803_s8 + $0x2c] sm:$0xf0]  ;;  %v605_v59 = vor.u32 %v638_v52, %v602_v53  ;;  %v633_v60 = vld [vmem:[%s803_s8 + $0x24] sm:$0xf] }
  0x33   : > { %v578_v61 = vld [vmem:[%s803_s8 + $0x30] sm:$0xf0]  ;;  %v584_v62 = vld [vmem:[%s803_s8 + $0x28] sm:$0xf]  ;;  %v636_v63 = vld [vmem:[%s803_s8 + $0x34] sm:$0xf0]  ;;  %v577_v2 = vor.u32 %v635_v57, %v576_v56 }
  0x34   : > { %v634_v0 = vld [vmem:[%s803_s8 + $0x2c] sm:$0xf]  ;;  %v586_v1 = vld [vmem:[%s803_s8 + $0x38] sm:$0xf0]  ;;  %v581_v3 = vor.u32 %v633_v60, %v578_v61  ;;  %v560_v4 = vld [vmem:[%s803_s8] sm:$0xf]  ;;  %v585_v6 = vor.u32 %v636_v63, %v584_v62 }
  0x35   : > { %439 = vmatpush.bf16.msra.mxu2 %v617_v46  ;;  %452 = vmatpush.bf16.msra.mxu3 %v621_v47  ;;  %v631_v5 = vld [vmem:[%s803_s8 + $0xc] sm:$0xf0]  ;;  %v589_v7 = vor.u32 %v634_v0, %v586_v1  ;;  %v629_v8 = vld [vmem:[%s803_s8 + $0x4] sm:$0xf]  ;;  %v562_v9 = vld [vmem:[%s803_s8 + $0x10] sm:$0xf0] }
  0x36   : > { %413 = vmatpush.bf16.msra.mxu0 %v609_v42  ;;  %426 = vmatpush.bf16.msra.mxu1 %v613_v43  ;;  %v568_v10 = vld [vmem:[%s803_s8 + $0x8] sm:$0xf]  ;;  %v632_v11 = vld [vmem:[%s803_s8 + $0x14] sm:$0xf0]  ;;  %v630_v12 = vld [vmem:[%s803_s8 + $0xc] sm:$0xf]  ;;  %v561_v14 = vor.u32 %v631_v5, %v560_v4  ;;  %v565_v15 = vor.u32 %v629_v8, %v562_v9 }
  0x37   : > { %v570_v13 = vld [vmem:[%s803_s8 + $0x18] sm:$0xf0]  ;;  %v569_v16 = vor.u32 %v632_v11, %v568_v10  ;;  %v295_v18 = vld [vmem:[%s864_s0] sm:$0xf]  ;;  %s873_s11 = smov (!%p265_p8, %s554_s11), 15 }
  0x38   : > { %v573_v17 = vor.u32 %v630_v12, %v570_v13  ;;  %s555_s12 = sshll.u32 %s873_s11, 3 }
  0x39   : > { %440 = vmatpush.bf16.msra.mxu2 %v601_v58  ;;  %453 = vmatpush.bf16.msra.mxu3 %v605_v59  ;;  %s268_s15 = scalar_lea.vmem %s867_s3, %s555_s12  ;;  %s274_s23 = scalar_lea.vmem %s868_s4, %s555_s12 }
  0x3a   : > { %414 = vmatpush.bf16.msra.mxu0 %v593_v54  ;;  %427 = vmatpush.bf16.msra.mxu1 %v597_v55  ;;  %v461_v22 = vld [vmem:[%s268_s15] sm:$0xff]  ;;  %v462_v23 = vld [vmem:[%s268_s15 + $0x8] sm:$0xff]  ;;  %v463_v29 = vld [vmem:[%s268_s15 + $0x10] sm:$0xff] }
  0x3b   : > { %v464_v31 = vld [vmem:[%s268_s15 + $0x18] sm:$0xff] }
  0x3d   : > { %441 = vmatpush.bf16.msra.mxu2 %v585_v6  ;;  %454 = vmatpush.bf16.msra.mxu3 %v589_v7 }
  0x3e   : > { %415 = vmatpush.bf16.msra.mxu0 %v577_v2  ;;  %428 = vmatpush.bf16.msra.mxu1 %v581_v3 }
  0x41   : > { %442 = vmatpush.bf16.msra.mxu2 %v569_v16  ;;  %455 = vmatpush.bf16.msra.mxu3 %v573_v17 }
  0x42   : > { %416 = vmatpush.bf16.msra.mxu0 %v561_v14  ;;  %429 = vmatpush.bf16.msra.mxu1 %v565_v15 }
  0x44   : > { %624 = vmatmul.msk.bf16.vlgmr.msra.gmra.mxu2 %vm392_vm1, %v295_v18  ;;  %625 = vmatmul.msk.bf16.vlgmr.msra.gmra.mxu3 %vm392_vm1, %v295_v18 }
  0x45   : > { %622 = vmatmul.msk.bf16.vlgmr.msra.gmra.mxu0 %vm392_vm1, %v295_v18  ;;  %623 = vmatmul.msk.bf16.vlgmr.msra.gmra.mxu1 %vm392_vm1, %v295_v18 }
  0x9f   : > { %v300_v19 = vpop.permute.xlu0 %299 }
  0xc2   : > { %v418_v20 = vpop.f32.mrf.mxu0  ;;  %v431_v21 = vpop.f32.mrf.mxu1 }
  0xc3   : > { %v419_v24 = vadd.f32 %v418_v20, %v300_v19  ;;  %v432_v25 = vadd.f32 %v431_v21, %v300_v19 }
  0xc5   : > { %v465_v26 = vadd.f32 %v461_v22, %v419_v24  ;;  %v466_v27 = vadd.f32 %v462_v23, %v432_v25 }
  0xc7   : > { %469 = vst [vmem:[%s274_s23] sm:$0xff] %v465_v26  ;;  %v444_v28 = vpop.f32.mrf.mxu2  ;;  %v457_v30 = vpop.f32.mrf.mxu3 }
  0xc8   : > { %470 = vst [vmem:[%s274_s23 + $0x8] sm:$0xff] %v466_v27  ;;  %v445_v32 = vadd.f32 %v444_v28, %v300_v19  ;;  %v458_v33 = vadd.f32 %v457_v30, %v300_v19 }
  0xca   : > { %v420_v34 = vpop.f32.mrf.mxu0  ;;  %v433_v35 = vpop.f32.mrf.mxu1  ;;  %v467_v36 = vadd.f32 %v463_v29, %v445_v32  ;;  %v468_v37 = vadd.f32 %v464_v31, %v458_v33 }
  0xcc   : > { %471 = vst [vmem:[%s274_s23 + $0x10] sm:$0xff] %v467_v36 }
  0xcd   : > { %472 = vst [vmem:[%s274_s23 + $0x18] sm:$0xff] %v468_v37 }
  0xcf   : > { %v446_v38 = vpop.f32.mrf.mxu2  ;;  %v459_v39 = vpop.f32.mrf.mxu3 }
  0xd0 PF: > { %p11_p9 = scmp.ge.s32.totalorder %s740_s19, 6   ;;  %s869_s15 = smov %s691_s16 }
  0xd1   : > { %s870_s16 = smov %s749_s22  ;;  %s871_s17 = smov %s740_s19 }
  0xd2   :  { %13 = sbr.rel (!%p11_p9) target bundleno = 2 (0x2), region = 97 }

// kernel: enc_forward.131
= control target key start
LH: loop header
LB: loop body
LE: loop exit
PB: predicated region body
PF: predicated region fallthrough
CT: control target
= control target key end

     0   :  { %s862_s18 = smov 0   ;;  %s864_s19 = smov 0   ;;  %s1031_s0 = inlined_call_operand.vmem [shape: bf16[8,72], index: 0, kind: input, shape index: {}]   ;;  %s1032_s1 = inlined_call_operand.vmem [shape: bf16[72,2048], index: 1, kind: input, shape index: {}]   ;;  %s1033_s2 = inlined_call_operand.vmem [shape: f32[8,1], index: 2, kind: input, shape index: {}]   ;;  %s1034_s3 = inlined_call_operand.vmem [shape: f32[8,8], index: 3, kind: input, shape index: {}]   ;;  %s1035_s4 = inlined_call_operand.vmem [shape: f32[8,1], index: 4, kind: input, shape index: {}]   ;;  %s1036_s5 = inlined_call_operand.vmem [shape: f32[8,2048], index: 5, kind: output, shape index: {}]  }
   0x1   :  { %s866_s20 = smov 0  }
   0x2 LB: > { %s671_s21 = sadd.s32 4294967295, %s829_s20   ;;  %s879_s22 = sadd.s32 1, %s829_s20   ;;  %s829_s20 = sphi %s866_s20, %s1039_s20   ;;  %s825_s19 = sphi %s864_s19, %s1038_s19   ;;  %s821_s18 = sphi %s862_s18, %s1037_s18  }
   0x3   : > { %s40_s23 = ssub.s32 %s829_s20, %s879_s22  ;;  %s43_s24 = sadd.s32 1, %s825_s19 }
   0x4   : > { %p41_p0 = scmp.eq.s32.totalorder %s40_s23, 0  ;;  %p50_p1 = scmp.ne.s32.totalorder %s825_s19, %s821_s18 }
   0x5   : > { %p51_p2 = scmp.eq.s32.totalorder %s829_s20, 0  ;;  %p674_p4 = scmp.ge.s32.totalorder %s829_s20, 4 }
   0x6   : > { %s888_s25 = scalar_select %p41_p0, %s825_s19, %s43_s24  }
   0x7   : > { %p52_p3 = por %p51_p2, %p50_p1  ;;  %177 = sbr.rel (%p674_p4) target bundleno = 34 (0x22), region = 32 }
   0xc   : > { %180 = sbr.rel (!%p52_p3) target bundleno = 34 (0x22), region = 36  ;;  %s182_s26 = sand.u32 (%p52_p3), 1, %s825_s19  }
   0xd   : > { %s754_s27 = sshll.u32 (%p52_p3), %s829_s20, 4  ;;  %s771_s28 = smul.u32 (%p52_p3), 144, %s182_s26 }
   0xe   : > { %s896_s6 = scalar_lea.vmem (%p52_p3), %s1032_s1, %s754_s27 }
   0xf   : > { %v200_v0 = vld [vmem:[%s896_s6] sm:$0xff] (%p52_p3)  ;;  %v202_v1 = vld [vmem:[%s896_s6 + $0x8] sm:$0xff] (%p52_p3)  ;;  %s901_s7 = scalar_lea.vmem (%p52_p3), [#allocation2], %s771_s28 }
  0x10   : > { %v204_v2 = vld [vmem:[%s896_s6 + $0x40] sm:$0xff] (%p52_p3)  ;;  %201 = vst [vmem:[%s901_s7] sm:$0xff] (%p52_p3), %v200_v0  ;;  %v206_v3 = vld [vmem:[%s896_s6 + $0x48] sm:$0xff] (%p52_p3) }
  0x11   : > { %203 = vst [vmem:[%s901_s7 + $0x8] sm:$0xff] %v202_v1  ;;  %v208_v4 = vld [vmem:[%s896_s6 + $0x80] sm:$0xff]  ;;  %v210_v5 = vld [vmem:[%s896_s6 + $0x88] sm:$0xff] }
  0x12   : > { %205 = vst [vmem:[%s901_s7 + $0x10] sm:$0xff] %v204_v2  ;;  %v212_v6 = vld [vmem:[%s896_s6 + $0xc0] sm:$0xff]  ;;  %v214_v7 = vld [vmem:[%s896_s6 + $0xc8] sm:$0xff] }
  0x13   : > { %207 = vst [vmem:[%s901_s7 + $0x18] sm:$0xff] %v206_v3  ;;  %v216_v8 = vld [vmem:[%s896_s6 + $0x100] sm:$0xff]  ;;  %v218_v9 = vld [vmem:[%s896_s6 + $0x108] sm:$0xff] }
  0x14   : > { %209 = vst [vmem:[%s901_s7 + $0x20] sm:$0xff] %v208_v4  ;;  %v220_v10 = vld [vmem:[%s896_s6 + $0x140] sm:$0xff]  ;;  %v222_v11 = vld [vmem:[%s896_s6 + $0x148] sm:$0xff] }
  0x15   : > { %211 = vst [vmem:[%s901_s7 + $0x28] sm:$0xff] %v210_v5  ;;  %v224_v12 = vld [vmem:[%s896_s6 + $0x180] sm:$0xff]  ;;  %v226_v13 = vld [vmem:[%s896_s6 + $0x188] sm:$0xff] }
  0x16   : > { %213 = vst [vmem:[%s901_s7 + $0x30] sm:$0xff] %v212_v6  ;;  %v228_v14 = vld [vmem:[%s896_s6 + $0x1c0] sm:$0xff]  ;;  %v230_v15 = vld [vmem:[%s896_s6 + $0x1c8] sm:$0xff] }
  0x17   : > { %215 = vst [vmem:[%s901_s7 + $0x38] sm:$0xff] %v214_v7  ;;  %v232_v16 = vld [vmem:[%s896_s6 + $0x200] sm:$0xff]  ;;  %v234_v17 = vld [vmem:[%s896_s6 + $0x208] sm:$0xff] }
  0x18   : > { %217 = vst [vmem:[%s901_s7 + $0x40] sm:$0xff] %v216_v8 }
  0x19   : > { %219 = vst [vmem:[%s901_s7 + $0x48] sm:$0xff] %v218_v9 }
  0x1a   : > { %221 = vst [vmem:[%s901_s7 + $0x50] sm:$0xff] %v220_v10 }
  0x1b   : > { %223 = vst [vmem:[%s901_s7 + $0x58] sm:$0xff] %v222_v11 }
  0x1c   : > { %225 = vst [vmem:[%s901_s7 + $0x60] sm:$0xff] %v224_v12 }
  0x1d   : > { %227 = vst [vmem:[%s901_s7 + $0x68] sm:$0xff] %v226_v13 }
  0x1e   : > { %229 = vst [vmem:[%s901_s7 + $0x70] sm:$0xff] %v228_v14 }
  0x1f   : > { %231 = vst [vmem:[%s901_s7 + $0x78] sm:$0xff] %v230_v15 }
  0x20   : > { %233 = vst [vmem:[%s901_s7 + $0x80] sm:$0xff] %v232_v16 }
  0x21   : > { %235 = vst [vmem:[%s901_s7 + $0x88] sm:$0xff] %v234_v17 }
  0x22 PF: > { %p677_p5 = scmp.ge.s32.totalorder %s829_s20, 1  ;;  %p240_p6 = scmp.lt.s32.totalorder %s829_s20, 5 }
  0x24   : > { %p241_p7 = pnand %p677_p5, %p240_p6 }
  0x25   : > { %s247_s8 = sand.u32 (!%p241_p7), 1, %s821_s18   ;;  %s678_s23 = sshll.u32 (!%p241_p7), %s671_s21, 2 }
  0x26   : > { %244 = sbr.rel (%p241_p7) target bundleno = 362 (0x16a), region = 59  ;;  %p276_p8 = scmp.lt.s32.totalorder (!%p241_p7), %s678_s23, 15 }
  0x27   : > { %s772_s9 = smul.u32 (!%p241_p7), 144, %s247_s8 }
  0x29   : > { %s942_s12 = scalar_lea.vmem (!%p241_p7), [#allocation2], %s772_s9 }
  0x2b   : > { %v831_v18 = vmov 0   ;;  %v301_v19 = vld [vmem:[%s1033_s2] sm:$0xff]  ;;  %v299_v21 = vld [vmem:[%s942_s12 + $0x88] sm:$0xff]  ;;  %vm401_vm0 = vcmask 1043456   ;;  %v770_v35 = vld [vmem:[%s942_s12 + $0x74] sm:$0xf0] }
  0x2c   : > { %798 = vset.pattern.permute.xlu0 %v831_v18  ;;  %v298_v20 = vld [vmem:[%s942_s12 + $0x80] sm:$0xff]  ;;  %v359_v24 = vunpack.c.l.b16 %v299_v21  ;;  %v360_v25 = vunpack.c.h.b16 %v299_v21  ;;  %v769_v27 = vld [vmem:[%s942_s12 + $0x6c] sm:$0xf0]  ;;  %v732_v33 = vld [vmem:[%s942_s12 + $0x70] sm:$0xf0]  ;;  %vm397_vm1 = vcmask 588800  }
  0x2d   : > { %304 = vperm.xlu0 %798, %v301_v19   ;;  %v357_v22 = vunpack.c.l.b16 %v298_v20  ;;  %v358_v23 = vunpack.c.h.b16 %v298_v20  ;;  %v730_v26 = vld [vmem:[%s942_s12 + $0x60] sm:$0xf]  ;;  %v767_v32 = vld [vmem:[%s942_s12 + $0x64] sm:$0xf]  ;;  %v738_v34 = vld [vmem:[%s942_s12 + $0x68] sm:$0xf] }
  0x2e   : > { %v379_v30 = vpack.c.b16 %v359_v24, %v359_v24  ;;  %v380_v31 = vpack.c.b16 %v360_v25, %v360_v25  ;;  %v768_v36 = vld [vmem:[%s942_s12 + $0x6c] sm:$0xf]  ;;  %v740_v37 = vld [vmem:[%s942_s12 + $0x78] sm:$0xf0]  ;;  %v471_v42 = vld [vmem:[%s1035_s4] sm:$0xff]  ;;  %v731_v43 = vor.u32 %v769_v27, %v730_v26  ;;  %v735_v44 = vor.u32 %v767_v32, %v732_v33  ;;  %s1041_s23 = smov (!%p276_p8, %s678_s23), 15 }
  0x2f   : > { %v377_v28 = vpack.c.b16 %v357_v22, %v357_v22  ;;  %v378_v29 = vpack.c.b16 %v358_v23, %v358_v23  ;;  %v714_v45 = vld [vmem:[%s942_s12 + $0x40] sm:$0xf]  ;;  %v765_v46 = vld [vmem:[%s942_s12 + $0x4c] sm:$0xf0]  ;;  %v739_v47 = vor.u32 %v770_v35, %v738_v34  ;;  %v743_v48 = vor.u32 %v768_v36, %v740_v37  ;;  %v763_v49 = vld [vmem:[%s942_s12 + $0x44] sm:$0xf] }
  0x30   : > { %v409_v40 = vsel %vm401_vm0, %v379_v30, 0  ;;  %v412_v41 = vsel %vm401_vm0, %v380_v31, 0  ;;  %v716_v50 = vld [vmem:[%s942_s12 + $0x50] sm:$0xf0]  ;;  %v722_v51 = vld [vmem:[%s942_s12 + $0x48] sm:$0xf]  ;;  %v715_v55 = vor.u32 %v765_v46, %v714_v45 }
  0x31   : > { %v403_v38 = vsel %vm401_vm0, %v377_v28, 0  ;;  %v406_v39 = vsel %vm401_vm0, %v378_v29, 0  ;;  %443 = vmatpush.bf16.msra.mxu2 %v409_v40  ;;  %456 = vmatpush.bf16.msra.mxu3 %v412_v41  ;;  %v766_v52 = vld [vmem:[%s942_s12 + $0x54] sm:$0xf0]  ;;  %v764_v53 = vld [vmem:[%s942_s12 + $0x4c] sm:$0xf]  ;;  %v719_v56 = vor.u32 %v763_v49, %v716_v50 }
  0x32   : > { %417 = vmatpush.bf16.msra.mxu0 %v403_v38  ;;  %430 = vmatpush.bf16.msra.mxu1 %v406_v39  ;;  %v724_v54 = vld [vmem:[%s942_s12 + $0x58] sm:$0xf0]  ;;  %v698_v57 = vld [vmem:[%s942_s12 + $0x20] sm:$0xf]  ;;  %v761_v58 = vld [vmem:[%s942_s12 + $0x2c] sm:$0xf0]  ;;  %v723_v59 = vor.u32 %v766_v52, %v722_v51 }
  0x33   : > { %v727_v60 = vor.u32 %v764_v53, %v724_v54  ;;  %v759_v61 = vld [vmem:[%s942_s12 + $0x24] sm:$0xf]  ;;  %v700_v62 = vld [vmem:[%s942_s12 + $0x30] sm:$0xf0]  ;;  %v706_v63 = vld [vmem:[%s942_s12 + $0x28] sm:$0xf]  ;;  %v699_v3 = vor.u32 %v761_v58, %v698_v57 }
  0x34   : > { %v762_v0 = vld [vmem:[%s942_s12 + $0x34] sm:$0xf0]  ;;  %v760_v1 = vld [vmem:[%s942_s12 + $0x2c] sm:$0xf]  ;;  %v708_v2 = vld [vmem:[%s942_s12 + $0x38] sm:$0xf0]  ;;  %v703_v4 = vor.u32 %v759_v61, %v700_v62 }
  0x35   : > { %474 = vperm.xlu0 %798, %v471_v42   ;;  %444 = vmatpush.bf16.msra.mxu2 %v739_v47  ;;  %v682_v5 = vld [vmem:[%s942_s12] sm:$0xf]  ;;  %v757_v6 = vld [vmem:[%s942_s12 + $0xc] sm:$0xf0]  ;;  %v707_v7 = vor.u32 %v762_v0, %v706_v63  ;;  %v711_v8 = vor.u32 %v760_v1, %v708_v2  ;;  %v755_v9 = vld [vmem:[%s942_s12 + $0x4] sm:$0xf] }
  0x36   : > { %418 = vmatpush.bf16.msra.mxu0 %v731_v43  ;;  %431 = vmatpush.bf16.msra.mxu1 %v735_v44  ;;  %v684_v10 = vld [vmem:[%s942_s12 + $0x10] sm:$0xf0]  ;;  %v690_v11 = vld [vmem:[%s942_s12 + $0x8] sm:$0xf]  ;;  %v758_v12 = vld [vmem:[%s942_s12 + $0x14] sm:$0xf0]  ;;  %v683_v15 = vor.u32 %v757_v6, %v682_v5 }
  0x37   : > { %457 = vmatpush.bf16.msra.mxu3 %v743_v48  ;;  %v756_v13 = vld [vmem:[%s942_s12 + $0xc] sm:$0xf]  ;;  %v692_v14 = vld [vmem:[%s942_s12 + $0x18] sm:$0xf0]  ;;  %v687_v16 = vor.u32 %v755_v9, %v684_v10  ;;  %v691_v17 = vor.u32 %v758_v12, %v690_v11  ;;  %v300_v19 = vld [vmem:[%s1031_s0] sm:$0xf] }
  0x38   : > { %v695_v18 = vor.u32 %v756_v13, %v692_v14  ;;  %v466_v27 = vld [vmem:[%s1034_s3] sm:$0xff]  ;;  %vm477_vm2 = vcmask 64512   ;;  %s679_s24 = sshll.u32 %s1041_s23, 3 }
  0x39   : > { %445 = vmatpush.bf16.msra.mxu2 %v723_v59  ;;  %s1012_s26 = scalar_lea.vmem %s1036_s5, %s679_s24 }
  0x3a   : > { %419 = vmatpush.bf16.msra.mxu0 %v715_v55  ;;  %432 = vmatpush.bf16.msra.mxu1 %v719_v56 }
  0x3b   : > { %458 = vmatpush.bf16.msra.mxu3 %v727_v60 }
  0x3d   : > { %446 = vmatpush.bf16.msra.mxu2 %v707_v7 }
  0x3e   : > { %420 = vmatpush.bf16.msra.mxu0 %v699_v3  ;;  %433 = vmatpush.bf16.msra.mxu1 %v703_v4 }
  0x3f   : > { %459 = vmatpush.bf16.msra.mxu3 %v711_v8 }
  0x41   : > { %447 = vmatpush.bf16.msra.mxu2 %v691_v17 }
  0x42   : > { %421 = vmatpush.bf16.msra.mxu0 %v683_v15  ;;  %434 = vmatpush.bf16.msra.mxu1 %v687_v16 }
  0x43   : > { %460 = vmatpush.bf16.msra.mxu3 %v695_v18 }
  0x44   : > { %746 = vmatmul.msk.bf16.vlgmr.msra.gmra.mxu2 %vm397_vm1, %v300_v19 }
  0x45   : > { %744 = vmatmul.msk.bf16.vlgmr.msra.gmra.mxu0 %vm397_vm1, %v300_v19  ;;  %745 = vmatmul.msk.bf16.vlgmr.msra.gmra.mxu1 %vm397_vm1, %v300_v19 }
  0x46   : > { %747 = vmatmul.msk.bf16.vlgmr.msra.gmra.mxu3 %vm397_vm1, %v300_v19 }
  0x9f   : > { %v305_v20 = vpop.permute.xlu0 %304 }
  0xa7   : > { %v475_v38 = vpop.permute.xlu0 %474 }
  0xc2   : > { %v423_v21 = vpop.f32.mrf.mxu0  ;;  %v436_v22 = vpop.f32.mrf.mxu1 }
  0xc3   : > { %v424_v23 = vadd.f32 %v423_v21, %v305_v20  ;;  %v988_v24 = vadd.f32 %v436_v22, %v305_v20 }
  0xc5   : > { %v467_v25 = vmul.f32 %v424_v23, %v424_v23  ;;  %v468_v26 = vmul.f32 %v988_v24, %v988_v24 }
  0xc7   : > { %496 = vmatpush.msrb.mxu0 %v467_v25  ;;  %516 = vmatpush.msrb.mxu1 %v468_v26  ;;  %v449_v28 = vpop.f32.mrf.mxu2 }
  0xc8   : > { %748 = vmatmul.msk.f32.vlgmr.msrb.gmra.mxu0 %vm477_vm2, %v466_v27  ;;  %749 = vmatmul.msk.f32.vlgmr.msrb.gmra.mxu1 %vm477_vm2, %v466_v27  ;;  %v997_v30 = vadd.f32 %v449_v28, %v305_v20 }
  0xc9   : > { %v462_v29 = vpop.f32.mrf.mxu3 }
  0xca   : > { %v999_v31 = vadd.f32 %v462_v29, %v305_v20  ;;  %v425_v32 = vpop.f32.mrf.mxu0  ;;  %v438_v33 = vpop.f32.mrf.mxu1  ;;  %v469_v34 = vmul.f32 %v997_v30, %v997_v30 }
  0xcc   : > { %v470_v35 = vmul.f32 %v999_v31, %v999_v31  ;;  %536 = vmatpush.msrb.mxu2 %v469_v34 }
  0xcd   : > { %750 = vmatmul.msk.f32.vlgmr.msrb.gmra.mxu2 %vm477_vm2, %v466_v27 }
  0xce   : > { %556 = vmatpush.msrb.mxu3 %v470_v35 }
  0xcf   : > { %751 = vmatmul.msk.f32.vlgmr.msrb.gmra.mxu3 %vm477_vm2, %v466_v27  ;;  %v451_v36 = vpop.f32.mrf.mxu2 }
  0xd1   : > { %v464_v37 = vpop.f32.mrf.mxu3 }
 0x145   : > { %v498_v39 = vpop.f32.mrf.mxu0  ;;  %v518_v40 = vpop.f32.mrf.mxu1 }
 0x146   : > { %v499_v41 = vadd.f32 %v498_v39, %v475_v38  ;;  %v519_v42 = vadd.f32 %v518_v40, %v475_v38 }
 0x148   : > { %799 = vrsqrt.f32 %v499_v41  ;;  %vm567_vm5 = vweird.f32 %v499_v41  ;;  %vm577_vm7 = vweird.f32 %v519_v42 }
 0x149   : > { %801 = vrsqrt.f32 %v519_v42 }
 0x14e   : > { %v800_v43 = vpop.eup %799 }
 0x14f   : > { %v802_v44 = vpop.eup %801  ;;  %v562_v45 = vmul.f32 %v800_v43, %v499_v41  ;;  %vm568_vm3 = vweird.f32 %v800_v43 }
 0x150   : > { %v572_v46 = vmul.f32 %v802_v44, %v519_v42  ;;  %v538_v49 = vpop.f32.mrf.mxu2  ;;  %vm578_vm4 = vweird.f32 %v802_v44  ;;  %vm569_vm6 = vmor %vm567_vm5, %vm568_vm3 }
 0x151   : > { %v563_v47 = vmul.f32 %v800_v43, %v562_v45  ;;  %v539_v52 = vadd.f32 %v538_v49, %v475_v38  ;;  %vm579_vm8 = vmor %vm577_vm7, %vm578_vm4 }
 0x152   : > { %v573_v48 = vmul.f32 %v802_v44, %v572_v46  ;;  %v558_v50 = vpop.f32.mrf.mxu3 }
 0x153   : > { %v564_v51 = vmul.f32 0.5, %v563_v47  ;;  %v559_v53 = vadd.f32 %v558_v50, %v475_v38  ;;  %803 = vrsqrt.f32 %v539_v52  ;;  %vm587_vm11 = vweird.f32 %v539_v52 }
 0x154   : > { %v574_v54 = vmul.f32 0.5, %v573_v48 }
 0x155   : > { %v565_v55 = vsub.f32 1.5, %v564_v51  ;;  %805 = vrsqrt.f32 %v559_v53  ;;  %vm597_vm13 = vweird.f32 %v559_v53 }
 0x156   : > { %v575_v56 = vsub.f32 1.5, %v574_v54 }
 0x157   : > { %v566_v57 = vmul.f32 %v800_v43, %v565_v55 }
 0x158   : > { %v576_v58 = vmul.f32 %v802_v44, %v575_v56 }
 0x159   : > { %v570_v59 = vsel %vm569_vm6, %v800_v43, %v566_v57  ;;  %v804_v62 = vpop.eup %803 }
 0x15a   : > { %v601_v60 = vmul.f32 %v570_v59, %v424_v23  ;;  %v580_v61 = vsel %vm579_vm8, %v802_v44, %v576_v58  ;;  %v582_v1 = vmul.f32 %v804_v62, %v539_v52  ;;  %vm588_vm9 = vweird.f32 %v804_v62 }
 0x15b   : > { %v602_v63 = vmul.f32 %v580_v61, %v988_v24  ;;  %v806_v0 = vpop.eup %805  ;;  %vm589_vm12 = vmor %vm587_vm11, %vm588_vm9 }
 0x15c   : > { %605 = vst [vmem:[%s1012_s26] sm:$0xff] %v601_v60  ;;  %v592_v2 = vmul.f32 %v806_v0, %v559_v53  ;;  %v583_v3 = vmul.f32 %v804_v62, %v582_v1  ;;  %vm598_vm10 = vweird.f32 %v806_v0 }
 0x15d   : > { %606 = vst [vmem:[%s1012_s26 + $0x8] sm:$0xff] %v602_v63  ;;  %vm599_vm14 = vmor %vm597_vm13, %vm598_vm10 }
 0x15e   : > { %v593_v4 = vmul.f32 %v806_v0, %v592_v2  ;;  %v584_v5 = vmul.f32 0.5, %v583_v3 }
 0x160   : > { %v594_v6 = vmul.f32 0.5, %v593_v4  ;;  %v585_v7 = vsub.f32 1.5, %v584_v5 }
 0x162   : > { %v595_v8 = vsub.f32 1.5, %v594_v6  ;;  %v586_v9 = vmul.f32 %v804_v62, %v585_v7 }
 0x164   : > { %v596_v10 = vmul.f32 %v806_v0, %v595_v8  ;;  %v590_v11 = vsel %vm589_vm12, %v804_v62, %v586_v9 }
 0x165   : > { %v603_v12 = vmul.f32 %v590_v11, %v997_v30 }
 0x166   : > { %v600_v13 = vsel %vm599_vm14, %v806_v0, %v596_v10 }
 0x167   : > { %v604_v14 = vmul.f32 %v600_v13, %v999_v31  ;;  %607 = vst [vmem:[%s1012_s26 + $0x10] sm:$0xff] %v603_v12 }
 0x169   : > { %608 = vst [vmem:[%s1012_s26 + $0x18] sm:$0xff] %v604_v14 }
 0x16a PF: > { %p12_p9 = scmp.ge.s32.totalorder %s879_s22, 6   ;;  %s1037_s18 = smov %s825_s19 }
 0x16b   : > { %s1038_s19 = smov %s888_s25  ;;  %s1039_s20 = smov %s879_s22 }
 0x16c   :  { %14 = sbr.rel (!%p12_p9) target bundleno = 2 (0x2), region = 98 }

// kernel: enc_forward.132
= control target key start
LH: loop header
LB: loop body
LE: loop exit
PB: predicated region body
PF: predicated region fallthrough
CT: control target
= control target key end

     0   :  { %s938_s21 = smov 0   ;;  %s940_s22 = smov 0   ;;  %s1119_s0 = inlined_call_operand.vmem [shape: bf16[8,72], index: 0, kind: input, shape index: {}]   ;;  %s1120_s1 = inlined_call_operand.vmem [shape: bf16[72,2048], index: 1, kind: input, shape index: {}]   ;;  %s1121_s2 = inlined_call_operand.vmem [shape: f32[8,1], index: 2, kind: input, shape index: {}]   ;;  %s1122_s3 = inlined_call_operand.vmem [shape: f32[8,8], index: 3, kind: input, shape index: {}]   ;;  %s1123_s4 = inlined_call_operand.vmem [shape: f32[8,1], index: 4, kind: input, shape index: {}]   ;;  %s1124_s5 = inlined_call_operand.vmem [shape: f32[8,2048], index: 5, kind: input, shape index: {}]   ;;  %s1125_s6 = inlined_call_operand.vmem [shape: f32[8,2048], index: 6, kind: output, shape index: {}]  }
   0x1   :  { %s942_s23 = smov 0  }
   0x2 LB: > { %s740_s24 = sadd.s32 4294967295, %s900_s23   ;;  %s955_s25 = sadd.s32 1, %s900_s23   ;;  %s900_s23 = sphi %s942_s23, %s1128_s23   ;;  %s896_s22 = sphi %s940_s22, %s1127_s22   ;;  %s892_s21 = sphi %s938_s21, %s1126_s21  }
   0x3   : > { %s41_s26 = ssub.s32 %s900_s23, %s955_s25  ;;  %s44_s27 = sadd.s32 1, %s896_s22 }
   0x4   : > { %p42_p0 = scmp.eq.s32.totalorder %s41_s26, 0  ;;  %p51_p1 = scmp.ne.s32.totalorder %s896_s22, %s892_s21 }
   0x5   : > { %p52_p2 = scmp.eq.s32.totalorder %s900_s23, 0  ;;  %p743_p4 = scmp.ge.s32.totalorder %s900_s23, 4 }
   0x6   : > { %s964_s28 = scalar_select %p42_p0, %s896_s22, %s44_s27  }
   0x7   : > { %p53_p3 = por %p52_p2, %p51_p1  ;;  %204 = sbr.rel (%p743_p4) target bundleno = 34 (0x22), region = 32 }
   0xc   : > { %207 = sbr.rel (!%p53_p3) target bundleno = 34 (0x22), region = 36  ;;  %s209_s29 = sand.u32 (%p53_p3), 1, %s896_s22  }
   0xd   : > { %s825_s30 = sshll.u32 (%p53_p3), %s900_s23, 4  ;;  %s842_s7 = smul.u32 (%p53_p3), 144, %s209_s29 }
   0xe   : > { %s972_s10 = scalar_lea.vmem (%p53_p3), %s1120_s1, %s825_s30 }
   0xf   : > { %v227_v0 = vld [vmem:[%s972_s10] sm:$0xff] (%p53_p3)  ;;  %v229_v1 = vld [vmem:[%s972_s10 + $0x8] sm:$0xff] (%p53_p3)  ;;  %s977_s11 = scalar_lea.vmem (%p53_p3), [#allocation2], %s842_s7 }
  0x10   : > { %v231_v2 = vld [vmem:[%s972_s10 + $0x40] sm:$0xff] (%p53_p3)  ;;  %228 = vst [vmem:[%s977_s11] sm:$0xff] (%p53_p3), %v227_v0  ;;  %v233_v3 = vld [vmem:[%s972_s10 + $0x48] sm:$0xff] (%p53_p3) }
  0x11   : > { %230 = vst [vmem:[%s977_s11 + $0x8] sm:$0xff] %v229_v1  ;;  %v235_v4 = vld [vmem:[%s972_s10 + $0x80] sm:$0xff]  ;;  %v237_v5 = vld [vmem:[%s972_s10 + $0x88] sm:$0xff] }
  0x12   : > { %232 = vst [vmem:[%s977_s11 + $0x10] sm:$0xff] %v231_v2  ;;  %v239_v6 = vld [vmem:[%s972_s10 + $0xc0] sm:$0xff]  ;;  %v241_v7 = vld [vmem:[%s972_s10 + $0xc8] sm:$0xff] }
  0x13   : > { %234 = vst [vmem:[%s977_s11 + $0x18] sm:$0xff] %v233_v3  ;;  %v243_v8 = vld [vmem:[%s972_s10 + $0x100] sm:$0xff]  ;;  %v245_v9 = vld [vmem:[%s972_s10 + $0x108] sm:$0xff] }
  0x14   : > { %236 = vst [vmem:[%s977_s11 + $0x20] sm:$0xff] %v235_v4  ;;  %v247_v10 = vld [vmem:[%s972_s10 + $0x140] sm:$0xff]  ;;  %v249_v11 = vld [vmem:[%s972_s10 + $0x148] sm:$0xff] }
  0x15   : > { %238 = vst [vmem:[%s977_s11 + $0x28] sm:$0xff] %v237_v5  ;;  %v251_v12 = vld [vmem:[%s972_s10 + $0x180] sm:$0xff]  ;;  %v253_v13 = vld [vmem:[%s972_s10 + $0x188] sm:$0xff] }
  0x16   : > { %240 = vst [vmem:[%s977_s11 + $0x30] sm:$0xff] %v239_v6  ;;  %v255_v14 = vld [vmem:[%s972_s10 + $0x1c0] sm:$0xff]  ;;  %v257_v15 = vld [vmem:[%s972_s10 + $0x1c8] sm:$0xff] }
  0x17   : > { %242 = vst [vmem:[%s977_s11 + $0x38] sm:$0xff] %v241_v7  ;;  %v259_v16 = vld [vmem:[%s972_s10 + $0x200] sm:$0xff]  ;;  %v261_v17 = vld [vmem:[%s972_s10 + $0x208] sm:$0xff] }
  0x18   : > { %244 = vst [vmem:[%s977_s11 + $0x40] sm:$0xff] %v243_v8 }
  0x19   : > { %246 = vst [vmem:[%s977_s11 + $0x48] sm:$0xff] %v245_v9 }
  0x1a   : > { %248 = vst [vmem:[%s977_s11 + $0x50] sm:$0xff] %v247_v10 }
  0x1b   : > { %250 = vst [vmem:[%s977_s11 + $0x58] sm:$0xff] %v249_v11 }
  0x1c   : > { %252 = vst [vmem:[%s977_s11 + $0x60] sm:$0xff] %v251_v12 }
  0x1d   : > { %254 = vst [vmem:[%s977_s11 + $0x68] sm:$0xff] %v253_v13 }
  0x1e   : > { %256 = vst [vmem:[%s977_s11 + $0x70] sm:$0xff] %v255_v14 }
  0x1f   : > { %258 = vst [vmem:[%s977_s11 + $0x78] sm:$0xff] %v257_v15 }
  0x20   : > { %260 = vst [vmem:[%s977_s11 + $0x80] sm:$0xff] %v259_v16 }
  0x21   : > { %262 = vst [vmem:[%s977_s11 + $0x88] sm:$0xff] %v261_v17 }
  0x22 PF: > { %p746_p5 = scmp.ge.s32.totalorder %s900_s23, 1  ;;  %p276_p6 = scmp.lt.s32.totalorder %s900_s23, 5 }
  0x24   : > { %p277_p7 = pnand %p746_p5, %p276_p6 }
  0x25   : > { %s283_s12 = sand.u32 (!%p277_p7), 1, %s892_s21   ;;  %s747_s27 = sshll.u32 (!%p277_p7), %s740_s24, 2 }
  0x26   : > { %280 = sbr.rel (%p277_p7) target bundleno = 364 (0x16c), region = 63  ;;  %p319_p8 = scmp.lt.s32.totalorder (!%p277_p7), %s747_s27, 15 }
  0x27   : > { %s843_s13 = smul.u32 (!%p277_p7), 144, %s283_s12 }
  0x29   : > { %s1018_s16 = scalar_lea.vmem (!%p277_p7), [#allocation2], %s843_s13 }
  0x2b   : > { %v902_v18 = vmov 0   ;;  %v350_v19 = vld [vmem:[%s1121_s2] sm:$0xff]  ;;  %v348_v21 = vld [vmem:[%s1018_s16 + $0x88] sm:$0xff]  ;;  %vm450_vm0 = vcmask 1043456   ;;  %v841_v35 = vld [vmem:[%s1018_s16 + $0x74] sm:$0xf0] }
  0x2c   : > { %869 = vset.pattern.permute.xlu0 %v902_v18  ;;  %v347_v20 = vld [vmem:[%s1018_s16 + $0x80] sm:$0xff]  ;;  %v408_v24 = vunpack.c.l.b16 %v348_v21  ;;  %v409_v25 = vunpack.c.h.b16 %v348_v21  ;;  %v840_v27 = vld [vmem:[%s1018_s16 + $0x6c] sm:$0xf0]  ;;  %v803_v33 = vld [vmem:[%s1018_s16 + $0x70] sm:$0xf0]  ;;  %vm446_vm1 = vcmask 588800  }
  0x2d   : > { %353 = vperm.xlu0 %869, %v350_v19   ;;  %v406_v22 = vunpack.c.l.b16 %v347_v20  ;;  %v407_v23 = vunpack.c.h.b16 %v347_v20  ;;  %v801_v26 = vld [vmem:[%s1018_s16 + $0x60] sm:$0xf]  ;;  %v838_v32 = vld [vmem:[%s1018_s16 + $0x64] sm:$0xf]  ;;  %v809_v34 = vld [vmem:[%s1018_s16 + $0x68] sm:$0xf] }
  0x2e   : > { %v428_v30 = vpack.c.b16 %v408_v24, %v408_v24  ;;  %v429_v31 = vpack.c.b16 %v409_v25, %v409_v25  ;;  %v839_v36 = vld [vmem:[%s1018_s16 + $0x6c] sm:$0xf]  ;;  %v811_v37 = vld [vmem:[%s1018_s16 + $0x78] sm:$0xf0]  ;;  %v520_v42 = vld [vmem:[%s1123_s4] sm:$0xff]  ;;  %v802_v43 = vor.u32 %v840_v27, %v801_v26  ;;  %v806_v44 = vor.u32 %v838_v32, %v803_v33  ;;  %s1130_s27 = smov (!%p319_p8, %s747_s27), 15 }
  0x2f   : > { %v426_v28 = vpack.c.b16 %v406_v22, %v406_v22  ;;  %v427_v29 = vpack.c.b16 %v407_v23, %v407_v23  ;;  %v785_v45 = vld [vmem:[%s1018_s16 + $0x40] sm:$0xf]  ;;  %v836_v46 = vld [vmem:[%s1018_s16 + $0x4c] sm:$0xf0]  ;;  %v810_v47 = vor.u32 %v841_v35, %v809_v34  ;;  %v814_v48 = vor.u32 %v839_v36, %v811_v37  ;;  %v834_v49 = vld [vmem:[%s1018_s16 + $0x44] sm:$0xf] }
  0x30   : > { %v458_v40 = vsel %vm450_vm0, %v428_v30, 0  ;;  %v461_v41 = vsel %vm450_vm0, %v429_v31, 0  ;;  %v787_v50 = vld [vmem:[%s1018_s16 + $0x50] sm:$0xf0]  ;;  %v793_v51 = vld [vmem:[%s1018_s16 + $0x48] sm:$0xf]  ;;  %v786_v55 = vor.u32 %v836_v46, %v785_v45 }
  0x31   : > { %v452_v38 = vsel %vm450_vm0, %v426_v28, 0  ;;  %v455_v39 = vsel %vm450_vm0, %v427_v29, 0  ;;  %492 = vmatpush.bf16.msra.mxu2 %v458_v40  ;;  %505 = vmatpush.bf16.msra.mxu3 %v461_v41  ;;  %v837_v52 = vld [vmem:[%s1018_s16 + $0x54] sm:$0xf0]  ;;  %v835_v53 = vld [vmem:[%s1018_s16 + $0x4c] sm:$0xf]  ;;  %v790_v56 = vor.u32 %v834_v49, %v787_v50 }
  0x32   : > { %466 = vmatpush.bf16.msra.mxu0 %v452_v38  ;;  %479 = vmatpush.bf16.msra.mxu1 %v455_v39  ;;  %v795_v54 = vld [vmem:[%s1018_s16 + $0x58] sm:$0xf0]  ;;  %v769_v57 = vld [vmem:[%s1018_s16 + $0x20] sm:$0xf]  ;;  %v832_v58 = vld [vmem:[%s1018_s16 + $0x2c] sm:$0xf0]  ;;  %v794_v59 = vor.u32 %v837_v52, %v793_v51 }
  0x33   : > { %v798_v60 = vor.u32 %v835_v53, %v795_v54  ;;  %v830_v61 = vld [vmem:[%s1018_s16 + $0x24] sm:$0xf]  ;;  %v771_v62 = vld [vmem:[%s1018_s16 + $0x30] sm:$0xf0]  ;;  %v777_v63 = vld [vmem:[%s1018_s16 + $0x28] sm:$0xf]  ;;  %v770_v3 = vor.u32 %v832_v58, %v769_v57 }
  0x34   : > { %v833_v0 = vld [vmem:[%s1018_s16 + $0x34] sm:$0xf0]  ;;  %v831_v1 = vld [vmem:[%s1018_s16 + $0x2c] sm:$0xf]  ;;  %v779_v2 = vld [vmem:[%s1018_s16 + $0x38] sm:$0xf0]  ;;  %v774_v4 = vor.u32 %v830_v61, %v771_v62 }
  0x35   : > { %523 = vperm.xlu0 %869, %v520_v42   ;;  %493 = vmatpush.bf16.msra.mxu2 %v810_v47  ;;  %v753_v5 = vld [vmem:[%s1018_s16] sm:$0xf]  ;;  %v828_v6 = vld [vmem:[%s1018_s16 + $0xc] sm:$0xf0]  ;;  %v778_v7 = vor.u32 %v833_v0, %v777_v63  ;;  %v782_v8 = vor.u32 %v831_v1, %v779_v2  ;;  %v826_v9 = vld [vmem:[%s1018_s16 + $0x4] sm:$0xf] }
  0x36   : > { %467 = vmatpush.bf16.msra.mxu0 %v802_v43  ;;  %480 = vmatpush.bf16.msra.mxu1 %v806_v44  ;;  %v755_v10 = vld [vmem:[%s1018_s16 + $0x10] sm:$0xf0]  ;;  %v761_v11 = vld [vmem:[%s1018_s16 + $0x8] sm:$0xf]  ;;  %v829_v12 = vld [vmem:[%s1018_s16 + $0x14] sm:$0xf0]  ;;  %v754_v15 = vor.u32 %v828_v6, %v753_v5 }
  0x37   : > { %506 = vmatpush.bf16.msra.mxu3 %v814_v48  ;;  %v827_v13 = vld [vmem:[%s1018_s16 + $0xc] sm:$0xf]  ;;  %v763_v14 = vld [vmem:[%s1018_s16 + $0x18] sm:$0xf0]  ;;  %v758_v16 = vor.u32 %v826_v9, %v755_v10  ;;  %v762_v17 = vor.u32 %v829_v12, %v761_v11  ;;  %v349_v19 = vld [vmem:[%s1119_s0] sm:$0xf] }
  0x38   : > { %v766_v18 = vor.u32 %v827_v13, %v763_v14  ;;  %v515_v27 = vld [vmem:[%s1122_s3] sm:$0xff]  ;;  %vm526_vm2 = vcmask 64512   ;;  %s748_s29 = sshll.u32 %s1130_s27, 3 }
  0x39   : > { %494 = vmatpush.bf16.msra.mxu2 %v794_v59  ;;  %s1091_s30 = scalar_lea.vmem %s1124_s5, %s748_s29  ;;  %s1098_s9 = scalar_lea.vmem %s1125_s6, %s748_s29 }
  0x3a   : > { %468 = vmatpush.bf16.msra.mxu0 %v786_v55  ;;  %481 = vmatpush.bf16.msra.mxu1 %v790_v56  ;;  %v655_v63 = vld [vmem:[%s1091_s30 + $0x8] sm:$0xff] }
  0x3b   : > { %507 = vmatpush.bf16.msra.mxu3 %v798_v60  ;;  %v654_v60 = vld [vmem:[%s1091_s30] sm:$0xff] }
  0x3d   : > { %495 = vmatpush.bf16.msra.mxu2 %v778_v7 }
  0x3e   : > { %469 = vmatpush.bf16.msra.mxu0 %v770_v3  ;;  %482 = vmatpush.bf16.msra.mxu1 %v774_v4 }
  0x3f   : > { %508 = vmatpush.bf16.msra.mxu3 %v782_v8 }
  0x41   : > { %496 = vmatpush.bf16.msra.mxu2 %v762_v17 }
  0x42   : > { %470 = vmatpush.bf16.msra.mxu0 %v754_v15  ;;  %483 = vmatpush.bf16.msra.mxu1 %v758_v16  ;;  %v656_v16 = vld [vmem:[%s1091_s30 + $0x10] sm:$0xff] }
  0x43   : > { %509 = vmatpush.bf16.msra.mxu3 %v766_v18 }
  0x44   : > { %817 = vmatmul.msk.bf16.vlgmr.msra.gmra.mxu2 %vm446_vm1, %v349_v19 }
  0x45   : > { %815 = vmatmul.msk.bf16.vlgmr.msra.gmra.mxu0 %vm446_vm1, %v349_v19  ;;  %816 = vmatmul.msk.bf16.vlgmr.msra.gmra.mxu1 %vm446_vm1, %v349_v19 }
  0x46   : > { %818 = vmatmul.msk.bf16.vlgmr.msra.gmra.mxu3 %vm446_vm1, %v349_v19  ;;  %v657_v19 = vld [vmem:[%s1091_s30 + $0x18] sm:$0xff] }
  0x9f   : > { %v354_v20 = vpop.permute.xlu0 %353 }
  0xa7   : > { %v524_v38 = vpop.permute.xlu0 %523 }
  0xc2   : > { %v472_v21 = vpop.f32.mrf.mxu0  ;;  %v485_v22 = vpop.f32.mrf.mxu1 }
  0xc3   : > { %v473_v23 = vadd.f32 %v472_v21, %v354_v20  ;;  %v1064_v24 = vadd.f32 %v485_v22, %v354_v20 }
  0xc5   : > { %v516_v25 = vmul.f32 %v473_v23, %v473_v23  ;;  %v517_v26 = vmul.f32 %v1064_v24, %v1064_v24 }
  0xc7   : > { %545 = vmatpush.msrb.mxu0 %v516_v25  ;;  %565 = vmatpush.msrb.mxu1 %v517_v26  ;;  %v498_v28 = vpop.f32.mrf.mxu2 }
  0xc8   : > { %819 = vmatmul.msk.f32.vlgmr.msrb.gmra.mxu0 %vm526_vm2, %v515_v27  ;;  %820 = vmatmul.msk.f32.vlgmr.msrb.gmra.mxu1 %vm526_vm2, %v515_v27  ;;  %v1073_v30 = vadd.f32 %v498_v28, %v354_v20 }
  0xc9   : > { %v511_v29 = vpop.f32.mrf.mxu3 }
  0xca   : > { %v1075_v31 = vadd.f32 %v511_v29, %v354_v20  ;;  %v474_v32 = vpop.f32.mrf.mxu0  ;;  %v487_v33 = vpop.f32.mrf.mxu1  ;;  %v518_v34 = vmul.f32 %v1073_v30, %v1073_v30 }
  0xcc   : > { %v519_v35 = vmul.f32 %v1075_v31, %v1075_v31  ;;  %585 = vmatpush.msrb.mxu2 %v518_v34 }
  0xcd   : > { %821 = vmatmul.msk.f32.vlgmr.msrb.gmra.mxu2 %vm526_vm2, %v515_v27 }
  0xce   : > { %605 = vmatpush.msrb.mxu3 %v519_v35 }
  0xcf   : > { %822 = vmatmul.msk.f32.vlgmr.msrb.gmra.mxu3 %vm526_vm2, %v515_v27  ;;  %v500_v36 = vpop.f32.mrf.mxu2 }
  0xd1   : > { %v513_v37 = vpop.f32.mrf.mxu3 }
 0x145   : > { %v547_v39 = vpop.f32.mrf.mxu0  ;;  %v567_v40 = vpop.f32.mrf.mxu1 }
 0x146   : > { %v548_v41 = vadd.f32 %v547_v39, %v524_v38  ;;  %v568_v42 = vadd.f32 %v567_v40, %v524_v38 }
 0x148   : > { %870 = vrsqrt.f32 %v548_v41  ;;  %vm616_vm5 = vweird.f32 %v548_v41  ;;  %vm626_vm7 = vweird.f32 %v568_v42 }
 0x149   : > { %872 = vrsqrt.f32 %v568_v42 }
 0x14e   : > { %v871_v43 = vpop.eup %870 }
 0x14f   : > { %v873_v44 = vpop.eup %872  ;;  %v611_v45 = vmul.f32 %v871_v43, %v548_v41  ;;  %vm617_vm3 = vweird.f32 %v871_v43 }
 0x150   : > { %v621_v46 = vmul.f32 %v873_v44, %v568_v42  ;;  %v587_v49 = vpop.f32.mrf.mxu2  ;;  %vm627_vm4 = vweird.f32 %v873_v44  ;;  %vm618_vm6 = vmor %vm616_vm5, %vm617_vm3 }
 0x151   : > { %v612_v47 = vmul.f32 %v871_v43, %v611_v45  ;;  %v588_v52 = vadd.f32 %v587_v49, %v524_v38  ;;  %vm628_vm8 = vmor %vm626_vm7, %vm627_vm4 }
 0x152   : > { %v622_v48 = vmul.f32 %v873_v44, %v621_v46  ;;  %v607_v50 = vpop.f32.mrf.mxu3 }
 0x153   : > { %v613_v51 = vmul.f32 0.5, %v612_v47  ;;  %v608_v53 = vadd.f32 %v607_v50, %v524_v38  ;;  %874 = vrsqrt.f32 %v588_v52  ;;  %vm636_vm11 = vweird.f32 %v588_v52 }
 0x154   : > { %v623_v54 = vmul.f32 0.5, %v622_v48 }
 0x155   : > { %v614_v55 = vsub.f32 1.5, %v613_v51  ;;  %876 = vrsqrt.f32 %v608_v53  ;;  %vm646_vm13 = vweird.f32 %v608_v53 }
 0x156   : > { %v624_v56 = vsub.f32 1.5, %v623_v54 }
 0x157   : > { %v615_v57 = vmul.f32 %v871_v43, %v614_v55 }
 0x158   : > { %v625_v58 = vmul.f32 %v873_v44, %v624_v56 }
 0x159   : > { %v619_v59 = vsel %vm618_vm6, %v871_v43, %v615_v57  ;;  %v875_v0 = vpop.eup %874 }
 0x15a   : > { %v650_v61 = vmul.f32 %v619_v59, %v473_v23  ;;  %v629_v62 = vsel %vm628_vm8, %v873_v44, %v625_v58  ;;  %v631_v4 = vmul.f32 %v875_v0, %v588_v52  ;;  %vm637_vm9 = vweird.f32 %v875_v0 }
 0x15b   : > { %v651_v1 = vmul.f32 %v629_v62, %v1064_v24  ;;  %v877_v2 = vpop.eup %876  ;;  %vm638_vm12 = vmor %vm636_vm11, %vm637_vm9 }
 0x15c   : > { %v658_v3 = vadd.f32 %v654_v60, %v650_v61  ;;  %v641_v6 = vmul.f32 %v877_v2, %v608_v53  ;;  %v632_v7 = vmul.f32 %v875_v0, %v631_v4  ;;  %vm647_vm10 = vweird.f32 %v877_v2 }
 0x15d   : > { %v659_v5 = vadd.f32 %v655_v63, %v651_v1  ;;  %vm648_vm14 = vmor %vm646_vm13, %vm647_vm10 }
 0x15e   : > { %662 = vst [vmem:[%s1098_s9] sm:$0xff] %v658_v3  ;;  %v642_v8 = vmul.f32 %v877_v2, %v641_v6  ;;  %v633_v9 = vmul.f32 0.5, %v632_v7 }
 0x15f   : > { %663 = vst [vmem:[%s1098_s9 + $0x8] sm:$0xff] %v659_v5 }
 0x160   : > { %v643_v10 = vmul.f32 0.5, %v642_v8  ;;  %v634_v11 = vsub.f32 1.5, %v633_v9 }
 0x162   : > { %v644_v12 = vsub.f32 1.5, %v643_v10  ;;  %v635_v13 = vmul.f32 %v875_v0, %v634_v11 }
 0x164   : > { %v645_v14 = vmul.f32 %v877_v2, %v644_v12  ;;  %v639_v15 = vsel %vm638_vm12, %v875_v0, %v635_v13 }
 0x165   : > { %v652_v17 = vmul.f32 %v639_v15, %v1073_v30 }
 0x166   : > { %v649_v18 = vsel %vm648_vm14, %v877_v2, %v645_v14 }
 0x167   : > { %v653_v20 = vmul.f32 %v649_v18, %v1075_v31  ;;  %v660_v21 = vadd.f32 %v656_v16, %v652_v17 }
 0x169   : > { %v661_v22 = vadd.f32 %v657_v19, %v653_v20  ;;  %664 = vst [vmem:[%s1098_s9 + $0x10] sm:$0xff] %v660_v21 }
 0x16b   : > { %665 = vst [vmem:[%s1098_s9 + $0x18] sm:$0xff] %v661_v22 }
 0x16c PF: > { %p13_p9 = scmp.ge.s32.totalorder %s955_s25, 6   ;;  %s1126_s21 = smov %s896_s22 }
 0x16d   : > { %s1127_s22 = smov %s964_s28  ;;  %s1128_s23 = smov %s955_s25 }
 0x16e   :  { %15 = sbr.rel (!%p13_p9) target bundleno = 2 (0x2), region = 105 }

// kernel: enc_forward.137
= control target key start
LH: loop header
LB: loop body
LE: loop exit
PB: predicated region body
PF: predicated region fallthrough
CT: control target
= control target key end

     0   :  { %s617_s18 = smov 0   ;;  %s684_s0 = inlined_call_operand.vmem [shape: bf16[8,8], index: 0, kind: input, shape index: {}]   ;;  %s685_s1 = inlined_call_operand.vmem [shape: f32[8,2048], index: 1, kind: input, shape index: {}]   ;;  %s686_s2 = inlined_call_operand.vmem [shape: f32[8,1], index: 2, kind: input, shape index: {}]   ;;  %s687_s3 = inlined_call_operand.vmem [shape: f32[8,2048], index: 3, kind: input, shape index: {}]   ;;  %s688_s4 = inlined_call_operand.vmem [shape: f32[8,2048], index: 4, kind: input, shape index: {}]   ;;  %s689_s5 = inlined_call_operand.vmem [shape: f32[8,2048], index: 5, kind: output, shape index: {}]  }
   0x1 LB: > { %s533_s19 = sadd.s32 4294967295, %s584_s18   ;;  %p537_p0 = scmp.ge.s32.totalorder %s584_s18, 1  ;;  %s584_s18 = sphi %s617_s18, %s15_s18  }
   0x2   : > { %p210_p1 = scmp.lt.s32.totalorder %s584_s18, 5 }
   0x4   : > { %p211_p2 = pnand %p537_p0, %p210_p1 }
   0x5   : > { %s538_s20 = sshll.u32 (!%p211_p2), %s533_s19, 2 }
   0x6   : > { %214 = sbr.rel (%p211_p2) target bundleno = 194 (0xc2), region = 40  ;;  %p249_p3 = scmp.lt.s32.totalorder (!%p211_p2), %s538_s20, 15 }
   0xb   : > { %v586_v0 = vmov 0   ;;  %v282_v1 = vld [vmem:[%s686_s2] sm:$0xff]  ;;  %s691_s20 = smov (!%p249_p3, %s538_s20), 15  ;;  %vm292_vm0 = vcmask 1043456   ;;  %vm288_vm1 = vcmask 64512  }
   0xc   : > { %561 = vset.pattern.permute.xlu0 %v586_v0  ;;  %s628_s23 = sshll.u32 %s691_s20, 3  ;;  %v281_v11 = vld [vmem:[%s684_s0] sm:$0xf] }
   0xd   : > { %285 = vperm.xlu0 %561, %v282_v1   ;;  %s252_s26 = scalar_lea.vmem %s685_s1, %s628_s23  ;;  %s646_s6 = scalar_lea.vmem %s687_s3, %s628_s23 }
   0xe   : > { %v273_v2 = vld [vmem:[%s252_s26] sm:$0xff]  ;;  %v274_v5 = vld [vmem:[%s252_s26 + $0x8] sm:$0xff]  ;;  %v275_v6 = vld [vmem:[%s252_s26 + $0x10] sm:$0xff]  ;;  %s653_s9 = scalar_lea.vmem %s688_s4, %s628_s23  ;;  %s664_s12 = scalar_lea.vmem %s689_s5, %s628_s23 }
   0xf   : > { %v277_v3 = vpack.c.bf16 %v273_v2, %v273_v2  ;;  %v276_v7 = vld [vmem:[%s252_s26 + $0x18] sm:$0xff]  ;;  %v278_v8 = vpack.c.bf16 %v274_v5, %v274_v5  ;;  %v279_v9 = vpack.c.bf16 %v275_v6, %v275_v6  ;;  %v433_v57 = vld [vmem:[%s646_s6] sm:$0xff]  ;;  %v434_v2 = vld [vmem:[%s646_s6 + $0x8] sm:$0xff] }
  0x10   : > { %v280_v10 = vpack.c.bf16 %v276_v7, %v276_v7  ;;  %v441_v62 = vld [vmem:[%s653_s9] sm:$0xff] }
  0x11   : > { %v294_v4 = vsel %vm292_vm0, %v277_v3, 0  ;;  %v297_v12 = vsel %vm292_vm0, %v278_v8, 0  ;;  %v300_v13 = vsel %vm292_vm0, %v279_v9, 0 }
  0x12   : > { %312 = vmatpush.bf16.msra.mxu0 %v294_v4  ;;  %v303_v14 = vsel %vm292_vm0, %v280_v10, 0  ;;  %325 = vmatpush.bf16.msra.mxu1 %v297_v12  ;;  %v442_v10 = vld [vmem:[%s653_s9 + $0x8] sm:$0xff] }
  0x13   : > { %338 = vmatpush.bf16.msra.mxu2 %v300_v13  ;;  %351 = vmatpush.bf16.msra.mxu3 %v303_v14 }
  0x15   : > { %546 = vmatmul.msk.bf16.vlgmr.msra.gmra.mxu0 %vm288_vm1, %v281_v11  ;;  %547 = vmatmul.msk.bf16.vlgmr.msra.gmra.mxu1 %vm288_vm1, %v281_v11 }
  0x16   : > { %548 = vmatmul.msk.bf16.vlgmr.msra.gmra.mxu2 %vm288_vm1, %v281_v11  ;;  %549 = vmatmul.msk.bf16.vlgmr.msra.gmra.mxu3 %vm288_vm1, %v281_v11 }
  0x7f   : > { %v286_v15 = vpop.permute.xlu0 %285 }
  0x92   : > { %v314_v16 = vpop.f32.mrf.mxu0  ;;  %v327_v18 = vpop.f32.mrf.mxu1 }
  0x93   : > { %v315_v17 = vadd.f32 %v314_v16, %v286_v15  ;;  %v328_v20 = vadd.f32 %v327_v18, %v286_v15 }
  0x95   : > { %v357_v19 = vsub.f32 0.0, %v315_v17  ;;  %v358_v22 = vsub.f32 0.0, %v328_v20 }
  0x97   : > { %v361_v21 = vmul.f32 1.442695, %v357_v19  ;;  %v363_v23 = vmul.f32 1.442695, %v358_v22  ;;  %v435_v19 = vld [vmem:[%s646_s6 + $0x10] sm:$0xff] }
  0x99   : > { %562 = vpow2.f32 %v361_v21  ;;  %v340_v24 = vpop.f32.mrf.mxu2  ;;  %v353_v27 = vpop.f32.mrf.mxu3 }
  0x9a   : > { %v316_v25 = vpop.f32.mrf.mxu0  ;;  %564 = vpow2.f32 %v363_v23  ;;  %v341_v26 = vadd.f32 %v340_v24, %v286_v15  ;;  %v354_v28 = vadd.f32 %v353_v27, %v286_v15  ;;  %v329_v29 = vpop.f32.mrf.mxu1  ;;  %v443_v24 = vld [vmem:[%s653_s9 + $0x10] sm:$0xff]  ;;  %v436_v27 = vld [vmem:[%s646_s6 + $0x18] sm:$0xff] }
  0x9c   : > { %v359_v30 = vsub.f32 0.0, %v341_v26  ;;  %v360_v31 = vsub.f32 0.0, %v354_v28 }
  0x9e   : > { %v365_v33 = vmul.f32 1.442695, %v359_v30  ;;  %v367_v35 = vmul.f32 1.442695, %v360_v31  ;;  %v444_v31 = vld [vmem:[%s653_s9 + $0x18] sm:$0xff] }
  0x9f   : > { %v563_v32 = vpop.eup %562 }
  0xa0   : > { %v369_v34 = vadd.f32 1.0, %v563_v32  ;;  %v565_v36 = vpop.eup %564  ;;  %566 = vpow2.f32 %v365_v33 }
  0xa1   : > { %v342_v37 = vpop.f32.mrf.mxu2  ;;  %v370_v38 = vadd.f32 1.0, %v565_v36  ;;  %v355_v39 = vpop.f32.mrf.mxu3 }
  0xa2   : > { %568 = vrcp.f32 %v369_v34  ;;  %v384_v47 = vand.u32 2147483648, %v369_v34  ;;  %vm378_vm2 = vweird.f32 %v369_v34  ;;  %v382_v51 = vand.u32 2147483647, %v369_v34 }
  0xa3   : > { %570 = vpow2.f32 %v367_v35  ;;  %v399_v55 = vand.u32 2147483648, %v370_v38  ;;  %vm393_vm5 = vweird.f32 %v370_v38  ;;  %v397_v59 = vand.u32 2147483647, %v370_v38 }
  0xa4   : > { %572 = vrcp.f32 %v370_v38  ;;  %v385_v54 = vor.u32 1.1754944e-38, %v384_v47  ;;  %vm383_vm7 = vcmp.eq.f32.partialorder %v382_v51, 8.507059e+37 }
  0xa5   : > { %v400_v4 = vor.u32 1.1754944e-38, %v399_v55  ;;  %vm398_vm9 = vcmp.eq.f32.partialorder %v397_v59, 8.507059e+37 }
  0xa6   : > { %v567_v40 = vpop.eup %566 }
  0xa7   : > { %v637_v42 = vadd.f32 1.0, %v567_v40 }
  0xa8   : > { %v569_v41 = vpop.eup %568 }
  0xa9   : > { %v571_v43 = vpop.eup %570  ;;  %v374_v44 = vmul.f32 %v569_v41, %v369_v34  ;;  %574 = vrcp.f32 %v637_v42  ;;  %vm379_vm3 = vweird.f32 %v569_v41  ;;  %v414_v6 = vand.u32 2147483648, %v637_v42 }
  0xaa   : > { %v573_v45 = vpop.eup %572  ;;  %v640_v48 = vadd.f32 1.0, %v571_v43  ;;  %vm380_vm4 = vmor %vm378_vm2, %vm379_vm3  ;;  %v412_v8 = vand.u32 2147483647, %v637_v42  ;;  %vm408_vm11 = vweird.f32 %v637_v42 }
  0xab   : > { %v375_v46 = vsub.f32 1.0, %v374_v44  ;;  %v389_v49 = vmul.f32 %v573_v45, %v370_v38  ;;  %vm394_vm6 = vweird.f32 %v573_v45  ;;  %v415_v17 = vor.u32 1.1754944e-38, %v414_v6 }
  0xac   : > { %576 = vrcp.f32 %v640_v48  ;;  %vm395_vm8 = vmor %vm393_vm5, %vm394_vm6  ;;  %v429_v18 = vand.u32 2147483648, %v640_v48  ;;  %v427_v22 = vand.u32 2147483647, %v640_v48  ;;  %vm413_vm14 = vcmp.eq.f32.partialorder %v412_v8, 8.507059e+37 }
  0xad   : > { %v376_v50 = vmul.f32 %v569_v41, %v375_v46  ;;  %v390_v52 = vsub.f32 1.0, %v389_v49  ;;  %vm423_vm15 = vweird.f32 %v640_v48 }
  0xae   : > { %v430_v29 = vor.u32 1.1754944e-38, %v429_v18  ;;  %vm428_vm1 = vcmp.eq.f32.partialorder %v427_v22, 8.507059e+37 }
  0xaf   : > { %v377_v53 = vadd.f32 %v569_v41, %v376_v50  ;;  %v575_v56 = vpop.eup %574  ;;  %v391_v58 = vmul.f32 %v573_v45, %v390_v52 }
  0xb0   : > { %v404_v61 = vmul.f32 %v575_v56, %v637_v42  ;;  %vm409_vm10 = vweird.f32 %v575_v56 }
  0xb1   : > { %v381_v60 = vsel %vm380_vm4, %v569_v41, %v377_v53  ;;  %v392_v0 = vadd.f32 %v573_v45, %v391_v58  ;;  %vm410_vm12 = vmor %vm408_vm11, %vm409_vm10 }
  0xb2   : > { %v386_v63 = vsel %vm383_vm7, %v385_v54, %v381_v60  ;;  %v577_v1 = vpop.eup %576  ;;  %v405_v5 = vsub.f32 1.0, %v404_v61 }
  0xb3   : > { %v437_v3 = vmul.f32 %v433_v57, %v386_v63  ;;  %v396_v7 = vsel %vm395_vm8, %v573_v45, %v392_v0  ;;  %v419_v9 = vmul.f32 %v577_v1, %v640_v48  ;;  %vm424_vm13 = vweird.f32 %v577_v1 }
  0xb4   : > { %v401_v12 = vsel %vm398_vm9, %v400_v4, %v396_v7  ;;  %v406_v13 = vmul.f32 %v575_v56, %v405_v5  ;;  %vm425_vm0 = vmor %vm423_vm15, %vm424_vm13 }
  0xb5   : > { %v445_v11 = vadd.f32 %v441_v62, %v437_v3  ;;  %v438_v14 = vmul.f32 %v434_v2, %v401_v12  ;;  %v420_v15 = vsub.f32 1.0, %v419_v9 }
  0xb6   : > { %v407_v16 = vadd.f32 %v575_v56, %v406_v13 }
  0xb7   : > { %449 = vst [vmem:[%s664_s12] sm:$0xff] %v445_v11  ;;  %v446_v20 = vadd.f32 %v442_v10, %v438_v14  ;;  %v421_v21 = vmul.f32 %v577_v1, %v420_v15 }
  0xb8   : > { %v411_v23 = vsel %vm410_vm12, %v575_v56, %v407_v16 }
  0xb9   : > { %450 = vst [vmem:[%s664_s12 + $0x8] sm:$0xff] %v446_v20  ;;  %v416_v25 = vsel %vm413_vm14, %v415_v17, %v411_v23  ;;  %v422_v26 = vadd.f32 %v577_v1, %v421_v21 }
  0xba   : > { %v439_v28 = vmul.f32 %v435_v19, %v416_v25 }
  0xbb   : > { %v426_v30 = vsel %vm425_vm0, %v577_v1, %v422_v26 }
  0xbc   : > { %v447_v32 = vadd.f32 %v443_v24, %v439_v28  ;;  %v431_v33 = vsel %vm428_vm1, %v430_v29, %v426_v30 }
  0xbd   : > { %v440_v34 = vmul.f32 %v436_v27, %v431_v33 }
  0xbe   : > { %451 = vst [vmem:[%s664_s12 + $0x10] sm:$0xff] %v447_v32 }
  0xbf   : > { %v448_v35 = vadd.f32 %v444_v31, %v440_v34 }
  0xc1   : > { %452 = vst [vmem:[%s664_s12 + $0x18] sm:$0xff] %v448_v35 }
  0xc2 PF: > { %s15_s18 = sadd.s32 1, %s584_s18  }
  0xc3   : > { %p12_p4 = scmp.ge.s32.totalorder %s15_s18, 6  }
  0xc5   :  { %14 = sbr.rel (!%p12_p4) target bundleno = 1 (0x1), region = 76 }

// kernel: enc_forward.138
= control target key start
LH: loop header
LB: loop body
LE: loop exit
PB: predicated region body
PF: predicated region fallthrough
CT: control target
= control target key end

     0   :  { %s853_s12 = smov 0   ;;  %s855_s13 = smov 0   ;;  %s1042_s0 = inlined_call_operand.vmem [shape: bf16[16,200], index: 0, kind: input, shape index: {}]   ;;  %s1043_s1 = inlined_call_operand.vmem [shape: bf16[200,512], index: 1, kind: input, shape index: {}]   ;;  %s1044_s2 = inlined_call_operand.vmem [shape: f32[16,1], index: 2, kind: input, shape index: {}]   ;;  %s1045_s3 = inlined_call_operand.vmem [shape: f32[16,512], index: 3, kind: output, shape index: {}]  }
   0x1   :  { %s857_s14 = smov 0  }
   0x2 LB: > { %s633_s15 = sadd.s32 4294967295, %s830_s14   ;;  %s870_s16 = sadd.s32 1, %s830_s14   ;;  %s830_s14 = sphi %s857_s14, %s1049_s14   ;;  %s826_s13 = sphi %s855_s13, %s1048_s13   ;;  %s822_s12 = sphi %s853_s12, %s1047_s12  }
   0x3   : > { %s38_s17 = ssub.s32 %s830_s14, %s870_s16  ;;  %s41_s18 = sadd.s32 1, %s826_s13 }
   0x4   : > { %p39_p0 = scmp.eq.s32.totalorder %s38_s17, 0  ;;  %p48_p1 = scmp.ne.s32.totalorder %s826_s13, %s822_s12 }
   0x5   : > { %p49_p2 = scmp.eq.s32.totalorder %s830_s14, 0  ;;  %p99_p3 = scmp.eq.s32.totalorder %s633_s15, 1 }
   0x6   : > { %s881_s19 = scalar_select %p39_p0, %s826_s13, %s41_s18  }
   0x7   : > { %p50_p4 = por %p49_p2, %p48_p1  ;;  %p883_p5 = por %p99_p3, %p48_p1 }
   0x8   : > { %p636_p6 = scmp.ge.s32.totalorder %s830_s14, 2 }
   0xa   : > { %127 = sbr.rel (%p636_p6) target bundleno = 44 (0x2c), region = 24 }
   0xf   : > { %130 = sbr.rel (!%p50_p4) target bundleno = 44 (0x2c), region = 28  ;;  %s132_s21 = sand.u32 (%p50_p4), 1, %s826_s13  }
  0x10   : > { %s752_s22 = sshll.u32 (%p50_p4), %s830_s14, 3  ;;  %s780_s23 = smul.u32 (%p50_p4), 200, %s132_s21 }
  0x11   : > { %s893_s26 = scalar_lea.vmem (%p50_p4), %s1043_s1, %s752_s22 }
  0x12   : > { %v214_v0 = vld [vmem:[%s893_s26] sm:$0xff] (%p50_p4)  ;;  %v216_v1 = vld [vmem:[%s893_s26 + $0x10] sm:$0xff] (%p50_p4)  ;;  %s898_s27 = scalar_lea.vmem (%p50_p4), [#allocation2], %s780_s23 }
  0x13   : > { %v218_v2 = vld [vmem:[%s893_s26 + $0x20] sm:$0xff] (%p50_p4)  ;;  %215 = vst [vmem:[%s898_s27] sm:$0xff] (%p50_p4), %v214_v0  ;;  %v220_v3 = vld [vmem:[%s893_s26 + $0x30] sm:$0xff] (%p50_p4) }
  0x14   : > { %217 = vst [vmem:[%s898_s27 + $0x8] sm:$0xff] %v216_v1  ;;  %v222_v4 = vld [vmem:[%s893_s26 + $0x40] sm:$0xff]  ;;  %v224_v5 = vld [vmem:[%s893_s26 + $0x50] sm:$0xff] }
  0x15   : > { %219 = vst [vmem:[%s898_s27 + $0x10] sm:$0xff] %v218_v2  ;;  %v226_v6 = vld [vmem:[%s893_s26 + $0x60] sm:$0xff]  ;;  %v228_v7 = vld [vmem:[%s893_s26 + $0x70] sm:$0xff] }
  0x16   : > { %221 = vst [vmem:[%s898_s27 + $0x18] sm:$0xff] %v220_v3  ;;  %v230_v8 = vld [vmem:[%s893_s26 + $0x80] sm:$0xff]  ;;  %v232_v9 = vld [vmem:[%s893_s26 + $0x90] sm:$0xff] }
  0x17   : > { %223 = vst [vmem:[%s898_s27 + $0x20] sm:$0xff] %v222_v4  ;;  %v234_v10 = vld [vmem:[%s893_s26 + $0xa0] sm:$0xff]  ;;  %v236_v11 = vld [vmem:[%s893_s26 + $0xb0] sm:$0xff] }
  0x18   : > { %225 = vst [vmem:[%s898_s27 + $0x28] sm:$0xff] %v224_v5  ;;  %v238_v12 = vld [vmem:[%s893_s26 + $0xc0] sm:$0xff]  ;;  %v240_v13 = vld [vmem:[%s893_s26 + $0xd0] sm:$0xff] }
  0x19   : > { %227 = vst [vmem:[%s898_s27 + $0x30] sm:$0xff] %v226_v6  ;;  %v242_v14 = vld [vmem:[%s893_s26 + $0xe0] sm:$0xff]  ;;  %v244_v15 = vld [vmem:[%s893_s26 + $0xf0] sm:$0xff] }
  0x1a   : > { %229 = vst [vmem:[%s898_s27 + $0x38] sm:$0xff] %v228_v7  ;;  %v246_v16 = vld [vmem:[%s893_s26 + $0x100] sm:$0xff]  ;;  %v248_v17 = vld [vmem:[%s893_s26 + $0x110] sm:$0xff] }
  0x1b   : > { %231 = vst [vmem:[%s898_s27 + $0x40] sm:$0xff] %v230_v8  ;;  %v250_v18 = vld [vmem:[%s893_s26 + $0x120] sm:$0xff]  ;;  %v252_v19 = vld [vmem:[%s893_s26 + $0x130] sm:$0xff] }
  0x1c   : > { %233 = vst [vmem:[%s898_s27 + $0x48] sm:$0xff] %v232_v9  ;;  %v254_v20 = vld [vmem:[%s893_s26 + $0x140] sm:$0xff]  ;;  %v256_v21 = vld [vmem:[%s893_s26 + $0x150] sm:$0xff] }
  0x1d   : > { %235 = vst [vmem:[%s898_s27 + $0x50] sm:$0xff] %v234_v10  ;;  %v258_v22 = vld [vmem:[%s893_s26 + $0x160] sm:$0xff]  ;;  %v260_v23 = vld [vmem:[%s893_s26 + $0x170] sm:$0xff] }
  0x1e   : > { %237 = vst [vmem:[%s898_s27 + $0x58] sm:$0xff] %v236_v11  ;;  %v262_v24 = vld [vmem:[%s893_s26 + $0x180] sm:$0xff] }
  0x1f   : > { %239 = vst [vmem:[%s898_s27 + $0x60] sm:$0xff] %v238_v12 }
  0x20   : > { %241 = vst [vmem:[%s898_s27 + $0x68] sm:$0xff] %v240_v13 }
  0x21   : > { %243 = vst [vmem:[%s898_s27 + $0x70] sm:$0xff] %v242_v14 }
  0x22   : > { %245 = vst [vmem:[%s898_s27 + $0x78] sm:$0xff] %v244_v15 }
  0x23   : > { %247 = vst [vmem:[%s898_s27 + $0x80] sm:$0xff] %v246_v16 }
  0x24   : > { %249 = vst [vmem:[%s898_s27 + $0x88] sm:$0xff] %v248_v17 }
  0x25   : > { %251 = vst [vmem:[%s898_s27 + $0x90] sm:$0xff] %v250_v18 }
  0x26   : > { %253 = vst [vmem:[%s898_s27 + $0x98] sm:$0xff] %v252_v19 }
  0x27   : > { %255 = vst [vmem:[%s898_s27 + $0xa0] sm:$0xff] %v254_v20 }
  0x28   : > { %257 = vst [vmem:[%s898_s27 + $0xa8] sm:$0xff] %v256_v21 }
  0x29   : > { %259 = vst [vmem:[%s898_s27 + $0xb0] sm:$0xff] %v258_v22 }
  0x2a   : > { %261 = vst [vmem:[%s898_s27 + $0xb8] sm:$0xff] %v260_v23 }
  0x2b   : > { %263 = vst [vmem:[%s898_s27 + $0xc0] sm:$0xff] %v262_v24 }
  0x2c PF: > { %p639_p7 = scmp.ge.s32.totalorder %s830_s14, 1  ;;  %p268_p8 = scmp.lt.s32.totalorder %s830_s14, 3 }
  0x2e   : > { %p269_p9 = pnand %p639_p7, %p268_p8 }
  0x2f   : > { %s275_s28 = sand.u32 (!%p269_p9), 1, %s822_s12  }
  0x30   : > { %272 = sbr.rel (%p269_p9) target bundleno = 241 (0xf1), region = 66  ;;  %s640_s23 = sshll.u32 (!%p269_p9), %s275_s28, 5 }
  0x31   : > { %s781_s29 = smul.u32 (!%p269_p9), 200, %s275_s28  ;;  %s296_s24 = scalar_lea.vmem (!%p269_p9), [#allocation3], %s640_s23 }
  0x33   : > { %s952_s30 = scalar_lea.vmem (!%p269_p9), [#allocation2], %s781_s29 }
  0x35   : > { %v707_v25 = vld [vmem:[%s952_s30 + $0x70] sm:$0xf]  ;;  %v768_v26 = vld [vmem:[%s952_s30 + $0x74] sm:$0xf0]  ;;  %v767_v27 = vld [vmem:[%s952_s30 + $0x74] sm:$0xf] }
  0x36   : > { %v708_v28 = vor.u32 %v768_v26, %v707_v25  ;;  %v709_v29 = vld [vmem:[%s952_s30 + $0x78] sm:$0xf0]  ;;  %v699_v30 = vld [vmem:[%s952_s30 + $0x60] sm:$0xf]  ;;  %v766_v31 = vld [vmem:[%s952_s30 + $0x64] sm:$0xf0] }
  0x37   : > { %v712_v32 = vor.u32 %v767_v27, %v709_v29  ;;  %v765_v33 = vld [vmem:[%s952_s30 + $0x64] sm:$0xf]  ;;  %v701_v34 = vld [vmem:[%s952_s30 + $0x68] sm:$0xf0]  ;;  %v700_v36 = vor.u32 %v766_v31, %v699_v30  ;;  %vm477_vm0 = vcmask 1043456   ;;  %v832_v25 = vmov 0  }
  0x38   : > { %v324_v35 = vld [vmem:[%s952_s30 + $0xc0] sm:$0xff]  ;;  %484 = vmatpush.bf16.msra.mxu0 %v708_v28  ;;  %v704_v39 = vor.u32 %v765_v33, %v701_v34  ;;  %v691_v40 = vld [vmem:[%s952_s30 + $0x50] sm:$0xf]  ;;  %v764_v41 = vld [vmem:[%s952_s30 + $0x54] sm:$0xf0]  ;;  %807 = vset.pattern.permute.xlu0 %v832_v25  ;;  %vm473_vm1 = vcmask 588800  }
  0x39   : > { %v422_v37 = vunpack.c.h.b16 %v324_v35  ;;  %v421_v38 = vunpack.c.l.b16 %v324_v35  ;;  %512 = vmatpush.bf16.msra.mxu2 %v712_v32  ;;  %v763_v42 = vld [vmem:[%s952_s30 + $0x54] sm:$0xf]  ;;  %v693_v44 = vld [vmem:[%s952_s30 + $0x58] sm:$0xf0]  ;;  %v692_v49 = vor.u32 %v764_v41, %v691_v40  ;;  %v683_v50 = vld [vmem:[%s952_s30 + $0x40] sm:$0xf] }
  0x3a   : > { %v775_v45 = vld [vmem:[%s952_s30 + $0xb4] sm:$0xf]  ;;  %v741_v46 = vld [vmem:[%s952_s30 + $0xb8] sm:$0xf0]  ;;  %v762_v51 = vld [vmem:[%s952_s30 + $0x44] sm:$0xf0]  ;;  %v696_v53 = vor.u32 %v763_v42, %v693_v44 }
  0x3b   : > { %v448_v43 = vpack.c.b16 %v422_v37, %v422_v37  ;;  %v447_v47 = vpack.c.b16 %v421_v38, %v421_v38  ;;  %v744_v54 = vor.u32 %v775_v45, %v741_v46  ;;  %v761_v55 = vld [vmem:[%s952_s30 + $0x44] sm:$0xf]  ;;  %v739_v56 = vld [vmem:[%s952_s30 + $0xb0] sm:$0xf]  ;;  %v776_v57 = vld [vmem:[%s952_s30 + $0xb4] sm:$0xf0]  ;;  %v684_v63 = vor.u32 %v762_v51, %v683_v50 }
  0x3c   : > { %485 = vmatpush.bf16.msra.mxu0 %v700_v36  ;;  %v685_v58 = vld [vmem:[%s952_s30 + $0x48] sm:$0xf0]  ;;  %v773_v59 = vld [vmem:[%s952_s30 + $0xa4] sm:$0xf]  ;;  %v740_v61 = vor.u32 %v776_v57, %v739_v56  ;;  %v731_v62 = vld [vmem:[%s952_s30 + $0xa0] sm:$0xf] }
  0x3d   : > { %v482_v48 = vsel %vm477_vm0, %v448_v43, 0  ;;  %v479_v52 = vsel %vm477_vm0, %v447_v47, 0  ;;  %513 = vmatpush.bf16.msra.mxu2 %v704_v39  ;;  %v733_v60 = vld [vmem:[%s952_s30 + $0xa8] sm:$0xf0]  ;;  %v774_v0 = vld [vmem:[%s952_s30 + $0xa4] sm:$0xf0]  ;;  %v688_v1 = vor.u32 %v761_v55, %v685_v58 }
  0x3e   : > { %529 = vmatpush.bf16.msra.mxu3 %v482_v48  ;;  %501 = vmatpush.bf16.msra.mxu1 %v479_v52  ;;  %v736_v2 = vor.u32 %v773_v59, %v733_v60  ;;  %v675_v3 = vld [vmem:[%s952_s30 + $0x30] sm:$0xf]  ;;  %v760_v4 = vld [vmem:[%s952_s30 + $0x34] sm:$0xf0]  ;;  %v759_v5 = vld [vmem:[%s952_s30 + $0x34] sm:$0xf]  ;;  %v732_v9 = vor.u32 %v774_v0, %v731_v62 }
  0x3f   : > { %v677_v6 = vld [vmem:[%s952_s30 + $0x38] sm:$0xf0]  ;;  %v771_v7 = vld [vmem:[%s952_s30 + $0x94] sm:$0xf]  ;;  %v723_v10 = vld [vmem:[%s952_s30 + $0x90] sm:$0xf]  ;;  %v676_v12 = vor.u32 %v760_v4, %v675_v3 }
  0x40   : > { %486 = vmatpush.bf16.msra.mxu0 %v692_v49  ;;  %v725_v8 = vld [vmem:[%s952_s30 + $0x98] sm:$0xf0]  ;;  %v772_v11 = vld [vmem:[%s952_s30 + $0x94] sm:$0xf0]  ;;  %v667_v13 = vld [vmem:[%s952_s30 + $0x20] sm:$0xf]  ;;  %v680_v14 = vor.u32 %v759_v5, %v677_v6 }
  0x41   : > { %514 = vmatpush.bf16.msra.mxu2 %v696_v53  ;;  %v728_v15 = vor.u32 %v771_v7, %v725_v8  ;;  %v758_v16 = vld [vmem:[%s952_s30 + $0x24] sm:$0xf0]  ;;  %v757_v17 = vld [vmem:[%s952_s30 + $0x24] sm:$0xf]  ;;  %v669_v18 = vld [vmem:[%s952_s30 + $0x28] sm:$0xf0]  ;;  %v724_v21 = vor.u32 %v772_v11, %v723_v10 }
  0x42   : > { %530 = vmatpush.bf16.msra.mxu3 %v744_v54  ;;  %502 = vmatpush.bf16.msra.mxu1 %v740_v61  ;;  %v769_v19 = vld [vmem:[%s952_s30 + $0x84] sm:$0xf]  ;;  %v717_v20 = vld [vmem:[%s952_s30 + $0x88] sm:$0xf0]  ;;  %v715_v23 = vld [vmem:[%s952_s30 + $0x80] sm:$0xf]  ;;  %v668_v26 = vor.u32 %v758_v16, %v667_v13  ;;  %v672_v28 = vor.u32 %v757_v17, %v669_v18 }
  0x43   : > { %v327_v22 = vld [vmem:[%s1044_s2] sm:$0xff]  ;;  %v770_v24 = vld [vmem:[%s952_s30 + $0x84] sm:$0xf0]  ;;  %v720_v29 = vor.u32 %v769_v19, %v717_v20  ;;  %v659_v30 = vld [vmem:[%s952_s30 + $0x10] sm:$0xf]  ;;  %s779_s12 = sshll.u32 (%p883_p5), %s633_s15, 4 }
  0x44   : > { %487 = vmatpush.bf16.msra.mxu0 %v684_v63  ;;  %v777_v27 = vld [vmem:[%s1042_s0 + $0x4] sm:$0xf]  ;;  %331 = vperm.xlu0 %807, %v327_v22   ;;  %v756_v31 = vld [vmem:[%s952_s30 + $0x14] sm:$0xf0]  ;;  %v645_v32 = vld [vmem:[%s1042_s0 + $0x8] sm:$0xf0]  ;;  %v716_v35 = vor.u32 %v770_v24, %v715_v23  ;;  %s553_s27 = scalar_lea.vmem (%p883_p5), %s1045_s3, %s779_s12 }
  0x45   : > { %515 = vmatpush.bf16.msra.mxu2 %v688_v1  ;;  %v755_v33 = vld [vmem:[%s952_s30 + $0x14] sm:$0xf]  ;;  %v661_v34 = vld [vmem:[%s952_s30 + $0x18] sm:$0xf0]  ;;  %v660_v36 = vor.u32 %v756_v31, %v659_v30  ;;  %v648_v37 = vor.u32 %v777_v27, %v645_v32  ;;  %v651_v39 = vld [vmem:[%s952_s30] sm:$0xf] }
  0x46   : > { %531 = vmatpush.bf16.msra.mxu3 %v736_v2  ;;  %503 = vmatpush.bf16.msra.mxu1 %v732_v9  ;;  %v664_v38 = vor.u32 %v755_v33, %v661_v34  ;;  %v754_v40 = vld [vmem:[%s952_s30 + $0x4] sm:$0xf0]  ;;  %v753_v41 = vld [vmem:[%s952_s30 + $0x4] sm:$0xf]  ;;  %v653_v42 = vld [vmem:[%s952_s30 + $0x8] sm:$0xf0] }
  0x47   : > { %v328_v43 = vld [vmem:[%s1044_s2 + $0x8] sm:$0xff]  ;;  %v652_v44 = vor.u32 %v754_v40, %v651_v39  ;;  %v643_v45 = vld [vmem:[%s1042_s0] sm:$0xf]  ;;  %v656_v47 = vor.u32 %v753_v41, %v653_v42 }
  0x48   : > { %488 = vmatpush.bf16.msra.mxu0 %v676_v12  ;;  %v778_v46 = vld [vmem:[%s1042_s0 + $0x4] sm:$0xf0] }
  0x49   : > { %516 = vmatpush.bf16.msra.mxu2 %v680_v14  ;;  %v644_v48 = vor.u32 %v778_v46, %v643_v45 }
  0x4a   : > { %532 = vmatpush.bf16.msra.mxu3 %v728_v15  ;;  %504 = vmatpush.bf16.msra.mxu1 %v724_v21 }
  0x4c   : > { %489 = vmatpush.bf16.msra.mxu0 %v668_v26  ;;  %336 = vperm.xlu0 %807, %v328_v43  }
  0x4d   : > { %517 = vmatpush.bf16.msra.mxu2 %v672_v28 }
  0x4e   : > { %533 = vmatpush.bf16.msra.mxu3 %v720_v29  ;;  %505 = vmatpush.bf16.msra.mxu1 %v716_v35 }
  0x50   : > { %490 = vmatpush.bf16.msra.mxu0 %v660_v36 }
  0x51   : > { %746 = vmatmul.msk.bf16.vlgmr.msra.gmra.mxu3 %vm473_vm1, %v648_v37  ;;  %518 = vmatpush.bf16.msra.mxu2 %v664_v38 }
  0x52   : > { %745 = vmatmul.msk.bf16.vlgmr.msra.gmra.mxu1 %vm473_vm1, %v648_v37 }
  0x54   : > { %491 = vmatpush.bf16.msra.mxu0 %v652_v44 }
  0x55   : > { %519 = vmatpush.bf16.msra.mxu2 %v656_v47 }
  0x57   : > { %492 = vmatmul.bf16.vlgmr.msra.gmra.mxu0 %v644_v48 }
  0x58   : > { %520 = vmatmul.bf16.vlgmr.msra.gmra.mxu2 %v644_v48 }
  0xb6   : > { %v332_v49 = vpop.permute.xlu0 %331 }
  0xbe   : > { %v337_v56 = vpop.permute.xlu0 %336 }
  0xcf   : > { %v507_v51 = vpop.f32.mrf.mxu1 }
  0xd4   : > { %v493_v50 = vpop.f32.mrf.mxu0  ;;  %v535_v54 = vpop.f32.mrf.mxu3 }
  0xd5   : > { %v494_v52 = vadd.f32 %v493_v50, %v332_v49 }
  0xd7   : > { %v508_v53 = vadd.f32 %v507_v51, %v494_v52  ;;  %v509_v61 = vpop.f32.mrf.mxu1 }
  0xd9   : > { %540 = vst [vmem:[%s296_s24] sm:$0xff] %v508_v53 }
  0xdb   : > { %v521_v55 = vpop.f32.mrf.mxu2 }
  0xdc   : > { %v522_v57 = vadd.f32 %v521_v55, %v332_v49  ;;  %v495_v58 = vpop.f32.mrf.mxu0  ;;  %v537_v1 = vpop.f32.mrf.mxu3 }
  0xdd   : > { %v496_v59 = vadd.f32 %v495_v58, %v337_v56 }
  0xde   : > { %v536_v60 = vadd.f32 %v535_v54, %v522_v57 }
  0xdf   : > { %v510_v62 = vadd.f32 %v509_v61, %v496_v59 }
  0xe0   : > { %541 = vst [vmem:[%s296_s24 + $0x8] sm:$0xff] %v536_v60  ;;  %v566_v3 = vld [vmem:[%s296_s24] sm:$0xff] (%p883_p5) }
  0xe1   : > { %542 = vst [vmem:[%s296_s24 + $0x10] sm:$0xff] %v510_v62 }
  0xe2   : > { %567 = vst [vmem:[%s553_s27] sm:$0xff] (%p883_p5), %v566_v3 }
  0xe3   : > { %v523_v63 = vpop.f32.mrf.mxu2 }
  0xe4   : > { %v524_v0 = vadd.f32 %v523_v63, %v337_v56  ;;  %550 = sbr.rel (!%p883_p5) target bundleno = 241 (0xf1), region = 74 }
  0xe6   : > { %v538_v2 = vadd.f32 %v537_v1, %v524_v0 }
  0xe7   : > { %v568_v4 = vld [vmem:[%s296_s24 + $0x8] sm:$0xff] (%p883_p5) }
  0xe8   : > { %543 = vst [vmem:[%s296_s24 + $0x18] sm:$0xff] %v538_v2  ;;  %v570_v5 = vld [vmem:[%s296_s24 + $0x10] sm:$0xff] (%p883_p5) }
  0xe9   : > { %569 = vst [vmem:[%s553_s27 + $0x8] sm:$0xff] %v568_v4 }
  0xea   : > { %571 = vst [vmem:[%s553_s27 + $0x20] sm:$0xff] %v570_v5 }
  0xef   : > { %v572_v6 = vld [vmem:[%s296_s24 + $0x18] sm:$0xff] }
  0xf0   : > { %573 = vst [vmem:[%s553_s27 + $0x28] sm:$0xff] %v572_v6 }
  0xf1 PF: > { %p10_p10 = scmp.ge.s32.totalorder %s870_s16, 4   ;;  %s1047_s12 = smov %s826_s13 }
  0xf2   : > { %s1048_s13 = smov %s881_s19  ;;  %s1049_s14 = smov %s870_s16 }
  0xf3   :  { %12 = sbr.rel (!%p10_p10) target bundleno = 2 (0x2), region = 128 }

// kernel: enc_forward.140
= control target key start
LH: loop header
LB: loop body
LE: loop exit
PB: predicated region body
PF: predicated region fallthrough
CT: control target
= control target key end

     0   :  { %s856_s15 = smov 0   ;;  %s858_s16 = smov 0   ;;  %s1041_s0 = inlined_call_operand.vmem [shape: bf16[16,144], index: 0, kind: input, shape index: {}]   ;;  %s1042_s1 = inlined_call_operand.vmem [shape: bf16[144,512], index: 1, kind: input, shape index: {}]   ;;  %s1043_s2 = inlined_call_operand.vmem [shape: f32[16,1], index: 2, kind: input, shape index: {}]   ;;  %s1044_s3 = inlined_call_operand.vmem [shape: f32[16,512], index: 3, kind: input, shape index: {}]   ;;  %s1045_s4 = inlined_call_operand.vmem [shape: f32[16,512], index: 4, kind: output, shape index: {}]  }
   0x1   :  { %s860_s17 = smov 0  }
   0x2 LB: > { %s656_s18 = sadd.s32 4294967295, %s828_s17   ;;  %s873_s19 = sadd.s32 1, %s828_s17   ;;  %s828_s17 = sphi %s860_s17, %s1050_s17   ;;  %s824_s16 = sphi %s858_s16, %s1049_s16   ;;  %s820_s15 = sphi %s856_s15, %s1048_s15  }
   0x3   : > { %s39_s20 = ssub.s32 %s828_s17, %s873_s19  ;;  %s42_s21 = sadd.s32 1, %s824_s16 }
   0x4   : > { %p40_p0 = scmp.eq.s32.totalorder %s39_s20, 0  ;;  %p49_p1 = scmp.ne.s32.totalorder %s824_s16, %s820_s15 }
   0x5   : > { %p50_p2 = scmp.eq.s32.totalorder %s828_s17, 0  ;;  %p126_p3 = scmp.eq.s32.totalorder %s656_s18, 1 }
   0x6   : > { %s884_s22 = scalar_select %p40_p0, %s824_s16, %s42_s21  }
   0x7   : > { %p886_p4 = por %p50_p2, %p49_p1  ;;  %p890_p5 = por %p126_p3, %p49_p1 }
   0x8   : > { %p659_p6 = scmp.ge.s32.totalorder %s828_s17, 2 }
   0xa   : > { %154 = sbr.rel (%p659_p6) target bundleno = 45 (0x2d), region = 24 }
   0xf   : > { %157 = sbr.rel (!%p886_p4) target bundleno = 37 (0x25), region = 28  ;;  %s159_s25 = sand.u32 (%p886_p4), 1, %s824_s16  }
  0x10   : > { %s755_s26 = sshll.u32 (%p886_p4), %s828_s17, 3  ;;  %s778_s27 = smul.u32 (%p886_p4), 144, %s159_s25 }
  0x11   : > { %s902_s30 = scalar_lea.vmem (%p886_p4), %s1042_s1, %s755_s26 }
  0x12   : > { %v227_v0 = vld [vmem:[%s902_s30] sm:$0xff] (%p886_p4)  ;;  %v229_v1 = vld [vmem:[%s902_s30 + $0x10] sm:$0xff] (%p886_p4)  ;;  %s907_s5 = scalar_lea.vmem (%p886_p4), [#allocation2], %s778_s27 }
  0x13   : > { %v231_v2 = vld [vmem:[%s902_s30 + $0x20] sm:$0xff] (%p886_p4)  ;;  %228 = vst [vmem:[%s907_s5] sm:$0xff] (%p886_p4), %v227_v0  ;;  %v233_v3 = vld [vmem:[%s902_s30 + $0x30] sm:$0xff] (%p886_p4) }
  0x14   : > { %230 = vst [vmem:[%s907_s5 + $0x8] sm:$0xff] %v229_v1  ;;  %v235_v4 = vld [vmem:[%s902_s30 + $0x40] sm:$0xff]  ;;  %v237_v5 = vld [vmem:[%s902_s30 + $0x50] sm:$0xff] }
  0x15   : > { %232 = vst [vmem:[%s907_s5 + $0x10] sm:$0xff] %v231_v2  ;;  %v239_v6 = vld [vmem:[%s902_s30 + $0x60] sm:$0xff]  ;;  %v241_v7 = vld [vmem:[%s902_s30 + $0x70] sm:$0xff] }
  0x16   : > { %234 = vst [vmem:[%s907_s5 + $0x18] sm:$0xff] %v233_v3  ;;  %v243_v8 = vld [vmem:[%s902_s30 + $0x80] sm:$0xff]  ;;  %v245_v9 = vld [vmem:[%s902_s30 + $0x90] sm:$0xff] }
  0x17   : > { %236 = vst [vmem:[%s907_s5 + $0x20] sm:$0xff] %v235_v4  ;;  %v247_v10 = vld [vmem:[%s902_s30 + $0xa0] sm:$0xff]  ;;  %v249_v11 = vld [vmem:[%s902_s30 + $0xb0] sm:$0xff] }
  0x18   : > { %238 = vst [vmem:[%s907_s5 + $0x28] sm:$0xff] %v237_v5  ;;  %v251_v12 = vld [vmem:[%s902_s30 + $0xc0] sm:$0xff]  ;;  %v253_v13 = vld [vmem:[%s902_s30 + $0xd0] sm:$0xff] }
  0x19   : > { %240 = vst [vmem:[%s907_s5 + $0x30] sm:$0xff] %v239_v6  ;;  %v255_v14 = vld [vmem:[%s902_s30 + $0xe0] sm:$0xff]  ;;  %v257_v15 = vld [vmem:[%s902_s30 + $0xf0] sm:$0xff] }
  0x1a   : > { %242 = vst [vmem:[%s907_s5 + $0x38] sm:$0xff] %v241_v7  ;;  %v259_v16 = vld [vmem:[%s902_s30 + $0x100] sm:$0xff]  ;;  %v261_v17 = vld [vmem:[%s902_s30 + $0x110] sm:$0xff] }
  0x1b   : > { %244 = vst [vmem:[%s907_s5 + $0x40] sm:$0xff] %v243_v8 }
  0x1c   : > { %246 = vst [vmem:[%s907_s5 + $0x48] sm:$0xff] %v245_v9 }
  0x1d   : > { %248 = vst [vmem:[%s907_s5 + $0x50] sm:$0xff] %v247_v10 }
  0x1e   : > { %250 = vst [vmem:[%s907_s5 + $0x58] sm:$0xff] %v249_v11 }
  0x1f   : > { %252 = vst [vmem:[%s907_s5 + $0x60] sm:$0xff] %v251_v12 }
  0x20   : > { %254 = vst [vmem:[%s907_s5 + $0x68] sm:$0xff] %v253_v13 }
  0x21   : > { %256 = vst [vmem:[%s907_s5 + $0x70] sm:$0xff] %v255_v14 }
  0x22   : > { %258 = vst [vmem:[%s907_s5 + $0x78] sm:$0xff] %v257_v15 }
  0x23   : > { %260 = vst [vmem:[%s907_s5 + $0x80] sm:$0xff] %v259_v16 }
  0x24   : > { %262 = vst [vmem:[%s907_s5 + $0x88] sm:$0xff] %v261_v17 }
  0x25 PF: > { %268 = sbr.rel (!%p886_p4) target bundleno = 45 (0x2d), region = 66  ;;  %s270_s6 = sand.u32 (%p886_p4), 1, %s824_s16  }
  0x26   : > { %s756_s7 = sshll.u32 (%p886_p4), %s828_s17, 4  ;;  %s662_s8 = sshll.u32 (%p886_p4), %s270_s6, 5 }
  0x27   : > { %s275_s11 = scalar_lea.vmem (%p886_p4), %s1044_s3, %s756_s7  ;;  %s272_s12 = scalar_lea.vmem (%p886_p4), [#allocation3], %s662_s8 }
  0x28   : > { %v288_v18 = vld [vmem:[%s275_s11] sm:$0xff] (%p886_p4)  ;;  %v290_v19 = vld [vmem:[%s275_s11 + $0x8] sm:$0xff] (%p886_p4) }
  0x29   : > { %v292_v20 = vld [vmem:[%s275_s11 + $0x20] sm:$0xff] (%p886_p4)  ;;  %289 = vst [vmem:[%s272_s12] sm:$0xff] (%p886_p4), %v288_v18  ;;  %v294_v21 = vld [vmem:[%s275_s11 + $0x28] sm:$0xff] (%p886_p4) }
  0x2a   : > { %291 = vst [vmem:[%s272_s12 + $0x8] sm:$0xff] %v290_v19 }
  0x2b   : > { %293 = vst [vmem:[%s272_s12 + $0x10] sm:$0xff] %v292_v20 }
  0x2c   : > { %295 = vst [vmem:[%s272_s12 + $0x18] sm:$0xff] %v294_v21 }
  0x2d PF: > { %p665_p7 = scmp.ge.s32.totalorder %s828_s17, 1  ;;  %p300_p8 = scmp.lt.s32.totalorder %s828_s17, 3 }
  0x2f   : > { %p301_p9 = pnand %p665_p7, %p300_p8 }
  0x30   : > { %s307_s13 = sand.u32 (!%p301_p9), 1, %s820_s15  }
  0x31   : > { %304 = sbr.rel (%p301_p9) target bundleno = 244 (0xf4), region = 89  ;;  %s666_s9 = sshll.u32 (!%p301_p9), %s307_s13, 5 }
  0x32   : > { %s779_s14 = smul.u32 (!%p301_p9), 144, %s307_s13  ;;  %s316_s10 = scalar_lea.vmem (!%p301_p9), [#allocation3], %s666_s9 }
  0x33   : > { %s1014_s11 = scalar_lea.vmem (!%p301_p9), [#allocation4], %s666_s9 }
  0x34   : > { %s954_s20 = scalar_lea.vmem (!%p301_p9), [#allocation2], %s779_s14 }
  0x36   : > { %v734_v22 = vld [vmem:[%s954_s20 + $0x70] sm:$0xf]  ;;  %v772_v23 = vld [vmem:[%s954_s20 + $0x74] sm:$0xf0]  ;;  %v771_v24 = vld [vmem:[%s954_s20 + $0x74] sm:$0xf] }
  0x37   : > { %v735_v25 = vor.u32 %v772_v23, %v734_v22  ;;  %v736_v26 = vld [vmem:[%s954_s20 + $0x78] sm:$0xf0]  ;;  %v726_v27 = vld [vmem:[%s954_s20 + $0x60] sm:$0xf]  ;;  %v770_v28 = vld [vmem:[%s954_s20 + $0x64] sm:$0xf0] }
  0x38   : > { %v739_v29 = vor.u32 %v771_v24, %v736_v26  ;;  %v769_v30 = vld [vmem:[%s954_s20 + $0x64] sm:$0xf]  ;;  %v728_v31 = vld [vmem:[%s954_s20 + $0x68] sm:$0xf0]  ;;  %v727_v32 = vor.u32 %v770_v28, %v726_v27  ;;  %v718_v34 = vld [vmem:[%s954_s20 + $0x50] sm:$0xf] }
  0x39   : > { %481 = vmatpush.bf16.msra.mxu0 %v735_v25  ;;  %v731_v33 = vor.u32 %v769_v30, %v728_v31  ;;  %v768_v35 = vld [vmem:[%s954_s20 + $0x54] sm:$0xf0]  ;;  %v767_v36 = vld [vmem:[%s954_s20 + $0x54] sm:$0xf]  ;;  %v720_v37 = vld [vmem:[%s954_s20 + $0x58] sm:$0xf0] }
  0x3a   : > { %509 = vmatpush.bf16.msra.mxu2 %v739_v29  ;;  %v719_v38 = vor.u32 %v768_v35, %v718_v34  ;;  %v710_v39 = vld [vmem:[%s954_s20 + $0x40] sm:$0xf]  ;;  %v775_v40 = vld [vmem:[%s1041_s0 + $0x4] sm:$0xf]  ;;  %v672_v41 = vld [vmem:[%s1041_s0 + $0x8] sm:$0xf0]  ;;  %v723_v42 = vor.u32 %v767_v36, %v720_v37 }
  0x3b   : > { %v766_v43 = vld [vmem:[%s954_s20 + $0x44] sm:$0xf0]  ;;  %v773_v44 = vld [vmem:[%s954_s20 + $0x84] sm:$0xf]  ;;  %v744_v45 = vld [vmem:[%s954_s20 + $0x88] sm:$0xf0]  ;;  %v675_v49 = vor.u32 %v775_v40, %v672_v41 }
  0x3c   : > { %v765_v46 = vld [vmem:[%s954_s20 + $0x44] sm:$0xf]  ;;  %v712_v47 = vld [vmem:[%s954_s20 + $0x48] sm:$0xf0]  ;;  %v747_v48 = vor.u32 %v773_v44, %v744_v45  ;;  %v742_v50 = vld [vmem:[%s954_s20 + $0x80] sm:$0xf]  ;;  %v711_v51 = vor.u32 %v766_v43, %v710_v39 }
  0x3d   : > { %482 = vmatpush.bf16.msra.mxu0 %v727_v32  ;;  %vm477_vm0 = vcmask 130048   ;;  %v774_v52 = vld [vmem:[%s954_s20 + $0x84] sm:$0xf0]  ;;  %v715_v53 = vor.u32 %v765_v46, %v712_v47  ;;  %v702_v54 = vld [vmem:[%s954_s20 + $0x30] sm:$0xf]  ;;  %v830_v60 = vmov 0  }
  0x3e   : > { %510 = vmatpush.bf16.msra.mxu2 %v731_v33  ;;  %530 = vmatpush.bf16.msra.mxu3 %v747_v48  ;;  %v764_v55 = vld [vmem:[%s954_s20 + $0x34] sm:$0xf0]  ;;  %v743_v56 = vor.u32 %v774_v52, %v742_v50  ;;  %v366_v57 = vld [vmem:[%s1043_s2] sm:$0xff]  ;;  %v704_v59 = vld [vmem:[%s954_s20 + $0x38] sm:$0xf0]  ;;  %s777_s15 = sshll.u32 (%p890_p5), %s656_s18, 4 }
  0x3f   : > { %v763_v58 = vld [vmem:[%s954_s20 + $0x34] sm:$0xf]  ;;  %805 = vset.pattern.permute.xlu0 %v830_v60  ;;  %v703_v61 = vor.u32 %v764_v55, %v702_v54  ;;  %v694_v63 = vld [vmem:[%s954_s20 + $0x20] sm:$0xf]  ;;  %v762_v0 = vld [vmem:[%s954_s20 + $0x24] sm:$0xf0]  ;;  %s558_s14 = scalar_lea.vmem (%p890_p5), %s1045_s4, %s777_s15 }
  0x40   : > { %502 = vmatpush.bf16.msra.mxu1 %v743_v56  ;;  %370 = vperm.xlu0 %805, %v366_v57   ;;  %v707_v62 = vor.u32 %v763_v58, %v704_v59  ;;  %v761_v1 = vld [vmem:[%s954_s20 + $0x24] sm:$0xf]  ;;  %v696_v2 = vld [vmem:[%s954_s20 + $0x28] sm:$0xf0]  ;;  %v695_v3 = vor.u32 %v762_v0, %v694_v63  ;;  %v686_v5 = vld [vmem:[%s954_s20 + $0x10] sm:$0xf] }
  0x41   : > { %483 = vmatpush.bf16.msra.mxu0 %v719_v38  ;;  %749 = vmatmul.msk.bf16.vlgmr.msra.gmra.mxu3 %vm477_vm0, %v675_v49  ;;  %v699_v4 = vor.u32 %v761_v1, %v696_v2  ;;  %v760_v6 = vld [vmem:[%s954_s20 + $0x14] sm:$0xf0]  ;;  %v759_v8 = vld [vmem:[%s954_s20 + $0x14] sm:$0xf]  ;;  %v688_v9 = vld [vmem:[%s954_s20 + $0x18] sm:$0xf0] }
  0x42   : > { %511 = vmatpush.bf16.msra.mxu2 %v723_v42  ;;  %v367_v7 = vld [vmem:[%s1043_s2 + $0x8] sm:$0xff]  ;;  %v687_v10 = vor.u32 %v760_v6, %v686_v5  ;;  %v691_v11 = vor.u32 %v759_v8, %v688_v9  ;;  %v678_v12 = vld [vmem:[%s954_s20] sm:$0xf]  ;;  %v757_v14 = vld [vmem:[%s954_s20 + $0x4] sm:$0xf] }
  0x43   : > { %748 = vmatmul.msk.bf16.vlgmr.msra.gmra.mxu1 %vm477_vm0, %v675_v49  ;;  %v758_v13 = vld [vmem:[%s954_s20 + $0x4] sm:$0xf0]  ;;  %v680_v15 = vld [vmem:[%s954_s20 + $0x8] sm:$0xf0]  ;;  %v670_v17 = vld [vmem:[%s1041_s0] sm:$0xf] }
  0x44   : > { %v679_v16 = vor.u32 %v758_v13, %v678_v12  ;;  %v776_v18 = vld [vmem:[%s1041_s0 + $0x4] sm:$0xf0]  ;;  %v683_v19 = vor.u32 %v757_v14, %v680_v15  ;;  %v537_v25 = vld [vmem:[%s316_s10] sm:$0xff]  ;;  %v539_v37 = vld [vmem:[%s316_s10 + $0x10] sm:$0xff] }
  0x45   : > { %484 = vmatpush.bf16.msra.mxu0 %v711_v51  ;;  %v671_v20 = vor.u32 %v776_v18, %v670_v17  ;;  %v538_v33 = vld [vmem:[%s316_s10 + $0x8] sm:$0xff]  ;;  %v540_v44 = vld [vmem:[%s316_s10 + $0x18] sm:$0xff] }
  0x46   : > { %512 = vmatpush.bf16.msra.mxu2 %v715_v53 }
  0x48   : > { %375 = vperm.xlu0 %805, %v367_v7  }
  0x49   : > { %485 = vmatpush.bf16.msra.mxu0 %v703_v61 }
  0x4a   : > { %513 = vmatpush.bf16.msra.mxu2 %v707_v62 }
  0x4d   : > { %486 = vmatpush.bf16.msra.mxu0 %v695_v3 }
  0x4e   : > { %514 = vmatpush.bf16.msra.mxu2 %v699_v4 }
  0x51   : > { %487 = vmatpush.bf16.msra.mxu0 %v687_v10 }
  0x52   : > { %515 = vmatpush.bf16.msra.mxu2 %v691_v11 }
  0x55   : > { %488 = vmatpush.bf16.msra.mxu0 %v679_v16 }
  0x56   : > { %516 = vmatpush.bf16.msra.mxu2 %v683_v19 }
  0x58   : > { %489 = vmatmul.bf16.vlgmr.msra.gmra.mxu0 %v671_v20 }
  0x59   : > { %517 = vmatmul.bf16.vlgmr.msra.gmra.mxu2 %v671_v20 }
  0xb2   : > { %v371_v21 = vpop.permute.xlu0 %370 }
  0xba   : > { %v376_v30 = vpop.permute.xlu0 %375 }
  0xc0   : > { %v504_v23 = vpop.f32.mrf.mxu1 }
  0xc4   : > { %v532_v28 = vpop.f32.mrf.mxu3 }
  0xc8   : > { %v506_v36 = vpop.f32.mrf.mxu1 }
  0xcc   : > { %v534_v43 = vpop.f32.mrf.mxu3 }
  0xd5   : > { %v490_v22 = vpop.f32.mrf.mxu0 }
  0xd6   : > { %v491_v24 = vadd.f32 %v490_v22, %v371_v21 }
  0xd8   : > { %v505_v26 = vadd.f32 %v504_v23, %v491_v24 }
  0xda   : > { %v541_v27 = vadd.f32 %v537_v25, %v505_v26 }
  0xdc   : > { %545 = vst [vmem:[%s1014_s11] sm:$0xff] %v541_v27  ;;  %v518_v29 = vpop.f32.mrf.mxu2 }
  0xdd   : > { %v519_v31 = vadd.f32 %v518_v29, %v371_v21  ;;  %v492_v32 = vpop.f32.mrf.mxu0 }
  0xde   : > { %v493_v34 = vadd.f32 %v492_v32, %v376_v30 }
  0xdf   : > { %v533_v35 = vadd.f32 %v532_v28, %v519_v31 }
  0xe0   : > { %v507_v38 = vadd.f32 %v506_v36, %v493_v34 }
  0xe1   : > { %v542_v39 = vadd.f32 %v538_v33, %v533_v35 }
  0xe2   : > { %v543_v40 = vadd.f32 %v539_v37, %v507_v38 }
  0xe3   : > { %546 = vst [vmem:[%s1014_s11 + $0x8] sm:$0xff] %v542_v39  ;;  %v571_v47 = vld [vmem:[%s1014_s11] sm:$0xff] (%p890_p5) }
  0xe4   : > { %547 = vst [vmem:[%s1014_s11 + $0x10] sm:$0xff] %v543_v40  ;;  %v520_v41 = vpop.f32.mrf.mxu2 }
  0xe5   : > { %v521_v42 = vadd.f32 %v520_v41, %v376_v30  ;;  %572 = vst [vmem:[%s558_s14] sm:$0xff] (%p890_p5), %v571_v47 }
  0xe7   : > { %v535_v45 = vadd.f32 %v534_v43, %v521_v42  ;;  %555 = sbr.rel (!%p890_p5) target bundleno = 244 (0xf4), region = 101 }
  0xe9   : > { %v544_v46 = vadd.f32 %v540_v44, %v535_v45 }
  0xea   : > { %v573_v48 = vld [vmem:[%s1014_s11 + $0x8] sm:$0xff] (%p890_p5) }
  0xeb   : > { %548 = vst [vmem:[%s1014_s11 + $0x18] sm:$0xff] %v544_v46  ;;  %v575_v49 = vld [vmem:[%s1014_s11 + $0x10] sm:$0xff] (%p890_p5) }
  0xec   : > { %574 = vst [vmem:[%s558_s14 + $0x8] sm:$0xff] %v573_v48 }
  0xed   : > { %576 = vst [vmem:[%s558_s14 + $0x20] sm:$0xff] %v575_v49 }
  0xf2   : > { %v577_v50 = vld [vmem:[%s1014_s11 + $0x18] sm:$0xff] }
  0xf3   : > { %578 = vst [vmem:[%s558_s14 + $0x28] sm:$0xff] %v577_v50 }
  0xf4 PF: > { %p11_p10 = scmp.ge.s32.totalorder %s873_s19, 4   ;;  %s1048_s15 = smov %s824_s16 }
  0xf5   : > { %s1049_s16 = smov %s884_s22  ;;  %s1050_s17 = smov %s873_s19 }
  0xf6   :  { %13 = sbr.rel (!%p11_p10) target bundleno = 2 (0x2), region = 163 }

// kernel: enc_forward.139
= control target key start
LH: loop header
LB: loop body
LE: loop exit
PB: predicated region body
PF: predicated region fallthrough
CT: control target
= control target key end

     0   :  { %s750_s12 = smov 0   ;;  %s752_s13 = smov 0   ;;  %s912_s0 = inlined_call_operand.vmem [shape: bf16[16,144], index: 0, kind: input, shape index: {}]   ;;  %s913_s1 = inlined_call_operand.vmem [shape: bf16[144,512], index: 1, kind: input, shape index: {}]   ;;  %s914_s2 = inlined_call_operand.vmem [shape: f32[16,1], index: 2, kind: input, shape index: {}]   ;;  %s915_s3 = inlined_call_operand.vmem [shape: f32[16,512], index: 3, kind: output, shape index: {}]  }
   0x1   :  { %s754_s14 = smov 0  }
   0x2 LB: > { %s560_s15 = sadd.s32 4294967295, %s727_s14   ;;  %s767_s16 = sadd.s32 1, %s727_s14   ;;  %s727_s14 = sphi %s754_s14, %s919_s14   ;;  %s723_s13 = sphi %s752_s13, %s918_s13   ;;  %s719_s12 = sphi %s750_s12, %s917_s12  }
   0x3   : > { %s38_s17 = ssub.s32 %s727_s14, %s767_s16  ;;  %s41_s18 = sadd.s32 1, %s723_s13 }
   0x4   : > { %p39_p0 = scmp.eq.s32.totalorder %s38_s17, 0  ;;  %p48_p1 = scmp.ne.s32.totalorder %s723_s13, %s719_s12 }
   0x5   : > { %p49_p2 = scmp.eq.s32.totalorder %s727_s14, 0  ;;  %p99_p3 = scmp.eq.s32.totalorder %s560_s15, 1 }
   0x6   : > { %s778_s19 = scalar_select %p39_p0, %s723_s13, %s41_s18  }
   0x7   : > { %p50_p4 = por %p49_p2, %p48_p1  ;;  %p780_p5 = por %p99_p3, %p48_p1 }
   0x8   : > { %p563_p6 = scmp.ge.s32.totalorder %s727_s14, 2 }
   0xa   : > { %127 = sbr.rel (%p563_p6) target bundleno = 37 (0x25), region = 24 }
   0xf   : > { %130 = sbr.rel (!%p50_p4) target bundleno = 37 (0x25), region = 28  ;;  %s132_s21 = sand.u32 (%p50_p4), 1, %s723_s13  }
  0x10   : > { %s655_s22 = sshll.u32 (%p50_p4), %s727_s14, 3  ;;  %s677_s23 = smul.u32 (%p50_p4), 144, %s132_s21 }
  0x11   : > { %s790_s26 = scalar_lea.vmem (%p50_p4), %s913_s1, %s655_s22 }
  0x12   : > { %v200_v0 = vld [vmem:[%s790_s26] sm:$0xff] (%p50_p4)  ;;  %v202_v1 = vld [vmem:[%s790_s26 + $0x10] sm:$0xff] (%p50_p4)  ;;  %s795_s27 = scalar_lea.vmem (%p50_p4), [#allocation2], %s677_s23 }
  0x13   : > { %v204_v2 = vld [vmem:[%s790_s26 + $0x20] sm:$0xff] (%p50_p4)  ;;  %201 = vst [vmem:[%s795_s27] sm:$0xff] (%p50_p4), %v200_v0  ;;  %v206_v3 = vld [vmem:[%s790_s26 + $0x30] sm:$0xff] (%p50_p4) }
  0x14   : > { %203 = vst [vmem:[%s795_s27 + $0x8] sm:$0xff] %v202_v1  ;;  %v208_v4 = vld [vmem:[%s790_s26 + $0x40] sm:$0xff]  ;;  %v210_v5 = vld [vmem:[%s790_s26 + $0x50] sm:$0xff] }
  0x15   : > { %205 = vst [vmem:[%s795_s27 + $0x10] sm:$0xff] %v204_v2  ;;  %v212_v6 = vld [vmem:[%s790_s26 + $0x60] sm:$0xff]  ;;  %v214_v7 = vld [vmem:[%s790_s26 + $0x70] sm:$0xff] }
  0x16   : > { %207 = vst [vmem:[%s795_s27 + $0x18] sm:$0xff] %v206_v3  ;;  %v216_v8 = vld [vmem:[%s790_s26 + $0x80] sm:$0xff]  ;;  %v218_v9 = vld [vmem:[%s790_s26 + $0x90] sm:$0xff] }
  0x17   : > { %209 = vst [vmem:[%s795_s27 + $0x20] sm:$0xff] %v208_v4  ;;  %v220_v10 = vld [vmem:[%s790_s26 + $0xa0] sm:$0xff]  ;;  %v222_v11 = vld [vmem:[%s790_s26 + $0xb0] sm:$0xff] }
  0x18   : > { %211 = vst [vmem:[%s795_s27 + $0x28] sm:$0xff] %v210_v5  ;;  %v224_v12 = vld [vmem:[%s790_s26 + $0xc0] sm:$0xff]  ;;  %v226_v13 = vld [vmem:[%s790_s26 + $0xd0] sm:$0xff] }
  0x19   : > { %213 = vst [vmem:[%s795_s27 + $0x30] sm:$0xff] %v212_v6  ;;  %v228_v14 = vld [vmem:[%s790_s26 + $0xe0] sm:$0xff]  ;;  %v230_v15 = vld [vmem:[%s790_s26 + $0xf0] sm:$0xff] }
  0x1a   : > { %215 = vst [vmem:[%s795_s27 + $0x38] sm:$0xff] %v214_v7  ;;  %v232_v16 = vld [vmem:[%s790_s26 + $0x100] sm:$0xff]  ;;  %v234_v17 = vld [vmem:[%s790_s26 + $0x110] sm:$0xff] }
  0x1b   : > { %217 = vst [vmem:[%s795_s27 + $0x40] sm:$0xff] %v216_v8 }
  0x1c   : > { %219 = vst [vmem:[%s795_s27 + $0x48] sm:$0xff] %v218_v9 }
  0x1d   : > { %221 = vst [vmem:[%s795_s27 + $0x50] sm:$0xff] %v220_v10 }
  0x1e   : > { %223 = vst [vmem:[%s795_s27 + $0x58] sm:$0xff] %v222_v11 }
  0x1f   : > { %225 = vst [vmem:[%s795_s27 + $0x60] sm:$0xff] %v224_v12 }
  0x20   : > { %227 = vst [vmem:[%s795_s27 + $0x68] sm:$0xff] %v226_v13 }
  0x21   : > { %229 = vst [vmem:[%s795_s27 + $0x70] sm:$0xff] %v228_v14 }
  0x22   : > { %231 = vst [vmem:[%s795_s27 + $0x78] sm:$0xff] %v230_v15 }
  0x23   : > { %233 = vst [vmem:[%s795_s27 + $0x80] sm:$0xff] %v232_v16 }
  0x24   : > { %235 = vst [vmem:[%s795_s27 + $0x88] sm:$0xff] %v234_v17 }
  0x25 PF: > { %p566_p7 = scmp.ge.s32.totalorder %s727_s14, 1  ;;  %p240_p8 = scmp.lt.s32.totalorder %s727_s14, 3 }
  0x27   : > { %p241_p9 = pnand %p566_p7, %p240_p8 }
  0x28   : > { %s247_s28 = sand.u32 (!%p241_p9), 1, %s719_s12  }
  0x29   : > { %244 = sbr.rel (%p241_p9) target bundleno = 236 (0xec), region = 66  ;;  %s567_s23 = sshll.u32 (!%p241_p9), %s247_s28, 5 }
  0x2a   : > { %s678_s29 = smul.u32 (!%p241_p9), 144, %s247_s28  ;;  %s268_s24 = scalar_lea.vmem (!%p241_p9), [#allocation3], %s567_s23 }
  0x2c   : > { %s835_s30 = scalar_lea.vmem (!%p241_p9), [#allocation2], %s678_s29 }
  0x2e   : > { %v634_v18 = vld [vmem:[%s835_s30 + $0x70] sm:$0xf]  ;;  %v671_v19 = vld [vmem:[%s835_s30 + $0x74] sm:$0xf0]  ;;  %v670_v20 = vld [vmem:[%s835_s30 + $0x74] sm:$0xf] }
  0x2f   : > { %v635_v21 = vor.u32 %v671_v19, %v634_v18  ;;  %v636_v22 = vld [vmem:[%s835_s30 + $0x78] sm:$0xf0]  ;;  %v626_v23 = vld [vmem:[%s835_s30 + $0x60] sm:$0xf]  ;;  %v669_v24 = vld [vmem:[%s835_s30 + $0x64] sm:$0xf0] }
  0x30   : > { %v639_v25 = vor.u32 %v670_v20, %v636_v22  ;;  %v668_v26 = vld [vmem:[%s835_s30 + $0x64] sm:$0xf]  ;;  %v628_v27 = vld [vmem:[%s835_s30 + $0x68] sm:$0xf0]  ;;  %v627_v28 = vor.u32 %v669_v24, %v626_v23  ;;  %v618_v30 = vld [vmem:[%s835_s30 + $0x50] sm:$0xf] }
  0x31   : > { %407 = vmatpush.bf16.msra.mxu0 %v635_v21  ;;  %v631_v29 = vor.u32 %v668_v26, %v628_v27  ;;  %v667_v31 = vld [vmem:[%s835_s30 + $0x54] sm:$0xf0]  ;;  %v666_v32 = vld [vmem:[%s835_s30 + $0x54] sm:$0xf]  ;;  %v620_v33 = vld [vmem:[%s835_s30 + $0x58] sm:$0xf0] }
  0x32   : > { %435 = vmatpush.bf16.msra.mxu2 %v639_v25  ;;  %v619_v34 = vor.u32 %v667_v31, %v618_v30  ;;  %v610_v35 = vld [vmem:[%s835_s30 + $0x40] sm:$0xf]  ;;  %v674_v36 = vld [vmem:[%s912_s0 + $0x4] sm:$0xf]  ;;  %v572_v37 = vld [vmem:[%s912_s0 + $0x8] sm:$0xf0]  ;;  %v623_v38 = vor.u32 %v666_v32, %v620_v33 }
  0x33   : > { %v665_v39 = vld [vmem:[%s835_s30 + $0x44] sm:$0xf0]  ;;  %v672_v40 = vld [vmem:[%s835_s30 + $0x84] sm:$0xf]  ;;  %v644_v41 = vld [vmem:[%s835_s30 + $0x88] sm:$0xf0]  ;;  %v575_v45 = vor.u32 %v674_v36, %v572_v37 }
  0x34   : > { %v664_v42 = vld [vmem:[%s835_s30 + $0x44] sm:$0xf]  ;;  %v612_v43 = vld [vmem:[%s835_s30 + $0x48] sm:$0xf0]  ;;  %v647_v44 = vor.u32 %v672_v40, %v644_v41  ;;  %v642_v46 = vld [vmem:[%s835_s30 + $0x80] sm:$0xf]  ;;  %v611_v47 = vor.u32 %v665_v39, %v610_v35 }
  0x35   : > { %408 = vmatpush.bf16.msra.mxu0 %v627_v28  ;;  %vm403_vm0 = vcmask 130048   ;;  %v673_v48 = vld [vmem:[%s835_s30 + $0x84] sm:$0xf0]  ;;  %v615_v49 = vor.u32 %v664_v42, %v612_v43  ;;  %v602_v50 = vld [vmem:[%s835_s30 + $0x30] sm:$0xf]  ;;  %v729_v56 = vmov 0  }
  0x36   : > { %436 = vmatpush.bf16.msra.mxu2 %v631_v29  ;;  %456 = vmatpush.bf16.msra.mxu3 %v647_v44  ;;  %v663_v51 = vld [vmem:[%s835_s30 + $0x34] sm:$0xf0]  ;;  %v643_v52 = vor.u32 %v673_v48, %v642_v46  ;;  %v292_v53 = vld [vmem:[%s914_s2] sm:$0xff]  ;;  %v604_v55 = vld [vmem:[%s835_s30 + $0x38] sm:$0xf0]  ;;  %s676_s12 = sshll.u32 (%p780_p5), %s560_s15, 4 }
  0x37   : > { %v662_v54 = vld [vmem:[%s835_s30 + $0x34] sm:$0xf]  ;;  %704 = vset.pattern.permute.xlu0 %v729_v56  ;;  %v603_v57 = vor.u32 %v663_v51, %v602_v50  ;;  %v594_v59 = vld [vmem:[%s835_s30 + $0x20] sm:$0xf]  ;;  %v661_v60 = vld [vmem:[%s835_s30 + $0x24] sm:$0xf0]  ;;  %s480_s27 = scalar_lea.vmem (%p780_p5), %s915_s3, %s676_s12 }
  0x38   : > { %428 = vmatpush.bf16.msra.mxu1 %v643_v52  ;;  %296 = vperm.xlu0 %704, %v292_v53   ;;  %v607_v58 = vor.u32 %v662_v54, %v604_v55  ;;  %v660_v61 = vld [vmem:[%s835_s30 + $0x24] sm:$0xf]  ;;  %v596_v62 = vld [vmem:[%s835_s30 + $0x28] sm:$0xf0]  ;;  %v595_v63 = vor.u32 %v661_v60, %v594_v59  ;;  %v586_v1 = vld [vmem:[%s835_s30 + $0x10] sm:$0xf] }
  0x39   : > { %409 = vmatpush.bf16.msra.mxu0 %v619_v34  ;;  %649 = vmatmul.msk.bf16.vlgmr.msra.gmra.mxu3 %vm403_vm0, %v575_v45  ;;  %v599_v0 = vor.u32 %v660_v61, %v596_v62  ;;  %v659_v2 = vld [vmem:[%s835_s30 + $0x14] sm:$0xf0]  ;;  %v658_v4 = vld [vmem:[%s835_s30 + $0x14] sm:$0xf]  ;;  %v588_v5 = vld [vmem:[%s835_s30 + $0x18] sm:$0xf0] }
  0x3a   : > { %437 = vmatpush.bf16.msra.mxu2 %v623_v38  ;;  %v293_v3 = vld [vmem:[%s914_s2 + $0x8] sm:$0xff]  ;;  %v587_v6 = vor.u32 %v659_v2, %v586_v1  ;;  %v591_v7 = vor.u32 %v658_v4, %v588_v5  ;;  %v578_v8 = vld [vmem:[%s835_s30] sm:$0xf]  ;;  %v656_v10 = vld [vmem:[%s835_s30 + $0x4] sm:$0xf] }
  0x3b   : > { %648 = vmatmul.msk.bf16.vlgmr.msra.gmra.mxu1 %vm403_vm0, %v575_v45  ;;  %v657_v9 = vld [vmem:[%s835_s30 + $0x4] sm:$0xf0]  ;;  %v580_v11 = vld [vmem:[%s835_s30 + $0x8] sm:$0xf0]  ;;  %v570_v13 = vld [vmem:[%s912_s0] sm:$0xf] }
  0x3c   : > { %v579_v12 = vor.u32 %v657_v9, %v578_v8  ;;  %v675_v14 = vld [vmem:[%s912_s0 + $0x4] sm:$0xf0]  ;;  %v583_v15 = vor.u32 %v656_v10, %v580_v11 }
  0x3d   : > { %410 = vmatpush.bf16.msra.mxu0 %v611_v47  ;;  %v571_v16 = vor.u32 %v675_v14, %v570_v13 }
  0x3e   : > { %438 = vmatpush.bf16.msra.mxu2 %v615_v49 }
  0x40   : > { %301 = vperm.xlu0 %704, %v293_v3  }
  0x41   : > { %411 = vmatpush.bf16.msra.mxu0 %v603_v57 }
  0x42   : > { %439 = vmatpush.bf16.msra.mxu2 %v607_v58 }
  0x45   : > { %412 = vmatpush.bf16.msra.mxu0 %v595_v63 }
  0x46   : > { %440 = vmatpush.bf16.msra.mxu2 %v599_v0 }
  0x49   : > { %413 = vmatpush.bf16.msra.mxu0 %v587_v6 }
  0x4a   : > { %441 = vmatpush.bf16.msra.mxu2 %v591_v7 }
  0x4d   : > { %414 = vmatpush.bf16.msra.mxu0 %v579_v12 }
  0x4e   : > { %442 = vmatpush.bf16.msra.mxu2 %v583_v15 }
  0x50   : > { %415 = vmatmul.bf16.vlgmr.msra.gmra.mxu0 %v571_v16 }
  0x51   : > { %443 = vmatmul.bf16.vlgmr.msra.gmra.mxu2 %v571_v16 }
  0xaa   : > { %v297_v17 = vpop.permute.xlu0 %296 }
  0xb2   : > { %v302_v25 = vpop.permute.xlu0 %301 }
  0xb8   : > { %v430_v19 = vpop.f32.mrf.mxu1 }
  0xbc   : > { %v458_v23 = vpop.f32.mrf.mxu3 }
  0xc0   : > { %v432_v30 = vpop.f32.mrf.mxu1 }
  0xc4   : > { %v460_v36 = vpop.f32.mrf.mxu3 }
  0xcd   : > { %v416_v18 = vpop.f32.mrf.mxu0 }
  0xce   : > { %v417_v20 = vadd.f32 %v416_v18, %v297_v17 }
  0xd0   : > { %v431_v21 = vadd.f32 %v430_v19, %v417_v20 }
  0xd2   : > { %v463_v22 = vmax.f32 %v431_v21, 0.0 }
  0xd4   : > { %467 = vst [vmem:[%s268_s24] sm:$0xff] %v463_v22  ;;  %v444_v24 = vpop.f32.mrf.mxu2 }
  0xd5   : > { %v445_v26 = vadd.f32 %v444_v24, %v297_v17  ;;  %v418_v27 = vpop.f32.mrf.mxu0 }
  0xd6   : > { %v419_v28 = vadd.f32 %v418_v27, %v302_v25 }
  0xd7   : > { %v459_v29 = vadd.f32 %v458_v23, %v445_v26 }
  0xd8   : > { %v433_v31 = vadd.f32 %v432_v30, %v419_v28 }
  0xd9   : > { %v464_v32 = vmax.f32 %v459_v29, 0.0 }
  0xda   : > { %v465_v33 = vmax.f32 %v433_v31, 0.0 }
  0xdb   : > { %468 = vst [vmem:[%s268_s24 + $0x8] sm:$0xff] %v464_v32  ;;  %v493_v39 = vld [vmem:[%s268_s24] sm:$0xff] (%p780_p5) }
  0xdc   : > { %469 = vst [vmem:[%s268_s24 + $0x10] sm:$0xff] %v465_v33  ;;  %v446_v34 = vpop.f32.mrf.mxu2 }
  0xdd   : > { %v447_v35 = vadd.f32 %v446_v34, %v302_v25  ;;  %494 = vst [vmem:[%s480_s27] sm:$0xff] (%p780_p5), %v493_v39 }
  0xdf   : > { %v461_v37 = vadd.f32 %v460_v36, %v447_v35  ;;  %477 = sbr.rel (!%p780_p5) target bundleno = 236 (0xec), region = 74 }
  0xe1   : > { %v466_v38 = vmax.f32 %v461_v37, 0.0 }
  0xe2   : > { %v495_v40 = vld [vmem:[%s268_s24 + $0x8] sm:$0xff] (%p780_p5) }
  0xe3   : > { %470 = vst [vmem:[%s268_s24 + $0x18] sm:$0xff] %v466_v38  ;;  %v497_v41 = vld [vmem:[%s268_s24 + $0x10] sm:$0xff] (%p780_p5) }
  0xe4   : > { %496 = vst [vmem:[%s480_s27 + $0x8] sm:$0xff] %v495_v40 }
  0xe5   : > { %498 = vst [vmem:[%s480_s27 + $0x20] sm:$0xff] %v497_v41 }
  0xea   : > { %v499_v42 = vld [vmem:[%s268_s24 + $0x18] sm:$0xff] }
  0xeb   : > { %500 = vst [vmem:[%s480_s27 + $0x28] sm:$0xff] %v499_v42 }
  0xec PF: > { %p10_p10 = scmp.ge.s32.totalorder %s767_s16, 4   ;;  %s917_s12 = smov %s723_s13 }
  0xed   : > { %s918_s13 = smov %s778_s19  ;;  %s919_s14 = smov %s767_s16 }
  0xee   :  { %12 = sbr.rel (!%p10_p10) target bundleno = 2 (0x2), region = 128 }

// kernel: enc_forward.145
= control target key start
LH: loop header
LB: loop body
LE: loop exit
PB: predicated region body
PF: predicated region fallthrough
CT: control target
= control target key end

     0   :  { %s937_s18 = smov 0   ;;  %s939_s19 = smov 0   ;;  %s1140_s0 = inlined_call_operand.vmem [shape: bf16[16,144], index: 0, kind: input, shape index: {}]   ;;  %s1141_s1 = inlined_call_operand.vmem [shape: bf16[144,512], index: 1, kind: input, shape index: {}]   ;;  %s1142_s2 = inlined_call_operand.vmem [shape: f32[16,1], index: 2, kind: input, shape index: {}]   ;;  %s1143_s3 = inlined_call_operand.vmem [shape: f32[16,16], index: 3, kind: input, shape index: {}]   ;;  %s1144_s4 = inlined_call_operand.vmem [shape: f32[16,1], index: 4, kind: input, shape index: {}]   ;;  %s1145_s5 = inlined_call_operand.vmem [shape: f32[16,512], index: 5, kind: output, shape index: {}]  }
   0x1   :  { %s941_s20 = smov 0  }
   0x2 LB: > { %s724_s21 = sadd.s32 4294967295, %s904_s20   ;;  %s954_s22 = sadd.s32 1, %s904_s20   ;;  %s904_s20 = sphi %s941_s20, %s1149_s20   ;;  %s900_s19 = sphi %s939_s19, %s1148_s19   ;;  %s896_s18 = sphi %s937_s18, %s1147_s18  }
   0x3   : > { %s40_s23 = ssub.s32 %s904_s20, %s954_s22  ;;  %s43_s24 = sadd.s32 1, %s900_s19 }
   0x4   : > { %p41_p0 = scmp.eq.s32.totalorder %s40_s23, 0  ;;  %p50_p1 = scmp.ne.s32.totalorder %s900_s19, %s896_s18 }
   0x5   : > { %p51_p2 = scmp.eq.s32.totalorder %s904_s20, 0  ;;  %p143_p3 = scmp.eq.s32.totalorder %s724_s21, 1 }
   0x6   : > { %s965_s25 = scalar_select %p41_p0, %s900_s19, %s43_s24  }
   0x7   : > { %p52_p4 = por %p51_p2, %p50_p1  ;;  %p967_p5 = por %p143_p3, %p50_p1 }
   0x8   : > { %p727_p6 = scmp.ge.s32.totalorder %s904_s20, 2 }
   0xa   : > { %177 = sbr.rel (%p727_p6) target bundleno = 37 (0x25), region = 32 }
   0xf   : > { %180 = sbr.rel (!%p52_p4) target bundleno = 37 (0x25), region = 36  ;;  %s182_s27 = sand.u32 (%p52_p4), 1, %s900_s19  }
  0x10   : > { %s823_s28 = sshll.u32 (%p52_p4), %s904_s20, 3  ;;  %s845_s29 = smul.u32 (%p52_p4), 144, %s182_s27 }
  0x11   : > { %s977_s7 = scalar_lea.vmem (%p52_p4), %s1141_s1, %s823_s28 }
  0x12   : > { %v250_v0 = vld [vmem:[%s977_s7] sm:$0xff] (%p52_p4)  ;;  %v252_v1 = vld [vmem:[%s977_s7 + $0x10] sm:$0xff] (%p52_p4)  ;;  %s982_s8 = scalar_lea.vmem (%p52_p4), [#allocation2], %s845_s29 }
  0x13   : > { %v254_v2 = vld [vmem:[%s977_s7 + $0x20] sm:$0xff] (%p52_p4)  ;;  %251 = vst [vmem:[%s982_s8] sm:$0xff] (%p52_p4), %v250_v0  ;;  %v256_v3 = vld [vmem:[%s977_s7 + $0x30] sm:$0xff] (%p52_p4) }
  0x14   : > { %253 = vst [vmem:[%s982_s8 + $0x8] sm:$0xff] %v252_v1  ;;  %v258_v4 = vld [vmem:[%s977_s7 + $0x40] sm:$0xff]  ;;  %v260_v5 = vld [vmem:[%s977_s7 + $0x50] sm:$0xff] }
  0x15   : > { %255 = vst [vmem:[%s982_s8 + $0x10] sm:$0xff] %v254_v2  ;;  %v262_v6 = vld [vmem:[%s977_s7 + $0x60] sm:$0xff]  ;;  %v264_v7 = vld [vmem:[%s977_s7 + $0x70] sm:$0xff] }
  0x16   : > { %257 = vst [vmem:[%s982_s8 + $0x18] sm:$0xff] %v256_v3  ;;  %v266_v8 = vld [vmem:[%s977_s7 + $0x80] sm:$0xff]  ;;  %v268_v9 = vld [vmem:[%s977_s7 + $0x90] sm:$0xff] }
  0x17   : > { %259 = vst [vmem:[%s982_s8 + $0x20] sm:$0xff] %v258_v4  ;;  %v270_v10 = vld [vmem:[%s977_s7 + $0xa0] sm:$0xff]  ;;  %v272_v11 = vld [vmem:[%s977_s7 + $0xb0] sm:$0xff] }
  0x18   : > { %261 = vst [vmem:[%s982_s8 + $0x28] sm:$0xff] %v260_v5  ;;  %v274_v12 = vld [vmem:[%s977_s7 + $0xc0] sm:$0xff]  ;;  %v276_v13 = vld [vmem:[%s977_s7 + $0xd0] sm:$0xff] }
  0x19   : > { %263 = vst [vmem:[%s982_s8 + $0x30] sm:$0xff] %v262_v6  ;;  %v278_v14 = vld [vmem:[%s977_s7 + $0xe0] sm:$0xff]  ;;  %v280_v15 = vld [vmem:[%s977_s7 + $0xf0] sm:$0xff] }
  0x1a   : > { %265 = vst [vmem:[%s982_s8 + $0x38] sm:$0xff] %v264_v7  ;;  %v282_v16 = vld [vmem:[%s977_s7 + $0x100] sm:$0xff]  ;;  %v284_v17 = vld [vmem:[%s977_s7 + $0x110] sm:$0xff] }
  0x1b   : > { %267 = vst [vmem:[%s982_s8 + $0x40] sm:$0xff] %v266_v8 }
  0x1c   : > { %269 = vst [vmem:[%s982_s8 + $0x48] sm:$0xff] %v268_v9 }
  0x1d   : > { %271 = vst [vmem:[%s982_s8 + $0x50] sm:$0xff] %v270_v10 }
  0x1e   : > { %273 = vst [vmem:[%s982_s8 + $0x58] sm:$0xff] %v272_v11 }
  0x1f   : > { %275 = vst [vmem:[%s982_s8 + $0x60] sm:$0xff] %v274_v12 }
  0x20   : > { %277 = vst [vmem:[%s982_s8 + $0x68] sm:$0xff] %v276_v13 }
  0x21   : > { %279 = vst [vmem:[%s982_s8 + $0x70] sm:$0xff] %v278_v14 }
  0x22   : > { %281 = vst [vmem:[%s982_s8 + $0x78] sm:$0xff] %v280_v15 }
  0x23   : > { %283 = vst [vmem:[%s982_s8 + $0x80] sm:$0xff] %v282_v16 }
  0x24   : > { %285 = vst [vmem:[%s982_s8 + $0x88] sm:$0xff] %v284_v17 }
  0x25 PF: > { %p730_p7 = scmp.ge.s32.totalorder %s904_s20, 1  ;;  %p290_p8 = scmp.lt.s32.totalorder %s904_s20, 3 }
  0x27   : > { %p291_p9 = pnand %p730_p7, %p290_p8 }
  0x28   : > { %s297_s9 = sand.u32 (!%p291_p9), 1, %s896_s18  }
  0x29   : > { %294 = sbr.rel (%p291_p9) target bundleno = 401 (0x191), region = 74  ;;  %s731_s15 = sshll.u32 (!%p291_p9), %s297_s9, 5 }
  0x2a   : > { %s846_s10 = smul.u32 (!%p291_p9), 144, %s297_s9  ;;  %s1110_s16 = scalar_lea.vmem (!%p291_p9), [#allocation3], %s731_s15 }
  0x2c   : > { %s1022_s11 = scalar_lea.vmem (!%p291_p9), [#allocation2], %s846_s10 }
  0x2e   : > { %v798_v18 = vld [vmem:[%s1022_s11 + $0x70] sm:$0xf]  ;;  %v839_v19 = vld [vmem:[%s1022_s11 + $0x74] sm:$0xf0]  ;;  %v838_v20 = vld [vmem:[%s1022_s11 + $0x74] sm:$0xf] }
  0x2f   : > { %v799_v21 = vor.u32 %v839_v19, %v798_v18  ;;  %v800_v22 = vld [vmem:[%s1022_s11 + $0x78] sm:$0xf0]  ;;  %v790_v23 = vld [vmem:[%s1022_s11 + $0x60] sm:$0xf]  ;;  %v837_v24 = vld [vmem:[%s1022_s11 + $0x64] sm:$0xf0] }
  0x30   : > { %v803_v25 = vor.u32 %v838_v20, %v800_v22  ;;  %v836_v26 = vld [vmem:[%s1022_s11 + $0x64] sm:$0xf]  ;;  %v792_v27 = vld [vmem:[%s1022_s11 + $0x68] sm:$0xf0]  ;;  %v791_v28 = vor.u32 %v837_v24, %v790_v23  ;;  %v782_v30 = vld [vmem:[%s1022_s11 + $0x50] sm:$0xf] }
  0x31   : > { %461 = vmatpush.bf16.msra.mxu0 %v799_v21  ;;  %v795_v29 = vor.u32 %v836_v26, %v792_v27  ;;  %v835_v31 = vld [vmem:[%s1022_s11 + $0x54] sm:$0xf0]  ;;  %v834_v32 = vld [vmem:[%s1022_s11 + $0x54] sm:$0xf]  ;;  %v784_v33 = vld [vmem:[%s1022_s11 + $0x58] sm:$0xf0] }
  0x32   : > { %489 = vmatpush.bf16.msra.mxu2 %v803_v25  ;;  %v783_v34 = vor.u32 %v835_v31, %v782_v30  ;;  %v774_v35 = vld [vmem:[%s1022_s11 + $0x40] sm:$0xf]  ;;  %v842_v36 = vld [vmem:[%s1140_s0 + $0x4] sm:$0xf]  ;;  %v736_v37 = vld [vmem:[%s1140_s0 + $0x8] sm:$0xf0]  ;;  %v787_v38 = vor.u32 %v834_v32, %v784_v33 }
  0x33   : > { %v833_v39 = vld [vmem:[%s1022_s11 + $0x44] sm:$0xf0]  ;;  %v840_v40 = vld [vmem:[%s1022_s11 + $0x84] sm:$0xf]  ;;  %v808_v41 = vld [vmem:[%s1022_s11 + $0x88] sm:$0xf0]  ;;  %v739_v45 = vor.u32 %v842_v36, %v736_v37 }
  0x34   : > { %v832_v42 = vld [vmem:[%s1022_s11 + $0x44] sm:$0xf]  ;;  %v776_v43 = vld [vmem:[%s1022_s11 + $0x48] sm:$0xf0]  ;;  %v811_v44 = vor.u32 %v840_v40, %v808_v41  ;;  %v775_v46 = vor.u32 %v833_v39, %v774_v35  ;;  %vm457_vm0 = vcmask 130048   ;;  %v906_v56 = vmov 0  }
  0x35   : > { %462 = vmatpush.bf16.msra.mxu0 %v791_v28  ;;  %v806_v47 = vld [vmem:[%s1022_s11 + $0x80] sm:$0xf]  ;;  %v841_v48 = vld [vmem:[%s1022_s11 + $0x84] sm:$0xf0]  ;;  %v779_v49 = vor.u32 %v832_v42, %v776_v43  ;;  %v766_v50 = vld [vmem:[%s1022_s11 + $0x30] sm:$0xf]  ;;  %872 = vset.pattern.permute.xlu0 %v906_v56 }
  0x36   : > { %490 = vmatpush.bf16.msra.mxu2 %v795_v29  ;;  %510 = vmatpush.bf16.msra.mxu3 %v811_v44  ;;  %v831_v51 = vld [vmem:[%s1022_s11 + $0x34] sm:$0xf0]  ;;  %v807_v52 = vor.u32 %v841_v48, %v806_v47  ;;  %v830_v54 = vld [vmem:[%s1022_s11 + $0x34] sm:$0xf]  ;;  %v768_v55 = vld [vmem:[%s1022_s11 + $0x38] sm:$0xf0] }
  0x37   : > { %v347_v53 = vld [vmem:[%s1142_s2 + $0x8] sm:$0xff]  ;;  %873 = vset.pattern.permute.xlu1 %v906_v56  ;;  %v767_v57 = vor.u32 %v831_v51, %v766_v50  ;;  %v771_v58 = vor.u32 %v830_v54, %v768_v55  ;;  %v758_v59 = vld [vmem:[%s1022_s11 + $0x20] sm:$0xf]  ;;  %v828_v61 = vld [vmem:[%s1022_s11 + $0x24] sm:$0xf]  ;;  %s844_s18 = sshll.u32 (%p967_p5), %s724_s21, 4 }
  0x38   : > { %482 = vmatpush.bf16.msra.mxu1 %v807_v52  ;;  %355 = vperm.xlu0 %872, %v347_v53   ;;  %v829_v60 = vld [vmem:[%s1022_s11 + $0x24] sm:$0xf0]  ;;  %v760_v62 = vld [vmem:[%s1022_s11 + $0x28] sm:$0xf0]  ;;  %v750_v1 = vld [vmem:[%s1022_s11 + $0x10] sm:$0xf]  ;;  %s644_s23 = scalar_lea.vmem (%p967_p5), %s1145_s5, %s844_s18 }
  0x39   : > { %463 = vmatpush.bf16.msra.mxu0 %v783_v34  ;;  %813 = vmatmul.msk.bf16.vlgmr.msra.gmra.mxu3 %vm457_vm0, %v739_v45  ;;  %v759_v63 = vor.u32 %v829_v60, %v758_v59  ;;  %v763_v0 = vor.u32 %v828_v61, %v760_v62  ;;  %v827_v2 = vld [vmem:[%s1022_s11 + $0x14] sm:$0xf0]  ;;  %v346_v3 = vld [vmem:[%s1142_s2] sm:$0xff]  ;;  %v752_v5 = vld [vmem:[%s1022_s11 + $0x18] sm:$0xf0] }
  0x3a   : > { %491 = vmatpush.bf16.msra.mxu2 %v787_v38  ;;  %v826_v4 = vld [vmem:[%s1022_s11 + $0x14] sm:$0xf]  ;;  %v751_v6 = vor.u32 %v827_v2, %v750_v1  ;;  %v742_v8 = vld [vmem:[%s1022_s11] sm:$0xf]  ;;  %v825_v9 = vld [vmem:[%s1022_s11 + $0x4] sm:$0xf0] }
  0x3b   : > { %812 = vmatmul.msk.bf16.vlgmr.msra.gmra.mxu1 %vm457_vm0, %v739_v45  ;;  %v755_v7 = vor.u32 %v826_v4, %v752_v5  ;;  %v824_v10 = vld [vmem:[%s1022_s11 + $0x4] sm:$0xf]  ;;  %v744_v11 = vld [vmem:[%s1022_s11 + $0x8] sm:$0xf0]  ;;  %v743_v12 = vor.u32 %v825_v9, %v742_v8  ;;  %v734_v13 = vld [vmem:[%s1140_s0] sm:$0xf] }
  0x3c   : > { %v843_v14 = vld [vmem:[%s1140_s0 + $0x4] sm:$0xf0]  ;;  %v747_v15 = vor.u32 %v824_v10, %v744_v11  ;;  %v523_v17 = vld [vmem:[%s1144_s4] sm:$0xff] }
  0x3d   : > { %464 = vmatpush.bf16.msra.mxu0 %v775_v46  ;;  %v735_v16 = vor.u32 %v843_v14, %v734_v13  ;;  %527 = vperm.xlu1 %873, %v523_v17   ;;  %v524_v21 = vld [vmem:[%s1144_s4 + $0x8] sm:$0xff]  ;;  %v517_v35 = vld [vmem:[%s1143_s3] sm:$0xff] }
  0x3e   : > { %492 = vmatpush.bf16.msra.mxu2 %v779_v49  ;;  %v518_v42 = vld [vmem:[%s1143_s3 + $0x8] sm:$0xff] }
  0x40   : > { %350 = vperm.xlu0 %872, %v346_v3  }
  0x41   : > { %465 = vmatpush.bf16.msra.mxu0 %v767_v57 }
  0x42   : > { %493 = vmatpush.bf16.msra.mxu2 %v771_v58 }
  0x45   : > { %466 = vmatpush.bf16.msra.mxu0 %v759_v63  ;;  %532 = vperm.xlu1 %873, %v524_v21  }
  0x46   : > { %494 = vmatpush.bf16.msra.mxu2 %v763_v0 }
  0x49   : > { %467 = vmatpush.bf16.msra.mxu0 %v751_v6 }
  0x4a   : > { %495 = vmatpush.bf16.msra.mxu2 %v755_v7 }
  0x4d   : > { %468 = vmatpush.bf16.msra.mxu0 %v743_v12 }
  0x4e   : > { %496 = vmatpush.bf16.msra.mxu2 %v747_v15 }
  0x50   : > { %469 = vmatmul.bf16.vlgmr.msra.gmra.mxu0 %v735_v16 }
  0x51   : > { %497 = vmatmul.bf16.vlgmr.msra.gmra.mxu2 %v735_v16 }
  0xaa   : > { %v356_v18 = vpop.permute.xlu0 %355 }
  0xaf   : > { %v528_v43 = vpop.permute.xlu1 %527 }
  0xb2   : > { %v351_v22 = vpop.permute.xlu0 %350 }
  0xb7   : > { %v533_v46 = vpop.permute.xlu1 %532 }
  0xb8   : > { %v484_v19 = vpop.f32.mrf.mxu1 }
  0xbc   : > { %v512_v23 = vpop.f32.mrf.mxu3 }
  0xc0   : > { %v486_v27 = vpop.f32.mrf.mxu1 }
  0xc4   : > { %v514_v37 = vpop.f32.mrf.mxu3 }
  0xcd   : > { %v470_v20 = vpop.f32.mrf.mxu0 }
  0xce   : > { %v471_v24 = vadd.f32 %v470_v20, %v351_v22 }
  0xd0   : > { %v485_v29 = vadd.f32 %v484_v19, %v471_v24 }
  0xd2   : > { %v519_v34 = vmul.f32 %v485_v29, %v485_v29 }
  0xd4   : > { %v498_v25 = vpop.f32.mrf.mxu2 }
  0xd5   : > { %v472_v26 = vpop.f32.mrf.mxu0  ;;  %v499_v32 = vadd.f32 %v498_v25, %v351_v22 }
  0xd6   : > { %v473_v28 = vadd.f32 %v472_v26, %v356_v18 }
  0xd7   : > { %v1093_v38 = vadd.f32 %v512_v23, %v499_v32 }
  0xd8   : > { %v1086_v30 = vadd.f32 %v486_v27, %v473_v28 }
  0xd9   : > { %v520_v41 = vmul.f32 %v1093_v38, %v1093_v38 }
  0xda   : > { %v521_v31 = vmul.f32 %v1086_v30, %v1086_v30 }
  0xdc   : > { %v500_v33 = vpop.f32.mrf.mxu2  ;;  %555 = vmatpush.msrb.mxu1 %v521_v31 }
  0xdd   : > { %v501_v36 = vadd.f32 %v500_v33, %v356_v18 }
  0xde   : > { %556 = vmatpush.msrb.mxu1 %v519_v34 }
  0xdf   : > { %v1095_v39 = vadd.f32 %v514_v37, %v501_v36  ;;  %814 = vmatmul.msk.f32.vlgmr.msrb.gmra.mxu1 %vm457_vm0, %v517_v35 }
  0xe1   : > { %v522_v40 = vmul.f32 %v1095_v39, %v1095_v39 }
  0xe3   : > { %578 = vmatpush.msrb.mxu3 %v522_v40 }
  0xe5   : > { %579 = vmatpush.msrb.mxu3 %v520_v41 }
  0xe6   : > { %816 = vmatmul.msk.f32.vlgmr.msrb.gmra.mxu3 %vm457_vm0, %v517_v35 }
  0xe7   : > { %815 = vmatmul.msk.f32.gmra.mxu1 %vm457_vm0, %v518_v42 }
  0xee   : > { %817 = vmatmul.msk.f32.gmra.mxu3 %vm457_vm0, %v518_v42 }
 0x15c   : > { %v558_v44 = vpop.f32.mrf.mxu1 }
 0x15d   : > { %v559_v45 = vadd.f32 %v558_v44, %v528_v43 }
 0x15f   : > { %874 = vrsqrt.f32 %v559_v45  ;;  %vm593_vm1 = vweird.f32 %v559_v45 }
 0x164   : > { %v561_v47 = vpop.f32.mrf.mxu1 }
 0x165   : > { %v875_v48 = vpop.eup %874  ;;  %v562_v49 = vadd.f32 %v561_v47, %v533_v46 }
 0x166   : > { %v588_v50 = vmul.f32 %v875_v48, %v559_v45  ;;  %vm594_vm2 = vweird.f32 %v875_v48 }
 0x167   : > { %876 = vrsqrt.f32 %v562_v49  ;;  %vm595_vm3 = vmor %vm593_vm1, %vm594_vm2  ;;  %vm613_vm5 = vweird.f32 %v562_v49 }
 0x168   : > { %v589_v51 = vmul.f32 %v875_v48, %v588_v50 }
 0x169   : > { %v581_v52 = vpop.f32.mrf.mxu3 }
 0x16a   : > { %v590_v53 = vmul.f32 0.5, %v589_v51  ;;  %v582_v54 = vadd.f32 %v581_v52, %v528_v43 }
 0x16c   : > { %v591_v55 = vsub.f32 1.5, %v590_v53  ;;  %878 = vrsqrt.f32 %v582_v54  ;;  %vm603_vm8 = vweird.f32 %v582_v54 }
 0x16d   : > { %v877_v56 = vpop.eup %876 }
 0x16e   : > { %v592_v57 = vmul.f32 %v875_v48, %v591_v55  ;;  %v608_v58 = vmul.f32 %v877_v56, %v562_v49  ;;  %vm614_vm4 = vweird.f32 %v877_v56 }
 0x16f   : > { %vm615_vm6 = vmor %vm613_vm5, %vm614_vm4 }
 0x170   : > { %v596_v59 = vsel %vm595_vm3, %v875_v48, %v592_v57  ;;  %v609_v60 = vmul.f32 %v877_v56, %v608_v58 }
 0x171   : > { %v627_v61 = vmul.f32 %v596_v59, %v485_v29  ;;  %v584_v62 = vpop.f32.mrf.mxu3 }
 0x172   : > { %v879_v63 = vpop.eup %878  ;;  %v610_v0 = vmul.f32 0.5, %v609_v60  ;;  %v585_v1 = vadd.f32 %v584_v62, %v533_v46 }
 0x173   : > { %631 = vst [vmem:[%s1110_s16] sm:$0xff] %v627_v61  ;;  %v598_v2 = vmul.f32 %v879_v63, %v582_v54  ;;  %vm604_vm7 = vweird.f32 %v879_v63 }
 0x174   : > { %v611_v3 = vsub.f32 1.5, %v610_v0  ;;  %880 = vrsqrt.f32 %v585_v1  ;;  %vm605_vm9 = vmor %vm603_vm8, %vm604_vm7  ;;  %vm623_vm11 = vweird.f32 %v585_v1 }
 0x175   : > { %v599_v4 = vmul.f32 %v879_v63, %v598_v2 }
 0x176   : > { %v612_v5 = vmul.f32 %v877_v56, %v611_v3 }
 0x177   : > { %v600_v6 = vmul.f32 0.5, %v599_v4 }
 0x178   : > { %v616_v7 = vsel %vm615_vm6, %v877_v56, %v612_v5 }
 0x179   : > { %v629_v8 = vmul.f32 %v616_v7, %v1086_v30  ;;  %v601_v9 = vsub.f32 1.5, %v600_v6 }
 0x17a   : > { %v881_v10 = vpop.eup %880  ;;  %v657_v21 = vld [vmem:[%s1110_s16] sm:$0xff] (%p967_p5) }
 0x17b   : > { %633 = vst [vmem:[%s1110_s16 + $0x10] sm:$0xff] %v629_v8  ;;  %v602_v11 = vmul.f32 %v879_v63, %v601_v9  ;;  %v618_v12 = vmul.f32 %v881_v10, %v585_v1  ;;  %vm624_vm10 = vweird.f32 %v881_v10 }
 0x17c   : > { %vm625_vm12 = vmor %vm623_vm11, %vm624_vm10  ;;  %658 = vst [vmem:[%s644_s23] sm:$0xff] (%p967_p5), %v657_v21 }
 0x17d   : > { %v606_v13 = vsel %vm605_vm9, %v879_v63, %v602_v11  ;;  %v619_v14 = vmul.f32 %v881_v10, %v618_v12 }
 0x17e   : > { %v628_v15 = vmul.f32 %v606_v13, %v1093_v38 }
 0x17f   : > { %v620_v16 = vmul.f32 0.5, %v619_v14 }
 0x180   : > { %632 = vst [vmem:[%s1110_s16 + $0x8] sm:$0xff] %v628_v15 }
 0x181   : > { %v621_v17 = vsub.f32 1.5, %v620_v16 }
 0x182   : > { %v661_v23 = vld [vmem:[%s1110_s16 + $0x10] sm:$0xff] (%p967_p5) }
 0x183   : > { %v622_v18 = vmul.f32 %v881_v10, %v621_v17  ;;  %662 = vst [vmem:[%s644_s23 + $0x20] sm:$0xff] (%p967_p5), %v661_v23 }
 0x184   : > { %641 = sbr.rel (!%p967_p5) target bundleno = 401 (0x191), region = 82 }
 0x185   : > { %v626_v19 = vsel %vm625_vm12, %v881_v10, %v622_v18 }
 0x186   : > { %v630_v20 = vmul.f32 %v626_v19, %v1095_v39 }
 0x187   : > { %v659_v22 = vld [vmem:[%s1110_s16 + $0x8] sm:$0xff] (%p967_p5) }
 0x188   : > { %634 = vst [vmem:[%s1110_s16 + $0x18] sm:$0xff] %v630_v20 }
 0x189   : > { %660 = vst [vmem:[%s644_s23 + $0x8] sm:$0xff] %v659_v22 }
 0x18f   : > { %v663_v24 = vld [vmem:[%s1110_s16 + $0x18] sm:$0xff] }
 0x190   : > { %664 = vst [vmem:[%s644_s23 + $0x28] sm:$0xff] %v663_v24 }
 0x191 PF: > { %p12_p10 = scmp.ge.s32.totalorder %s954_s22, 4   ;;  %s1147_s18 = smov %s900_s19 }
 0x192   : > { %s1148_s19 = smov %s965_s25  ;;  %s1149_s20 = smov %s954_s22 }
 0x193   :  { %14 = sbr.rel (!%p12_p10) target bundleno = 2 (0x2), region = 136 }

// kernel: enc_forward.146
= control target key start
LH: loop header
LB: loop body
LE: loop exit
PB: predicated region body
PF: predicated region fallthrough
CT: control target
= control target key end

     0   :  { %s1047_s21 = smov 0   ;;  %s1049_s22 = smov 0   ;;  %s1269_s0 = inlined_call_operand.vmem [shape: bf16[16,144], index: 0, kind: input, shape index: {}]   ;;  %s1270_s1 = inlined_call_operand.vmem [shape: bf16[144,512], index: 1, kind: input, shape index: {}]   ;;  %s1271_s2 = inlined_call_operand.vmem [shape: f32[16,1], index: 2, kind: input, shape index: {}]   ;;  %s1272_s3 = inlined_call_operand.vmem [shape: f32[16,16], index: 3, kind: input, shape index: {}]   ;;  %s1273_s4 = inlined_call_operand.vmem [shape: f32[16,1], index: 4, kind: input, shape index: {}]   ;;  %s1274_s5 = inlined_call_operand.vmem [shape: f32[16,512], index: 5, kind: input, shape index: {}]   ;;  %s1275_s6 = inlined_call_operand.vmem [shape: f32[16,512], index: 6, kind: output, shape index: {}]  }
   0x1   :  { %s1051_s23 = smov 0  }
   0x2 LB: > { %s824_s24 = sadd.s32 4294967295, %s1009_s23   ;;  %s1064_s25 = sadd.s32 1, %s1009_s23   ;;  %s1009_s23 = sphi %s1051_s23, %s1280_s23   ;;  %s1005_s22 = sphi %s1049_s22, %s1279_s22   ;;  %s1001_s21 = sphi %s1047_s21, %s1278_s21  }
   0x3   : > { %s41_s26 = ssub.s32 %s1009_s23, %s1064_s25  ;;  %s44_s27 = sadd.s32 1, %s1005_s22 }
   0x4   : > { %p42_p0 = scmp.eq.s32.totalorder %s41_s26, 0  ;;  %p51_p1 = scmp.ne.s32.totalorder %s1005_s22, %s1001_s21 }
   0x5   : > { %p52_p2 = scmp.eq.s32.totalorder %s1009_s23, 0  ;;  %p170_p3 = scmp.eq.s32.totalorder %s824_s24, 1 }
   0x6   : > { %s1075_s28 = scalar_select %p42_p0, %s1005_s22, %s44_s27  }
   0x7   : > { %p1077_p4 = por %p52_p2, %p51_p1  ;;  %p1081_p5 = por %p170_p3, %p51_p1 }
   0x8   : > { %p827_p6 = scmp.ge.s32.totalorder %s1009_s23, 2 }
   0xa   : > { %204 = sbr.rel (%p827_p6) target bundleno = 45 (0x2d), region = 32 }
   0xf   : > { %207 = sbr.rel (!%p1077_p4) target bundleno = 37 (0x25), region = 36  ;;  %s209_s7 = sand.u32 (%p1077_p4), 1, %s1005_s22  }
  0x10   : > { %s927_s8 = sshll.u32 (%p1077_p4), %s1009_s23, 3  ;;  %s950_s9 = smul.u32 (%p1077_p4), 144, %s209_s7 }
  0x11   : > { %s1093_s12 = scalar_lea.vmem (%p1077_p4), %s1270_s1, %s927_s8 }
  0x12   : > { %v277_v0 = vld [vmem:[%s1093_s12] sm:$0xff] (%p1077_p4)  ;;  %v279_v1 = vld [vmem:[%s1093_s12 + $0x10] sm:$0xff] (%p1077_p4)  ;;  %s1098_s13 = scalar_lea.vmem (%p1077_p4), [#allocation2], %s950_s9 }
  0x13   : > { %v281_v2 = vld [vmem:[%s1093_s12 + $0x20] sm:$0xff] (%p1077_p4)  ;;  %278 = vst [vmem:[%s1098_s13] sm:$0xff] (%p1077_p4), %v277_v0  ;;  %v283_v3 = vld [vmem:[%s1093_s12 + $0x30] sm:$0xff] (%p1077_p4) }
  0x14   : > { %280 = vst [vmem:[%s1098_s13 + $0x8] sm:$0xff] %v279_v1  ;;  %v285_v4 = vld [vmem:[%s1093_s12 + $0x40] sm:$0xff]  ;;  %v287_v5 = vld [vmem:[%s1093_s12 + $0x50] sm:$0xff] }
  0x15   : > { %282 = vst [vmem:[%s1098_s13 + $0x10] sm:$0xff] %v281_v2  ;;  %v289_v6 = vld [vmem:[%s1093_s12 + $0x60] sm:$0xff]  ;;  %v291_v7 = vld [vmem:[%s1093_s12 + $0x70] sm:$0xff] }
  0x16   : > { %284 = vst [vmem:[%s1098_s13 + $0x18] sm:$0xff] %v283_v3  ;;  %v293_v8 = vld [vmem:[%s1093_s12 + $0x80] sm:$0xff]  ;;  %v295_v9 = vld [vmem:[%s1093_s12 + $0x90] sm:$0xff] }
  0x17   : > { %286 = vst [vmem:[%s1098_s13 + $0x20] sm:$0xff] %v285_v4  ;;  %v297_v10 = vld [vmem:[%s1093_s12 + $0xa0] sm:$0xff]  ;;  %v299_v11 = vld [vmem:[%s1093_s12 + $0xb0] sm:$0xff] }
  0x18   : > { %288 = vst [vmem:[%s1098_s13 + $0x28] sm:$0xff] %v287_v5  ;;  %v301_v12 = vld [vmem:[%s1093_s12 + $0xc0] sm:$0xff]  ;;  %v303_v13 = vld [vmem:[%s1093_s12 + $0xd0] sm:$0xff] }
  0x19   : > { %290 = vst [vmem:[%s1098_s13 + $0x30] sm:$0xff] %v289_v6  ;;  %v305_v14 = vld [vmem:[%s1093_s12 + $0xe0] sm:$0xff]  ;;  %v307_v15 = vld [vmem:[%s1093_s12 + $0xf0] sm:$0xff] }
  0x1a   : > { %292 = vst [vmem:[%s1098_s13 + $0x38] sm:$0xff] %v291_v7  ;;  %v309_v16 = vld [vmem:[%s1093_s12 + $0x100] sm:$0xff]  ;;  %v311_v17 = vld [vmem:[%s1093_s12 + $0x110] sm:$0xff] }
  0x1b   : > { %294 = vst [vmem:[%s1098_s13 + $0x40] sm:$0xff] %v293_v8 }
  0x1c   : > { %296 = vst [vmem:[%s1098_s13 + $0x48] sm:$0xff] %v295_v9 }
  0x1d   : > { %298 = vst [vmem:[%s1098_s13 + $0x50] sm:$0xff] %v297_v10 }
  0x1e   : > { %300 = vst [vmem:[%s1098_s13 + $0x58] sm:$0xff] %v299_v11 }
  0x1f   : > { %302 = vst [vmem:[%s1098_s13 + $0x60] sm:$0xff] %v301_v12 }
  0x20   : > { %304 = vst [vmem:[%s1098_s13 + $0x68] sm:$0xff] %v303_v13 }
  0x21   : > { %306 = vst [vmem:[%s1098_s13 + $0x70] sm:$0xff] %v305_v14 }
  0x22   : > { %308 = vst [vmem:[%s1098_s13 + $0x78] sm:$0xff] %v307_v15 }
  0x23   : > { %310 = vst [vmem:[%s1098_s13 + $0x80] sm:$0xff] %v309_v16 }
  0x24   : > { %312 = vst [vmem:[%s1098_s13 + $0x88] sm:$0xff] %v311_v17 }
  0x25 PF: > { %318 = sbr.rel (!%p1077_p4) target bundleno = 45 (0x2d), region = 74  ;;  %s320_s14 = sand.u32 (%p1077_p4), 1, %s1005_s22  }
  0x26   : > { %s928_s15 = sshll.u32 (%p1077_p4), %s1009_s23, 4  ;;  %s830_s16 = sshll.u32 (%p1077_p4), %s320_s14, 5 }
  0x27   : > { %s325_s19 = scalar_lea.vmem (%p1077_p4), %s1274_s5, %s928_s15  ;;  %s322_s20 = scalar_lea.vmem (%p1077_p4), [#allocation3], %s830_s16 }
  0x28   : > { %v338_v18 = vld [vmem:[%s325_s19] sm:$0xff] (%p1077_p4)  ;;  %v340_v19 = vld [vmem:[%s325_s19 + $0x8] sm:$0xff] (%p1077_p4) }
  0x29   : > { %v342_v20 = vld [vmem:[%s325_s19 + $0x20] sm:$0xff] (%p1077_p4)  ;;  %339 = vst [vmem:[%s322_s20] sm:$0xff] (%p1077_p4), %v338_v18  ;;  %v344_v21 = vld [vmem:[%s325_s19 + $0x28] sm:$0xff] (%p1077_p4) }
  0x2a   : > { %341 = vst [vmem:[%s322_s20 + $0x8] sm:$0xff] %v340_v19 }
  0x2b   : > { %343 = vst [vmem:[%s322_s20 + $0x10] sm:$0xff] %v342_v20 }
  0x2c   : > { %345 = vst [vmem:[%s322_s20 + $0x18] sm:$0xff] %v344_v21 }
  0x2d PF: > { %p833_p7 = scmp.ge.s32.totalorder %s1009_s23, 1  ;;  %p350_p8 = scmp.lt.s32.totalorder %s1009_s23, 3 }
  0x2f   : > { %p351_p9 = pnand %p833_p7, %p350_p8 }
  0x30   : > { %s357_s26 = sand.u32 (!%p351_p9), 1, %s1001_s21  }
  0x31   : > { %354 = sbr.rel (%p351_p9) target bundleno = 411 (0x19b), region = 97  ;;  %s834_s11 = sshll.u32 (!%p351_p9), %s357_s26, 5 }
  0x32   : > { %s951_s27 = smul.u32 (!%p351_p9), 144, %s357_s26  ;;  %s1233_s12 = scalar_lea.vmem (!%p351_p9), [#allocation3], %s834_s11 }
  0x33   : > { %s1236_s21 = scalar_lea.vmem (!%p351_p9), [#allocation4], %s834_s11 }
  0x34   : > { %s1145_s29 = scalar_lea.vmem (!%p351_p9), [#allocation2], %s951_s27 }
  0x36   : > { %v902_v22 = vld [vmem:[%s1145_s29 + $0x70] sm:$0xf]  ;;  %v944_v23 = vld [vmem:[%s1145_s29 + $0x74] sm:$0xf0]  ;;  %v943_v24 = vld [vmem:[%s1145_s29 + $0x74] sm:$0xf] }
  0x37   : > { %v903_v25 = vor.u32 %v944_v23, %v902_v22  ;;  %v904_v26 = vld [vmem:[%s1145_s29 + $0x78] sm:$0xf0]  ;;  %v894_v27 = vld [vmem:[%s1145_s29 + $0x60] sm:$0xf]  ;;  %v942_v28 = vld [vmem:[%s1145_s29 + $0x64] sm:$0xf0] }
  0x38   : > { %v907_v29 = vor.u32 %v943_v24, %v904_v26  ;;  %v941_v30 = vld [vmem:[%s1145_s29 + $0x64] sm:$0xf]  ;;  %v896_v31 = vld [vmem:[%s1145_s29 + $0x68] sm:$0xf0]  ;;  %v895_v32 = vor.u32 %v942_v28, %v894_v27  ;;  %v886_v34 = vld [vmem:[%s1145_s29 + $0x50] sm:$0xf] }
  0x39   : > { %535 = vmatpush.bf16.msra.mxu0 %v903_v25  ;;  %v899_v33 = vor.u32 %v941_v30, %v896_v31  ;;  %v940_v35 = vld [vmem:[%s1145_s29 + $0x54] sm:$0xf0]  ;;  %v939_v36 = vld [vmem:[%s1145_s29 + $0x54] sm:$0xf]  ;;  %v888_v37 = vld [vmem:[%s1145_s29 + $0x58] sm:$0xf0] }
  0x3a   : > { %563 = vmatpush.bf16.msra.mxu2 %v907_v29  ;;  %v887_v38 = vor.u32 %v940_v35, %v886_v34  ;;  %v878_v39 = vld [vmem:[%s1145_s29 + $0x40] sm:$0xf]  ;;  %v947_v40 = vld [vmem:[%s1269_s0 + $0x4] sm:$0xf]  ;;  %v840_v41 = vld [vmem:[%s1269_s0 + $0x8] sm:$0xf0]  ;;  %v891_v42 = vor.u32 %v939_v36, %v888_v37 }
  0x3b   : > { %v938_v43 = vld [vmem:[%s1145_s29 + $0x44] sm:$0xf0]  ;;  %v945_v44 = vld [vmem:[%s1145_s29 + $0x84] sm:$0xf]  ;;  %v912_v45 = vld [vmem:[%s1145_s29 + $0x88] sm:$0xf0]  ;;  %v843_v49 = vor.u32 %v947_v40, %v840_v41 }
  0x3c   : > { %v937_v46 = vld [vmem:[%s1145_s29 + $0x44] sm:$0xf]  ;;  %v880_v47 = vld [vmem:[%s1145_s29 + $0x48] sm:$0xf0]  ;;  %v915_v48 = vor.u32 %v945_v44, %v912_v45  ;;  %v879_v50 = vor.u32 %v938_v43, %v878_v39  ;;  %vm531_vm0 = vcmask 130048   ;;  %v1011_v60 = vmov 0  }
  0x3d   : > { %536 = vmatpush.bf16.msra.mxu0 %v895_v32  ;;  %v910_v51 = vld [vmem:[%s1145_s29 + $0x80] sm:$0xf]  ;;  %v946_v52 = vld [vmem:[%s1145_s29 + $0x84] sm:$0xf0]  ;;  %v883_v53 = vor.u32 %v937_v46, %v880_v47  ;;  %v870_v54 = vld [vmem:[%s1145_s29 + $0x30] sm:$0xf]  ;;  %977 = vset.pattern.permute.xlu0 %v1011_v60 }
  0x3e   : > { %564 = vmatpush.bf16.msra.mxu2 %v899_v33  ;;  %584 = vmatpush.bf16.msra.mxu3 %v915_v48  ;;  %v936_v55 = vld [vmem:[%s1145_s29 + $0x34] sm:$0xf0]  ;;  %v911_v56 = vor.u32 %v946_v52, %v910_v51  ;;  %v935_v58 = vld [vmem:[%s1145_s29 + $0x34] sm:$0xf]  ;;  %v872_v59 = vld [vmem:[%s1145_s29 + $0x38] sm:$0xf0] }
  0x3f   : > { %v421_v57 = vld [vmem:[%s1271_s2 + $0x8] sm:$0xff]  ;;  %978 = vset.pattern.permute.xlu1 %v1011_v60  ;;  %v871_v61 = vor.u32 %v936_v55, %v870_v54  ;;  %v875_v62 = vor.u32 %v935_v58, %v872_v59  ;;  %v862_v63 = vld [vmem:[%s1145_s29 + $0x20] sm:$0xf]  ;;  %v933_v1 = vld [vmem:[%s1145_s29 + $0x24] sm:$0xf]  ;;  %s949_s26 = sshll.u32 (%p1081_p5), %s824_s24, 4 }
  0x40   : > { %556 = vmatpush.bf16.msra.mxu1 %v911_v56  ;;  %429 = vperm.xlu0 %977, %v421_v57   ;;  %v934_v0 = vld [vmem:[%s1145_s29 + $0x24] sm:$0xf0]  ;;  %v864_v2 = vld [vmem:[%s1145_s29 + $0x28] sm:$0xf0]  ;;  %v854_v5 = vld [vmem:[%s1145_s29 + $0x10] sm:$0xf]  ;;  %s726_s15 = scalar_lea.vmem (%p1081_p5), %s1275_s6, %s949_s26 }
  0x41   : > { %537 = vmatpush.bf16.msra.mxu0 %v887_v38  ;;  %917 = vmatmul.msk.bf16.vlgmr.msra.gmra.mxu3 %vm531_vm0, %v843_v49  ;;  %v863_v3 = vor.u32 %v934_v0, %v862_v63  ;;  %v867_v4 = vor.u32 %v933_v1, %v864_v2  ;;  %v932_v6 = vld [vmem:[%s1145_s29 + $0x14] sm:$0xf0]  ;;  %v420_v7 = vld [vmem:[%s1271_s2] sm:$0xff]  ;;  %v856_v9 = vld [vmem:[%s1145_s29 + $0x18] sm:$0xf0] }
  0x42   : > { %565 = vmatpush.bf16.msra.mxu2 %v891_v42  ;;  %v931_v8 = vld [vmem:[%s1145_s29 + $0x14] sm:$0xf]  ;;  %v855_v10 = vor.u32 %v932_v6, %v854_v5  ;;  %v846_v12 = vld [vmem:[%s1145_s29] sm:$0xf]  ;;  %v930_v13 = vld [vmem:[%s1145_s29 + $0x4] sm:$0xf0] }
  0x43   : > { %916 = vmatmul.msk.bf16.vlgmr.msra.gmra.mxu1 %vm531_vm0, %v843_v49  ;;  %v859_v11 = vor.u32 %v931_v8, %v856_v9  ;;  %v929_v14 = vld [vmem:[%s1145_s29 + $0x4] sm:$0xf]  ;;  %v848_v15 = vld [vmem:[%s1145_s29 + $0x8] sm:$0xf0]  ;;  %v847_v16 = vor.u32 %v930_v13, %v846_v12  ;;  %v838_v17 = vld [vmem:[%s1269_s0] sm:$0xf] }
  0x44   : > { %v948_v18 = vld [vmem:[%s1269_s0 + $0x4] sm:$0xf0]  ;;  %v851_v19 = vor.u32 %v929_v14, %v848_v15  ;;  %v597_v21 = vld [vmem:[%s1273_s4] sm:$0xff]  ;;  %v707_v14 = vld [vmem:[%s1233_s12 + $0x10] sm:$0xff] }
  0x45   : > { %538 = vmatpush.bf16.msra.mxu0 %v879_v50  ;;  %v839_v20 = vor.u32 %v948_v18, %v838_v17  ;;  %601 = vperm.xlu1 %978, %v597_v21   ;;  %v598_v25 = vld [vmem:[%s1273_s4 + $0x8] sm:$0xff]  ;;  %v591_v39 = vld [vmem:[%s1272_s3] sm:$0xff] }
  0x46   : > { %566 = vmatpush.bf16.msra.mxu2 %v883_v53  ;;  %v592_v46 = vld [vmem:[%s1272_s3 + $0x8] sm:$0xff]  ;;  %v705_v0 = vld [vmem:[%s1233_s12] sm:$0xff] }
  0x48   : > { %424 = vperm.xlu0 %977, %v420_v7  }
  0x49   : > { %539 = vmatpush.bf16.msra.mxu0 %v871_v61 }
  0x4a   : > { %567 = vmatpush.bf16.msra.mxu2 %v875_v62 }
  0x4d   : > { %540 = vmatpush.bf16.msra.mxu0 %v863_v3  ;;  %606 = vperm.xlu1 %978, %v598_v25  }
  0x4e   : > { %568 = vmatpush.bf16.msra.mxu2 %v867_v4 }
  0x51   : > { %541 = vmatpush.bf16.msra.mxu0 %v855_v10 }
  0x52   : > { %569 = vmatpush.bf16.msra.mxu2 %v859_v11 }
  0x55   : > { %542 = vmatpush.bf16.msra.mxu0 %v847_v16 }
  0x56   : > { %570 = vmatpush.bf16.msra.mxu2 %v851_v19 }
  0x58   : > { %543 = vmatmul.bf16.vlgmr.msra.gmra.mxu0 %v839_v20 }
  0x59   : > { %571 = vmatmul.bf16.vlgmr.msra.gmra.mxu2 %v839_v20 }
  0xb2   : > { %v430_v22 = vpop.permute.xlu0 %429 }
  0xb7   : > { %v602_v47 = vpop.permute.xlu1 %601 }
  0xba   : > { %v425_v26 = vpop.permute.xlu0 %424 }
  0xbf   : > { %v607_v50 = vpop.permute.xlu1 %606 }
  0xc0   : > { %v558_v23 = vpop.f32.mrf.mxu1 }
  0xc4   : > { %v586_v27 = vpop.f32.mrf.mxu3 }
  0xc8   : > { %v560_v31 = vpop.f32.mrf.mxu1 }
  0xcc   : > { %v588_v41 = vpop.f32.mrf.mxu3 }
  0xd5   : > { %v544_v24 = vpop.f32.mrf.mxu0 }
  0xd6   : > { %v545_v28 = vadd.f32 %v544_v24, %v425_v26 }
  0xd8   : > { %v559_v33 = vadd.f32 %v558_v23, %v545_v28 }
  0xda   : > { %v593_v38 = vmul.f32 %v559_v33, %v559_v33 }
  0xdc   : > { %v572_v29 = vpop.f32.mrf.mxu2 }
  0xdd   : > { %v546_v30 = vpop.f32.mrf.mxu0  ;;  %v573_v36 = vadd.f32 %v572_v29, %v425_v26 }
  0xde   : > { %v547_v32 = vadd.f32 %v546_v30, %v430_v22  ;;  %v708_v30 = vld [vmem:[%s1233_s12 + $0x18] sm:$0xff] }
  0xdf   : > { %v1216_v42 = vadd.f32 %v586_v27, %v573_v36 }
  0xe0   : > { %v1209_v34 = vadd.f32 %v560_v31, %v547_v32 }
  0xe1   : > { %v594_v45 = vmul.f32 %v1216_v42, %v1216_v42 }
  0xe2   : > { %v595_v35 = vmul.f32 %v1209_v34, %v1209_v34 }
  0xe4   : > { %v574_v37 = vpop.f32.mrf.mxu2  ;;  %629 = vmatpush.msrb.mxu1 %v595_v35 }
  0xe5   : > { %v575_v40 = vadd.f32 %v574_v37, %v430_v22  ;;  %v706_v22 = vld [vmem:[%s1233_s12 + $0x8] sm:$0xff] }
  0xe6   : > { %630 = vmatpush.msrb.mxu1 %v593_v38 }
  0xe7   : > { %v1218_v43 = vadd.f32 %v588_v41, %v575_v40  ;;  %918 = vmatmul.msk.f32.vlgmr.msrb.gmra.mxu1 %vm531_vm0, %v591_v39 }
  0xe9   : > { %v596_v44 = vmul.f32 %v1218_v43, %v1218_v43 }
  0xeb   : > { %652 = vmatpush.msrb.mxu3 %v596_v44 }
  0xed   : > { %653 = vmatpush.msrb.mxu3 %v594_v45 }
  0xee   : > { %920 = vmatmul.msk.f32.vlgmr.msrb.gmra.mxu3 %vm531_vm0, %v591_v39 }
  0xef   : > { %919 = vmatmul.msk.f32.gmra.mxu1 %vm531_vm0, %v592_v46 }
  0xf6   : > { %921 = vmatmul.msk.f32.gmra.mxu3 %vm531_vm0, %v592_v46 }
 0x164   : > { %v632_v48 = vpop.f32.mrf.mxu1 }
 0x165   : > { %v633_v49 = vadd.f32 %v632_v48, %v602_v47 }
 0x167   : > { %979 = vrsqrt.f32 %v633_v49  ;;  %vm667_vm1 = vweird.f32 %v633_v49 }
 0x16c   : > { %v635_v51 = vpop.f32.mrf.mxu1 }
 0x16d   : > { %v980_v52 = vpop.eup %979  ;;  %v636_v53 = vadd.f32 %v635_v51, %v607_v50 }
 0x16e   : > { %v662_v54 = vmul.f32 %v980_v52, %v633_v49  ;;  %vm668_vm2 = vweird.f32 %v980_v52 }
 0x16f   : > { %981 = vrsqrt.f32 %v636_v53  ;;  %vm669_vm3 = vmor %vm667_vm1, %vm668_vm2  ;;  %vm687_vm5 = vweird.f32 %v636_v53 }
 0x170   : > { %v663_v55 = vmul.f32 %v980_v52, %v662_v54 }
 0x171   : > { %v655_v56 = vpop.f32.mrf.mxu3 }
 0x172   : > { %v664_v57 = vmul.f32 0.5, %v663_v55  ;;  %v656_v58 = vadd.f32 %v655_v56, %v602_v47 }
 0x174   : > { %v665_v59 = vsub.f32 1.5, %v664_v57  ;;  %983 = vrsqrt.f32 %v656_v58  ;;  %vm677_vm8 = vweird.f32 %v656_v58 }
 0x175   : > { %v982_v60 = vpop.eup %981 }
 0x176   : > { %v666_v61 = vmul.f32 %v980_v52, %v665_v59  ;;  %v682_v62 = vmul.f32 %v982_v60, %v636_v53  ;;  %vm688_vm4 = vweird.f32 %v982_v60 }
 0x177   : > { %vm689_vm6 = vmor %vm687_vm5, %vm688_vm4 }
 0x178   : > { %v670_v63 = vsel %vm669_vm3, %v980_v52, %v666_v61  ;;  %v683_v1 = vmul.f32 %v982_v60, %v682_v62 }
 0x179   : > { %v701_v2 = vmul.f32 %v670_v63, %v559_v33  ;;  %v658_v3 = vpop.f32.mrf.mxu3 }
 0x17a   : > { %v984_v4 = vpop.eup %983  ;;  %v684_v5 = vmul.f32 0.5, %v683_v1  ;;  %v659_v6 = vadd.f32 %v658_v3, %v607_v50 }
 0x17b   : > { %v709_v7 = vadd.f32 %v705_v0, %v701_v2  ;;  %v672_v8 = vmul.f32 %v984_v4, %v656_v58  ;;  %vm678_vm7 = vweird.f32 %v984_v4 }
 0x17c   : > { %v685_v9 = vsub.f32 1.5, %v684_v5  ;;  %985 = vrsqrt.f32 %v659_v6  ;;  %vm679_vm9 = vmor %vm677_vm8, %vm678_vm7  ;;  %vm697_vm11 = vweird.f32 %v659_v6 }
 0x17d   : > { %713 = vst [vmem:[%s1236_s21] sm:$0xff] %v709_v7  ;;  %v673_v10 = vmul.f32 %v984_v4, %v672_v8 }
 0x17e   : > { %v686_v11 = vmul.f32 %v982_v60, %v685_v9 }
 0x17f   : > { %v674_v12 = vmul.f32 0.5, %v673_v10 }
 0x180   : > { %v690_v13 = vsel %vm689_vm6, %v982_v60, %v686_v11 }
 0x181   : > { %v703_v15 = vmul.f32 %v690_v13, %v1209_v34  ;;  %v675_v16 = vsub.f32 1.5, %v674_v12 }
 0x182   : > { %v986_v17 = vpop.eup %985 }
 0x183   : > { %v711_v18 = vadd.f32 %v707_v14, %v703_v15  ;;  %v676_v19 = vmul.f32 %v984_v4, %v675_v16  ;;  %v692_v20 = vmul.f32 %v986_v17, %v659_v6  ;;  %vm698_vm10 = vweird.f32 %v986_v17 }
 0x184   : > { %vm699_vm12 = vmor %vm697_vm11, %vm698_vm10  ;;  %v739_v33 = vld [vmem:[%s1236_s21] sm:$0xff] (%p1081_p5) }
 0x185   : > { %715 = vst [vmem:[%s1236_s21 + $0x10] sm:$0xff] %v711_v18  ;;  %v680_v21 = vsel %vm679_vm9, %v984_v4, %v676_v19  ;;  %v693_v23 = vmul.f32 %v986_v17, %v692_v20 }
 0x186   : > { %v702_v24 = vmul.f32 %v680_v21, %v1216_v42  ;;  %740 = vst [vmem:[%s726_s15] sm:$0xff] (%p1081_p5), %v739_v33 }
 0x187   : > { %v694_v25 = vmul.f32 0.5, %v693_v23 }
 0x188   : > { %v710_v26 = vadd.f32 %v706_v22, %v702_v24 }
 0x189   : > { %v695_v27 = vsub.f32 1.5, %v694_v25 }
 0x18a   : > { %714 = vst [vmem:[%s1236_s21 + $0x8] sm:$0xff] %v710_v26 }
 0x18b   : > { %v696_v28 = vmul.f32 %v986_v17, %v695_v27 }
 0x18c   : > { %v743_v35 = vld [vmem:[%s1236_s21 + $0x10] sm:$0xff] (%p1081_p5) }
 0x18d   : > { %v700_v29 = vsel %vm699_vm12, %v986_v17, %v696_v28  ;;  %744 = vst [vmem:[%s726_s15 + $0x20] sm:$0xff] (%p1081_p5), %v743_v35 }
 0x18e   : > { %v704_v31 = vmul.f32 %v700_v29, %v1218_v43  ;;  %723 = sbr.rel (!%p1081_p5) target bundleno = 411 (0x19b), region = 109 }
 0x190   : > { %v712_v32 = vadd.f32 %v708_v30, %v704_v31 }
 0x191   : > { %v741_v34 = vld [vmem:[%s1236_s21 + $0x8] sm:$0xff] (%p1081_p5) }
 0x192   : > { %716 = vst [vmem:[%s1236_s21 + $0x18] sm:$0xff] %v712_v32 }
 0x193   : > { %742 = vst [vmem:[%s726_s15 + $0x8] sm:$0xff] %v741_v34 }
 0x199   : > { %v745_v36 = vld [vmem:[%s1236_s21 + $0x18] sm:$0xff] }
 0x19a   : > { %746 = vst [vmem:[%s726_s15 + $0x28] sm:$0xff] %v745_v36 }
 0x19b PF: > { %p13_p10 = scmp.ge.s32.totalorder %s1064_s25, 4   ;;  %s1278_s21 = smov %s1005_s22 }
 0x19c   : > { %s1279_s22 = smov %s1075_s28  ;;  %s1280_s23 = smov %s1064_s25 }
 0x19d   :  { %15 = sbr.rel (!%p13_p10) target bundleno = 2 (0x2), region = 171 }

// kernel: enc_forward.155
= control target key start
LH: loop header
LB: loop body
LE: loop exit
PB: predicated region body
PF: predicated region fallthrough
CT: control target
= control target key end

     0   :  { %s751_s18 = smov 0   ;;  %s753_s19 = smov 0   ;;  %s875_s0 = inlined_call_operand.vmem [shape: bf16[16,16], index: 0, kind: input, shape index: {}]   ;;  %s876_s1 = inlined_call_operand.vmem [shape: f32[16,512], index: 1, kind: input, shape index: {}]   ;;  %s877_s2 = inlined_call_operand.vmem [shape: f32[16,1], index: 2, kind: input, shape index: {}]   ;;  %s878_s3 = inlined_call_operand.vmem [shape: f32[16,512], index: 3, kind: input, shape index: {}]   ;;  %s879_s4 = inlined_call_operand.vmem [shape: f32[16,512], index: 4, kind: input, shape index: {}]   ;;  %s880_s5 = inlined_call_operand.vmem [shape: f32[16,512], index: 5, kind: output, shape index: {}]  }
   0x1   :  { %s755_s20 = smov 0  }
   0x2 LB: > { %s620_s21 = sadd.s32 4294967295, %s718_s20   ;;  %s768_s22 = sadd.s32 1, %s718_s20   ;;  %s718_s20 = sphi %s755_s20, %s885_s20   ;;  %s714_s19 = sphi %s753_s19, %s884_s19   ;;  %s710_s18 = sphi %s751_s18, %s883_s18  }
   0x3   : > { %s40_s23 = ssub.s32 %s718_s20, %s768_s22  ;;  %s43_s24 = sadd.s32 1, %s714_s19 }
   0x4   : > { %p41_p0 = scmp.eq.s32.totalorder %s40_s23, 0  ;;  %p50_p1 = scmp.ne.s32.totalorder %s714_s19, %s710_s18 }
   0x5   : > { %p51_p2 = scmp.eq.s32.totalorder %s718_s20, 0  ;;  %p153_p3 = scmp.eq.s32.totalorder %s620_s21, 1 }
   0x6   : > { %s779_s25 = scalar_select %p41_p0, %s714_s19, %s43_s24  }
   0x7   : > { %p781_p4 = por %p51_p2, %p50_p1  ;;  %p785_p5 = por %p153_p3, %p50_p1 }
   0x8   : > { %p623_p6 = scmp.ge.s32.totalorder %s718_s20, 2 }
   0xa   : > { %181 = sbr.rel (%p623_p6) target bundleno = 39 (0x27), region = 24 }
   0xf   : > { %184 = sbr.rel (!%p781_p4) target bundleno = 23 (0x17), region = 28  ;;  %s186_s28 = sand.u32 (%p781_p4), 1, %s714_s19  }
  0x10   : > { %s649_s29 = sshll.u32 (%p781_p4), %s718_s20, 4  ;;  %s624_s30 = sshll.u32 (%p781_p4), %s186_s28, 5 }
  0x11   : > { %s191_s8 = scalar_lea.vmem (%p781_p4), %s876_s1, %s649_s29  ;;  %s188_s9 = scalar_lea.vmem (%p781_p4), [#allocation2], %s624_s30 }
  0x12   : > { %v204_v0 = vld [vmem:[%s191_s8] sm:$0xff] (%p781_p4)  ;;  %v206_v1 = vld [vmem:[%s191_s8 + $0x8] sm:$0xff] (%p781_p4) }
  0x13   : > { %v208_v2 = vld [vmem:[%s191_s8 + $0x20] sm:$0xff] (%p781_p4)  ;;  %205 = vst [vmem:[%s188_s9] sm:$0xff] (%p781_p4), %v204_v0  ;;  %v210_v3 = vld [vmem:[%s191_s8 + $0x28] sm:$0xff] (%p781_p4) }
  0x14   : > { %207 = vst [vmem:[%s188_s9 + $0x8] sm:$0xff] %v206_v1 }
  0x15   : > { %209 = vst [vmem:[%s188_s9 + $0x10] sm:$0xff] %v208_v2 }
  0x16   : > { %211 = vst [vmem:[%s188_s9 + $0x18] sm:$0xff] %v210_v3 }
  0x17 PF: > { %217 = sbr.rel (!%p781_p4) target bundleno = 31 (0x1f), region = 51  ;;  %s219_s10 = sand.u32 (%p781_p4), 1, %s714_s19  }
  0x18   : > { %s650_s11 = sshll.u32 (%p781_p4), %s718_s20, 4  ;;  %s627_s12 = sshll.u32 (%p781_p4), %s219_s10, 5 }
  0x19   : > { %s224_s15 = scalar_lea.vmem (%p781_p4), %s878_s3, %s650_s11  ;;  %s221_s16 = scalar_lea.vmem (%p781_p4), [#allocation3], %s627_s12 }
  0x1a   : > { %v237_v4 = vld [vmem:[%s224_s15] sm:$0xff] (%p781_p4)  ;;  %v239_v5 = vld [vmem:[%s224_s15 + $0x8] sm:$0xff] (%p781_p4) }
  0x1b   : > { %v241_v6 = vld [vmem:[%s224_s15 + $0x20] sm:$0xff] (%p781_p4)  ;;  %238 = vst [vmem:[%s221_s16] sm:$0xff] (%p781_p4), %v237_v4  ;;  %v243_v7 = vld [vmem:[%s224_s15 + $0x28] sm:$0xff] (%p781_p4) }
  0x1c   : > { %240 = vst [vmem:[%s221_s16 + $0x8] sm:$0xff] %v239_v5 }
  0x1d   : > { %242 = vst [vmem:[%s221_s16 + $0x10] sm:$0xff] %v241_v6 }
  0x1e   : > { %244 = vst [vmem:[%s221_s16 + $0x18] sm:$0xff] %v243_v7 }
  0x1f PF: > { %250 = sbr.rel (!%p781_p4) target bundleno = 39 (0x27), region = 74  ;;  %s252_s17 = sand.u32 (%p781_p4), 1, %s714_s19  }
  0x20   : > { %s651_s23 = sshll.u32 (%p781_p4), %s718_s20, 4  ;;  %s630_s24 = sshll.u32 (%p781_p4), %s252_s17, 5 }
  0x21   : > { %s257_s30 = scalar_lea.vmem (%p781_p4), %s879_s4, %s651_s23  ;;  %s254_s6 = scalar_lea.vmem (%p781_p4), [#allocation4], %s630_s24 }
  0x22   : > { %v270_v8 = vld [vmem:[%s257_s30] sm:$0xff] (%p781_p4)  ;;  %v272_v9 = vld [vmem:[%s257_s30 + $0x8] sm:$0xff] (%p781_p4) }
  0x23   : > { %v274_v10 = vld [vmem:[%s257_s30 + $0x20] sm:$0xff] (%p781_p4)  ;;  %271 = vst [vmem:[%s254_s6] sm:$0xff] (%p781_p4), %v270_v8  ;;  %v276_v11 = vld [vmem:[%s257_s30 + $0x28] sm:$0xff] (%p781_p4) }
  0x24   : > { %273 = vst [vmem:[%s254_s6 + $0x8] sm:$0xff] %v272_v9 }
  0x25   : > { %275 = vst [vmem:[%s254_s6 + $0x10] sm:$0xff] %v274_v10 }
  0x26   : > { %277 = vst [vmem:[%s254_s6 + $0x18] sm:$0xff] %v276_v11 }
  0x27 PF: > { %p633_p7 = scmp.ge.s32.totalorder %s718_s20, 1  ;;  %p282_p8 = scmp.lt.s32.totalorder %s718_s20, 3 }
  0x29   : > { %p283_p9 = pnand %p633_p7, %p282_p8 }
  0x2a   : > { %s289_s26 = sand.u32 (!%p283_p9), 1, %s710_s18  }
  0x2b   : > { %286 = sbr.rel (%p283_p9) target bundleno = 237 (0xed), region = 97  ;;  %s817_s9 = sshll.u32 (!%p283_p9), %s289_s26, 5 }
  0x2c   : > { %s291_s10 = scalar_lea.vmem (!%p283_p9), [#allocation2], %s817_s9  ;;  %s830_s14 = scalar_lea.vmem (!%p283_p9), [#allocation3], %s817_s9 }
  0x2d   : > { %s834_s15 = scalar_lea.vmem (!%p283_p9), [#allocation4], %s817_s9  ;;  %s841_s16 = scalar_lea.vmem (!%p283_p9), [#allocation5], %s817_s9 }
  0x30   : > { %v350_v12 = vld [vmem:[%s877_s2] sm:$0xff]  ;;  %v720_v13 = vmov 0   ;;  %v344_v15 = vld [vmem:[%s291_s10 + $0x10] sm:$0xff]  ;;  %v343_v18 = vld [vmem:[%s291_s10 + $0x8] sm:$0xff]  ;;  %vm367_vm0 = vcmask 130048   ;;  %s653_s17 = sshll.u32 (%p785_p5), %s620_s21, 4 }
  0x31   : > { %679 = vset.pattern.permute.xlu0 %v720_v13  ;;  %v342_v14 = vld [vmem:[%s291_s10] sm:$0xff]  ;;  %v345_v19 = vld [vmem:[%s291_s10 + $0x18] sm:$0xff]  ;;  %v351_v21 = vld [vmem:[%s877_s2 + $0x8] sm:$0xff]  ;;  %s504_s28 = scalar_lea.vmem (%p785_p5), %s880_s5, %s653_s17 }
  0x32   : > { %354 = vperm.xlu0 %679, %v350_v12   ;;  %v346_v16 = vpack.c.bf16 %v344_v15, %v342_v14  ;;  %v652_v17 = vld [vmem:[%s875_s0] sm:$0xff]  ;;  %v347_v20 = vpack.c.bf16 %v345_v19, %v343_v18  ;;  %v476_v5 = vld [vmem:[%s830_s14 + $0x8] sm:$0xff] }
  0x33   : > { %v475_v60 = vld [vmem:[%s830_s14] sm:$0xff]  ;;  %v484_v13 = vld [vmem:[%s834_s15 + $0x8] sm:$0xff] }
  0x34   : > { %378 = vmatpush.bf16.msra.mxu0 %v346_v16  ;;  %392 = vmatpush.bf16.msra.mxu1 %v347_v20  ;;  %v483_v2 = vld [vmem:[%s834_s15] sm:$0xff]  ;;  %v477_v20 = vld [vmem:[%s830_s14 + $0x10] sm:$0xff] }
  0x37   : > { %642 = vmatmul.msk.bf16.vlgmr.msra.gmra.mxu0 %vm367_vm0, %v652_v17  ;;  %643 = vmatmul.msk.bf16.vlgmr.msra.gmra.mxu1 %vm367_vm0, %v652_v17 }
  0x3a   : > { %359 = vperm.xlu0 %679, %v351_v21  }
  0xa4   : > { %v355_v22 = vpop.permute.xlu0 %354 }
  0xac   : > { %v360_v30 = vpop.permute.xlu0 %359 }
  0xb4   : > { %v380_v23 = vpop.f32.mrf.mxu0  ;;  %v394_v26 = vpop.f32.mrf.mxu1 }
  0xb5   : > { %v381_v24 = vadd.f32 %v380_v23, %v355_v22  ;;  %v395_v27 = vadd.f32 %v394_v26, %v355_v22  ;;  %v485_v26 = vld [vmem:[%s834_s15 + $0x10] sm:$0xff] }
  0xb7   : > { %v399_v25 = vsub.f32 0.0, %v381_v24  ;;  %v400_v29 = vsub.f32 0.0, %v395_v27 }
  0xb9   : > { %v403_v28 = vmul.f32 1.442695, %v399_v25  ;;  %v405_v31 = vmul.f32 1.442695, %v400_v29 }
  0xbb   : > { %680 = vpow2.f32 %v403_v28 }
  0xbc   : > { %v382_v32 = vpop.f32.mrf.mxu0  ;;  %682 = vpow2.f32 %v405_v31  ;;  %v396_v35 = vpop.f32.mrf.mxu1 }
  0xbd   : > { %v383_v33 = vadd.f32 %v382_v32, %v360_v30  ;;  %v397_v36 = vadd.f32 %v396_v35, %v360_v30  ;;  %v478_v32 = vld [vmem:[%s830_s14 + $0x18] sm:$0xff] }
  0xbf   : > { %v401_v34 = vsub.f32 0.0, %v383_v33  ;;  %v402_v40 = vsub.f32 0.0, %v397_v36  ;;  %v486_v36 = vld [vmem:[%s834_s15 + $0x18] sm:$0xff] }
  0xc1   : > { %v681_v37 = vpop.eup %680  ;;  %v407_v38 = vmul.f32 1.442695, %v401_v34  ;;  %v409_v43 = vmul.f32 1.442695, %v402_v40 }
  0xc2   : > { %v411_v39 = vadd.f32 1.0, %v681_v37  ;;  %v683_v41 = vpop.eup %682 }
  0xc3   : > { %684 = vpow2.f32 %v407_v38  ;;  %v412_v42 = vadd.f32 1.0, %v683_v41 }
  0xc4   : > { %686 = vrcp.f32 %v411_v39  ;;  %v426_v51 = vand.u32 2147483648, %v411_v39  ;;  %v424_v54 = vand.u32 2147483647, %v411_v39  ;;  %vm420_vm2 = vweird.f32 %v411_v39 }
  0xc5   : > { %688 = vrcp.f32 %v412_v42  ;;  %v441_v58 = vand.u32 2147483648, %v412_v42  ;;  %v439_v63 = vand.u32 2147483647, %v412_v42  ;;  %vm435_vm6 = vweird.f32 %v412_v42 }
  0xc6   : > { %690 = vpow2.f32 %v409_v43  ;;  %v427_v61 = vor.u32 1.1754944e-38, %v426_v51  ;;  %vm425_vm5 = vcmp.eq.f32.partialorder %v424_v54, 8.507059e+37 }
  0xc7   : > { %v442_v7 = vor.u32 1.1754944e-38, %v441_v58  ;;  %vm440_vm8 = vcmp.eq.f32.partialorder %v439_v63, 8.507059e+37 }
  0xc9   : > { %v685_v44 = vpop.eup %684 }
  0xca   : > { %v687_v45 = vpop.eup %686  ;;  %v413_v46 = vadd.f32 1.0, %v685_v44 }
  0xcb   : > { %v416_v47 = vmul.f32 %v687_v45, %v411_v39  ;;  %v689_v48 = vpop.eup %688  ;;  %vm421_vm1 = vweird.f32 %v687_v45 }
  0xcc   : > { %692 = vrcp.f32 %v413_v46  ;;  %v691_v50 = vpop.eup %690  ;;  %v431_v52 = vmul.f32 %v689_v48, %v412_v42  ;;  %vm422_vm3 = vmor %vm420_vm2, %vm421_vm1  ;;  %vm436_vm4 = vweird.f32 %v689_v48  ;;  %v454_v10 = vand.u32 2147483647, %v413_v46 }
  0xcd   : > { %v417_v49 = vsub.f32 1.0, %v416_v47  ;;  %v826_v55 = vadd.f32 1.0, %v691_v50  ;;  %vm437_vm7 = vmor %vm435_vm6, %vm436_vm4  ;;  %v456_v11 = vand.u32 2147483648, %v413_v46  ;;  %vm450_vm10 = vweird.f32 %v413_v46 }
  0xce   : > { %v432_v56 = vsub.f32 1.0, %v431_v52  ;;  %vm455_vm12 = vcmp.eq.f32.partialorder %v454_v10, 8.507059e+37 }
  0xcf   : > { %v418_v53 = vmul.f32 %v687_v45, %v417_v49  ;;  %694 = vrcp.f32 %v826_v55  ;;  %v457_v22 = vor.u32 1.1754944e-38, %v456_v11  ;;  %v471_v25 = vand.u32 2147483648, %v826_v55 }
  0xd0   : > { %v433_v62 = vmul.f32 %v689_v48, %v432_v56  ;;  %v469_v29 = vand.u32 2147483647, %v826_v55  ;;  %vm465_vm14 = vweird.f32 %v826_v55 }
  0xd1   : > { %v419_v57 = vadd.f32 %v687_v45, %v418_v53  ;;  %v472_v34 = vor.u32 1.1754944e-38, %v471_v25 }
  0xd2   : > { %v693_v59 = vpop.eup %692  ;;  %v434_v4 = vadd.f32 %v689_v48, %v433_v62  ;;  %vm470_vm0 = vcmp.eq.f32.partialorder %v469_v29, 8.507059e+37 }
  0xd3   : > { %v423_v0 = vsel %vm422_vm3, %v687_v45, %v419_v57  ;;  %v446_v1 = vmul.f32 %v693_v59, %v413_v46  ;;  %vm451_vm9 = vweird.f32 %v693_v59 }
  0xd4   : > { %v428_v3 = vsel %vm425_vm5, %v427_v61, %v423_v0  ;;  %v438_v9 = vsel %vm437_vm7, %v689_v48, %v434_v4  ;;  %vm452_vm11 = vmor %vm450_vm10, %vm451_vm9 }
  0xd5   : > { %v479_v6 = vmul.f32 %v475_v60, %v428_v3  ;;  %v447_v8 = vsub.f32 1.0, %v446_v1  ;;  %v695_v12 = vpop.eup %694  ;;  %v443_v15 = vsel %vm440_vm8, %v442_v7, %v438_v9 }
  0xd6   : > { %v480_v17 = vmul.f32 %v476_v5, %v443_v15  ;;  %v461_v18 = vmul.f32 %v695_v12, %v826_v55  ;;  %vm466_vm13 = vweird.f32 %v695_v12 }
  0xd7   : > { %v487_v14 = vadd.f32 %v483_v2, %v479_v6  ;;  %v448_v16 = vmul.f32 %v693_v59, %v447_v8  ;;  %vm467_vm15 = vmor %vm465_vm14, %vm466_vm13 }
  0xd8   : > { %v488_v21 = vadd.f32 %v484_v13, %v480_v17  ;;  %v462_v23 = vsub.f32 1.0, %v461_v18 }
  0xd9   : > { %491 = vst [vmem:[%s841_s16] sm:$0xff] %v487_v14  ;;  %v449_v19 = vadd.f32 %v693_v59, %v448_v16 }
  0xda   : > { %492 = vst [vmem:[%s841_s16 + $0x8] sm:$0xff] %v488_v21  ;;  %v463_v28 = vmul.f32 %v695_v12, %v462_v23 }
  0xdb   : > { %v453_v24 = vsel %vm452_vm11, %v693_v59, %v449_v19 }
  0xdc   : > { %v458_v27 = vsel %vm455_vm12, %v457_v22, %v453_v24  ;;  %v464_v31 = vadd.f32 %v695_v12, %v463_v28 }
  0xdd   : > { %v481_v30 = vmul.f32 %v477_v20, %v458_v27 }
  0xde   : > { %v468_v35 = vsel %vm467_vm15, %v695_v12, %v464_v31 }
  0xdf   : > { %v489_v33 = vadd.f32 %v485_v26, %v481_v30  ;;  %v473_v37 = vsel %vm470_vm0, %v472_v34, %v468_v35 }
  0xe0   : > { %v482_v38 = vmul.f32 %v478_v32, %v473_v37  ;;  %501 = sbr.rel (!%p785_p5) target bundleno = 237 (0xed), region = 113  ;;  %v517_v40 = vld [vmem:[%s841_s16] sm:$0xff] (%p785_p5) }
  0xe1   : > { %493 = vst [vmem:[%s841_s16 + $0x10] sm:$0xff] %v489_v33  ;;  %v519_v41 = vld [vmem:[%s841_s16 + $0x8] sm:$0xff] (%p785_p5) }
  0xe2   : > { %v490_v39 = vadd.f32 %v486_v36, %v482_v38  ;;  %518 = vst [vmem:[%s504_s28] sm:$0xff] (%p785_p5), %v517_v40 }
  0xe3   : > { %520 = vst [vmem:[%s504_s28 + $0x8] sm:$0xff] (%p785_p5), %v519_v41 }
  0xe4   : > { %494 = vst [vmem:[%s841_s16 + $0x18] sm:$0xff] %v490_v39 }
  0xe8   : > { %v521_v42 = vld [vmem:[%s841_s16 + $0x10] sm:$0xff] }
  0xe9   : > { %522 = vst [vmem:[%s504_s28 + $0x20] sm:$0xff] %v521_v42 }
  0xeb   : > { %v523_v43 = vld [vmem:[%s841_s16 + $0x18] sm:$0xff] }
  0xec   : > { %524 = vst [vmem:[%s504_s28 + $0x28] sm:$0xff] %v523_v43 }
  0xed PF: > { %p12_p10 = scmp.ge.s32.totalorder %s768_s22, 4   ;;  %s883_s18 = smov %s714_s19 }
  0xee   : > { %s884_s19 = smov %s779_s25  ;;  %s885_s20 = smov %s768_s22 }
  0xef   :  { %14 = sbr.rel (!%p12_p10) target bundleno = 2 (0x2), region = 183 }

// kernel: enc_forward.156
= control target key start
LH: loop header
LB: loop body
LE: loop exit
PB: predicated region body
PF: predicated region fallthrough
CT: control target
= control target key end

     0   :  { %v464_v6 = vmov 0   ;;  %vm250_vm0 = vcmask 130048   ;;  %s596_s1 = inlined_call_operand.vmem [shape: bf16[400,128], index: 1, kind: input, shape index: {}]   ;;  %s597_s0 = inlined_call_operand.vmem [shape: bf16[16,400], index: 0, kind: input, shape index: {}]   ;;  %s598_s2 = inlined_call_operand.vmem [shape: f32[16,1], index: 2, kind: input, shape index: {}]   ;;  %s599_s3 = inlined_call_operand.vmem [shape: f32[16,128], index: 3, kind: output, shape index: {}]  }
   0x1   :  { %v440_v0 = vld [vmem:[%s596_s1 + $0x38] sm:$0xff]  ;;  %v439_v3 = vld [vmem:[%s596_s1 + $0x30] sm:$0xff]  ;;  %463 = vset.pattern.permute.xlu0 %v464_v6  ;;  %v438_v7 = vld [vmem:[%s596_s1 + $0x28] sm:$0xff] }
   0x2   :  { %v448_v1 = vld [vmem:[%s596_s1 + $0x78] sm:$0xff]  ;;  %254 = vmatpush.bf16.msra.mxu0 %v440_v0  ;;  %v447_v4 = vld [vmem:[%s596_s1 + $0x70] sm:$0xff]  ;;  %v446_v8 = vld [vmem:[%s596_s1 + $0x68] sm:$0xff] }
   0x3   :  { %v456_v2 = vld [vmem:[%s596_s1 + $0xb8] sm:$0xff]  ;;  %268 = vmatpush.bf16.msra.mxu1 %v448_v1  ;;  %v455_v5 = vld [vmem:[%s596_s1 + $0xb0] sm:$0xff]  ;;  %v457_v9 = vld [vmem:[%s596_s1 + $0xc0] sm:$0xff] }
   0x4   :  { %282 = vmatpush.bf16.msra.mxu2 %v456_v2  ;;  %v454_v10 = vld [vmem:[%s596_s1 + $0xa8] sm:$0xff]  ;;  %v328_v12 = vld [vmem:[%s597_s0 + $0x18] sm:$0xf0]  ;;  %303 = vmatpush.bf16.msra.mxu3 %v457_v9  ;;  %v437_v14 = vld [vmem:[%s596_s1 + $0x20] sm:$0xff] }
   0x5   :  { %v459_v11 = vld [vmem:[%s597_s0 + $0xc] sm:$0xf]  ;;  %v445_v15 = vld [vmem:[%s596_s1 + $0x60] sm:$0xff]  ;;  %v436_v18 = vld [vmem:[%s596_s1 + $0x18] sm:$0xff] }
   0x6   :  { %255 = vmatpush.bf16.msra.mxu0 %v439_v3  ;;  %v331_v13 = vor.u32 %v459_v11, %v328_v12  ;;  %v453_v16 = vld [vmem:[%s596_s1 + $0xa0] sm:$0xff]  ;;  %v444_v19 = vld [vmem:[%s596_s1 + $0x58] sm:$0xff]  ;;  %v70_v21 = vld [vmem:[%s598_s2 + $0x8] sm:$0xff] }
   0x7   :  { %269 = vmatpush.bf16.msra.mxu1 %v447_v4  ;;  %v69_v17 = vld [vmem:[%s598_s2] sm:$0xff]  ;;  %v452_v20 = vld [vmem:[%s596_s1 + $0x98] sm:$0xff]  ;;  %v435_v22 = vld [vmem:[%s596_s1 + $0x10] sm:$0xff] }
   0x8   :  { %283 = vmatpush.bf16.msra.mxu2 %v455_v5  ;;  %432 = vmatmul.msk.bf16.vlgmr.msra.gmra.mxu3 %vm250_vm0, %v331_v13  ;;  %v443_v23 = vld [vmem:[%s596_s1 + $0x50] sm:$0xff]  ;;  %v434_v25 = vld [vmem:[%s596_s1 + $0x8] sm:$0xff]  ;;  %v433_v28 = vld [vmem:[%s596_s1] sm:$0xff] }
   0x9   :  { %73 = vperm.xlu0 %463, %v69_v17   ;;  %v451_v24 = vld [vmem:[%s596_s1 + $0x90] sm:$0xff]  ;;  %v442_v26 = vld [vmem:[%s596_s1 + $0x48] sm:$0xff]  ;;  %v441_v29 = vld [vmem:[%s596_s1 + $0x40] sm:$0xff] }
   0xa   :  { %256 = vmatpush.bf16.msra.mxu0 %v438_v7  ;;  %v450_v27 = vld [vmem:[%s596_s1 + $0x88] sm:$0xff]  ;;  %v318_v30 = vld [vmem:[%s597_s0] sm:$0xf]  ;;  %v460_v31 = vld [vmem:[%s597_s0 + $0xc] sm:$0xf0] }
   0xb   :  { %270 = vmatpush.bf16.msra.mxu1 %v446_v8  ;;  %v458_v32 = vld [vmem:[%s597_s0 + $0x4] sm:$0xf]  ;;  %v320_v33 = vld [vmem:[%s597_s0 + $0x10] sm:$0xf0]  ;;  %v326_v35 = vld [vmem:[%s597_s0 + $0x8] sm:$0xf]  ;;  %v319_v37 = vor.u32 %v460_v31, %v318_v30 }
   0xc   :  { %284 = vmatpush.bf16.msra.mxu2 %v454_v10  ;;  %v449_v34 = vld [vmem:[%s596_s1 + $0x80] sm:$0xff]  ;;  %v461_v36 = vld [vmem:[%s597_s0 + $0x14] sm:$0xf0]  ;;  %v323_v38 = vor.u32 %v458_v32, %v320_v33 }
   0xd   :  { %v327_v39 = vor.u32 %v461_v36, %v326_v35 }
   0xe   :  { %257 = vmatpush.bf16.msra.mxu0 %v437_v14 }
   0xf   :  { %271 = vmatpush.bf16.msra.mxu1 %v445_v15 }
  0x10   :  { %285 = vmatpush.bf16.msra.mxu2 %v453_v16 }
  0x11   :  { %78 = vperm.xlu0 %463, %v70_v21  }
  0x12   :  { %258 = vmatpush.bf16.msra.mxu0 %v436_v18 }
  0x13   :  { %272 = vmatpush.bf16.msra.mxu1 %v444_v19 }
  0x14   :  { %286 = vmatpush.bf16.msra.mxu2 %v452_v20 }
  0x16   :  { %259 = vmatpush.bf16.msra.mxu0 %v435_v22 }
  0x17   :  { %273 = vmatpush.bf16.msra.mxu1 %v443_v23 }
  0x18   :  { %287 = vmatpush.bf16.msra.mxu2 %v451_v24 }
  0x1a   :  { %260 = vmatpush.bf16.msra.mxu0 %v434_v25 }
  0x1b   :  { %274 = vmatpush.bf16.msra.mxu1 %v442_v26 }
  0x1c   :  { %288 = vmatpush.bf16.msra.mxu2 %v450_v27 }
  0x1e   :  { %261 = vmatpush.bf16.msra.mxu0 %v433_v28 }
  0x1f   :  { %275 = vmatpush.bf16.msra.mxu1 %v441_v29 }
  0x20   :  { %289 = vmatpush.bf16.msra.mxu2 %v449_v34 }
  0x21   :  { %262 = vmatmul.bf16.vlgmr.msra.gmra.mxu0 %v319_v37 }
  0x22   :  { %276 = vmatmul.bf16.vlgmr.msra.gmra.mxu1 %v323_v38 }
  0x23   :  { %290 = vmatmul.bf16.vlgmr.msra.gmra.mxu2 %v327_v39 }
  0x7b   :  { %v74_v40 = vpop.permute.xlu0 %73 }
  0x83   :  { %v79_v49 = vpop.permute.xlu0 %78 }
  0x8b   :  { %v305_v45 = vpop.f32.mrf.mxu3 }
  0x93   :  { %v307_v56 = vpop.f32.mrf.mxu3 }
  0x9e   :  { %v263_v41 = vpop.f32.mrf.mxu0 }
  0x9f   :  { %v264_v42 = vadd.f32 %v263_v41, %v74_v40  ;;  %v277_v43 = vpop.f32.mrf.mxu1 }
  0xa1   :  { %v278_v44 = vadd.f32 %v277_v43, %v264_v42 }
  0xa6   :  { %v291_v46 = vpop.f32.mrf.mxu2  ;;  %v265_v48 = vpop.f32.mrf.mxu0 }
  0xa7   :  { %v292_v47 = vadd.f32 %v291_v46, %v278_v44  ;;  %v266_v51 = vadd.f32 %v265_v48, %v79_v49  ;;  %v279_v52 = vpop.f32.mrf.mxu1 }
  0xa9   :  { %v306_v50 = vadd.f32 %v305_v45, %v292_v47  ;;  %v280_v53 = vadd.f32 %v279_v52, %v266_v51 }
  0xab   :  { %310 = vst [vmem:[%s599_s3] sm:$0xff] %v306_v50 }
  0xae   :  { %v293_v54 = vpop.f32.mrf.mxu2 }
  0xaf   :  { %v294_v55 = vadd.f32 %v293_v54, %v280_v53 }
  0xb1   :  { %v308_v57 = vadd.f32 %v307_v56, %v294_v55 }
  0xb3   :  { %311 = vst [vmem:[%s599_s3 + $0x8] sm:$0xff] %v308_v57 }

// kernel: enc_forward.157
= control target key start
LH: loop header
LB: loop body
LE: loop exit
PB: predicated region body
PF: predicated region fallthrough
CT: control target
= control target key end

     0   :  { %v208_v4 = vmov 0   ;;  %vm110_vm0 = vcmask 130048   ;;  %s280_s1 = inlined_call_operand.vmem [shape: bf16[144,128], index: 1, kind: input, shape index: {}]   ;;  %s281_s0 = inlined_call_operand.vmem [shape: bf16[16,144], index: 0, kind: input, shape index: {}]   ;;  %s282_s2 = inlined_call_operand.vmem [shape: f32[16,1], index: 2, kind: input, shape index: {}]   ;;  %s283_s3 = inlined_call_operand.vmem [shape: f32[16,128], index: 3, kind: output, shape index: {}]  }
   0x1   :  { %v202_v0 = vld [vmem:[%s280_s1 + $0x38] sm:$0xff]  ;;  %v201_v1 = vld [vmem:[%s280_s1 + $0x30] sm:$0xff]  ;;  %v203_v2 = vld [vmem:[%s280_s1 + $0x40] sm:$0xff]  ;;  %207 = vset.pattern.permute.xlu0 %v208_v4 }
   0x2   :  { %114 = vmatpush.bf16.msra.mxu0 %v202_v0  ;;  %v204_v3 = vld [vmem:[%s281_s0 + $0x4] sm:$0xf]  ;;  %v154_v5 = vld [vmem:[%s281_s0 + $0x8] sm:$0xf0]  ;;  %135 = vmatpush.bf16.msra.mxu1 %v203_v2  ;;  %v198_v11 = vld [vmem:[%s280_s1 + $0x18] sm:$0xff] }
   0x3   :  { %v157_v6 = vor.u32 %v204_v3, %v154_v5  ;;  %v35_v7 = vld [vmem:[%s282_s2] sm:$0xff]  ;;  %v200_v8 = vld [vmem:[%s280_s1 + $0x28] sm:$0xff]  ;;  %v197_v12 = vld [vmem:[%s280_s1 + $0x10] sm:$0xff] }
   0x4   :  { %39 = vperm.xlu0 %207, %v35_v7   ;;  %v199_v9 = vld [vmem:[%s280_s1 + $0x20] sm:$0xff]  ;;  %v36_v10 = vld [vmem:[%s282_s2 + $0x8] sm:$0xff] }
   0x5   :  { %194 = vmatmul.msk.bf16.vlgmr.msra.gmra.mxu1 %vm110_vm0, %v157_v6  ;;  %v196_v13 = vld [vmem:[%s280_s1 + $0x8] sm:$0xff]  ;;  %v195_v14 = vld [vmem:[%s280_s1] sm:$0xff] }
   0x6   :  { %115 = vmatpush.bf16.msra.mxu0 %v201_v1  ;;  %v152_v15 = vld [vmem:[%s281_s0] sm:$0xf]  ;;  %v205_v16 = vld [vmem:[%s281_s0 + $0x4] sm:$0xf0] }
   0x7   :  { %v153_v17 = vor.u32 %v205_v16, %v152_v15 }
   0xa   :  { %116 = vmatpush.bf16.msra.mxu0 %v200_v8 }
   0xc   :  { %44 = vperm.xlu0 %207, %v36_v10  }
   0xe   :  { %117 = vmatpush.bf16.msra.mxu0 %v199_v9 }
  0x12   :  { %118 = vmatpush.bf16.msra.mxu0 %v198_v11 }
  0x16   :  { %119 = vmatpush.bf16.msra.mxu0 %v197_v12 }
  0x1a   :  { %120 = vmatpush.bf16.msra.mxu0 %v196_v13 }
  0x1e   :  { %121 = vmatpush.bf16.msra.mxu0 %v195_v14 }
  0x21   :  { %122 = vmatmul.bf16.vlgmr.msra.gmra.mxu0 %v153_v17 }
  0x76   :  { %v40_v18 = vpop.permute.xlu0 %39 }
  0x7e   :  { %v45_v24 = vpop.permute.xlu0 %44 }
  0x82   :  { %v137_v19 = vpop.f32.mrf.mxu1 }
  0x8a   :  { %v139_v27 = vpop.f32.mrf.mxu1 }
  0x9e   :  { %v123_v20 = vpop.f32.mrf.mxu0 }
  0x9f   :  { %v124_v21 = vadd.f32 %v123_v20, %v40_v18 }
  0xa1   :  { %v138_v22 = vadd.f32 %v137_v19, %v124_v21 }
  0xa3   :  { %v142_v23 = vmax.f32 %v138_v22, 0.0 }
  0xa5   :  { %144 = vst [vmem:[%s283_s3] sm:$0xff] %v142_v23 }
  0xa6   :  { %v125_v25 = vpop.f32.mrf.mxu0 }
  0xa7   :  { %v126_v26 = vadd.f32 %v125_v25, %v45_v24 }
  0xa9   :  { %v140_v28 = vadd.f32 %v139_v27, %v126_v26 }
  0xab   :  { %v143_v29 = vmax.f32 %v140_v28, 0.0 }
  0xad   :  { %145 = vst [vmem:[%s283_s3 + $0x8] sm:$0xff] %v143_v29 }

// kernel: enc_forward.158
= control target key start
LH: loop header
LB: loop body
LE: loop exit
PB: predicated region body
PF: predicated region fallthrough
CT: control target
= control target key end

     0   :  { %v213_v4 = vmov 0   ;;  %vm113_vm0 = vcmask 130048   ;;  %s296_s1 = inlined_call_operand.vmem [shape: bf16[144,128], index: 1, kind: input, shape index: {}]   ;;  %s297_s0 = inlined_call_operand.vmem [shape: bf16[16,144], index: 0, kind: input, shape index: {}]   ;;  %s298_s2 = inlined_call_operand.vmem [shape: f32[16,1], index: 2, kind: input, shape index: {}]   ;;  %s299_s3 = inlined_call_operand.vmem [shape: f32[16,128], index: 3, kind: input, shape index: {}]   ;;  %s300_s4 = inlined_call_operand.vmem [shape: f32[16,128], index: 4, kind: output, shape index: {}]  }
   0x1   :  { %v207_v0 = vld [vmem:[%s296_s1 + $0x38] sm:$0xff]  ;;  %v206_v1 = vld [vmem:[%s296_s1 + $0x30] sm:$0xff]  ;;  %v208_v2 = vld [vmem:[%s296_s1 + $0x40] sm:$0xff]  ;;  %212 = vset.pattern.permute.xlu0 %v213_v4 }
   0x2   :  { %117 = vmatpush.bf16.msra.mxu0 %v207_v0  ;;  %v209_v3 = vld [vmem:[%s297_s0 + $0x4] sm:$0xf]  ;;  %v159_v5 = vld [vmem:[%s297_s0 + $0x8] sm:$0xf0]  ;;  %138 = vmatpush.bf16.msra.mxu1 %v208_v2  ;;  %v203_v11 = vld [vmem:[%s296_s1 + $0x18] sm:$0xff] }
   0x3   :  { %v162_v6 = vor.u32 %v209_v3, %v159_v5  ;;  %v38_v7 = vld [vmem:[%s298_s2] sm:$0xff]  ;;  %v205_v8 = vld [vmem:[%s296_s1 + $0x28] sm:$0xff]  ;;  %v202_v12 = vld [vmem:[%s296_s1 + $0x10] sm:$0xff] }
   0x4   :  { %42 = vperm.xlu0 %212, %v38_v7   ;;  %v204_v9 = vld [vmem:[%s296_s1 + $0x20] sm:$0xff]  ;;  %v39_v10 = vld [vmem:[%s298_s2 + $0x8] sm:$0xff] }
   0x5   :  { %199 = vmatmul.msk.bf16.vlgmr.msra.gmra.mxu1 %vm113_vm0, %v162_v6  ;;  %v201_v13 = vld [vmem:[%s296_s1 + $0x8] sm:$0xff]  ;;  %v200_v14 = vld [vmem:[%s296_s1] sm:$0xff] }
   0x6   :  { %118 = vmatpush.bf16.msra.mxu0 %v206_v1  ;;  %v157_v15 = vld [vmem:[%s297_s0] sm:$0xf]  ;;  %v210_v16 = vld [vmem:[%s297_s0 + $0x4] sm:$0xf0] }
   0x7   :  { %v158_v17 = vor.u32 %v210_v16, %v157_v15  ;;  %v145_v22 = vld [vmem:[%s299_s3] sm:$0xff]  ;;  %v146_v29 = vld [vmem:[%s299_s3 + $0x8] sm:$0xff] }
   0xa   :  { %119 = vmatpush.bf16.msra.mxu0 %v205_v8 }
   0xc   :  { %47 = vperm.xlu0 %212, %v39_v10  }
   0xe   :  { %120 = vmatpush.bf16.msra.mxu0 %v204_v9 }
  0x12   :  { %121 = vmatpush.bf16.msra.mxu0 %v203_v11 }
  0x16   :  { %122 = vmatpush.bf16.msra.mxu0 %v202_v12 }
  0x1a   :  { %123 = vmatpush.bf16.msra.mxu0 %v201_v13 }
  0x1e   :  { %124 = vmatpush.bf16.msra.mxu0 %v200_v14 }
  0x21   :  { %125 = vmatmul.bf16.vlgmr.msra.gmra.mxu0 %v158_v17 }
  0x76   :  { %v43_v18 = vpop.permute.xlu0 %42 }
  0x7e   :  { %v48_v25 = vpop.permute.xlu0 %47 }
  0x82   :  { %v140_v19 = vpop.f32.mrf.mxu1 }
  0x8a   :  { %v142_v28 = vpop.f32.mrf.mxu1 }
  0x9e   :  { %v126_v20 = vpop.f32.mrf.mxu0 }
  0x9f   :  { %v127_v21 = vadd.f32 %v126_v20, %v43_v18 }
  0xa1   :  { %v141_v23 = vadd.f32 %v140_v19, %v127_v21 }
  0xa3   :  { %v147_v24 = vadd.f32 %v145_v22, %v141_v23 }
  0xa5   :  { %149 = vst [vmem:[%s300_s4] sm:$0xff] %v147_v24 }
  0xa6   :  { %v128_v26 = vpop.f32.mrf.mxu0 }
  0xa7   :  { %v129_v27 = vadd.f32 %v128_v26, %v48_v25 }
  0xa9   :  { %v143_v30 = vadd.f32 %v142_v28, %v129_v27 }
  0xab   :  { %v148_v31 = vadd.f32 %v146_v29, %v143_v30 }
  0xad   :  { %150 = vst [vmem:[%s300_s4 + $0x8] sm:$0xff] %v148_v31 }

// kernel: enc_forward.163
= control target key start
LH: loop header
LB: loop body
LE: loop exit
PB: predicated region body
PF: predicated region fallthrough
CT: control target
= control target key end

     0   :  { %v286_v4 = vmov 0   ;;  %vm116_vm0 = vcmask 130048   ;;  %s383_s1 = inlined_call_operand.vmem [shape: bf16[144,128], index: 1, kind: input, shape index: {}]   ;;  %s384_s0 = inlined_call_operand.vmem [shape: bf16[16,144], index: 0, kind: input, shape index: {}]   ;;  %s385_s2 = inlined_call_operand.vmem [shape: f32[16,1], index: 2, kind: input, shape index: {}]   ;;  %s386_s4 = inlined_call_operand.vmem [shape: f32[16,1], index: 4, kind: input, shape index: {}]   ;;  %s387_s3 = inlined_call_operand.vmem [shape: f32[16,16], index: 3, kind: input, shape index: {}]   ;;  %s388_s5 = inlined_call_operand.vmem [shape: f32[16,128], index: 5, kind: output, shape index: {}]  }
   0x1   :  { %v275_v0 = vld [vmem:[%s383_s1 + $0x38] sm:$0xff]  ;;  %v274_v1 = vld [vmem:[%s383_s1 + $0x30] sm:$0xff]  ;;  %v276_v2 = vld [vmem:[%s383_s1 + $0x40] sm:$0xff]  ;;  %280 = vset.pattern.permute.xlu0 %v286_v4  ;;  %281 = vset.pattern.permute.xlu1 %v286_v4 }
   0x2   :  { %120 = vmatpush.bf16.msra.mxu0 %v275_v0  ;;  %v277_v3 = vld [vmem:[%s384_s0 + $0x4] sm:$0xf]  ;;  %v225_v5 = vld [vmem:[%s384_s0 + $0x8] sm:$0xf0]  ;;  %141 = vmatpush.bf16.msra.mxu1 %v276_v2  ;;  %v271_v11 = vld [vmem:[%s383_s1 + $0x18] sm:$0xff] }
   0x3   :  { %v228_v6 = vor.u32 %v277_v3, %v225_v5  ;;  %v42_v7 = vld [vmem:[%s385_s2 + $0x8] sm:$0xff]  ;;  %v272_v9 = vld [vmem:[%s383_s1 + $0x20] sm:$0xff]  ;;  %v270_v12 = vld [vmem:[%s383_s1 + $0x10] sm:$0xff] }
   0x4   :  { %50 = vperm.xlu0 %280, %v42_v7   ;;  %v273_v8 = vld [vmem:[%s383_s1 + $0x28] sm:$0xff]  ;;  %v41_v10 = vld [vmem:[%s385_s2] sm:$0xff] }
   0x5   :  { %265 = vmatmul.msk.bf16.vlgmr.msra.gmra.mxu1 %vm116_vm0, %v228_v6  ;;  %v269_v13 = vld [vmem:[%s383_s1 + $0x8] sm:$0xff]  ;;  %v268_v14 = vld [vmem:[%s383_s1] sm:$0xff] }
   0x6   :  { %121 = vmatpush.bf16.msra.mxu0 %v274_v1  ;;  %v223_v15 = vld [vmem:[%s384_s0] sm:$0xf]  ;;  %v278_v16 = vld [vmem:[%s384_s0 + $0x4] sm:$0xf0] }
   0x7   :  { %v224_v17 = vor.u32 %v278_v16, %v223_v15  ;;  %v152_v19 = vld [vmem:[%s386_s4] sm:$0xff]  ;;  %v153_v22 = vld [vmem:[%s386_s4 + $0x8] sm:$0xff] }
   0x8   :  { %156 = vperm.xlu1 %281, %v152_v19   ;;  %v148_v32 = vld [vmem:[%s387_s3] sm:$0xff]  ;;  %v149_v33 = vld [vmem:[%s387_s3 + $0x8] sm:$0xff] }
   0xa   :  { %122 = vmatpush.bf16.msra.mxu0 %v273_v8 }
   0xc   :  { %45 = vperm.xlu0 %280, %v41_v10  }
   0xe   :  { %123 = vmatpush.bf16.msra.mxu0 %v272_v9 }
  0x10   :  { %161 = vperm.xlu1 %281, %v153_v22  }
  0x12   :  { %124 = vmatpush.bf16.msra.mxu0 %v271_v11 }
  0x16   :  { %125 = vmatpush.bf16.msra.mxu0 %v270_v12 }
  0x1a   :  { %126 = vmatpush.bf16.msra.mxu0 %v269_v13 }
  0x1e   :  { %127 = vmatpush.bf16.msra.mxu0 %v268_v14 }
  0x21   :  { %128 = vmatmul.bf16.vlgmr.msra.gmra.mxu0 %v224_v17 }
  0x76   :  { %v51_v18 = vpop.permute.xlu0 %50 }
  0x7a   :  { %v157_v34 = vpop.permute.xlu1 %156 }
  0x7e   :  { %v46_v23 = vpop.permute.xlu0 %45 }
  0x82   :  { %v143_v20 = vpop.f32.mrf.mxu1  ;;  %v162_v37 = vpop.permute.xlu1 %161 }
  0x8a   :  { %v145_v27 = vpop.f32.mrf.mxu1 }
  0x9e   :  { %v129_v21 = vpop.f32.mrf.mxu0 }
  0x9f   :  { %v130_v24 = vadd.f32 %v129_v21, %v46_v23 }
  0xa1   :  { %v144_v28 = vadd.f32 %v143_v20, %v130_v24 }
  0xa3   :  { %v150_v31 = vmul.f32 %v144_v28, %v144_v28 }
  0xa6   :  { %v131_v25 = vpop.f32.mrf.mxu0 }
  0xa7   :  { %v132_v26 = vadd.f32 %v131_v25, %v51_v18 }
  0xa9   :  { %v146_v29 = vadd.f32 %v145_v27, %v132_v26 }
  0xab   :  { %v151_v30 = vmul.f32 %v146_v29, %v146_v29 }
  0xad   :  { %184 = vmatpush.msra.mxu2 %v151_v30 }
  0xaf   :  { %185 = vmatpush.msra.mxu2 %v150_v31 }
  0xb0   :  { %266 = vmatmul.msk.f32.vlgmr.msra.gmra.mxu2 %vm116_vm0, %v148_v32 }
  0xb8   :  { %267 = vmatmul.msk.f32.gmra.mxu2 %vm116_vm0, %v149_v33 }
 0x133   :  { %v187_v35 = vpop.f32.mrf.mxu2 }
 0x134   :  { %v188_v36 = vadd.f32 %v187_v35, %v157_v34 }
 0x136   :  { %282 = vrsqrt.f32 %v188_v36  ;;  %vm199_vm2 = vweird.f32 %v188_v36 }
 0x13b   :  { %v190_v38 = vpop.f32.mrf.mxu2 }
 0x13c   :  { %v283_v39 = vpop.eup %282  ;;  %v191_v40 = vadd.f32 %v190_v38, %v162_v37 }
 0x13d   :  { %v194_v41 = vmul.f32 %v283_v39, %v188_v36  ;;  %vm200_vm1 = vweird.f32 %v283_v39 }
 0x13e   :  { %284 = vrsqrt.f32 %v191_v40  ;;  %vm201_vm3 = vmor %vm199_vm2, %vm200_vm1  ;;  %vm209_vm5 = vweird.f32 %v191_v40 }
 0x13f   :  { %v195_v42 = vmul.f32 %v283_v39, %v194_v41 }
 0x141   :  { %v196_v43 = vmul.f32 0.5, %v195_v42 }
 0x143   :  { %v197_v44 = vsub.f32 1.5, %v196_v43 }
 0x144   :  { %v285_v45 = vpop.eup %284 }
 0x145   :  { %v198_v46 = vmul.f32 %v283_v39, %v197_v44  ;;  %v204_v47 = vmul.f32 %v285_v45, %v191_v40  ;;  %vm210_vm4 = vweird.f32 %v285_v45 }
 0x146   :  { %vm211_vm6 = vmor %vm209_vm5, %vm210_vm4 }
 0x147   :  { %v202_v48 = vsel %vm201_vm3, %v283_v39, %v198_v46  ;;  %v205_v49 = vmul.f32 %v285_v45, %v204_v47 }
 0x148   :  { %v213_v50 = vmul.f32 %v202_v48, %v144_v28 }
 0x149   :  { %v206_v51 = vmul.f32 0.5, %v205_v49 }
 0x14a   :  { %215 = vst [vmem:[%s388_s5] sm:$0xff] %v213_v50 }
 0x14b   :  { %v207_v52 = vsub.f32 1.5, %v206_v51 }
 0x14d   :  { %v208_v53 = vmul.f32 %v285_v45, %v207_v52 }
 0x14f   :  { %v212_v54 = vsel %vm211_vm6, %v285_v45, %v208_v53 }
 0x150   :  { %v214_v55 = vmul.f32 %v212_v54, %v146_v29 }
 0x152   :  { %216 = vst [vmem:[%s388_s5 + $0x8] sm:$0xff] %v214_v55 }

// kernel: enc_forward.164
= control target key start
LH: loop header
LB: loop body
LE: loop exit
PB: predicated region body
PF: predicated region fallthrough
CT: control target
= control target key end

     0   :  { %v293_v4 = vmov 0   ;;  %vm119_vm0 = vcmask 130048   ;;  %s401_s1 = inlined_call_operand.vmem [shape: bf16[144,128], index: 1, kind: input, shape index: {}]   ;;  %s402_s0 = inlined_call_operand.vmem [shape: bf16[16,144], index: 0, kind: input, shape index: {}]   ;;  %s403_s2 = inlined_call_operand.vmem [shape: f32[16,1], index: 2, kind: input, shape index: {}]   ;;  %s404_s4 = inlined_call_operand.vmem [shape: f32[16,1], index: 4, kind: input, shape index: {}]   ;;  %s405_s3 = inlined_call_operand.vmem [shape: f32[16,16], index: 3, kind: input, shape index: {}]   ;;  %s406_s5 = inlined_call_operand.vmem [shape: f32[16,128], index: 5, kind: input, shape index: {}]   ;;  %s407_s6 = inlined_call_operand.vmem [shape: f32[16,128], index: 6, kind: output, shape index: {}]  }
   0x1   :  { %v282_v0 = vld [vmem:[%s401_s1 + $0x38] sm:$0xff]  ;;  %v281_v1 = vld [vmem:[%s401_s1 + $0x30] sm:$0xff]  ;;  %v283_v2 = vld [vmem:[%s401_s1 + $0x40] sm:$0xff]  ;;  %287 = vset.pattern.permute.xlu0 %v293_v4  ;;  %288 = vset.pattern.permute.xlu1 %v293_v4 }
   0x2   :  { %123 = vmatpush.bf16.msra.mxu0 %v282_v0  ;;  %v284_v3 = vld [vmem:[%s402_s0 + $0x4] sm:$0xf]  ;;  %v232_v5 = vld [vmem:[%s402_s0 + $0x8] sm:$0xf0]  ;;  %144 = vmatpush.bf16.msra.mxu1 %v283_v2  ;;  %v278_v11 = vld [vmem:[%s401_s1 + $0x18] sm:$0xff] }
   0x3   :  { %v235_v6 = vor.u32 %v284_v3, %v232_v5  ;;  %v45_v7 = vld [vmem:[%s403_s2 + $0x8] sm:$0xff]  ;;  %v279_v9 = vld [vmem:[%s401_s1 + $0x20] sm:$0xff]  ;;  %v277_v12 = vld [vmem:[%s401_s1 + $0x10] sm:$0xff] }
   0x4   :  { %53 = vperm.xlu0 %287, %v45_v7   ;;  %v280_v8 = vld [vmem:[%s401_s1 + $0x28] sm:$0xff]  ;;  %v44_v10 = vld [vmem:[%s403_s2] sm:$0xff] }
   0x5   :  { %272 = vmatmul.msk.bf16.vlgmr.msra.gmra.mxu1 %vm119_vm0, %v235_v6  ;;  %v276_v13 = vld [vmem:[%s401_s1 + $0x8] sm:$0xff]  ;;  %v275_v14 = vld [vmem:[%s401_s1] sm:$0xff] }
   0x6   :  { %124 = vmatpush.bf16.msra.mxu0 %v281_v1  ;;  %v230_v15 = vld [vmem:[%s402_s0] sm:$0xf]  ;;  %v285_v16 = vld [vmem:[%s402_s0 + $0x4] sm:$0xf0] }
   0x7   :  { %v231_v17 = vor.u32 %v285_v16, %v230_v15  ;;  %v155_v19 = vld [vmem:[%s404_s4] sm:$0xff]  ;;  %v156_v22 = vld [vmem:[%s404_s4 + $0x8] sm:$0xff] }
   0x8   :  { %159 = vperm.xlu1 %288, %v155_v19   ;;  %v151_v32 = vld [vmem:[%s405_s3] sm:$0xff]  ;;  %v152_v33 = vld [vmem:[%s405_s3 + $0x8] sm:$0xff] }
   0x9   :  { %v218_v49 = vld [vmem:[%s406_s5] sm:$0xff]  ;;  %v219_v57 = vld [vmem:[%s406_s5 + $0x8] sm:$0xff] }
   0xa   :  { %125 = vmatpush.bf16.msra.mxu0 %v280_v8 }
   0xc   :  { %48 = vperm.xlu0 %287, %v44_v10  }
   0xe   :  { %126 = vmatpush.bf16.msra.mxu0 %v279_v9 }
  0x10   :  { %164 = vperm.xlu1 %288, %v156_v22  }
  0x12   :  { %127 = vmatpush.bf16.msra.mxu0 %v278_v11 }
  0x16   :  { %128 = vmatpush.bf16.msra.mxu0 %v277_v12 }
  0x1a   :  { %129 = vmatpush.bf16.msra.mxu0 %v276_v13 }
  0x1e   :  { %130 = vmatpush.bf16.msra.mxu0 %v275_v14 }
  0x21   :  { %131 = vmatmul.bf16.vlgmr.msra.gmra.mxu0 %v231_v17 }
  0x76   :  { %v54_v18 = vpop.permute.xlu0 %53 }
  0x7a   :  { %v160_v34 = vpop.permute.xlu1 %159 }
  0x7e   :  { %v49_v23 = vpop.permute.xlu0 %48 }
  0x82   :  { %v146_v20 = vpop.f32.mrf.mxu1  ;;  %v165_v37 = vpop.permute.xlu1 %164 }
  0x8a   :  { %v148_v27 = vpop.f32.mrf.mxu1 }
  0x9e   :  { %v132_v21 = vpop.f32.mrf.mxu0 }
  0x9f   :  { %v133_v24 = vadd.f32 %v132_v21, %v49_v23 }
  0xa1   :  { %v147_v28 = vadd.f32 %v146_v20, %v133_v24 }
  0xa3   :  { %v153_v31 = vmul.f32 %v147_v28, %v147_v28 }
  0xa6   :  { %v134_v25 = vpop.f32.mrf.mxu0 }
  0xa7   :  { %v135_v26 = vadd.f32 %v134_v25, %v54_v18 }
  0xa9   :  { %v149_v29 = vadd.f32 %v148_v27, %v135_v26 }
  0xab   :  { %v154_v30 = vmul.f32 %v149_v29, %v149_v29 }
  0xad   :  { %187 = vmatpush.msra.mxu2 %v154_v30 }
  0xaf   :  { %188 = vmatpush.msra.mxu2 %v153_v31 }
  0xb0   :  { %273 = vmatmul.msk.f32.vlgmr.msra.gmra.mxu2 %vm119_vm0, %v151_v32 }
  0xb8   :  { %274 = vmatmul.msk.f32.gmra.mxu2 %vm119_vm0, %v152_v33 }
 0x133   :  { %v190_v35 = vpop.f32.mrf.mxu2 }
 0x134   :  { %v191_v36 = vadd.f32 %v190_v35, %v160_v34 }
 0x136   :  { %289 = vrsqrt.f32 %v191_v36  ;;  %vm202_vm2 = vweird.f32 %v191_v36 }
 0x13b   :  { %v193_v38 = vpop.f32.mrf.mxu2 }
 0x13c   :  { %v290_v39 = vpop.eup %289  ;;  %v194_v40 = vadd.f32 %v193_v38, %v165_v37 }
 0x13d   :  { %v197_v41 = vmul.f32 %v290_v39, %v191_v36  ;;  %vm203_vm1 = vweird.f32 %v290_v39 }
 0x13e   :  { %291 = vrsqrt.f32 %v194_v40  ;;  %vm204_vm3 = vmor %vm202_vm2, %vm203_vm1  ;;  %vm212_vm5 = vweird.f32 %v194_v40 }
 0x13f   :  { %v198_v42 = vmul.f32 %v290_v39, %v197_v41 }
 0x141   :  { %v199_v43 = vmul.f32 0.5, %v198_v42 }
 0x143   :  { %v200_v44 = vsub.f32 1.5, %v199_v43 }
 0x144   :  { %v292_v45 = vpop.eup %291 }
 0x145   :  { %v201_v46 = vmul.f32 %v290_v39, %v200_v44  ;;  %v207_v47 = vmul.f32 %v292_v45, %v194_v40  ;;  %vm213_vm4 = vweird.f32 %v292_v45 }
 0x146   :  { %vm214_vm6 = vmor %vm212_vm5, %vm213_vm4 }
 0x147   :  { %v205_v48 = vsel %vm204_vm3, %v290_v39, %v201_v46  ;;  %v208_v50 = vmul.f32 %v292_v45, %v207_v47 }
 0x148   :  { %v216_v51 = vmul.f32 %v205_v48, %v147_v28 }
 0x149   :  { %v209_v52 = vmul.f32 0.5, %v208_v50 }
 0x14a   :  { %v220_v53 = vadd.f32 %v218_v49, %v216_v51 }
 0x14b   :  { %v210_v54 = vsub.f32 1.5, %v209_v52 }
 0x14c   :  { %222 = vst [vmem:[%s407_s6] sm:$0xff] %v220_v53 }
 0x14d   :  { %v211_v55 = vmul.f32 %v292_v45, %v210_v54 }
 0x14f   :  { %v215_v56 = vsel %vm214_vm6, %v292_v45, %v211_v55 }
 0x150   :  { %v217_v58 = vmul.f32 %v215_v56, %v149_v29 }
 0x152   :  { %v221_v59 = vadd.f32 %v219_v57, %v217_v58 }
 0x154   :  { %223 = vst [vmem:[%s407_s6 + $0x8] sm:$0xff] %v221_v59 }

// kernel: enc_forward.173
= control target key start
LH: loop header
LB: loop body
LE: loop exit
PB: predicated region body
PF: predicated region fallthrough
CT: control target
= control target key end

     0   :  { %v129_v2 = vmov 0   ;;  %vm43_vm0 = vcmask 130048   ;;  %s193_s1 = inlined_call_operand.vmem [shape: f32[16,128], index: 1, kind: input, shape index: {}]   ;;  %s194_s0 = inlined_call_operand.vmem [shape: bf16[16,16], index: 0, kind: input, shape index: {}]   ;;  %s195_s2 = inlined_call_operand.vmem [shape: f32[16,1], index: 2, kind: input, shape index: {}]   ;;  %s196_s3 = inlined_call_operand.vmem [shape: f32[16,128], index: 3, kind: input, shape index: {}]   ;;  %s197_s4 = inlined_call_operand.vmem [shape: f32[16,128], index: 4, kind: input, shape index: {}]   ;;  %s198_s5 = inlined_call_operand.vmem [shape: f32[16,128], index: 5, kind: output, shape index: {}]  }
   0x1   :  { %v21_v0 = vld [vmem:[%s193_s1] sm:$0xff]  ;;  %v22_v1 = vld [vmem:[%s193_s1 + $0x8] sm:$0xff]  ;;  %120 = vset.pattern.permute.xlu0 %v129_v2 }
   0x2   :  { %v23_v3 = vpack.c.bf16 %v22_v1, %v21_v0  ;;  %v26_v4 = vld [vmem:[%s195_s2] sm:$0xff]  ;;  %v27_v6 = vld [vmem:[%s195_s2 + $0x8] sm:$0xff] }
   0x3   :  { %v118_v5 = vld [vmem:[%s194_s0] sm:$0xff]  ;;  %30 = vperm.xlu0 %120, %v26_v4   ;;  %v100_v43 = vld [vmem:[%s196_s3 + $0x8] sm:$0xff] }
   0x4   :  { %54 = vmatpush.bf16.msra.mxu0 %v23_v3  ;;  %v99_v30 = vld [vmem:[%s196_s3] sm:$0xff]  ;;  %v104_v46 = vld [vmem:[%s197_s4 + $0x8] sm:$0xff] }
   0x5   :  { %v103_v34 = vld [vmem:[%s197_s4] sm:$0xff] }
   0x7   :  { %117 = vmatmul.msk.bf16.vlgmr.msra.gmra.mxu0 %vm43_vm0, %v118_v5 }
   0xb   :  { %35 = vperm.xlu0 %120, %v27_v6  }
  0x75   :  { %v31_v7 = vpop.permute.xlu0 %30 }
  0x7d   :  { %v36_v12 = vpop.permute.xlu0 %35 }
  0x84   :  { %v56_v8 = vpop.f32.mrf.mxu0 }
  0x85   :  { %v57_v9 = vadd.f32 %v56_v8, %v31_v7 }
  0x87   :  { %v61_v10 = vsub.f32 0.0, %v57_v9 }
  0x89   :  { %v63_v11 = vmul.f32 1.442695, %v61_v10 }
  0x8b   :  { %121 = vpow2.f32 %v63_v11 }
  0x8c   :  { %v58_v13 = vpop.f32.mrf.mxu0 }
  0x8d   :  { %v59_v14 = vadd.f32 %v58_v13, %v36_v12 }
  0x8f   :  { %v62_v15 = vsub.f32 0.0, %v59_v14 }
  0x91   :  { %v122_v16 = vpop.eup %121  ;;  %v65_v17 = vmul.f32 1.442695, %v62_v15 }
  0x92   :  { %v67_v18 = vadd.f32 1.0, %v122_v16 }
  0x93   :  { %123 = vpow2.f32 %v65_v17 }
  0x94   :  { %125 = vrcp.f32 %v67_v18  ;;  %v80_v24 = vand.u32 2147483648, %v67_v18  ;;  %v78_v26 = vand.u32 2147483647, %v67_v18  ;;  %vm74_vm2 = vweird.f32 %v67_v18 }
  0x96   :  { %v81_v29 = vor.u32 1.1754944e-38, %v80_v24  ;;  %vm79_vm4 = vcmp.eq.f32.partialorder %v78_v26, 8.507059e+37 }
  0x99   :  { %v124_v19 = vpop.eup %123 }
  0x9a   :  { %v126_v20 = vpop.eup %125  ;;  %v68_v21 = vadd.f32 1.0, %v124_v19 }
  0x9b   :  { %v70_v22 = vmul.f32 %v126_v20, %v67_v18  ;;  %vm75_vm1 = vweird.f32 %v126_v20 }
  0x9c   :  { %127 = vrcp.f32 %v68_v21  ;;  %vm76_vm3 = vmor %vm74_vm2, %vm75_vm1  ;;  %v95_v37 = vand.u32 2147483648, %v68_v21  ;;  %v93_v40 = vand.u32 2147483647, %v68_v21  ;;  %vm89_vm6 = vweird.f32 %v68_v21 }
  0x9d   :  { %v71_v23 = vsub.f32 1.0, %v70_v22 }
  0x9e   :  { %v96_v42 = vor.u32 1.1754944e-38, %v95_v37  ;;  %vm94_vm8 = vcmp.eq.f32.partialorder %v93_v40, 8.507059e+37 }
  0x9f   :  { %v72_v25 = vmul.f32 %v126_v20, %v71_v23 }
  0xa1   :  { %v73_v27 = vadd.f32 %v126_v20, %v72_v25 }
  0xa2   :  { %v128_v28 = vpop.eup %127 }
  0xa3   :  { %v77_v31 = vsel %vm76_vm3, %v126_v20, %v73_v27  ;;  %v85_v32 = vmul.f32 %v128_v28, %v68_v21  ;;  %vm90_vm5 = vweird.f32 %v128_v28 }
  0xa4   :  { %v82_v33 = vsel %vm79_vm4, %v81_v29, %v77_v31  ;;  %vm91_vm7 = vmor %vm89_vm6, %vm90_vm5 }
  0xa5   :  { %v101_v35 = vmul.f32 %v99_v30, %v82_v33  ;;  %v86_v36 = vsub.f32 1.0, %v85_v32 }
  0xa7   :  { %v105_v38 = vadd.f32 %v103_v34, %v101_v35  ;;  %v87_v39 = vmul.f32 %v128_v28, %v86_v36 }
  0xa9   :  { %107 = vst [vmem:[%s198_s5] sm:$0xff] %v105_v38  ;;  %v88_v41 = vadd.f32 %v128_v28, %v87_v39 }
  0xab   :  { %v92_v44 = vsel %vm91_vm7, %v128_v28, %v88_v41 }
  0xac   :  { %v97_v45 = vsel %vm94_vm8, %v96_v42, %v92_v44 }
  0xad   :  { %v102_v47 = vmul.f32 %v100_v43, %v97_v45 }
  0xaf   :  { %v106_v48 = vadd.f32 %v104_v46, %v102_v47 }
  0xb1   :  { %108 = vst [vmem:[%s198_s5 + $0x8] sm:$0xff] %v106_v48 }

// kernel: enc_forward.201
= control target key start
LH: loop header
LB: loop body
LE: loop exit
PB: predicated region body
PF: predicated region fallthrough
CT: control target
= control target key end

     0   :  { %v90_v2 = vmov 0   ;;  %vm47_vm0 = vcmask 130048   ;;  %s141_s1 = inlined_call_operand.vmem [shape: f32[16,128], index: 1, kind: input, shape index: {}]   ;;  %s142_s0 = inlined_call_operand.vmem [shape: bf16[24,16], index: 0, kind: input, shape index: {}]   ;;  %s143_s2 = inlined_call_operand.vmem [shape: f32[24,1], index: 2, kind: input, shape index: {}]   ;;  %s144_s3 = inlined_call_operand.vmem [shape: f32[24,128], index: 3, kind: output, shape index: {}]  }
   0x1   :  { %v15_v0 = vld [vmem:[%s141_s1] sm:$0xff]  ;;  %v16_v1 = vld [vmem:[%s141_s1 + $0x8] sm:$0xff]  ;;  %88 = vset.pattern.permute.xlu0 %v90_v2  ;;  %89 = vset.pattern.permute.xlu1 %v90_v2  ;;  %v23_v8 = vld [vmem:[%s143_s2 + $0x10] sm:$0xff] }
   0x2   :  { %v17_v3 = vpack.c.bf16 %v16_v1, %v15_v0  ;;  %v20_v4 = vld [vmem:[%s142_s0 + $0x8] sm:$0xf]  ;;  %v21_v5 = vld [vmem:[%s143_s2] sm:$0xff]  ;;  %36 = vperm.xlu1 %89, %v23_v8  }
   0x3   :  { %v85_v6 = vld [vmem:[%s142_s0] sm:$0xff]  ;;  %v44_v7 = vunpack.c.l.b16 %v20_v4  ;;  %26 = vperm.xlu0 %88, %v21_v5   ;;  %v22_v10 = vld [vmem:[%s143_s2 + $0x8] sm:$0xff] }
   0x4   :  { %61 = vmatpush.bf16.msra.mxu0 %v17_v3  ;;  %86 = vmatpush.bf16.msra.mxu1 %v17_v3 }
   0x5   :  { %v46_v9 = vpack.c.b16 %v44_v7, %v44_v7 }
   0x7   :  { %83 = vmatmul.msk.bf16.vlgmr.msra.gmra.mxu0 %vm47_vm0, %v85_v6  ;;  %84 = vmatmul.msk.bf16.vlgmr.msra.gmra.mxu1 %vm47_vm0, %v46_v9 }
   0xb   :  { %31 = vperm.xlu0 %88, %v22_v10  }
  0x74   :  { %v37_v12 = vpop.permute.xlu1 %36 }
  0x75   :  { %v27_v11 = vpop.permute.xlu0 %26 }
  0x7d   :  { %v32_v17 = vpop.permute.xlu0 %31 }
  0x84   :  { %v63_v13 = vpop.f32.mrf.mxu0  ;;  %v68_v14 = vpop.f32.mrf.mxu1 }
  0x85   :  { %v64_v15 = vadd.f32 %v63_v13, %v27_v11  ;;  %v69_v16 = vadd.f32 %v68_v14, %v37_v12 }
  0x87   :  { %72 = vst [vmem:[%s144_s3] sm:$0xff] %v64_v15 }
  0x88   :  { %74 = vst [vmem:[%s144_s3 + $0x10] sm:$0xff] %v69_v16 }
  0x8c   :  { %v65_v18 = vpop.f32.mrf.mxu0  ;;  %v70_v19 = vpop.f32.mrf.mxu1 }
  0x8d   :  { %v66_v20 = vadd.f32 %v65_v18, %v32_v17 }
  0x8f   :  { %73 = vst [vmem:[%s144_s3 + $0x8] sm:$0xff] %v66_v20 }

// kernel: enc_forward.203
= control target key start
LH: loop header
LB: loop body
LE: loop exit
PB: predicated region body
PF: predicated region fallthrough
CT: control target
= control target key end

     0   :  { %vm43_vm0 = vcmask 1043456   ;;  %v79_v1 = vmov 0   ;;  %vm39_vm1 = vcmask 64512   ;;  %s129_s1 = inlined_call_operand.vmem [shape: f32[8,128], index: 1, kind: input, shape index: {}]   ;;  %s130_s2 = inlined_call_operand.vmem [shape: f32[16,1], index: 2, kind: input, shape index: {}]   ;;  %s131_s0 = inlined_call_operand.vmem [shape: bf16[16,8], index: 0, kind: input, shape index: {}]   ;;  %s132_s3 = inlined_call_operand.vmem [shape: f32[16,128], index: 3, kind: input, shape index: {}]   ;;  %s133_s4 = inlined_call_operand.vmem [shape: f32[16,128], index: 4, kind: output, shape index: {}]  }
   0x1   :  { %v18_v0 = vld [vmem:[%s129_s1] sm:$0xff]  ;;  %78 = vset.pattern.permute.xlu0 %v79_v1  ;;  %v23_v6 = vld [vmem:[%s130_s2 + $0x8] sm:$0xff] }
   0x2   :  { %v22_v2 = vld [vmem:[%s130_s2] sm:$0xff]  ;;  %v19_v3 = vpack.c.bf16 %v18_v0, %v18_v0  ;;  %v62_v14 = vld [vmem:[%s132_s3 + $0x8] sm:$0xff] }
   0x3   :  { %26 = vperm.xlu0 %78, %v22_v2   ;;  %v76_v5 = vld [vmem:[%s131_s0] sm:$0xff] }
   0x4   :  { %v45_v4 = vsel %vm43_vm0, %v19_v3, 0  ;;  %v61_v9 = vld [vmem:[%s132_s3] sm:$0xff] }
   0x5   :  { %54 = vmatpush.bf16.msra.mxu0 %v45_v4 }
   0x8   :  { %75 = vmatmul.msk.bf16.vlgmr.msra.gmra.mxu0 %vm39_vm1, %v76_v5 }
   0xb   :  { %31 = vperm.xlu0 %78, %v23_v6  }
  0x75   :  { %v27_v7 = vpop.permute.xlu0 %26 }
  0x7d   :  { %v32_v12 = vpop.permute.xlu0 %31 }
  0x85   :  { %v56_v8 = vpop.f32.mrf.mxu0 }
  0x86   :  { %v57_v10 = vadd.f32 %v56_v8, %v27_v7 }
  0x88   :  { %v63_v11 = vadd.f32 %v61_v9, %v57_v10 }
  0x8a   :  { %65 = vst [vmem:[%s133_s4] sm:$0xff] %v63_v11 }
  0x8d   :  { %v58_v13 = vpop.f32.mrf.mxu0 }
  0x8e   :  { %v59_v15 = vadd.f32 %v58_v13, %v32_v12 }
  0x90   :  { %v64_v16 = vadd.f32 %v62_v14, %v59_v15 }
  0x92   :  { %66 = vst [vmem:[%s133_s4 + $0x8] sm:$0xff] %v64_v16 }

// kernel: enc_forward.202
= control target key start
LH: loop header
LB: loop body
LE: loop exit
PB: predicated region body
PF: predicated region fallthrough
CT: control target
= control target key end

     0   :  { %s413_s12 = smov 0   ;;  %s441_s0 = inlined_call_operand.vmem [shape: f32[2,4,8], index: 0, kind: input, shape index: {}]   ;;  %s442_s1 = inlined_call_operand.vmem [shape: f32[2,8,4], index: 1, kind: input, shape index: {}]   ;;  %s443_s2 = inlined_call_operand.vmem [shape: f32[2,4,8], index: 2, kind: input, shape index: {}]   ;;  %s444_s3 = inlined_call_operand.vmem [shape: f32[2,4,8], index: 3, kind: output, shape index: {}]  }
   0x1 LB: > { %s359_s13 = sadd.s32 4294967295, %s391_s12   ;;  %p363_p0 = scmp.ge.s32.totalorder %s391_s12, 1  ;;  %s391_s12 = sphi %s413_s12, %s13_s12  }
   0x2   : > { %p154_p1 = scmp.lt.s32.totalorder %s391_s12, 3 }
   0x4   : > { %p155_p2 = pnand %p363_p0, %p154_p1 }
   0x5   : > { %p184_p3 = scmp.lt.s32.totalorder (!%p155_p2), %s359_s13, 1 }
   0x6   : > { %158 = sbr.rel (%p155_p2) target bundleno = 533 (0x215), region = 32 }
   0xb   : > { %s446_s13 = smov (!%p184_p3, %s359_s13), 1  ;;  %vm203_vm0 = vcmask 64512   ;;  %vm227_vm1 = vcmask 27648   ;;  %vm256_vm2 = vcmask 1043456   ;;  %vm252_vm7 = vcmask 31744  }
   0xc   : > { %s365_s14 = sshll.u32 %s446_s13, 3  ;;  %s421_s15 = sshll.u32 %s446_s13, 2  ;;  %vm280_vm8 = vcmask 60416  }
   0xd   : > { %s191_s18 = scalar_lea.vmem %s442_s1, %s365_s14  ;;  %s187_s21 = scalar_lea.vmem %s441_s0, %s421_s15 }
   0xe   : > { %v201_v0 = vld [vmem:[%s191_s18] sm:$0xff]  ;;  %s195_s24 = scalar_lea.vmem %s443_s2, %s421_s15  ;;  %s199_s27 = scalar_lea.vmem %s444_s3, %s421_s15 }
   0xf   : > { %v200_v1 = vld [vmem:[%s187_s21] sm:$0xf]  ;;  %222 = vmatpush.msra.mxu0 %v201_v0 }
  0x10   : > { %368 = vmatmul.msk.f32.vlgmr.msra.gmra.mxu0 %vm203_vm0, %v200_v1  ;;  %v202_v9 = vld [vmem:[%s195_s24] sm:$0xf] }
  0x11   : > { %369 = vmatpush.msk.msra.mxu1 %vm256_vm2, %v202_v9 }
  0x8d   : > { %v224_v2 = vpop.f32.mrf.mxu0 }
  0x8e   : > { %v228_v3 = vsel %vm227_vm1, %v224_v2, -inf }
  0x8f   : > { %229 = vmax.xlane.f32.xlu0 %v228_v3 }
 0x102   : > { %v230_v4 = vpop.xlane.xlu0 %229 }
 0x103   : > { %v231_v5 = vsub.f32 %v224_v2, %v230_v4 }
 0x105   : > { %v232_v6 = vmul.f32 1.442695, %v231_v5 }
 0x107   : > { %381 = vpow2.f32 %v232_v6 }
 0x10d   : > { %v382_v7 = vpop.eup %381 }
 0x10e   : > { %v234_v8 = vsel %vm227_vm1, %v382_v7, 0.0 }
 0x10f   : > { %235 = vadd.xlane.f32.xlu0 %v234_v8 }
 0x182   : > { %v236_v10 = vpop.xlane.xlu0 %235 }
 0x183   : > { %383 = vrcp.f32 %v236_v10  ;;  %v248_v14 = vand.u32 2147483648, %v236_v10  ;;  %v246_v16 = vand.u32 2147483647, %v236_v10  ;;  %vm242_vm4 = vweird.f32 %v236_v10 }
 0x185   : > { %v249_v18 = vor.u32 1.1754944e-38, %v248_v14  ;;  %vm247_vm6 = vcmp.eq.f32.partialorder %v246_v16, 8.507059e+37 }
 0x189   : > { %v384_v11 = vpop.eup %383 }
 0x18a   : > { %v238_v12 = vmul.f32 %v384_v11, %v236_v10  ;;  %vm243_vm3 = vweird.f32 %v384_v11 }
 0x18b   : > { %vm244_vm5 = vmor %vm242_vm4, %vm243_vm3 }
 0x18c   : > { %v239_v13 = vsub.f32 1.0, %v238_v12 }
 0x18e   : > { %v240_v15 = vmul.f32 %v384_v11, %v239_v13 }
 0x190   : > { %v241_v17 = vadd.f32 %v384_v11, %v240_v15 }
 0x192   : > { %v245_v19 = vsel %vm244_vm5, %v384_v11, %v241_v17 }
 0x193   : > { %v250_v20 = vsel %vm247_vm6, %v249_v18, %v245_v19 }
 0x194   : > { %v251_v21 = vmul.f32 %v382_v7, %v250_v20 }
 0x196   : > { %370 = vmatmul.msk.f32.vlgmr.msra.gmra.mxu1 %vm252_vm7, %v251_v21 }
 0x213   : > { %v277_v22 = vpop.f32.mrf.mxu1 }
 0x214   : > { %281 = vst.msk [vmem:[%s199_s27] sm:$0xf] %vm280_vm8, %v277_v22 }
 0x215 PF: > { %s13_s12 = sadd.s32 1, %s391_s12  }
 0x216   : > { %p10_p4 = scmp.ge.s32.totalorder %s13_s12, 4  }
 0x218   :  { %12 = sbr.rel (!%p10_p4) target bundleno = 1 (0x1), region = 68 }

// kernel: enc_forward.212
= control target key start
LH: loop header
LB: loop body
LE: loop exit
PB: predicated region body
PF: predicated region fallthrough
CT: control target
= control target key end

     0   :  { %v139_v2 = vmov 0   ;;  %vm46_vm0 = vcmask 130048   ;;  %s211_s1 = inlined_call_operand.vmem [shape: f32[16,128], index: 1, kind: input, shape index: {}]   ;;  %s212_s0 = inlined_call_operand.vmem [shape: bf16[16,16], index: 0, kind: input, shape index: {}]   ;;  %s213_s2 = inlined_call_operand.vmem [shape: f32[16,1], index: 2, kind: input, shape index: {}]   ;;  %s214_s5 = inlined_call_operand.vmem [shape: f32[1,128], index: 5, kind: input, shape index: {}]   ;;  %s215_s3 = inlined_call_operand.vmem [shape: f32[16,128], index: 3, kind: input, shape index: {}]   ;;  %s216_s4 = inlined_call_operand.vmem [shape: f32[16,128], index: 4, kind: input, shape index: {}]   ;;  %s217_s6 = inlined_call_operand.vmem [shape: f32[16,128], index: 6, kind: output, shape index: {}]  }
   0x1   :  { %v24_v0 = vld [vmem:[%s211_s1] sm:$0xff]  ;;  %v25_v1 = vld [vmem:[%s211_s1 + $0x8] sm:$0xff]  ;;  %129 = vset.pattern.permute.xlu0 %v139_v2 }
   0x2   :  { %v26_v3 = vpack.c.bf16 %v25_v1, %v24_v0  ;;  %v29_v4 = vld [vmem:[%s213_s2] sm:$0xff]  ;;  %v30_v6 = vld [vmem:[%s213_s2 + $0x8] sm:$0xff] }
   0x3   :  { %v127_v5 = vld [vmem:[%s212_s0] sm:$0xff]  ;;  %33 = vperm.xlu0 %129, %v29_v4   ;;  %v103_v45 = vld [vmem:[%s215_s3 + $0x8] sm:$0xff] }
   0x4   :  { %57 = vmatpush.bf16.msra.mxu0 %v26_v3  ;;  %v102_v30 = vld [vmem:[%s215_s3] sm:$0xff]  ;;  %v107_v48 = vld [vmem:[%s216_s4 + $0x8] sm:$0xff] }
   0x5   :  { %v106_v34 = vld [vmem:[%s216_s4] sm:$0xff] }
   0x6   :  { %v130_v36 = vld [vmem:[%s214_s5] ss:$0 sm:$0xff] }
   0x7   :  { %126 = vmatmul.msk.bf16.vlgmr.msra.gmra.mxu0 %vm46_vm0, %v127_v5 }
   0xb   :  { %38 = vperm.xlu0 %129, %v30_v6  }
  0x75   :  { %v34_v7 = vpop.permute.xlu0 %33 }
  0x7d   :  { %v39_v12 = vpop.permute.xlu0 %38 }
  0x84   :  { %v59_v8 = vpop.f32.mrf.mxu0 }
  0x85   :  { %v60_v9 = vadd.f32 %v59_v8, %v34_v7 }
  0x87   :  { %v64_v10 = vsub.f32 0.0, %v60_v9 }
  0x89   :  { %v66_v11 = vmul.f32 1.442695, %v64_v10 }
  0x8b   :  { %131 = vpow2.f32 %v66_v11 }
  0x8c   :  { %v61_v13 = vpop.f32.mrf.mxu0 }
  0x8d   :  { %v62_v14 = vadd.f32 %v61_v13, %v39_v12 }
  0x8f   :  { %v65_v15 = vsub.f32 0.0, %v62_v14 }
  0x91   :  { %v132_v16 = vpop.eup %131  ;;  %v68_v17 = vmul.f32 1.442695, %v65_v15 }
  0x92   :  { %v70_v18 = vadd.f32 1.0, %v132_v16 }
  0x93   :  { %133 = vpow2.f32 %v68_v17 }
  0x94   :  { %135 = vrcp.f32 %v70_v18  ;;  %v83_v24 = vand.u32 2147483648, %v70_v18  ;;  %v81_v26 = vand.u32 2147483647, %v70_v18  ;;  %vm77_vm2 = vweird.f32 %v70_v18 }
  0x96   :  { %v84_v29 = vor.u32 1.1754944e-38, %v83_v24  ;;  %vm82_vm4 = vcmp.eq.f32.partialorder %v81_v26, 8.507059e+37 }
  0x99   :  { %v134_v19 = vpop.eup %133 }
  0x9a   :  { %v136_v20 = vpop.eup %135  ;;  %v71_v21 = vadd.f32 1.0, %v134_v19 }
  0x9b   :  { %v73_v22 = vmul.f32 %v136_v20, %v70_v18  ;;  %vm78_vm1 = vweird.f32 %v136_v20 }
  0x9c   :  { %137 = vrcp.f32 %v71_v21  ;;  %vm79_vm3 = vmor %vm77_vm2, %vm78_vm1  ;;  %v98_v38 = vand.u32 2147483648, %v71_v21  ;;  %v96_v41 = vand.u32 2147483647, %v71_v21  ;;  %vm92_vm6 = vweird.f32 %v71_v21 }
  0x9d   :  { %v74_v23 = vsub.f32 1.0, %v73_v22 }
  0x9e   :  { %v99_v44 = vor.u32 1.1754944e-38, %v98_v38  ;;  %vm97_vm8 = vcmp.eq.f32.partialorder %v96_v41, 8.507059e+37 }
  0x9f   :  { %v75_v25 = vmul.f32 %v136_v20, %v74_v23 }
  0xa1   :  { %v76_v27 = vadd.f32 %v136_v20, %v75_v25 }
  0xa2   :  { %v138_v28 = vpop.eup %137 }
  0xa3   :  { %v80_v31 = vsel %vm79_vm3, %v136_v20, %v76_v27  ;;  %v88_v32 = vmul.f32 %v138_v28, %v71_v21  ;;  %vm93_vm5 = vweird.f32 %v138_v28 }
  0xa4   :  { %v85_v33 = vsel %vm82_vm4, %v84_v29, %v80_v31  ;;  %vm94_vm7 = vmor %vm92_vm6, %vm93_vm5 }
  0xa5   :  { %v104_v35 = vmul.f32 %v102_v30, %v85_v33  ;;  %v89_v37 = vsub.f32 1.0, %v88_v32 }
  0xa7   :  { %v108_v39 = vadd.f32 %v106_v34, %v104_v35  ;;  %v90_v40 = vmul.f32 %v138_v28, %v89_v37 }
  0xa9   :  { %v114_v42 = vmul.f32 %v130_v36, %v108_v39  ;;  %v91_v43 = vadd.f32 %v138_v28, %v90_v40 }
  0xab   :  { %116 = vst [vmem:[%s217_s6] sm:$0xff] %v114_v42  ;;  %v95_v46 = vsel %vm94_vm7, %v138_v28, %v91_v43 }
  0xac   :  { %v100_v47 = vsel %vm97_vm8, %v99_v44, %v95_v46 }
  0xad   :  { %v105_v49 = vmul.f32 %v103_v45, %v100_v47 }
  0xaf   :  { %v109_v50 = vadd.f32 %v107_v48, %v105_v49 }
  0xb1   :  { %v115_v51 = vmul.f32 %v130_v36, %v109_v50 }
  0xb3   :  { %117 = vst [vmem:[%s217_s6 + $0x8] sm:$0xff] %v115_v51 }

// kernel: enc_forward.239
= control target key start
LH: loop header
LB: loop body
LE: loop exit
PB: predicated region body
PF: predicated region fallthrough
CT: control target
= control target key end

     0   :  { %v206_v4 = vmov 0   ;;  %vm110_vm0 = vcmask 130048   ;;  %s278_s1 = inlined_call_operand.vmem [shape: bf16[144,128], index: 1, kind: input, shape index: {}]   ;;  %s279_s0 = inlined_call_operand.vmem [shape: bf16[16,144], index: 0, kind: input, shape index: {}]   ;;  %s280_s2 = inlined_call_operand.vmem [shape: f32[16,1], index: 2, kind: input, shape index: {}]   ;;  %s281_s3 = inlined_call_operand.vmem [shape: f32[16,128], index: 3, kind: output, shape index: {}]  }
   0x1   :  { %v200_v0 = vld [vmem:[%s278_s1 + $0x38] sm:$0xff]  ;;  %v199_v1 = vld [vmem:[%s278_s1 + $0x30] sm:$0xff]  ;;  %v201_v2 = vld [vmem:[%s278_s1 + $0x40] sm:$0xff]  ;;  %205 = vset.pattern.permute.xlu0 %v206_v4 }
   0x2   :  { %114 = vmatpush.bf16.msra.mxu0 %v200_v0  ;;  %v202_v3 = vld [vmem:[%s279_s0 + $0x4] sm:$0xf]  ;;  %v152_v5 = vld [vmem:[%s279_s0 + $0x8] sm:$0xf0]  ;;  %135 = vmatpush.bf16.msra.mxu1 %v201_v2  ;;  %v196_v11 = vld [vmem:[%s278_s1 + $0x18] sm:$0xff] }
   0x3   :  { %v155_v6 = vor.u32 %v202_v3, %v152_v5  ;;  %v35_v7 = vld [vmem:[%s280_s2] sm:$0xff]  ;;  %v198_v8 = vld [vmem:[%s278_s1 + $0x28] sm:$0xff]  ;;  %v195_v12 = vld [vmem:[%s278_s1 + $0x10] sm:$0xff] }
   0x4   :  { %39 = vperm.xlu0 %205, %v35_v7   ;;  %v197_v9 = vld [vmem:[%s278_s1 + $0x20] sm:$0xff]  ;;  %v36_v10 = vld [vmem:[%s280_s2 + $0x8] sm:$0xff] }
   0x5   :  { %192 = vmatmul.msk.bf16.vlgmr.msra.gmra.mxu1 %vm110_vm0, %v155_v6  ;;  %v194_v13 = vld [vmem:[%s278_s1 + $0x8] sm:$0xff]  ;;  %v193_v14 = vld [vmem:[%s278_s1] sm:$0xff] }
   0x6   :  { %115 = vmatpush.bf16.msra.mxu0 %v199_v1  ;;  %v150_v15 = vld [vmem:[%s279_s0] sm:$0xf]  ;;  %v203_v16 = vld [vmem:[%s279_s0 + $0x4] sm:$0xf0] }
   0x7   :  { %v151_v17 = vor.u32 %v203_v16, %v150_v15 }
   0xa   :  { %116 = vmatpush.bf16.msra.mxu0 %v198_v8 }
   0xc   :  { %44 = vperm.xlu0 %205, %v36_v10  }
   0xe   :  { %117 = vmatpush.bf16.msra.mxu0 %v197_v9 }
  0x12   :  { %118 = vmatpush.bf16.msra.mxu0 %v196_v11 }
  0x16   :  { %119 = vmatpush.bf16.msra.mxu0 %v195_v12 }
  0x1a   :  { %120 = vmatpush.bf16.msra.mxu0 %v194_v13 }
  0x1e   :  { %121 = vmatpush.bf16.msra.mxu0 %v193_v14 }
  0x21   :  { %122 = vmatmul.bf16.vlgmr.msra.gmra.mxu0 %v151_v17 }
  0x76   :  { %v40_v18 = vpop.permute.xlu0 %39 }
  0x7e   :  { %v45_v23 = vpop.permute.xlu0 %44 }
  0x82   :  { %v137_v19 = vpop.f32.mrf.mxu1 }
  0x8a   :  { %v139_v26 = vpop.f32.mrf.mxu1 }
  0x9e   :  { %v123_v20 = vpop.f32.mrf.mxu0 }
  0x9f   :  { %v124_v21 = vadd.f32 %v123_v20, %v40_v18 }
  0xa1   :  { %v138_v22 = vadd.f32 %v137_v19, %v124_v21 }
  0xa3   :  { %142 = vst [vmem:[%s281_s3] sm:$0xff] %v138_v22 }
  0xa6   :  { %v125_v24 = vpop.f32.mrf.mxu0 }
  0xa7   :  { %v126_v25 = vadd.f32 %v125_v24, %v45_v23 }
  0xa9   :  { %v140_v27 = vadd.f32 %v139_v26, %v126_v25 }
  0xab   :  { %143 = vst [vmem:[%s281_s3 + $0x8] sm:$0xff] %v140_v27 }

// kernel: enc_forward.231
= control target key start
LH: loop header
LB: loop body
LE: loop exit
PB: predicated region body
PF: predicated region fallthrough
CT: control target
= control target key end

     0   :  { %s384_s12 = smov 0   ;;  %s413_s0 = inlined_call_operand.vmem [shape: f32[2,1,8], index: 0, kind: input, shape index: {}]   ;;  %s414_s1 = inlined_call_operand.vmem [shape: f32[2,8,1], index: 1, kind: input, shape index: {}]   ;;  %s415_s2 = inlined_call_operand.vmem [shape: f32[2,1,8], index: 2, kind: input, shape index: {}]   ;;  %s416_s3 = inlined_call_operand.vmem [shape: f32[2,1,8], index: 3, kind: output, shape index: {}]  }
   0x1 LB: > { %s333_s13 = sadd.s32 4294967295, %s362_s12   ;;  %p337_p0 = scmp.ge.s32.totalorder %s362_s12, 1  ;;  %s362_s12 = sphi %s384_s12, %s13_s12  }
   0x2   : > { %p152_p1 = scmp.lt.s32.totalorder %s362_s12, 3 }
   0x4   : > { %p153_p2 = pnand %p337_p0, %p152_p1 }
   0x5   : > { %p179_p3 = scmp.lt.s32.totalorder (!%p153_p2), %s333_s13, 1 }
   0x6   : > { %156 = sbr.rel (%p153_p2) target bundleno = 299 (0x12b), region = 32 }
   0xb   : > { %s418_s13 = smov (!%p179_p3, %s333_s13), 1  ;;  %vm195_vm0 = vcmask 64512   ;;  %vm242_vm1 = vcmask 1040384   ;;  %vm238_vm6 = vcmask 7168   ;;  %vm266_vm7 = vcmask 57344  }
   0xc   : > { %s338_s14 = sshll.u32 %s418_s13, 3  ;;  %s181_s17 = scalar_lea.vmem %s413_s0, %s418_s13 }
   0xd   : > { %s185_s20 = scalar_lea.vmem %s414_s1, %s338_s14  ;;  %v192_v0 = vld [vmem:[%s181_s17] sm:$0x1]  ;;  %s188_s23 = scalar_lea.vmem %s415_s2, %s418_s13 }
   0xe   : > { %v193_v1 = vld [vmem:[%s185_s20] sm:$0xff]  ;;  %s191_s26 = scalar_lea.vmem %s416_s3, %s418_s13 }
   0xf   : > { %214 = vmatpush.msra.mxu0 %v193_v1  ;;  %v194_v2 = vld [vmem:[%s188_s23] sm:$0x1] }
  0x10   : > { %339 = vmatmul.msk.f32.vlgmr.msra.gmra.mxu0 %vm195_vm0, %v192_v0  ;;  %340 = vmatpush.msk.msra.mxu1 %vm242_vm1, %v194_v2 }
  0x8d   : > { %v216_v3 = vpop.f32.mrf.mxu0 }
  0x8e   : > { %v219_v4 = vsub.f32 %v216_v3, %v216_v3 }
  0x90   : > { %v220_v5 = vmul.f32 1.442695, %v219_v4 }
  0x92   : > { %352 = vpow2.f32 %v220_v5 }
  0x98   : > { %v353_v6 = vpop.eup %352 }
  0x99   : > { %354 = vrcp.f32 %v353_v6  ;;  %v234_v10 = vand.u32 2147483648, %v353_v6  ;;  %v232_v12 = vand.u32 2147483647, %v353_v6  ;;  %vm228_vm3 = vweird.f32 %v353_v6 }
  0x9b   : > { %v235_v14 = vor.u32 1.1754944e-38, %v234_v10  ;;  %vm233_vm5 = vcmp.eq.f32.partialorder %v232_v12, 8.507059e+37 }
  0x9f   : > { %v355_v7 = vpop.eup %354 }
  0xa0   : > { %v224_v8 = vmul.f32 %v355_v7, %v353_v6  ;;  %vm229_vm2 = vweird.f32 %v355_v7 }
  0xa1   : > { %vm230_vm4 = vmor %vm228_vm3, %vm229_vm2 }
  0xa2   : > { %v225_v9 = vsub.f32 1.0, %v224_v8 }
  0xa4   : > { %v226_v11 = vmul.f32 %v355_v7, %v225_v9 }
  0xa6   : > { %v227_v13 = vadd.f32 %v355_v7, %v226_v11 }
  0xa8   : > { %v231_v15 = vsel %vm230_vm4, %v355_v7, %v227_v13 }
  0xa9   : > { %v236_v16 = vsel %vm233_vm5, %v235_v14, %v231_v15 }
  0xaa   : > { %v237_v17 = vmul.f32 %v353_v6, %v236_v16 }
  0xac   : > { %341 = vmatmul.msk.f32.vlgmr.msra.gmra.mxu1 %vm238_vm6, %v237_v17 }
 0x129   : > { %v263_v18 = vpop.f32.mrf.mxu1 }
 0x12a   : > { %267 = vst.msk [vmem:[%s191_s26] sm:$0x1] %vm266_vm7, %v263_v18 }
 0x12b PF: > { %s13_s12 = sadd.s32 1, %s362_s12  }
 0x12c   : > { %p10_p4 = scmp.ge.s32.totalorder %s13_s12, 4  }
 0x12e   :  { %12 = sbr.rel (!%p10_p4) target bundleno = 1 (0x1), region = 68 }

// kernel: enc_forward.237
= control target key start
LH: loop header
LB: loop body
LE: loop exit
PB: predicated region body
PF: predicated region fallthrough
CT: control target
= control target key end

     0   :  { %10 = vsyncpa [#allocation3], 0  ;;  %s175_s21 = smov [#allocation2]   ;;  %s176_s23 = smov 64   ;;  %s242_s0 = inlined_call_operand.hbm [shape: bf16[16,16], index: 0, kind: input, shape index: {}]   ;;  %s243_s1 = inlined_call_operand.vmem [shape: f32[16,128], index: 1, kind: input, shape index: {}]   ;;  %s244_s2 = inlined_call_operand.vmem [shape: f32[16,1], index: 2, kind: input, shape index: {}]   ;;  %s245_s3 = inlined_call_operand.vmem [shape: f32[16,128], index: 3, kind: input, shape index: {}]   ;;  %s246_s4 = inlined_call_operand.vmem [shape: f32[16,128], index: 4, kind: input, shape index: {}]   ;;  %s247_s5 = inlined_call_operand.vmem [shape: f32[16,128], index: 5, kind: output, shape index: {}]  }
   0x1   :  { %s15_s20 = sshll.u32 %s242_s0, 4  ;;  %s17_s22 = sshll.u32 %s175_s21, 4  ;;  %s16_s20 = int_to_ptr.hbm [resolvable:$true] %s15_s20  ;;  %s18_s22 = int_to_ptr.vmem [resolvable:$true] %s17_s22 }
   0x2   :  { %s177_s24 = smov 4  }
   0x3   :  { %23 = dma.hbm_to_vmem [thread:$0]  %s16_s20, 128, %s18_s22, [#allocation3], %s176_s23, %s176_s23, %s177_s24  }
   0x4   :  { %173 = dma.done.wait [#allocation3], 128  }
   0x5   :  { %174 = vsyncadd [#allocation3], 4294967168  ;;  %v178_v0 = vmov 0   ;;  %v37_v1 = vld [vmem:[%s243_s1] sm:$0xff]  ;;  %v38_v2 = vld [vmem:[%s243_s1 + $0x8] sm:$0xff]  ;;  %vm59_vm0 = vcmask 130048  }
   0x6   :  { %140 = vset.pattern.permute.xlu0 %v178_v0  ;;  %v39_v3 = vpack.c.bf16 %v38_v2, %v37_v1  ;;  %v42_v4 = vld [vmem:[%s244_s2] sm:$0xff]  ;;  %v43_v6 = vld [vmem:[%s244_s2 + $0x8] sm:$0xff] }
   0x7   :  { %v135_v5 = vld [vmem:[#allocation2] sm:$0xff]  ;;  %46 = vperm.xlu0 %140, %v42_v4   ;;  %v116_v43 = vld [vmem:[%s245_s3 + $0x8] sm:$0xff] }
   0x8   :  { %70 = vmatpush.bf16.msra.mxu0 %v39_v3  ;;  %v115_v30 = vld [vmem:[%s245_s3] sm:$0xff]  ;;  %v120_v46 = vld [vmem:[%s246_s4 + $0x8] sm:$0xff] }
   0x9   :  { %v119_v34 = vld [vmem:[%s246_s4] sm:$0xff] }
   0xb   :  { %134 = vmatmul.msk.bf16.vlgmr.msra.gmra.mxu0 %vm59_vm0, %v135_v5 }
   0xf   :  { %51 = vperm.xlu0 %140, %v43_v6  }
  0x79   :  { %v47_v7 = vpop.permute.xlu0 %46 }
  0x81   :  { %v52_v12 = vpop.permute.xlu0 %51 }
  0x88   :  { %v72_v8 = vpop.f32.mrf.mxu0 }
  0x89   :  { %v73_v9 = vadd.f32 %v72_v8, %v47_v7 }
  0x8b   :  { %v77_v10 = vsub.f32 0.0, %v73_v9 }
  0x8d   :  { %v79_v11 = vmul.f32 1.442695, %v77_v10 }
  0x8f   :  { %141 = vpow2.f32 %v79_v11 }
  0x90   :  { %v74_v13 = vpop.f32.mrf.mxu0 }
  0x91   :  { %v75_v14 = vadd.f32 %v74_v13, %v52_v12 }
  0x93   :  { %v78_v15 = vsub.f32 0.0, %v75_v14 }
  0x95   :  { %v142_v16 = vpop.eup %141  ;;  %v81_v17 = vmul.f32 1.442695, %v78_v15 }
  0x96   :  { %v83_v18 = vadd.f32 1.0, %v142_v16 }
  0x97   :  { %143 = vpow2.f32 %v81_v17 }
  0x98   :  { %145 = vrcp.f32 %v83_v18  ;;  %v96_v24 = vand.u32 2147483648, %v83_v18  ;;  %v94_v26 = vand.u32 2147483647, %v83_v18  ;;  %vm90_vm2 = vweird.f32 %v83_v18 }
  0x9a   :  { %v97_v29 = vor.u32 1.1754944e-38, %v96_v24  ;;  %vm95_vm4 = vcmp.eq.f32.partialorder %v94_v26, 8.507059e+37 }
  0x9d   :  { %v144_v19 = vpop.eup %143 }
  0x9e   :  { %v146_v20 = vpop.eup %145  ;;  %v84_v21 = vadd.f32 1.0, %v144_v19 }
  0x9f   :  { %v86_v22 = vmul.f32 %v146_v20, %v83_v18  ;;  %vm91_vm1 = vweird.f32 %v146_v20 }
  0xa0   :  { %147 = vrcp.f32 %v84_v21  ;;  %vm92_vm3 = vmor %vm90_vm2, %vm91_vm1  ;;  %v111_v37 = vand.u32 2147483648, %v84_v21  ;;  %v109_v40 = vand.u32 2147483647, %v84_v21  ;;  %vm105_vm6 = vweird.f32 %v84_v21 }
  0xa1   :  { %v87_v23 = vsub.f32 1.0, %v86_v22 }
  0xa2   :  { %v112_v42 = vor.u32 1.1754944e-38, %v111_v37  ;;  %vm110_vm8 = vcmp.eq.f32.partialorder %v109_v40, 8.507059e+37 }
  0xa3   :  { %v88_v25 = vmul.f32 %v146_v20, %v87_v23 }
  0xa5   :  { %v89_v27 = vadd.f32 %v146_v20, %v88_v25 }
  0xa6   :  { %v148_v28 = vpop.eup %147 }
  0xa7   :  { %v93_v31 = vsel %vm92_vm3, %v146_v20, %v89_v27  ;;  %v101_v32 = vmul.f32 %v148_v28, %v84_v21  ;;  %vm106_vm5 = vweird.f32 %v148_v28 }
  0xa8   :  { %v98_v33 = vsel %vm95_vm4, %v97_v29, %v93_v31  ;;  %vm107_vm7 = vmor %vm105_vm6, %vm106_vm5 }
  0xa9   :  { %v117_v35 = vmul.f32 %v115_v30, %v98_v33  ;;  %v102_v36 = vsub.f32 1.0, %v101_v32 }
  0xab   :  { %v121_v38 = vadd.f32 %v119_v34, %v117_v35  ;;  %v103_v39 = vmul.f32 %v148_v28, %v102_v36 }
  0xad   :  { %123 = vst [vmem:[%s247_s5] sm:$0xff] %v121_v38  ;;  %v104_v41 = vadd.f32 %v148_v28, %v103_v39 }
  0xaf   :  { %v108_v44 = vsel %vm107_vm7, %v148_v28, %v104_v41 }
  0xb0   :  { %v113_v45 = vsel %vm110_vm8, %v112_v42, %v108_v44 }
  0xb1   :  { %v118_v47 = vmul.f32 %v116_v43, %v113_v45 }
  0xb3   :  { %v122_v48 = vadd.f32 %v120_v46, %v118_v47 }
  0xb5   :  { %124 = vst [vmem:[%s247_s5 + $0x8] sm:$0xff] %v122_v48 }
  0xb6   :  { %129 = vsyncpa [#allocation3], 1 }

</bundles_post_ra>
